<compile_context>
chip_gen: v7x
topology: tpu7x:2x2x1
jax: 0.10.0
libtpu: 0.0.40
codegen_flags: <defaults>
</compile_context>

<pallas_src>
import jax
import jax.numpy as jnp
from jax.experimental import pallas as pl
from jax.experimental.pallas import tpu as pltpu


def _round_up(x, m):
    return (x + m - 1) // m * m


def _pick_time_chunk(seq_len, max_chunk=16):
    # largest divisor of seq_len that is <= max_chunk (avoids ragged last chunk)
    t = min(seq_len, max_chunk)
    while seq_len % t != 0:
        t -= 1
    return t


def _sigmoid(x):
    # sigmoid(x) = 0.5*(1 + tanh(x/2)): keeps all gate nonlinearities on the
    # same EUP op type (tanh); mathematically identical to jax.nn.sigmoid.
    return 0.5 * (jnp.tanh(0.5 * x) + 1.0)


def _make_decoder_kernel(n_layers, time_chunk, hidden_pad, emb_pad):
    L, T, Hp, Ep = n_layers, time_chunk, hidden_pad, emb_pad
    in_pads = [Ep] + [Hp] * (L - 1)

    def kernel(*refs):
        # ---- unpack refs (inputs, outputs, scratch) ----
        emb_ref = refs[0]                             # (T, Bp, Ep) current chunk
        h0_ref = refs[1]                              # (L, Bp, Hp)
        c0_ref = refs[2]                              # (L, Bp, Hp)
        w_refs = [refs[3 + 2 * l] for l in range(L)]  # (in_pad+Hp, 4Hp)
        b_refs = [refs[4 + 2 * l] for l in range(L)]  # (1, 4Hp)
        w_out_ref = refs[3 + 2 * L]                   # (Hp, Cp)
        b_out_ref = refs[4 + 2 * L]                   # (1, Cp), pad classes=-1e30
        o = 5 + 2 * L
        logp_ref = refs[o + 0]                        # (T*Bp, Cp) chunk of logp
        sym_ref = refs[o + 1]                         # (S, Bp)   int32 symbols
        h_out_ref = refs[o + 2]                       # (L, Bp, Hp)
        c_out_ref = refs[o + 3]                       # (L, Bp, Hp)
        s = o + 4
        xh_refs = [refs[s + l] for l in range(L)]     # (Bp, in_pad+Hp) f32
        c_scr = refs[s + L]                           # (L, Bp, Hp) f32
        hseq_scr = refs[s + L + 1]                    # (T, Bp, Hp) f32

        Bp = emb_ref.shape[1]
        Cp = b_out_ref.shape[1]
        ci = pl.program_id(0)

        # ---- initialize recurrent state from the encoder hidden (chunk 0) ----
        @pl.when(ci == 0)
        def _init():
            for l in range(L):
                ip = in_pads[l]
                xh_refs[l][:, :ip] = jnp.zeros((Bp, ip), jnp.float32)
                xh_refs[l][:, ip:ip + Hp] = h0_ref[l]
            c_scr[...] = c0_ref[...]

        # ---- time recurrence over this chunk (fully unrolled) ----
        def step(t, carry):
            x = emb_ref[t].astype(jnp.float32)        # input_dropout = identity
            for l in range(L):
                ip = in_pads[l]
                w = w_refs[l]
                # persistent xh scratch: the h-half already holds h_{t-1};
                # only the x-half is rewritten (no per-step concat temp).
                xh_refs[l][:, :ip] = x
                xh = xh_refs[l][...]                  # (Bp, ip+Hp)
                gates = (jnp.dot(xh.astype(w.dtype), w[...],
                                 preferred_element_type=jnp.float32)
                         + b_refs[l][...])
                # PyTorch gate order (i, f, g, o); lane-aligned Hp-wide slabs
                i_g = _sigmoid(gates[:, 0 * Hp:1 * Hp])
                f_g = _sigmoid(gates[:, 1 * Hp:2 * Hp])
                g_g = jnp.tanh(gates[:, 2 * Hp:3 * Hp])
                o_g = _sigmoid(gates[:, 3 * Hp:4 * Hp])
                c_new = f_g * c_scr[l] + i_g * g_g
                h_new = o_g * jnp.tanh(c_new)
                c_scr[l] = c_new
                xh_refs[l][:, ip:ip + Hp] = h_new     # h state for step t+1
                x = h_new                             # inter-layer dropout = id
            hseq_scr[t] = x                           # top-layer h for step t
            return carry

        jax.lax.fori_loop(0, T, step, 0, unroll=True)

        # ---- chunk epilogue: projection + log_softmax + fused argmax decode ----
        h_all = hseq_scr[...].reshape(T * Bp, Hp)
        logits = (jnp.dot(h_all.astype(w_out_ref.dtype), w_out_ref[...],
                          preferred_element_type=jnp.float32) + b_out_ref[...])
        m = jnp.max(logits, axis=-1, keepdims=True)
        z = logits - m
        lse = jnp.log(jnp.sum(jnp.exp(z), axis=-1, keepdims=True))
        logp_ref[...] = z - lse

        # argmax (first max index, like torch.topk(1)) while logits are in VMEM
        logits3 = logits.reshape(T, Bp, Cp)
        mx3 = m.reshape(T, Bp, 1)
        idx = jax.lax.broadcasted_iota(jnp.int32, logits3.shape, 2)
        sym = jnp.min(jnp.where(logits3 == mx3, idx, jnp.int32(Cp)), axis=-1)
        row0 = pl.multiple_of(ci * T, T)
        sym_ref[pl.ds(row0, T), :] = sym.astype(jnp.int32)

        # final hidden state (last chunk's write is the one that survives)
        for l in range(L):
            ip = in_pads[l]
            h_out_ref[l] = xh_refs[l][:, ip:ip + Hp]
        c_out_ref[...] = c_scr[...]

    return kernel


def dns_decoder_forward(tokens, encoder_hidden, params, sos_id,
                        param_dtype=jnp.float32, max_time_chunk=16):
    """Teacher-forcing forward pass of DNSdecoder.

    tokens:          (B, S)   int32 target tokens
    encoder_hidden:  (h0, c0) each (n_layers, B, H) float32
    Returns (logp[S, B, C], (h_final, c_final), symbols[S, B, 1]).
    """
    h0, c0 = encoder_hidden
    L, B, H = h0.shape
    S = tokens.shape[1]
    C = params["out_w"].shape[0]
    E = params["embedding"].shape[1]
    f32 = jnp.float32

    # padded sizes: sublane-dense batch, lane-dense feature dims
    Bp = _round_up(B, 8)
    Ep = _round_up(E, 128)
    Hp = _round_up(H, 128)
    Cp = _round_up(C, 128)
    T = _pick_time_chunk(S, max_time_chunk)
    n_chunks = S // T

    # teacher forcing: prepend SOS, drop last input token
    sos = jnp.full((B, 1), sos_id, dtype=tokens.dtype)
    dec_in = jnp.concatenate([sos, tokens], axis=1)[:, :-1]            # (B, S)

    # embedding gather directly in time-major order (only token ids transposed)
    emb = jnp.take(params["embedding"], dec_in.T, axis=0)              # (S,B,E)
    emb_p = jnp.zeros((S, Bp, Ep), param_dtype).at[:, :B, :E].set(
        emb.astype(param_dtype))

    h0_p = jnp.zeros((L, Bp, Hp), f32).at[:, :B, :H].set(h0.astype(f32))
    c0_p = jnp.zeros((L, Bp, Hp), f32).at[:, :B, :H].set(c0.astype(f32))

    operands = [emb_p, h0_p, c0_p]
    in_specs = [
        pl.BlockSpec((T, Bp, Ep), lambda ci: (ci, 0, 0)),   # per-chunk DMA
        pl.BlockSpec((L, Bp, Hp), lambda ci: (0, 0, 0)),
        pl.BlockSpec((L, Bp, Hp), lambda ci: (0, 0, 0)),
    ]

    # fused, lane-aligned per-layer gate weights:
    #   rows [0:in_dim] -> w_ih.T; rows [in_pad:in_pad+H] -> w_hh.T
    #   cols: gate g in lanes [g*Hp : g*Hp+H], rest zero (bias pad = 0)
    for l in range(L):
        in_dim = E if l == 0 else H
        in_pad = Ep if l == 0 else Hp
        w_ihT = params[f"w_ih_{l}"].T.astype(f32)                      # (in_dim,4H)
        w_hhT = params[f"w_hh_{l}"].T.astype(f32)                      # (H,4H)
        bias = (params[f"b_ih_{l}"] + params[f"b_hh_{l}"]).astype(f32)
        W = jnp.zeros((in_pad + Hp, 4 * Hp), f32)
        bvec = jnp.zeros((1, 4 * Hp), f32)
        for g in range(4):
            W = W.at[:in_dim, g * Hp:g * Hp + H].set(w_ihT[:, g * H:(g + 1) * H])
            W = W.at[in_pad:in_pad + H, g * Hp:g * Hp + H].set(
                w_hhT[:, g * H:(g + 1) * H])
            bvec = bvec.at[0, g * Hp:g * Hp + H].set(bias[g * H:(g + 1) * H])
        operands += [W.astype(param_dtype), bvec]
        in_specs += [
            pl.BlockSpec((in_pad + Hp, 4 * Hp), lambda ci: (0, 0)),
            pl.BlockSpec((1, 4 * Hp), lambda ci: (0, 0)),
        ]

    # output projection; pad classes biased to -1e30 so they never win the
    # max / logsumexp / argmax (bias kept f32)
    w_out_p = jnp.zeros((Hp, Cp), f32).at[:H, :C].set(
        params["out_w"].T.astype(f32)).astype(param_dtype)
    b_out_p = jnp.full((1, Cp), -1e30, f32).at[0, :C].set(
        params["out_b"].astype(f32))
    operands += [w_out_p, b_out_p]
    in_specs += [
        pl.BlockSpec((Hp, Cp), lambda ci: (0, 0)),
        pl.BlockSpec((1, Cp), lambda ci: (0, 0)),
    ]

    out_shape = (
        jax.ShapeDtypeStruct((S * Bp, Cp), f32),      # log-probs (lane-dense)
        jax.ShapeDtypeStruct((S, Bp), jnp.int32),     # fused argmax symbols
        jax.ShapeDtypeStruct((L, Bp, Hp), f32),       # final h
        jax.ShapeDtypeStruct((L, Bp, Hp), f32),       # final c
    )
    out_specs = [
        pl.BlockSpec((T * Bp, Cp), lambda ci: (ci, 0)),
        pl.BlockSpec((S, Bp), lambda ci: (0, 0)),
        pl.BlockSpec((L, Bp, Hp), lambda ci: (0, 0, 0)),
        pl.BlockSpec((L, Bp, Hp), lambda ci: (0, 0, 0)),
    ]
    scratch_shapes = (
        [pltpu.VMEM((Bp, (Ep if l == 0 else Hp) + Hp), f32) for l in range(L)]
        + [pltpu.VMEM((L, Bp, Hp), f32),              # c state
           pltpu.VMEM((T, Bp, Hp), f32)]              # per-chunk top-layer h
    )

    # VMEM budget from actual operand/block/scratch sizes (x2 double-buffering)
    psz = jnp.dtype(param_dtype).itemsize
    vmem = 2 * T * Bp * Ep * psz                      # emb chunk
    vmem += 2 * 2 * L * Bp * Hp * 4                   # h0, c0
    for l in range(L):
        ip = Ep if l == 0 else Hp
        vmem += 2 * ((ip + Hp) * 4 * Hp * psz + 4 * Hp * 4)
    vmem += 2 * (Hp * Cp * psz + Cp * 4)              # w_out, b_out
    vmem += 2 * T * Bp * Cp * 4                       # logp chunk
    vmem += 2 * S * Bp * 4                            # symbols
    vmem += 2 * 2 * L * Bp * Hp * 4                   # h_out, c_out
    for l in range(L):
        ip = Ep if l == 0 else Hp
        vmem += Bp * (ip + Hp) * 4                    # xh scratch
    vmem += (L + T) * Bp * Hp * 4                     # c_scr + hseq_scr
    # TODO(synk): on v7x (64 MiB physical VMEM) shrink max_time_chunk rather
    #             than relying on a higher limit.
    vmem_limit = min(max(int(vmem * 1.5) + (4 << 20), 32 << 20), 100 << 20)

    grid_spec = pltpu.PrefetchScalarGridSpec(
        num_scalar_prefetch=0, grid=(n_chunks,),
        in_specs=in_specs, out_specs=out_specs, scratch_shapes=scratch_shapes)

    logp_p, sym_p, h_fp, c_fp = pl.pallas_call(
        _make_decoder_kernel(L, T, Hp, Ep),
        out_shape=out_shape,
        grid_spec=grid_spec,
        compiler_params=pltpu.CompilerParams(
            dimension_semantics=("arbitrary",),       # serial time recurrence
            vmem_limit_bytes=vmem_limit),
    )(*operands)

    logp = logp_p.reshape(S, Bp, Cp)[:, :B, :C]                        # (S,B,C)
    symbols = sym_p[:, :B][..., None]                                  # (S,B,1)
    h_f = h_fp[:, :B, :H]
    c_f = c_fp[:, :B, :H]
    return logp, (h_f, c_f), symbols


# ---------------- pure-JAX reference for verification ----------------
def _reference_forward(tokens, encoder_hidden, params, sos_id):
    h0, c0 = encoder_hidden
    n_layers, B, H = h0.shape
    sos = jnp.full((B, 1), sos_id, dtype=tokens.dtype)
    dec_in = jnp.concatenate([sos, tokens], axis=1)[:, :-1]
    emb = jnp.take(params["embedding"], dec_in, axis=0)                # (B,S,E)

    def step(carry, x_t):
        hs, cs = carry
        x = x_t
        new_h, new_c = [], []
        for l in range(n_layers):
            gates = (x @ params[f"w_ih_{l}"].T + params[f"b_ih_{l}"]
                     + hs[l] @ params[f"w_hh_{l}"].T + params[f"b_hh_{l}"])
            i_g = jax.nn.sigmoid(gates[:, 0 * H:1 * H])
            f_g = jax.nn.sigmoid(gates[:, 1 * H:2 * H])
            g_g = jnp.tanh(gates[:, 2 * H:3 * H])
            o_g = jax.nn.sigmoid(gates[:, 3 * H:4 * H])
            c_new = f_g * cs[l] + i_g * g_g
            h_new = o_g * jnp.tanh(c_new)
            new_h.append(h_new)
            new_c.append(c_new)
            x = h_new
        logits = x @ params["out_w"].T + params["out_b"]
        logp = jax.nn.log_softmax(logits, axis=-1)
        return (jnp.stack(new_h), jnp.stack(new_c)), logp

    (h_f, c_f), logps = jax.lax.scan(step, (h0, c0),
                                     jnp.transpose(emb, (1, 0, 2)))
    return logps, (h_f, c_f)


if __name__ == "__main__":
    # small shapes consistent with the module
    vocab_size, class_size = 30, 20
    emb_size, hidden_size, n_layers = 32, 32, 2
    sos_id, eos_id = 0, 1
    B, S = 2, 8
    H = hidden_size

    key = jax.random.PRNGKey(0)
    keys = jax.random.split(key, 16)
    scale = 1.0 / jnp.sqrt(hidden_size)

    params = {
        "embedding": jax.random.normal(keys[0], (vocab_size, emb_size),
                                       jnp.float32) * 0.1,
        "out_w": jax.random.uniform(keys[1], (class_size, hidden_size),
                                    jnp.float32, -scale, scale),
        "out_b": jax.random.uniform(keys[2], (class_size,),
                                    jnp.float32, -scale, scale),
    }
    k_idx = 3
    for l in range(n_layers):
        in_dim = emb_size if l == 0 else hidden_size
        params[f"w_ih_{l}"] = jax.random.uniform(
            keys[k_idx], (4 * H, in_dim), jnp.float32, -scale, scale); k_idx += 1
        params[f"w_hh_{l}"] = jax.random.uniform(
            keys[k_idx], (4 * H, H), jnp.float32, -scale, scale); k_idx += 1
        params[f"b_ih_{l}"] = jax.random.uniform(
            keys[k_idx], (4 * H,), jnp.float32, -scale, scale); k_idx += 1
        params[f"b_hh_{l}"] = jax.random.uniform(
            keys[k_idx], (4 * H,), jnp.float32, -scale, scale); k_idx += 1

    tokens = jax.random.randint(keys[k_idx], (B, S), 0, vocab_size,
                                dtype=jnp.int32); k_idx += 1
    h0 = jax.random.normal(keys[k_idx], (n_layers, B, H), jnp.float32) * 0.1
    k_idx += 1
    c0 = jax.random.normal(keys[k_idx], (n_layers, B, H), jnp.float32) * 0.1

    ref_logp, (ref_h, ref_c) = _reference_forward(
        tokens, (h0, c0), params, sos_id)

    # ---- f32 weights: tight check against the f32 reference ----
    logp, (h_f, c_f), symbols = dns_decoder_forward(
        tokens, (h0, c0), params, sos_id, param_dtype=jnp.float32)
    jax.block_until_ready((logp, h_f, c_f, symbols))
    assert jnp.allclose(logp, ref_logp, atol=1e-4), "log-softmax mismatch (f32)"
    assert jnp.allclose(h_f, ref_h, atol=1e-4), "final h mismatch (f32)"
    assert jnp.allclose(c_f, ref_c, atol=1e-4), "final c mismatch (f32)"
    ref_sym = jnp.argmax(ref_logp, axis=-1)[..., None]
    assert jnp.array_equal(symbols, ref_sym), "symbols mismatch (f32)"

    # ---- bf16 weights (f32 accumulation / f32 state): loose check ----
    logp_bf, (h_bf, c_bf), sym_bf = dns_decoder_forward(
        tokens, (h0, c0), params, sos_id, param_dtype=jnp.bfloat16)
    jax.block_until_ready((logp_bf, h_bf, c_bf, sym_bf))
    assert jnp.allclose(logp_bf, ref_logp, atol=0.15), "log-softmax mismatch (bf16)"
    assert jnp.allclose(h_bf, ref_h, atol=0.15), "final h mismatch (bf16)"
    assert jnp.allclose(c_bf, ref_c, atol=0.15), "final c mismatch (bf16)"

    print("KERNEL_OK")
</pallas_src>

<mosaic_0001>
module attributes {stable_mosaic.version = 11 : i64} {
  func.func @kernel(%arg0: i32, %arg1: memref<8x8x128xf32, #tpu.memory_space<vmem>>, %arg2: memref<2x8x128xf32, #tpu.memory_space<vmem>>, %arg3: memref<2x8x128xf32, #tpu.memory_space<vmem>>, %arg4: memref<256x512xf32, #tpu.memory_space<vmem>>, %arg5: memref<1x512xf32, #tpu.memory_space<vmem>>, %arg6: memref<256x512xf32, #tpu.memory_space<vmem>>, %arg7: memref<1x512xf32, #tpu.memory_space<vmem>>, %arg8: memref<128x128xf32, #tpu.memory_space<vmem>>, %arg9: memref<1x128xf32, #tpu.memory_space<vmem>>, %arg10: memref<64x128xf32, #tpu.memory_space<vmem>>, %arg11: memref<8x8xi32, #tpu.memory_space<vmem>>, %arg12: memref<2x8x128xf32, #tpu.memory_space<vmem>>, %arg13: memref<2x8x128xf32, #tpu.memory_space<vmem>>, %arg14: memref<8x256xf32, #tpu.memory_space<vmem>>, %arg15: memref<8x256xf32, #tpu.memory_space<vmem>>, %arg16: memref<2x8x128xf32, #tpu.memory_space<vmem>>, %arg17: memref<8x8x128xf32, #tpu.memory_space<vmem>>) attributes {dimension_semantics = [#tpu.dimension_semantics<arbitrary>], iteration_bounds = array<i64: 1>, scalar_prefetch = 0 : i64, scratch_operands = 4 : i64, tpu.core_type = #tpu.core_type<tc>, window_params = [{transform_indices = @transform_0, window_bounds = array<i64: 8, 8, 128>}, {pipeline_mode = #tpu.pipeline_mode<synchronous>, transform_indices = @transform_1, window_bounds = array<i64: 2, 8, 128>}, {pipeline_mode = #tpu.pipeline_mode<synchronous>, transform_indices = @transform_2, window_bounds = array<i64: 2, 8, 128>}, {pipeline_mode = #tpu.pipeline_mode<synchronous>, transform_indices = @transform_3, window_bounds = array<i64: 256, 512>}, {pipeline_mode = #tpu.pipeline_mode<synchronous>, transform_indices = @transform_4, window_bounds = array<i64: 1, 512>}, {pipeline_mode = #tpu.pipeline_mode<synchronous>, transform_indices = @transform_5, window_bounds = array<i64: 256, 512>}, {pipeline_mode = #tpu.pipeline_mode<synchronous>, transform_indices = @transform_6, window_bounds = array<i64: 1, 512>}, {pipeline_mode = #tpu.pipeline_mode<synchronous>, transform_indices = @transform_7, window_bounds = array<i64: 128, 128>}, {pipeline_mode = #tpu.pipeline_mode<synchronous>, transform_indices = @transform_8, window_bounds = array<i64: 1, 128>}, {transform_indices = @transform_9, window_bounds = array<i64: 64, 128>}, {pipeline_mode = #tpu.pipeline_mode<synchronous>, transform_indices = @transform_10, window_bounds = array<i64: 8, 8>}, {pipeline_mode = #tpu.pipeline_mode<synchronous>, transform_indices = @transform_11, window_bounds = array<i64: 2, 8, 128>}, {pipeline_mode = #tpu.pipeline_mode<synchronous>, transform_indices = @transform_12, window_bounds = array<i64: 2, 8, 128>}]} {
    %c0_i32 = arith.constant 0 : i32
    %0 = arith.cmpi eq, %arg0, %c0_i32 : i32
    %1 = arith.extui %0 : i1 to i32
    %c0_i32_0 = arith.constant 0 : i32
    %2 = arith.cmpi ne, %1, %c0_i32_0 : i32
    scf.if %2 {
      %cst_477 = arith.constant 0.000000e+00 : f32
      %803 = vector.broadcast %cst_477 : f32 to vector<8x128xf32>
      %c0_478 = arith.constant 0 : index
      %c0_479 = arith.constant 0 : index
      %804 = vector.load %arg14[%c0_478, %c0_479] : memref<8x256xf32, #tpu.memory_space<vmem>>, vector<8x128xf32>
      tpu.vector_store %arg14[%c0_478, %c0_479], %803 {strides = array<i32>} : memref<8x256xf32, #tpu.memory_space<vmem>>, vector<8x128xf32>,
      %c0_480 = arith.constant 0 : index
      %c0_481 = arith.constant 0 : index
      %c0_482 = arith.constant 0 : index
      %805 = vector.load %arg2[%c0_480, %c0_481, %c0_482] : memref<2x8x128xf32, #tpu.memory_space<vmem>>, vector<1x8x128xf32>
      %806 = vector.shape_cast %805 : vector<1x8x128xf32> to vector<8x128xf32>
      %c0_483 = arith.constant 0 : index
      %c128_484 = arith.constant 128 : index
      %807 = vector.load %arg14[%c0_483, %c128_484] : memref<8x256xf32, #tpu.memory_space<vmem>>, vector<8x128xf32>
      tpu.vector_store %arg14[%c0_483, %c128_484], %806 {strides = array<i32>} : memref<8x256xf32, #tpu.memory_space<vmem>>, vector<8x128xf32>,
      %cst_485 = arith.constant 0.000000e+00 : f32
      %808 = vector.broadcast %cst_485 : f32 to vector<8x128xf32>
      %c0_486 = arith.constant 0 : index
      %c0_487 = arith.constant 0 : index
      %809 = vector.load %arg15[%c0_486, %c0_487] : memref<8x256xf32, #tpu.memory_space<vmem>>, vector<8x128xf32>
      tpu.vector_store %arg15[%c0_486, %c0_487], %808 {strides = array<i32>} : memref<8x256xf32, #tpu.memory_space<vmem>>, vector<8x128xf32>,
      %c1_488 = arith.constant 1 : index
      %c0_489 = arith.constant 0 : index
      %c0_490 = arith.constant 0 : index
      %810 = vector.load %arg2[%c1_488, %c0_489, %c0_490] : memref<2x8x128xf32, #tpu.memory_space<vmem>>, vector<1x8x128xf32>
      %811 = vector.shape_cast %810 : vector<1x8x128xf32> to vector<8x128xf32>
      %c0_491 = arith.constant 0 : index
      %c128_492 = arith.constant 128 : index
      %812 = vector.load %arg15[%c0_491, %c128_492] : memref<8x256xf32, #tpu.memory_space<vmem>>, vector<8x128xf32>
      tpu.vector_store %arg15[%c0_491, %c128_492], %811 {strides = array<i32>} : memref<8x256xf32, #tpu.memory_space<vmem>>, vector<8x128xf32>,
      %c0_493 = arith.constant 0 : index
      %c0_494 = arith.constant 0 : index
      %c0_495 = arith.constant 0 : index
      %813 = vector.load %arg3[%c0_493, %c0_494, %c0_495] : memref<2x8x128xf32, #tpu.memory_space<vmem>>, vector<2x8x128xf32>
      %c0_496 = arith.constant 0 : index
      %c0_497 = arith.constant 0 : index
      %c0_498 = arith.constant 0 : index
      %814 = vector.load %arg16[%c0_496, %c0_497, %c0_498] : memref<2x8x128xf32, #tpu.memory_space<vmem>>, vector<2x8x128xf32>
      tpu.vector_store %arg16[%c0_496, %c0_497, %c0_498], %813 {strides = array<i32>} : memref<2x8x128xf32, #tpu.memory_space<vmem>>, vector<2x8x128xf32>,
    } else {
    }
    %c0_i32_1 = arith.constant 0 : i32
    %3 = arith.index_cast %c0_i32_1 : i32 to index
    %c0 = arith.constant 0 : index
    %c0_2 = arith.constant 0 : index
    %4 = vector.load %arg1[%3, %c0, %c0_2] : memref<8x8x128xf32, #tpu.memory_space<vmem>>, vector<1x8x128xf32>
    %5 = vector.shape_cast %4 : vector<1x8x128xf32> to vector<8x128xf32>
    %c0_3 = arith.constant 0 : index
    %c0_4 = arith.constant 0 : index
    %6 = vector.load %arg14[%c0_3, %c0_4] : memref<8x256xf32, #tpu.memory_space<vmem>>, vector<8x128xf32>
    tpu.vector_store %arg14[%c0_3, %c0_4], %5 {strides = array<i32>} : memref<8x256xf32, #tpu.memory_space<vmem>>, vector<8x128xf32>,
    %c0_5 = arith.constant 0 : index
    %c0_6 = arith.constant 0 : index
    %7 = vector.load %arg14[%c0_5, %c0_6] : memref<8x256xf32, #tpu.memory_space<vmem>>, vector<8x256xf32>
    %c0_7 = arith.constant 0 : index
    %c0_8 = arith.constant 0 : index
    %8 = vector.load %arg4[%c0_7, %c0_8] : memref<256x512xf32, #tpu.memory_space<vmem>>, vector<256x512xf32>
    %cst = arith.constant dense<0.000000e+00> : vector<8x512xf32>
    %9 = tpu.matmul %7, %8, %cst {dimension_numbers = #tpu.dot_dimension_numbers<[1], [0], [0], [1], [0, 0, 1, 1], [], []>} : vector<8x256xf32>, vector<256x512xf32>, vector<8x512xf32> -> vector<8x512xf32>
    %c0_9 = arith.constant 0 : index
    %c0_10 = arith.constant 0 : index
    %10 = vector.load %arg5[%c0_9, %c0_10] : memref<1x512xf32, #tpu.memory_space<vmem>>, vector<1x512xf32>
    %11 = vector.broadcast %10 : vector<1x512xf32> to vector<8x512xf32>
    %12 = arith.addf %9, %11 : vector<8x512xf32>
    %13 = vector.extract_strided_slice %12 {offsets = [0, 0], sizes = [8, 128], strides = [1, 1]} : vector<8x512xf32> to vector<8x128xf32>
    %cst_11 = arith.constant 5.000000e-01 : f32
    %14 = vector.broadcast %cst_11 : f32 to vector<8x128xf32>
    %15 = arith.mulf %14, %13 : vector<8x128xf32>
    %16 = math.tanh %15 : vector<8x128xf32>
    %cst_12 = arith.constant 1.000000e+00 : f32
    %17 = vector.broadcast %cst_12 : f32 to vector<8x128xf32>
    %18 = arith.addf %16, %17 : vector<8x128xf32>
    %cst_13 = arith.constant 5.000000e-01 : f32
    %19 = vector.broadcast %cst_13 : f32 to vector<8x128xf32>
    %20 = arith.mulf %19, %18 : vector<8x128xf32>
    %21 = vector.extract_strided_slice %12 {offsets = [0, 128], sizes = [8, 128], strides = [1, 1]} : vector<8x512xf32> to vector<8x128xf32>
    %cst_14 = arith.constant 5.000000e-01 : f32
    %22 = vector.broadcast %cst_14 : f32 to vector<8x128xf32>
    %23 = arith.mulf %22, %21 : vector<8x128xf32>
    %24 = math.tanh %23 : vector<8x128xf32>
    %cst_15 = arith.constant 1.000000e+00 : f32
    %25 = vector.broadcast %cst_15 : f32 to vector<8x128xf32>
    %26 = arith.addf %24, %25 : vector<8x128xf32>
    %cst_16 = arith.constant 5.000000e-01 : f32
    %27 = vector.broadcast %cst_16 : f32 to vector<8x128xf32>
    %28 = arith.mulf %27, %26 : vector<8x128xf32>
    %29 = vector.extract_strided_slice %12 {offsets = [0, 256], sizes = [8, 128], strides = [1, 1]} : vector<8x512xf32> to vector<8x128xf32>
    %30 = math.tanh %29 : vector<8x128xf32>
    %31 = vector.extract_strided_slice %12 {offsets = [0, 384], sizes = [8, 128], strides = [1, 1]} : vector<8x512xf32> to vector<8x128xf32>
    %cst_17 = arith.constant 5.000000e-01 : f32
    %32 = vector.broadcast %cst_17 : f32 to vector<8x128xf32>
    %33 = arith.mulf %32, %31 : vector<8x128xf32>
    %34 = math.tanh %33 : vector<8x128xf32>
    %cst_18 = arith.constant 1.000000e+00 : f32
    %35 = vector.broadcast %cst_18 : f32 to vector<8x128xf32>
    %36 = arith.addf %34, %35 : vector<8x128xf32>
    %cst_19 = arith.constant 5.000000e-01 : f32
    %37 = vector.broadcast %cst_19 : f32 to vector<8x128xf32>
    %38 = arith.mulf %37, %36 : vector<8x128xf32>
    %c0_20 = arith.constant 0 : index
    %c0_21 = arith.constant 0 : index
    %c0_22 = arith.constant 0 : index
    %39 = vector.load %arg16[%c0_20, %c0_21, %c0_22] : memref<2x8x128xf32, #tpu.memory_space<vmem>>, vector<1x8x128xf32>
    %40 = vector.shape_cast %39 : vector<1x8x128xf32> to vector<8x128xf32>
    %41 = arith.mulf %28, %40 : vector<8x128xf32>
    %42 = arith.mulf %20, %30 : vector<8x128xf32>
    %43 = arith.addf %41, %42 : vector<8x128xf32>
    %44 = math.tanh %43 : vector<8x128xf32>
    %45 = arith.mulf %38, %44 : vector<8x128xf32>
    %c0_23 = arith.constant 0 : index
    %c0_24 = arith.constant 0 : index
    %c0_25 = arith.constant 0 : index
    %46 = vector.load %arg16[%c0_23, %c0_24, %c0_25] : memref<2x8x128xf32, #tpu.memory_space<vmem>>, vector<1x8x128xf32>
    %47 = vector.shape_cast %46 : vector<1x8x128xf32> to vector<8x128xf32>
    %48 = vector.shape_cast %43 : vector<8x128xf32> to vector<1x8x128xf32>
    tpu.vector_store %arg16[%c0_23, %c0_24, %c0_25], %48 {strides = array<i32>} : memref<2x8x128xf32, #tpu.memory_space<vmem>>, vector<1x8x128xf32>,
    %c0_26 = arith.constant 0 : index
    %c128 = arith.constant 128 : index
    %49 = vector.load %arg14[%c0_26, %c128] : memref<8x256xf32, #tpu.memory_space<vmem>>, vector<8x128xf32>
    tpu.vector_store %arg14[%c0_26, %c128], %45 {strides = array<i32>} : memref<8x256xf32, #tpu.memory_space<vmem>>, vector<8x128xf32>,
    %c0_27 = arith.constant 0 : index
    %c0_28 = arith.constant 0 : index
    %50 = vector.load %arg15[%c0_27, %c0_28] : memref<8x256xf32, #tpu.memory_space<vmem>>, vector<8x128xf32>
    tpu.vector_store %arg15[%c0_27, %c0_28], %45 {strides = array<i32>} : memref<8x256xf32, #tpu.memory_space<vmem>>, vector<8x128xf32>,
    %c0_29 = arith.constant 0 : index
    %c0_30 = arith.constant 0 : index
    %51 = vector.load %arg15[%c0_29, %c0_30] : memref<8x256xf32, #tpu.memory_space<vmem>>, vector<8x256xf32>
    %c0_31 = arith.constant 0 : index
    %c0_32 = arith.constant 0 : index
    %52 = vector.load %arg6[%c0_31, %c0_32] : memref<256x512xf32, #tpu.memory_space<vmem>>, vector<256x512xf32>
    %cst_33 = arith.constant dense<0.000000e+00> : vector<8x512xf32>
    %53 = tpu.matmul %51, %52, %cst_33 {dimension_numbers = #tpu.dot_dimension_numbers<[1], [0], [0], [1], [0, 0, 1, 1], [], []>} : vector<8x256xf32>, vector<256x512xf32>, vector<8x512xf32> -> vector<8x512xf32>
    %c0_34 = arith.constant 0 : index
    %c0_35 = arith.constant 0 : index
    %54 = vector.load %arg7[%c0_34, %c0_35] : memref<1x512xf32, #tpu.memory_space<vmem>>, vector<1x512xf32>
    %55 = vector.broadcast %54 : vector<1x512xf32> to vector<8x512xf32>
    %56 = arith.addf %53, %55 : vector<8x512xf32>
    %57 = vector.extract_strided_slice %56 {offsets = [0, 0], sizes = [8, 128], strides = [1, 1]} : vector<8x512xf32> to vector<8x128xf32>
    %cst_36 = arith.constant 5.000000e-01 : f32
    %58 = vector.broadcast %cst_36 : f32 to vector<8x128xf32>
    %59 = arith.mulf %58, %57 : vector<8x128xf32>
    %60 = math.tanh %59 : vector<8x128xf32>
    %cst_37 = arith.constant 1.000000e+00 : f32
    %61 = vector.broadcast %cst_37 : f32 to vector<8x128xf32>
    %62 = arith.addf %60, %61 : vector<8x128xf32>
    %cst_38 = arith.constant 5.000000e-01 : f32
    %63 = vector.broadcast %cst_38 : f32 to vector<8x128xf32>
    %64 = arith.mulf %63, %62 : vector<8x128xf32>
    %65 = vector.extract_strided_slice %56 {offsets = [0, 128], sizes = [8, 128], strides = [1, 1]} : vector<8x512xf32> to vector<8x128xf32>
    %cst_39 = arith.constant 5.000000e-01 : f32
    %66 = vector.broadcast %cst_39 : f32 to vector<8x128xf32>
    %67 = arith.mulf %66, %65 : vector<8x128xf32>
    %68 = math.tanh %67 : vector<8x128xf32>
    %cst_40 = arith.constant 1.000000e+00 : f32
    %69 = vector.broadcast %cst_40 : f32 to vector<8x128xf32>
    %70 = arith.addf %68, %69 : vector<8x128xf32>
    %cst_41 = arith.constant 5.000000e-01 : f32
    %71 = vector.broadcast %cst_41 : f32 to vector<8x128xf32>
    %72 = arith.mulf %71, %70 : vector<8x128xf32>
    %73 = vector.extract_strided_slice %56 {offsets = [0, 256], sizes = [8, 128], strides = [1, 1]} : vector<8x512xf32> to vector<8x128xf32>
    %74 = math.tanh %73 : vector<8x128xf32>
    %75 = vector.extract_strided_slice %56 {offsets = [0, 384], sizes = [8, 128], strides = [1, 1]} : vector<8x512xf32> to vector<8x128xf32>
    %cst_42 = arith.constant 5.000000e-01 : f32
    %76 = vector.broadcast %cst_42 : f32 to vector<8x128xf32>
    %77 = arith.mulf %76, %75 : vector<8x128xf32>
    %78 = math.tanh %77 : vector<8x128xf32>
    %cst_43 = arith.constant 1.000000e+00 : f32
    %79 = vector.broadcast %cst_43 : f32 to vector<8x128xf32>
    %80 = arith.addf %78, %79 : vector<8x128xf32>
    %cst_44 = arith.constant 5.000000e-01 : f32
    %81 = vector.broadcast %cst_44 : f32 to vector<8x128xf32>
    %82 = arith.mulf %81, %80 : vector<8x128xf32>
    %c1 = arith.constant 1 : index
    %c0_45 = arith.constant 0 : index
    %c0_46 = arith.constant 0 : index
    %83 = vector.load %arg16[%c1, %c0_45, %c0_46] : memref<2x8x128xf32, #tpu.memory_space<vmem>>, vector<1x8x128xf32>
    %84 = vector.shape_cast %83 : vector<1x8x128xf32> to vector<8x128xf32>
    %85 = arith.mulf %72, %84 : vector<8x128xf32>
    %86 = arith.mulf %64, %74 : vector<8x128xf32>
    %87 = arith.addf %85, %86 : vector<8x128xf32>
    %88 = math.tanh %87 : vector<8x128xf32>
    %89 = arith.mulf %82, %88 : vector<8x128xf32>
    %c1_47 = arith.constant 1 : index
    %c0_48 = arith.constant 0 : index
    %c0_49 = arith.constant 0 : index
    %90 = vector.load %arg16[%c1_47, %c0_48, %c0_49] : memref<2x8x128xf32, #tpu.memory_space<vmem>>, vector<1x8x128xf32>
    %91 = vector.shape_cast %90 : vector<1x8x128xf32> to vector<8x128xf32>
    %92 = vector.shape_cast %87 : vector<8x128xf32> to vector<1x8x128xf32>
    tpu.vector_store %arg16[%c1_47, %c0_48, %c0_49], %92 {strides = array<i32>} : memref<2x8x128xf32, #tpu.memory_space<vmem>>, vector<1x8x128xf32>,
    %c0_50 = arith.constant 0 : index
    %c128_51 = arith.constant 128 : index
    %93 = vector.load %arg15[%c0_50, %c128_51] : memref<8x256xf32, #tpu.memory_space<vmem>>, vector<8x128xf32>
    tpu.vector_store %arg15[%c0_50, %c128_51], %89 {strides = array<i32>} : memref<8x256xf32, #tpu.memory_space<vmem>>, vector<8x128xf32>,
    %94 = arith.index_cast %c0_i32_1 : i32 to index
    %c0_52 = arith.constant 0 : index
    %c0_53 = arith.constant 0 : index
    %95 = vector.load %arg17[%94, %c0_52, %c0_53] : memref<8x8x128xf32, #tpu.memory_space<vmem>>, vector<1x8x128xf32>
    %96 = vector.shape_cast %95 : vector<1x8x128xf32> to vector<8x128xf32>
    %97 = vector.shape_cast %89 : vector<8x128xf32> to vector<1x8x128xf32>
    tpu.vector_store %arg17[%94, %c0_52, %c0_53], %97 {strides = array<i32>} : memref<8x8x128xf32, #tpu.memory_space<vmem>>, vector<1x8x128xf32>,
    %c1_i32 = arith.constant 1 : i32
    %98 = arith.index_cast %c1_i32 : i32 to index
    %c0_54 = arith.constant 0 : index
    %c0_55 = arith.constant 0 : index
    %99 = vector.load %arg1[%98, %c0_54, %c0_55] : memref<8x8x128xf32, #tpu.memory_space<vmem>>, vector<1x8x128xf32>
    %100 = vector.shape_cast %99 : vector<1x8x128xf32> to vector<8x128xf32>
    %c0_56 = arith.constant 0 : index
    %c0_57 = arith.constant 0 : index
    %101 = vector.load %arg14[%c0_56, %c0_57] : memref<8x256xf32, #tpu.memory_space<vmem>>, vector<8x128xf32>
    tpu.vector_store %arg14[%c0_56, %c0_57], %100 {strides = array<i32>} : memref<8x256xf32, #tpu.memory_space<vmem>>, vector<8x128xf32>,
    %c0_58 = arith.constant 0 : index
    %c0_59 = arith.constant 0 : index
    %102 = vector.load %arg14[%c0_58, %c0_59] : memref<8x256xf32, #tpu.memory_space<vmem>>, vector<8x256xf32>
    %c0_60 = arith.constant 0 : index
    %c0_61 = arith.constant 0 : index
    %103 = vector.load %arg4[%c0_60, %c0_61] : memref<256x512xf32, #tpu.memory_space<vmem>>, vector<256x512xf32>
    %cst_62 = arith.constant dense<0.000000e+00> : vector<8x512xf32>
    %104 = tpu.matmul %102, %103, %cst_62 {dimension_numbers = #tpu.dot_dimension_numbers<[1], [0], [0], [1], [0, 0, 1, 1], [], []>} : vector<8x256xf32>, vector<256x512xf32>, vector<8x512xf32> -> vector<8x512xf32>
    %c0_63 = arith.constant 0 : index
    %c0_64 = arith.constant 0 : index
    %105 = vector.load %arg5[%c0_63, %c0_64] : memref<1x512xf32, #tpu.memory_space<vmem>>, vector<1x512xf32>
    %106 = vector.broadcast %105 : vector<1x512xf32> to vector<8x512xf32>
    %107 = arith.addf %104, %106 : vector<8x512xf32>
    %108 = vector.extract_strided_slice %107 {offsets = [0, 0], sizes = [8, 128], strides = [1, 1]} : vector<8x512xf32> to vector<8x128xf32>
    %cst_65 = arith.constant 5.000000e-01 : f32
    %109 = vector.broadcast %cst_65 : f32 to vector<8x128xf32>
    %110 = arith.mulf %109, %108 : vector<8x128xf32>
    %111 = math.tanh %110 : vector<8x128xf32>
    %cst_66 = arith.constant 1.000000e+00 : f32
    %112 = vector.broadcast %cst_66 : f32 to vector<8x128xf32>
    %113 = arith.addf %111, %112 : vector<8x128xf32>
    %cst_67 = arith.constant 5.000000e-01 : f32
    %114 = vector.broadcast %cst_67 : f32 to vector<8x128xf32>
    %115 = arith.mulf %114, %113 : vector<8x128xf32>
    %116 = vector.extract_strided_slice %107 {offsets = [0, 128], sizes = [8, 128], strides = [1, 1]} : vector<8x512xf32> to vector<8x128xf32>
    %cst_68 = arith.constant 5.000000e-01 : f32
    %117 = vector.broadcast %cst_68 : f32 to vector<8x128xf32>
    %118 = arith.mulf %117, %116 : vector<8x128xf32>
    %119 = math.tanh %118 : vector<8x128xf32>
    %cst_69 = arith.constant 1.000000e+00 : f32
    %120 = vector.broadcast %cst_69 : f32 to vector<8x128xf32>
    %121 = arith.addf %119, %120 : vector<8x128xf32>
    %cst_70 = arith.constant 5.000000e-01 : f32
    %122 = vector.broadcast %cst_70 : f32 to vector<8x128xf32>
    %123 = arith.mulf %122, %121 : vector<8x128xf32>
    %124 = vector.extract_strided_slice %107 {offsets = [0, 256], sizes = [8, 128], strides = [1, 1]} : vector<8x512xf32> to vector<8x128xf32>
    %125 = math.tanh %124 : vector<8x128xf32>
    %126 = vector.extract_strided_slice %107 {offsets = [0, 384], sizes = [8, 128], strides = [1, 1]} : vector<8x512xf32> to vector<8x128xf32>
    %cst_71 = arith.constant 5.000000e-01 : f32
    %127 = vector.broadcast %cst_71 : f32 to vector<8x128xf32>
    %128 = arith.mulf %127, %126 : vector<8x128xf32>
    %129 = math.tanh %128 : vector<8x128xf32>
    %cst_72 = arith.constant 1.000000e+00 : f32
    %130 = vector.broadcast %cst_72 : f32 to vector<8x128xf32>
    %131 = arith.addf %129, %130 : vector<8x128xf32>
    %cst_73 = arith.constant 5.000000e-01 : f32
    %132 = vector.broadcast %cst_73 : f32 to vector<8x128xf32>
    %133 = arith.mulf %132, %131 : vector<8x128xf32>
    %c0_74 = arith.constant 0 : index
    %c0_75 = arith.constant 0 : index
    %c0_76 = arith.constant 0 : index
    %134 = vector.load %arg16[%c0_74, %c0_75, %c0_76] : memref<2x8x128xf32, #tpu.memory_space<vmem>>, vector<1x8x128xf32>
    %135 = vector.shape_cast %134 : vector<1x8x128xf32> to vector<8x128xf32>
    %136 = arith.mulf %123, %135 : vector<8x128xf32>
    %137 = arith.mulf %115, %125 : vector<8x128xf32>
    %138 = arith.addf %136, %137 : vector<8x128xf32>
    %139 = math.tanh %138 : vector<8x128xf32>
    %140 = arith.mulf %133, %139 : vector<8x128xf32>
    %c0_77 = arith.constant 0 : index
    %c0_78 = arith.constant 0 : index
    %c0_79 = arith.constant 0 : index
    %141 = vector.load %arg16[%c0_77, %c0_78, %c0_79] : memref<2x8x128xf32, #tpu.memory_space<vmem>>, vector<1x8x128xf32>
    %142 = vector.shape_cast %141 : vector<1x8x128xf32> to vector<8x128xf32>
    %143 = vector.shape_cast %138 : vector<8x128xf32> to vector<1x8x128xf32>
    tpu.vector_store %arg16[%c0_77, %c0_78, %c0_79], %143 {strides = array<i32>} : memref<2x8x128xf32, #tpu.memory_space<vmem>>, vector<1x8x128xf32>,
    %c0_80 = arith.constant 0 : index
    %c128_81 = arith.constant 128 : index
    %144 = vector.load %arg14[%c0_80, %c128_81] : memref<8x256xf32, #tpu.memory_space<vmem>>, vector<8x128xf32>
    tpu.vector_store %arg14[%c0_80, %c128_81], %140 {strides = array<i32>} : memref<8x256xf32, #tpu.memory_space<vmem>>, vector<8x128xf32>,
    %c0_82 = arith.constant 0 : index
    %c0_83 = arith.constant 0 : index
    %145 = vector.load %arg15[%c0_82, %c0_83] : memref<8x256xf32, #tpu.memory_space<vmem>>, vector<8x128xf32>
    tpu.vector_store %arg15[%c0_82, %c0_83], %140 {strides = array<i32>} : memref<8x256xf32, #tpu.memory_space<vmem>>, vector<8x128xf32>,
    %c0_84 = arith.constant 0 : index
    %c0_85 = arith.constant 0 : index
    %146 = vector.load %arg15[%c0_84, %c0_85] : memref<8x256xf32, #tpu.memory_space<vmem>>, vector<8x256xf32>
    %c0_86 = arith.constant 0 : index
    %c0_87 = arith.constant 0 : index
    %147 = vector.load %arg6[%c0_86, %c0_87] : memref<256x512xf32, #tpu.memory_space<vmem>>, vector<256x512xf32>
    %cst_88 = arith.constant dense<0.000000e+00> : vector<8x512xf32>
    %148 = tpu.matmul %146, %147, %cst_88 {dimension_numbers = #tpu.dot_dimension_numbers<[1], [0], [0], [1], [0, 0, 1, 1], [], []>} : vector<8x256xf32>, vector<256x512xf32>, vector<8x512xf32> -> vector<8x512xf32>
    %c0_89 = arith.constant 0 : index
    %c0_90 = arith.constant 0 : index
    %149 = vector.load %arg7[%c0_89, %c0_90] : memref<1x512xf32, #tpu.memory_space<vmem>>, vector<1x512xf32>
    %150 = vector.broadcast %149 : vector<1x512xf32> to vector<8x512xf32>
    %151 = arith.addf %148, %150 : vector<8x512xf32>
    %152 = vector.extract_strided_slice %151 {offsets = [0, 0], sizes = [8, 128], strides = [1, 1]} : vector<8x512xf32> to vector<8x128xf32>
    %cst_91 = arith.constant 5.000000e-01 : f32
    %153 = vector.broadcast %cst_91 : f32 to vector<8x128xf32>
    %154 = arith.mulf %153, %152 : vector<8x128xf32>
    %155 = math.tanh %154 : vector<8x128xf32>
    %cst_92 = arith.constant 1.000000e+00 : f32
    %156 = vector.broadcast %cst_92 : f32 to vector<8x128xf32>
    %157 = arith.addf %155, %156 : vector<8x128xf32>
    %cst_93 = arith.constant 5.000000e-01 : f32
    %158 = vector.broadcast %cst_93 : f32 to vector<8x128xf32>
    %159 = arith.mulf %158, %157 : vector<8x128xf32>
    %160 = vector.extract_strided_slice %151 {offsets = [0, 128], sizes = [8, 128], strides = [1, 1]} : vector<8x512xf32> to vector<8x128xf32>
    %cst_94 = arith.constant 5.000000e-01 : f32
    %161 = vector.broadcast %cst_94 : f32 to vector<8x128xf32>
    %162 = arith.mulf %161, %160 : vector<8x128xf32>
    %163 = math.tanh %162 : vector<8x128xf32>
    %cst_95 = arith.constant 1.000000e+00 : f32
    %164 = vector.broadcast %cst_95 : f32 to vector<8x128xf32>
    %165 = arith.addf %163, %164 : vector<8x128xf32>
    %cst_96 = arith.constant 5.000000e-01 : f32
    %166 = vector.broadcast %cst_96 : f32 to vector<8x128xf32>
    %167 = arith.mulf %166, %165 : vector<8x128xf32>
    %168 = vector.extract_strided_slice %151 {offsets = [0, 256], sizes = [8, 128], strides = [1, 1]} : vector<8x512xf32> to vector<8x128xf32>
    %169 = math.tanh %168 : vector<8x128xf32>
    %170 = vector.extract_strided_slice %151 {offsets = [0, 384], sizes = [8, 128], strides = [1, 1]} : vector<8x512xf32> to vector<8x128xf32>
    %cst_97 = arith.constant 5.000000e-01 : f32
    %171 = vector.broadcast %cst_97 : f32 to vector<8x128xf32>
    %172 = arith.mulf %171, %170 : vector<8x128xf32>
    %173 = math.tanh %172 : vector<8x128xf32>
    %cst_98 = arith.constant 1.000000e+00 : f32
    %174 = vector.broadcast %cst_98 : f32 to vector<8x128xf32>
    %175 = arith.addf %173, %174 : vector<8x128xf32>
    %cst_99 = arith.constant 5.000000e-01 : f32
    %176 = vector.broadcast %cst_99 : f32 to vector<8x128xf32>
    %177 = arith.mulf %176, %175 : vector<8x128xf32>
    %c1_100 = arith.constant 1 : index
    %c0_101 = arith.constant 0 : index
    %c0_102 = arith.constant 0 : index
    %178 = vector.load %arg16[%c1_100, %c0_101, %c0_102] : memref<2x8x128xf32, #tpu.memory_space<vmem>>, vector<1x8x128xf32>
    %179 = vector.shape_cast %178 : vector<1x8x128xf32> to vector<8x128xf32>
    %180 = arith.mulf %167, %179 : vector<8x128xf32>
    %181 = arith.mulf %159, %169 : vector<8x128xf32>
    %182 = arith.addf %180, %181 : vector<8x128xf32>
    %183 = math.tanh %182 : vector<8x128xf32>
    %184 = arith.mulf %177, %183 : vector<8x128xf32>
    %c1_103 = arith.constant 1 : index
    %c0_104 = arith.constant 0 : index
    %c0_105 = arith.constant 0 : index
    %185 = vector.load %arg16[%c1_103, %c0_104, %c0_105] : memref<2x8x128xf32, #tpu.memory_space<vmem>>, vector<1x8x128xf32>
    %186 = vector.shape_cast %185 : vector<1x8x128xf32> to vector<8x128xf32>
    %187 = vector.shape_cast %182 : vector<8x128xf32> to vector<1x8x128xf32>
    tpu.vector_store %arg16[%c1_103, %c0_104, %c0_105], %187 {strides = array<i32>} : memref<2x8x128xf32, #tpu.memory_space<vmem>>, vector<1x8x128xf32>,
    %c0_106 = arith.constant 0 : index
    %c128_107 = arith.constant 128 : index
    %188 = vector.load %arg15[%c0_106, %c128_107] : memref<8x256xf32, #tpu.memory_space<vmem>>, vector<8x128xf32>
    tpu.vector_store %arg15[%c0_106, %c128_107], %184 {strides = array<i32>} : memref<8x256xf32, #tpu.memory_space<vmem>>, vector<8x128xf32>,
    %189 = arith.index_cast %c1_i32 : i32 to index
    %c0_108 = arith.constant 0 : index
    %c0_109 = arith.constant 0 : index
    %190 = vector.load %arg17[%189, %c0_108, %c0_109] : memref<8x8x128xf32, #tpu.memory_space<vmem>>, vector<1x8x128xf32>
    %191 = vector.shape_cast %190 : vector<1x8x128xf32> to vector<8x128xf32>
    %192 = vector.shape_cast %184 : vector<8x128xf32> to vector<1x8x128xf32>
    tpu.vector_store %arg17[%189, %c0_108, %c0_109], %192 {strides = array<i32>} : memref<8x8x128xf32, #tpu.memory_space<vmem>>, vector<1x8x128xf32>,
    %c2_i32 = arith.constant 2 : i32
    %193 = arith.index_cast %c2_i32 : i32 to index
    %c0_110 = arith.constant 0 : index
    %c0_111 = arith.constant 0 : index
    %194 = vector.load %arg1[%193, %c0_110, %c0_111] : memref<8x8x128xf32, #tpu.memory_space<vmem>>, vector<1x8x128xf32>
    %195 = vector.shape_cast %194 : vector<1x8x128xf32> to vector<8x128xf32>
    %c0_112 = arith.constant 0 : index
    %c0_113 = arith.constant 0 : index
    %196 = vector.load %arg14[%c0_112, %c0_113] : memref<8x256xf32, #tpu.memory_space<vmem>>, vector<8x128xf32>
    tpu.vector_store %arg14[%c0_112, %c0_113], %195 {strides = array<i32>} : memref<8x256xf32, #tpu.memory_space<vmem>>, vector<8x128xf32>,
    %c0_114 = arith.constant 0 : index
    %c0_115 = arith.constant 0 : index
    %197 = vector.load %arg14[%c0_114, %c0_115] : memref<8x256xf32, #tpu.memory_space<vmem>>, vector<8x256xf32>
    %c0_116 = arith.constant 0 : index
    %c0_117 = arith.constant 0 : index
    %198 = vector.load %arg4[%c0_116, %c0_117] : memref<256x512xf32, #tpu.memory_space<vmem>>, vector<256x512xf32>
    %cst_118 = arith.constant dense<0.000000e+00> : vector<8x512xf32>
    %199 = tpu.matmul %197, %198, %cst_118 {dimension_numbers = #tpu.dot_dimension_numbers<[1], [0], [0], [1], [0, 0, 1, 1], [], []>} : vector<8x256xf32>, vector<256x512xf32>, vector<8x512xf32> -> vector<8x512xf32>
    %c0_119 = arith.constant 0 : index
    %c0_120 = arith.constant 0 : index
    %200 = vector.load %arg5[%c0_119, %c0_120] : memref<1x512xf32, #tpu.memory_space<vmem>>, vector<1x512xf32>
    %201 = vector.broadcast %200 : vector<1x512xf32> to vector<8x512xf32>
    %202 = arith.addf %199, %201 : vector<8x512xf32>
    %203 = vector.extract_strided_slice %202 {offsets = [0, 0], sizes = [8, 128], strides = [1, 1]} : vector<8x512xf32> to vector<8x128xf32>
    %cst_121 = arith.constant 5.000000e-01 : f32
    %204 = vector.broadcast %cst_121 : f32 to vector<8x128xf32>
    %205 = arith.mulf %204, %203 : vector<8x128xf32>
    %206 = math.tanh %205 : vector<8x128xf32>
    %cst_122 = arith.constant 1.000000e+00 : f32
    %207 = vector.broadcast %cst_122 : f32 to vector<8x128xf32>
    %208 = arith.addf %206, %207 : vector<8x128xf32>
    %cst_123 = arith.constant 5.000000e-01 : f32
    %209 = vector.broadcast %cst_123 : f32 to vector<8x128xf32>
    %210 = arith.mulf %209, %208 : vector<8x128xf32>
    %211 = vector.extract_strided_slice %202 {offsets = [0, 128], sizes = [8, 128], strides = [1, 1]} : vector<8x512xf32> to vector<8x128xf32>
    %cst_124 = arith.constant 5.000000e-01 : f32
    %212 = vector.broadcast %cst_124 : f32 to vector<8x128xf32>
    %213 = arith.mulf %212, %211 : vector<8x128xf32>
    %214 = math.tanh %213 : vector<8x128xf32>
    %cst_125 = arith.constant 1.000000e+00 : f32
    %215 = vector.broadcast %cst_125 : f32 to vector<8x128xf32>
    %216 = arith.addf %214, %215 : vector<8x128xf32>
    %cst_126 = arith.constant 5.000000e-01 : f32
    %217 = vector.broadcast %cst_126 : f32 to vector<8x128xf32>
    %218 = arith.mulf %217, %216 : vector<8x128xf32>
    %219 = vector.extract_strided_slice %202 {offsets = [0, 256], sizes = [8, 128], strides = [1, 1]} : vector<8x512xf32> to vector<8x128xf32>
    %220 = math.tanh %219 : vector<8x128xf32>
    %221 = vector.extract_strided_slice %202 {offsets = [0, 384], sizes = [8, 128], strides = [1, 1]} : vector<8x512xf32> to vector<8x128xf32>
    %cst_127 = arith.constant 5.000000e-01 : f32
    %222 = vector.broadcast %cst_127 : f32 to vector<8x128xf32>
    %223 = arith.mulf %222, %221 : vector<8x128xf32>
    %224 = math.tanh %223 : vector<8x128xf32>
    %cst_128 = arith.constant 1.000000e+00 : f32
    %225 = vector.broadcast %cst_128 : f32 to vector<8x128xf32>
    %226 = arith.addf %224, %225 : vector<8x128xf32>
    %cst_129 = arith.constant 5.000000e-01 : f32
    %227 = vector.broadcast %cst_129 : f32 to vector<8x128xf32>
    %228 = arith.mulf %227, %226 : vector<8x128xf32>
    %c0_130 = arith.constant 0 : index
    %c0_131 = arith.constant 0 : index
    %c0_132 = arith.constant 0 : index
    %229 = vector.load %arg16[%c0_130, %c0_131, %c0_132] : memref<2x8x128xf32, #tpu.memory_space<vmem>>, vector<1x8x128xf32>
    %230 = vector.shape_cast %229 : vector<1x8x128xf32> to vector<8x128xf32>
    %231 = arith.mulf %218, %230 : vector<8x128xf32>
    %232 = arith.mulf %210, %220 : vector<8x128xf32>
    %233 = arith.addf %231, %232 : vector<8x128xf32>
    %234 = math.tanh %233 : vector<8x128xf32>
    %235 = arith.mulf %228, %234 : vector<8x128xf32>
    %c0_133 = arith.constant 0 : index
    %c0_134 = arith.constant 0 : index
    %c0_135 = arith.constant 0 : index
    %236 = vector.load %arg16[%c0_133, %c0_134, %c0_135] : memref<2x8x128xf32, #tpu.memory_space<vmem>>, vector<1x8x128xf32>
    %237 = vector.shape_cast %236 : vector<1x8x128xf32> to vector<8x128xf32>
    %238 = vector.shape_cast %233 : vector<8x128xf32> to vector<1x8x128xf32>
    tpu.vector_store %arg16[%c0_133, %c0_134, %c0_135], %238 {strides = array<i32>} : memref<2x8x128xf32, #tpu.memory_space<vmem>>, vector<1x8x128xf32>,
    %c0_136 = arith.constant 0 : index
    %c128_137 = arith.constant 128 : index
    %239 = vector.load %arg14[%c0_136, %c128_137] : memref<8x256xf32, #tpu.memory_space<vmem>>, vector<8x128xf32>
    tpu.vector_store %arg14[%c0_136, %c128_137], %235 {strides = array<i32>} : memref<8x256xf32, #tpu.memory_space<vmem>>, vector<8x128xf32>,
    %c0_138 = arith.constant 0 : index
    %c0_139 = arith.constant 0 : index
    %240 = vector.load %arg15[%c0_138, %c0_139] : memref<8x256xf32, #tpu.memory_space<vmem>>, vector<8x128xf32>
    tpu.vector_store %arg15[%c0_138, %c0_139], %235 {strides = array<i32>} : memref<8x256xf32, #tpu.memory_space<vmem>>, vector<8x128xf32>,
    %c0_140 = arith.constant 0 : index
    %c0_141 = arith.constant 0 : index
    %241 = vector.load %arg15[%c0_140, %c0_141] : memref<8x256xf32, #tpu.memory_space<vmem>>, vector<8x256xf32>
    %c0_142 = arith.constant 0 : index
    %c0_143 = arith.constant 0 : index
    %242 = vector.load %arg6[%c0_142, %c0_143] : memref<256x512xf32, #tpu.memory_space<vmem>>, vector<256x512xf32>
    %cst_144 = arith.constant dense<0.000000e+00> : vector<8x512xf32>
    %243 = tpu.matmul %241, %242, %cst_144 {dimension_numbers = #tpu.dot_dimension_numbers<[1], [0], [0], [1], [0, 0, 1, 1], [], []>} : vector<8x256xf32>, vector<256x512xf32>, vector<8x512xf32> -> vector<8x512xf32>
    %c0_145 = arith.constant 0 : index
    %c0_146 = arith.constant 0 : index
    %244 = vector.load %arg7[%c0_145, %c0_146] : memref<1x512xf32, #tpu.memory_space<vmem>>, vector<1x512xf32>
    %245 = vector.broadcast %244 : vector<1x512xf32> to vector<8x512xf32>
    %246 = arith.addf %243, %245 : vector<8x512xf32>
    %247 = vector.extract_strided_slice %246 {offsets = [0, 0], sizes = [8, 128], strides = [1, 1]} : vector<8x512xf32> to vector<8x128xf32>
    %cst_147 = arith.constant 5.000000e-01 : f32
    %248 = vector.broadcast %cst_147 : f32 to vector<8x128xf32>
    %249 = arith.mulf %248, %247 : vector<8x128xf32>
    %250 = math.tanh %249 : vector<8x128xf32>
    %cst_148 = arith.constant 1.000000e+00 : f32
    %251 = vector.broadcast %cst_148 : f32 to vector<8x128xf32>
    %252 = arith.addf %250, %251 : vector<8x128xf32>
    %cst_149 = arith.constant 5.000000e-01 : f32
    %253 = vector.broadcast %cst_149 : f32 to vector<8x128xf32>
    %254 = arith.mulf %253, %252 : vector<8x128xf32>
    %255 = vector.extract_strided_slice %246 {offsets = [0, 128], sizes = [8, 128], strides = [1, 1]} : vector<8x512xf32> to vector<8x128xf32>
    %cst_150 = arith.constant 5.000000e-01 : f32
    %256 = vector.broadcast %cst_150 : f32 to vector<8x128xf32>
    %257 = arith.mulf %256, %255 : vector<8x128xf32>
    %258 = math.tanh %257 : vector<8x128xf32>
    %cst_151 = arith.constant 1.000000e+00 : f32
    %259 = vector.broadcast %cst_151 : f32 to vector<8x128xf32>
    %260 = arith.addf %258, %259 : vector<8x128xf32>
    %cst_152 = arith.constant 5.000000e-01 : f32
    %261 = vector.broadcast %cst_152 : f32 to vector<8x128xf32>
    %262 = arith.mulf %261, %260 : vector<8x128xf32>
    %263 = vector.extract_strided_slice %246 {offsets = [0, 256], sizes = [8, 128], strides = [1, 1]} : vector<8x512xf32> to vector<8x128xf32>
    %264 = math.tanh %263 : vector<8x128xf32>
    %265 = vector.extract_strided_slice %246 {offsets = [0, 384], sizes = [8, 128], strides = [1, 1]} : vector<8x512xf32> to vector<8x128xf32>
    %cst_153 = arith.constant 5.000000e-01 : f32
    %266 = vector.broadcast %cst_153 : f32 to vector<8x128xf32>
    %267 = arith.mulf %266, %265 : vector<8x128xf32>
    %268 = math.tanh %267 : vector<8x128xf32>
    %cst_154 = arith.constant 1.000000e+00 : f32
    %269 = vector.broadcast %cst_154 : f32 to vector<8x128xf32>
    %270 = arith.addf %268, %269 : vector<8x128xf32>
    %cst_155 = arith.constant 5.000000e-01 : f32
    %271 = vector.broadcast %cst_155 : f32 to vector<8x128xf32>
    %272 = arith.mulf %271, %270 : vector<8x128xf32>
    %c1_156 = arith.constant 1 : index
    %c0_157 = arith.constant 0 : index
    %c0_158 = arith.constant 0 : index
    %273 = vector.load %arg16[%c1_156, %c0_157, %c0_158] : memref<2x8x128xf32, #tpu.memory_space<vmem>>, vector<1x8x128xf32>
    %274 = vector.shape_cast %273 : vector<1x8x128xf32> to vector<8x128xf32>
    %275 = arith.mulf %262, %274 : vector<8x128xf32>
    %276 = arith.mulf %254, %264 : vector<8x128xf32>
    %277 = arith.addf %275, %276 : vector<8x128xf32>
    %278 = math.tanh %277 : vector<8x128xf32>
    %279 = arith.mulf %272, %278 : vector<8x128xf32>
    %c1_159 = arith.constant 1 : index
    %c0_160 = arith.constant 0 : index
    %c0_161 = arith.constant 0 : index
    %280 = vector.load %arg16[%c1_159, %c0_160, %c0_161] : memref<2x8x128xf32, #tpu.memory_space<vmem>>, vector<1x8x128xf32>
    %281 = vector.shape_cast %280 : vector<1x8x128xf32> to vector<8x128xf32>
    %282 = vector.shape_cast %277 : vector<8x128xf32> to vector<1x8x128xf32>
    tpu.vector_store %arg16[%c1_159, %c0_160, %c0_161], %282 {strides = array<i32>} : memref<2x8x128xf32, #tpu.memory_space<vmem>>, vector<1x8x128xf32>,
    %c0_162 = arith.constant 0 : index
    %c128_163 = arith.constant 128 : index
    %283 = vector.load %arg15[%c0_162, %c128_163] : memref<8x256xf32, #tpu.memory_space<vmem>>, vector<8x128xf32>
    tpu.vector_store %arg15[%c0_162, %c128_163], %279 {strides = array<i32>} : memref<8x256xf32, #tpu.memory_space<vmem>>, vector<8x128xf32>,
    %284 = arith.index_cast %c2_i32 : i32 to index
    %c0_164 = arith.constant 0 : index
    %c0_165 = arith.constant 0 : index
    %285 = vector.load %arg17[%284, %c0_164, %c0_165] : memref<8x8x128xf32, #tpu.memory_space<vmem>>, vector<1x8x128xf32>
    %286 = vector.shape_cast %285 : vector<1x8x128xf32> to vector<8x128xf32>
    %287 = vector.shape_cast %279 : vector<8x128xf32> to vector<1x8x128xf32>
    tpu.vector_store %arg17[%284, %c0_164, %c0_165], %287 {strides = array<i32>} : memref<8x8x128xf32, #tpu.memory_space<vmem>>, vector<1x8x128xf32>,
    %c3_i32 = arith.constant 3 : i32
    %288 = arith.index_cast %c3_i32 : i32 to index
    %c0_166 = arith.constant 0 : index
    %c0_167 = arith.constant 0 : index
    %289 = vector.load %arg1[%288, %c0_166, %c0_167] : memref<8x8x128xf32, #tpu.memory_space<vmem>>, vector<1x8x128xf32>
    %290 = vector.shape_cast %289 : vector<1x8x128xf32> to vector<8x128xf32>
    %c0_168 = arith.constant 0 : index
    %c0_169 = arith.constant 0 : index
    %291 = vector.load %arg14[%c0_168, %c0_169] : memref<8x256xf32, #tpu.memory_space<vmem>>, vector<8x128xf32>
    tpu.vector_store %arg14[%c0_168, %c0_169], %290 {strides = array<i32>} : memref<8x256xf32, #tpu.memory_space<vmem>>, vector<8x128xf32>,
    %c0_170 = arith.constant 0 : index
    %c0_171 = arith.constant 0 : index
    %292 = vector.load %arg14[%c0_170, %c0_171] : memref<8x256xf32, #tpu.memory_space<vmem>>, vector<8x256xf32>
    %c0_172 = arith.constant 0 : index
    %c0_173 = arith.constant 0 : index
    %293 = vector.load %arg4[%c0_172, %c0_173] : memref<256x512xf32, #tpu.memory_space<vmem>>, vector<256x512xf32>
    %cst_174 = arith.constant dense<0.000000e+00> : vector<8x512xf32>
    %294 = tpu.matmul %292, %293, %cst_174 {dimension_numbers = #tpu.dot_dimension_numbers<[1], [0], [0], [1], [0, 0, 1, 1], [], []>} : vector<8x256xf32>, vector<256x512xf32>, vector<8x512xf32> -> vector<8x512xf32>
    %c0_175 = arith.constant 0 : index
    %c0_176 = arith.constant 0 : index
    %295 = vector.load %arg5[%c0_175, %c0_176] : memref<1x512xf32, #tpu.memory_space<vmem>>, vector<1x512xf32>
    %296 = vector.broadcast %295 : vector<1x512xf32> to vector<8x512xf32>
    %297 = arith.addf %294, %296 : vector<8x512xf32>
    %298 = vector.extract_strided_slice %297 {offsets = [0, 0], sizes = [8, 128], strides = [1, 1]} : vector<8x512xf32> to vector<8x128xf32>
    %cst_177 = arith.constant 5.000000e-01 : f32
    %299 = vector.broadcast %cst_177 : f32 to vector<8x128xf32>
    %300 = arith.mulf %299, %298 : vector<8x128xf32>
    %301 = math.tanh %300 : vector<8x128xf32>
    %cst_178 = arith.constant 1.000000e+00 : f32
    %302 = vector.broadcast %cst_178 : f32 to vector<8x128xf32>
    %303 = arith.addf %301, %302 : vector<8x128xf32>
    %cst_179 = arith.constant 5.000000e-01 : f32
    %304 = vector.broadcast %cst_179 : f32 to vector<8x128xf32>
    %305 = arith.mulf %304, %303 : vector<8x128xf32>
    %306 = vector.extract_strided_slice %297 {offsets = [0, 128], sizes = [8, 128], strides = [1, 1]} : vector<8x512xf32> to vector<8x128xf32>
    %cst_180 = arith.constant 5.000000e-01 : f32
    %307 = vector.broadcast %cst_180 : f32 to vector<8x128xf32>
    %308 = arith.mulf %307, %306 : vector<8x128xf32>
    %309 = math.tanh %308 : vector<8x128xf32>
    %cst_181 = arith.constant 1.000000e+00 : f32
    %310 = vector.broadcast %cst_181 : f32 to vector<8x128xf32>
    %311 = arith.addf %309, %310 : vector<8x128xf32>
    %cst_182 = arith.constant 5.000000e-01 : f32
    %312 = vector.broadcast %cst_182 : f32 to vector<8x128xf32>
    %313 = arith.mulf %312, %311 : vector<8x128xf32>
    %314 = vector.extract_strided_slice %297 {offsets = [0, 256], sizes = [8, 128], strides = [1, 1]} : vector<8x512xf32> to vector<8x128xf32>
    %315 = math.tanh %314 : vector<8x128xf32>
    %316 = vector.extract_strided_slice %297 {offsets = [0, 384], sizes = [8, 128], strides = [1, 1]} : vector<8x512xf32> to vector<8x128xf32>
    %cst_183 = arith.constant 5.000000e-01 : f32
    %317 = vector.broadcast %cst_183 : f32 to vector<8x128xf32>
    %318 = arith.mulf %317, %316 : vector<8x128xf32>
    %319 = math.tanh %318 : vector<8x128xf32>
    %cst_184 = arith.constant 1.000000e+00 : f32
    %320 = vector.broadcast %cst_184 : f32 to vector<8x128xf32>
    %321 = arith.addf %319, %320 : vector<8x128xf32>
    %cst_185 = arith.constant 5.000000e-01 : f32
    %322 = vector.broadcast %cst_185 : f32 to vector<8x128xf32>
    %323 = arith.mulf %322, %321 : vector<8x128xf32>
    %c0_186 = arith.constant 0 : index
    %c0_187 = arith.constant 0 : index
    %c0_188 = arith.constant 0 : index
    %324 = vector.load %arg16[%c0_186, %c0_187, %c0_188] : memref<2x8x128xf32, #tpu.memory_space<vmem>>, vector<1x8x128xf32>
    %325 = vector.shape_cast %324 : vector<1x8x128xf32> to vector<8x128xf32>
    %326 = arith.mulf %313, %325 : vector<8x128xf32>
    %327 = arith.mulf %305, %315 : vector<8x128xf32>
    %328 = arith.addf %326, %327 : vector<8x128xf32>
    %329 = math.tanh %328 : vector<8x128xf32>
    %330 = arith.mulf %323, %329 : vector<8x128xf32>
    %c0_189 = arith.constant 0 : index
    %c0_190 = arith.constant 0 : index
    %c0_191 = arith.constant 0 : index
    %331 = vector.load %arg16[%c0_189, %c0_190, %c0_191] : memref<2x8x128xf32, #tpu.memory_space<vmem>>, vector<1x8x128xf32>
    %332 = vector.shape_cast %331 : vector<1x8x128xf32> to vector<8x128xf32>
    %333 = vector.shape_cast %328 : vector<8x128xf32> to vector<1x8x128xf32>
    tpu.vector_store %arg16[%c0_189, %c0_190, %c0_191], %333 {strides = array<i32>} : memref<2x8x128xf32, #tpu.memory_space<vmem>>, vector<1x8x128xf32>,
    %c0_192 = arith.constant 0 : index
    %c128_193 = arith.constant 128 : index
    %334 = vector.load %arg14[%c0_192, %c128_193] : memref<8x256xf32, #tpu.memory_space<vmem>>, vector<8x128xf32>
    tpu.vector_store %arg14[%c0_192, %c128_193], %330 {strides = array<i32>} : memref<8x256xf32, #tpu.memory_space<vmem>>, vector<8x128xf32>,
    %c0_194 = arith.constant 0 : index
    %c0_195 = arith.constant 0 : index
    %335 = vector.load %arg15[%c0_194, %c0_195] : memref<8x256xf32, #tpu.memory_space<vmem>>, vector<8x128xf32>
    tpu.vector_store %arg15[%c0_194, %c0_195], %330 {strides = array<i32>} : memref<8x256xf32, #tpu.memory_space<vmem>>, vector<8x128xf32>,
    %c0_196 = arith.constant 0 : index
    %c0_197 = arith.constant 0 : index
    %336 = vector.load %arg15[%c0_196, %c0_197] : memref<8x256xf32, #tpu.memory_space<vmem>>, vector<8x256xf32>
    %c0_198 = arith.constant 0 : index
    %c0_199 = arith.constant 0 : index
    %337 = vector.load %arg6[%c0_198, %c0_199] : memref<256x512xf32, #tpu.memory_space<vmem>>, vector<256x512xf32>
    %cst_200 = arith.constant dense<0.000000e+00> : vector<8x512xf32>
    %338 = tpu.matmul %336, %337, %cst_200 {dimension_numbers = #tpu.dot_dimension_numbers<[1], [0], [0], [1], [0, 0, 1, 1], [], []>} : vector<8x256xf32>, vector<256x512xf32>, vector<8x512xf32> -> vector<8x512xf32>
    %c0_201 = arith.constant 0 : index
    %c0_202 = arith.constant 0 : index
    %339 = vector.load %arg7[%c0_201, %c0_202] : memref<1x512xf32, #tpu.memory_space<vmem>>, vector<1x512xf32>
    %340 = vector.broadcast %339 : vector<1x512xf32> to vector<8x512xf32>
    %341 = arith.addf %338, %340 : vector<8x512xf32>
    %342 = vector.extract_strided_slice %341 {offsets = [0, 0], sizes = [8, 128], strides = [1, 1]} : vector<8x512xf32> to vector<8x128xf32>
    %cst_203 = arith.constant 5.000000e-01 : f32
    %343 = vector.broadcast %cst_203 : f32 to vector<8x128xf32>
    %344 = arith.mulf %343, %342 : vector<8x128xf32>
    %345 = math.tanh %344 : vector<8x128xf32>
    %cst_204 = arith.constant 1.000000e+00 : f32
    %346 = vector.broadcast %cst_204 : f32 to vector<8x128xf32>
    %347 = arith.addf %345, %346 : vector<8x128xf32>
    %cst_205 = arith.constant 5.000000e-01 : f32
    %348 = vector.broadcast %cst_205 : f32 to vector<8x128xf32>
    %349 = arith.mulf %348, %347 : vector<8x128xf32>
    %350 = vector.extract_strided_slice %341 {offsets = [0, 128], sizes = [8, 128], strides = [1, 1]} : vector<8x512xf32> to vector<8x128xf32>
    %cst_206 = arith.constant 5.000000e-01 : f32
    %351 = vector.broadcast %cst_206 : f32 to vector<8x128xf32>
    %352 = arith.mulf %351, %350 : vector<8x128xf32>
    %353 = math.tanh %352 : vector<8x128xf32>
    %cst_207 = arith.constant 1.000000e+00 : f32
    %354 = vector.broadcast %cst_207 : f32 to vector<8x128xf32>
    %355 = arith.addf %353, %354 : vector<8x128xf32>
    %cst_208 = arith.constant 5.000000e-01 : f32
    %356 = vector.broadcast %cst_208 : f32 to vector<8x128xf32>
    %357 = arith.mulf %356, %355 : vector<8x128xf32>
    %358 = vector.extract_strided_slice %341 {offsets = [0, 256], sizes = [8, 128], strides = [1, 1]} : vector<8x512xf32> to vector<8x128xf32>
    %359 = math.tanh %358 : vector<8x128xf32>
    %360 = vector.extract_strided_slice %341 {offsets = [0, 384], sizes = [8, 128], strides = [1, 1]} : vector<8x512xf32> to vector<8x128xf32>
    %cst_209 = arith.constant 5.000000e-01 : f32
    %361 = vector.broadcast %cst_209 : f32 to vector<8x128xf32>
    %362 = arith.mulf %361, %360 : vector<8x128xf32>
    %363 = math.tanh %362 : vector<8x128xf32>
    %cst_210 = arith.constant 1.000000e+00 : f32
    %364 = vector.broadcast %cst_210 : f32 to vector<8x128xf32>
    %365 = arith.addf %363, %364 : vector<8x128xf32>
    %cst_211 = arith.constant 5.000000e-01 : f32
    %366 = vector.broadcast %cst_211 : f32 to vector<8x128xf32>
    %367 = arith.mulf %366, %365 : vector<8x128xf32>
    %c1_212 = arith.constant 1 : index
    %c0_213 = arith.constant 0 : index
    %c0_214 = arith.constant 0 : index
    %368 = vector.load %arg16[%c1_212, %c0_213, %c0_214] : memref<2x8x128xf32, #tpu.memory_space<vmem>>, vector<1x8x128xf32>
    %369 = vector.shape_cast %368 : vector<1x8x128xf32> to vector<8x128xf32>
    %370 = arith.mulf %357, %369 : vector<8x128xf32>
    %371 = arith.mulf %349, %359 : vector<8x128xf32>
    %372 = arith.addf %370, %371 : vector<8x128xf32>
    %373 = math.tanh %372 : vector<8x128xf32>
    %374 = arith.mulf %367, %373 : vector<8x128xf32>
    %c1_215 = arith.constant 1 : index
    %c0_216 = arith.constant 0 : index
    %c0_217 = arith.constant 0 : index
    %375 = vector.load %arg16[%c1_215, %c0_216, %c0_217] : memref<2x8x128xf32, #tpu.memory_space<vmem>>, vector<1x8x128xf32>
    %376 = vector.shape_cast %375 : vector<1x8x128xf32> to vector<8x128xf32>
    %377 = vector.shape_cast %372 : vector<8x128xf32> to vector<1x8x128xf32>
    tpu.vector_store %arg16[%c1_215, %c0_216, %c0_217], %377 {strides = array<i32>} : memref<2x8x128xf32, #tpu.memory_space<vmem>>, vector<1x8x128xf32>,
    %c0_218 = arith.constant 0 : index
    %c128_219 = arith.constant 128 : index
    %378 = vector.load %arg15[%c0_218, %c128_219] : memref<8x256xf32, #tpu.memory_space<vmem>>, vector<8x128xf32>
    tpu.vector_store %arg15[%c0_218, %c128_219], %374 {strides = array<i32>} : memref<8x256xf32, #tpu.memory_space<vmem>>, vector<8x128xf32>,
    %379 = arith.index_cast %c3_i32 : i32 to index
    %c0_220 = arith.constant 0 : index
    %c0_221 = arith.constant 0 : index
    %380 = vector.load %arg17[%379, %c0_220, %c0_221] : memref<8x8x128xf32, #tpu.memory_space<vmem>>, vector<1x8x128xf32>
    %381 = vector.shape_cast %380 : vector<1x8x128xf32> to vector<8x128xf32>
    %382 = vector.shape_cast %374 : vector<8x128xf32> to vector<1x8x128xf32>
    tpu.vector_store %arg17[%379, %c0_220, %c0_221], %382 {strides = array<i32>} : memref<8x8x128xf32, #tpu.memory_space<vmem>>, vector<1x8x128xf32>,
    %c4_i32 = arith.constant 4 : i32
    %383 = arith.index_cast %c4_i32 : i32 to index
    %c0_222 = arith.constant 0 : index
    %c0_223 = arith.constant 0 : index
    %384 = vector.load %arg1[%383, %c0_222, %c0_223] : memref<8x8x128xf32, #tpu.memory_space<vmem>>, vector<1x8x128xf32>
    %385 = vector.shape_cast %384 : vector<1x8x128xf32> to vector<8x128xf32>
    %c0_224 = arith.constant 0 : index
    %c0_225 = arith.constant 0 : index
    %386 = vector.load %arg14[%c0_224, %c0_225] : memref<8x256xf32, #tpu.memory_space<vmem>>, vector<8x128xf32>
    tpu.vector_store %arg14[%c0_224, %c0_225], %385 {strides = array<i32>} : memref<8x256xf32, #tpu.memory_space<vmem>>, vector<8x128xf32>,
    %c0_226 = arith.constant 0 : index
    %c0_227 = arith.constant 0 : index
    %387 = vector.load %arg14[%c0_226, %c0_227] : memref<8x256xf32, #tpu.memory_space<vmem>>, vector<8x256xf32>
    %c0_228 = arith.constant 0 : index
    %c0_229 = arith.constant 0 : index
    %388 = vector.load %arg4[%c0_228, %c0_229] : memref<256x512xf32, #tpu.memory_space<vmem>>, vector<256x512xf32>
    %cst_230 = arith.constant dense<0.000000e+00> : vector<8x512xf32>
    %389 = tpu.matmul %387, %388, %cst_230 {dimension_numbers = #tpu.dot_dimension_numbers<[1], [0], [0], [1], [0, 0, 1, 1], [], []>} : vector<8x256xf32>, vector<256x512xf32>, vector<8x512xf32> -> vector<8x512xf32>
    %c0_231 = arith.constant 0 : index
    %c0_232 = arith.constant 0 : index
    %390 = vector.load %arg5[%c0_231, %c0_232] : memref<1x512xf32, #tpu.memory_space<vmem>>, vector<1x512xf32>
    %391 = vector.broadcast %390 : vector<1x512xf32> to vector<8x512xf32>
    %392 = arith.addf %389, %391 : vector<8x512xf32>
    %393 = vector.extract_strided_slice %392 {offsets = [0, 0], sizes = [8, 128], strides = [1, 1]} : vector<8x512xf32> to vector<8x128xf32>
    %cst_233 = arith.constant 5.000000e-01 : f32
    %394 = vector.broadcast %cst_233 : f32 to vector<8x128xf32>
    %395 = arith.mulf %394, %393 : vector<8x128xf32>
    %396 = math.tanh %395 : vector<8x128xf32>
    %cst_234 = arith.constant 1.000000e+00 : f32
    %397 = vector.broadcast %cst_234 : f32 to vector<8x128xf32>
    %398 = arith.addf %396, %397 : vector<8x128xf32>
    %cst_235 = arith.constant 5.000000e-01 : f32
    %399 = vector.broadcast %cst_235 : f32 to vector<8x128xf32>
    %400 = arith.mulf %399, %398 : vector<8x128xf32>
    %401 = vector.extract_strided_slice %392 {offsets = [0, 128], sizes = [8, 128], strides = [1, 1]} : vector<8x512xf32> to vector<8x128xf32>
    %cst_236 = arith.constant 5.000000e-01 : f32
    %402 = vector.broadcast %cst_236 : f32 to vector<8x128xf32>
    %403 = arith.mulf %402, %401 : vector<8x128xf32>
    %404 = math.tanh %403 : vector<8x128xf32>
    %cst_237 = arith.constant 1.000000e+00 : f32
    %405 = vector.broadcast %cst_237 : f32 to vector<8x128xf32>
    %406 = arith.addf %404, %405 : vector<8x128xf32>
    %cst_238 = arith.constant 5.000000e-01 : f32
    %407 = vector.broadcast %cst_238 : f32 to vector<8x128xf32>
    %408 = arith.mulf %407, %406 : vector<8x128xf32>
    %409 = vector.extract_strided_slice %392 {offsets = [0, 256], sizes = [8, 128], strides = [1, 1]} : vector<8x512xf32> to vector<8x128xf32>
    %410 = math.tanh %409 : vector<8x128xf32>
    %411 = vector.extract_strided_slice %392 {offsets = [0, 384], sizes = [8, 128], strides = [1, 1]} : vector<8x512xf32> to vector<8x128xf32>
    %cst_239 = arith.constant 5.000000e-01 : f32
    %412 = vector.broadcast %cst_239 : f32 to vector<8x128xf32>
    %413 = arith.mulf %412, %411 : vector<8x128xf32>
    %414 = math.tanh %413 : vector<8x128xf32>
    %cst_240 = arith.constant 1.000000e+00 : f32
    %415 = vector.broadcast %cst_240 : f32 to vector<8x128xf32>
    %416 = arith.addf %414, %415 : vector<8x128xf32>
    %cst_241 = arith.constant 5.000000e-01 : f32
    %417 = vector.broadcast %cst_241 : f32 to vector<8x128xf32>
    %418 = arith.mulf %417, %416 : vector<8x128xf32>
    %c0_242 = arith.constant 0 : index
    %c0_243 = arith.constant 0 : index
    %c0_244 = arith.constant 0 : index
    %419 = vector.load %arg16[%c0_242, %c0_243, %c0_244] : memref<2x8x128xf32, #tpu.memory_space<vmem>>, vector<1x8x128xf32>
    %420 = vector.shape_cast %419 : vector<1x8x128xf32> to vector<8x128xf32>
    %421 = arith.mulf %408, %420 : vector<8x128xf32>
    %422 = arith.mulf %400, %410 : vector<8x128xf32>
    %423 = arith.addf %421, %422 : vector<8x128xf32>
    %424 = math.tanh %423 : vector<8x128xf32>
    %425 = arith.mulf %418, %424 : vector<8x128xf32>
    %c0_245 = arith.constant 0 : index
    %c0_246 = arith.constant 0 : index
    %c0_247 = arith.constant 0 : index
    %426 = vector.load %arg16[%c0_245, %c0_246, %c0_247] : memref<2x8x128xf32, #tpu.memory_space<vmem>>, vector<1x8x128xf32>
    %427 = vector.shape_cast %426 : vector<1x8x128xf32> to vector<8x128xf32>
    %428 = vector.shape_cast %423 : vector<8x128xf32> to vector<1x8x128xf32>
    tpu.vector_store %arg16[%c0_245, %c0_246, %c0_247], %428 {strides = array<i32>} : memref<2x8x128xf32, #tpu.memory_space<vmem>>, vector<1x8x128xf32>,
    %c0_248 = arith.constant 0 : index
    %c128_249 = arith.constant 128 : index
    %429 = vector.load %arg14[%c0_248, %c128_249] : memref<8x256xf32, #tpu.memory_space<vmem>>, vector<8x128xf32>
    tpu.vector_store %arg14[%c0_248, %c128_249], %425 {strides = array<i32>} : memref<8x256xf32, #tpu.memory_space<vmem>>, vector<8x128xf32>,
    %c0_250 = arith.constant 0 : index
    %c0_251 = arith.constant 0 : index
    %430 = vector.load %arg15[%c0_250, %c0_251] : memref<8x256xf32, #tpu.memory_space<vmem>>, vector<8x128xf32>
    tpu.vector_store %arg15[%c0_250, %c0_251], %425 {strides = array<i32>} : memref<8x256xf32, #tpu.memory_space<vmem>>, vector<8x128xf32>,
    %c0_252 = arith.constant 0 : index
    %c0_253 = arith.constant 0 : index
    %431 = vector.load %arg15[%c0_252, %c0_253] : memref<8x256xf32, #tpu.memory_space<vmem>>, vector<8x256xf32>
    %c0_254 = arith.constant 0 : index
    %c0_255 = arith.constant 0 : index
    %432 = vector.load %arg6[%c0_254, %c0_255] : memref<256x512xf32, #tpu.memory_space<vmem>>, vector<256x512xf32>
    %cst_256 = arith.constant dense<0.000000e+00> : vector<8x512xf32>
    %433 = tpu.matmul %431, %432, %cst_256 {dimension_numbers = #tpu.dot_dimension_numbers<[1], [0], [0], [1], [0, 0, 1, 1], [], []>} : vector<8x256xf32>, vector<256x512xf32>, vector<8x512xf32> -> vector<8x512xf32>
    %c0_257 = arith.constant 0 : index
    %c0_258 = arith.constant 0 : index
    %434 = vector.load %arg7[%c0_257, %c0_258] : memref<1x512xf32, #tpu.memory_space<vmem>>, vector<1x512xf32>
    %435 = vector.broadcast %434 : vector<1x512xf32> to vector<8x512xf32>
    %436 = arith.addf %433, %435 : vector<8x512xf32>
    %437 = vector.extract_strided_slice %436 {offsets = [0, 0], sizes = [8, 128], strides = [1, 1]} : vector<8x512xf32> to vector<8x128xf32>
    %cst_259 = arith.constant 5.000000e-01 : f32
    %438 = vector.broadcast %cst_259 : f32 to vector<8x128xf32>
    %439 = arith.mulf %438, %437 : vector<8x128xf32>
    %440 = math.tanh %439 : vector<8x128xf32>
    %cst_260 = arith.constant 1.000000e+00 : f32
    %441 = vector.broadcast %cst_260 : f32 to vector<8x128xf32>
    %442 = arith.addf %440, %441 : vector<8x128xf32>
    %cst_261 = arith.constant 5.000000e-01 : f32
    %443 = vector.broadcast %cst_261 : f32 to vector<8x128xf32>
    %444 = arith.mulf %443, %442 : vector<8x128xf32>
    %445 = vector.extract_strided_slice %436 {offsets = [0, 128], sizes = [8, 128], strides = [1, 1]} : vector<8x512xf32> to vector<8x128xf32>
    %cst_262 = arith.constant 5.000000e-01 : f32
    %446 = vector.broadcast %cst_262 : f32 to vector<8x128xf32>
    %447 = arith.mulf %446, %445 : vector<8x128xf32>
    %448 = math.tanh %447 : vector<8x128xf32>
    %cst_263 = arith.constant 1.000000e+00 : f32
    %449 = vector.broadcast %cst_263 : f32 to vector<8x128xf32>
    %450 = arith.addf %448, %449 : vector<8x128xf32>
    %cst_264 = arith.constant 5.000000e-01 : f32
    %451 = vector.broadcast %cst_264 : f32 to vector<8x128xf32>
    %452 = arith.mulf %451, %450 : vector<8x128xf32>
    %453 = vector.extract_strided_slice %436 {offsets = [0, 256], sizes = [8, 128], strides = [1, 1]} : vector<8x512xf32> to vector<8x128xf32>
    %454 = math.tanh %453 : vector<8x128xf32>
    %455 = vector.extract_strided_slice %436 {offsets = [0, 384], sizes = [8, 128], strides = [1, 1]} : vector<8x512xf32> to vector<8x128xf32>
    %cst_265 = arith.constant 5.000000e-01 : f32
    %456 = vector.broadcast %cst_265 : f32 to vector<8x128xf32>
    %457 = arith.mulf %456, %455 : vector<8x128xf32>
    %458 = math.tanh %457 : vector<8x128xf32>
    %cst_266 = arith.constant 1.000000e+00 : f32
    %459 = vector.broadcast %cst_266 : f32 to vector<8x128xf32>
    %460 = arith.addf %458, %459 : vector<8x128xf32>
    %cst_267 = arith.constant 5.000000e-01 : f32
    %461 = vector.broadcast %cst_267 : f32 to vector<8x128xf32>
    %462 = arith.mulf %461, %460 : vector<8x128xf32>
    %c1_268 = arith.constant 1 : index
    %c0_269 = arith.constant 0 : index
    %c0_270 = arith.constant 0 : index
    %463 = vector.load %arg16[%c1_268, %c0_269, %c0_270] : memref<2x8x128xf32, #tpu.memory_space<vmem>>, vector<1x8x128xf32>
    %464 = vector.shape_cast %463 : vector<1x8x128xf32> to vector<8x128xf32>
    %465 = arith.mulf %452, %464 : vector<8x128xf32>
    %466 = arith.mulf %444, %454 : vector<8x128xf32>
    %467 = arith.addf %465, %466 : vector<8x128xf32>
    %468 = math.tanh %467 : vector<8x128xf32>
    %469 = arith.mulf %462, %468 : vector<8x128xf32>
    %c1_271 = arith.constant 1 : index
    %c0_272 = arith.constant 0 : index
    %c0_273 = arith.constant 0 : index
    %470 = vector.load %arg16[%c1_271, %c0_272, %c0_273] : memref<2x8x128xf32, #tpu.memory_space<vmem>>, vector<1x8x128xf32>
    %471 = vector.shape_cast %470 : vector<1x8x128xf32> to vector<8x128xf32>
    %472 = vector.shape_cast %467 : vector<8x128xf32> to vector<1x8x128xf32>
    tpu.vector_store %arg16[%c1_271, %c0_272, %c0_273], %472 {strides = array<i32>} : memref<2x8x128xf32, #tpu.memory_space<vmem>>, vector<1x8x128xf32>,
    %c0_274 = arith.constant 0 : index
    %c128_275 = arith.constant 128 : index
    %473 = vector.load %arg15[%c0_274, %c128_275] : memref<8x256xf32, #tpu.memory_space<vmem>>, vector<8x128xf32>
    tpu.vector_store %arg15[%c0_274, %c128_275], %469 {strides = array<i32>} : memref<8x256xf32, #tpu.memory_space<vmem>>, vector<8x128xf32>,
    %474 = arith.index_cast %c4_i32 : i32 to index
    %c0_276 = arith.constant 0 : index
    %c0_277 = arith.constant 0 : index
    %475 = vector.load %arg17[%474, %c0_276, %c0_277] : memref<8x8x128xf32, #tpu.memory_space<vmem>>, vector<1x8x128xf32>
    %476 = vector.shape_cast %475 : vector<1x8x128xf32> to vector<8x128xf32>
    %477 = vector.shape_cast %469 : vector<8x128xf32> to vector<1x8x128xf32>
    tpu.vector_store %arg17[%474, %c0_276, %c0_277], %477 {strides = array<i32>} : memref<8x8x128xf32, #tpu.memory_space<vmem>>, vector<1x8x128xf32>,
    %c5_i32 = arith.constant 5 : i32
    %478 = arith.index_cast %c5_i32 : i32 to index
    %c0_278 = arith.constant 0 : index
    %c0_279 = arith.constant 0 : index
    %479 = vector.load %arg1[%478, %c0_278, %c0_279] : memref<8x8x128xf32, #tpu.memory_space<vmem>>, vector<1x8x128xf32>
    %480 = vector.shape_cast %479 : vector<1x8x128xf32> to vector<8x128xf32>
    %c0_280 = arith.constant 0 : index
    %c0_281 = arith.constant 0 : index
    %481 = vector.load %arg14[%c0_280, %c0_281] : memref<8x256xf32, #tpu.memory_space<vmem>>, vector<8x128xf32>
    tpu.vector_store %arg14[%c0_280, %c0_281], %480 {strides = array<i32>} : memref<8x256xf32, #tpu.memory_space<vmem>>, vector<8x128xf32>,
    %c0_282 = arith.constant 0 : index
    %c0_283 = arith.constant 0 : index
    %482 = vector.load %arg14[%c0_282, %c0_283] : memref<8x256xf32, #tpu.memory_space<vmem>>, vector<8x256xf32>
    %c0_284 = arith.constant 0 : index
    %c0_285 = arith.constant 0 : index
    %483 = vector.load %arg4[%c0_284, %c0_285] : memref<256x512xf32, #tpu.memory_space<vmem>>, vector<256x512xf32>
    %cst_286 = arith.constant dense<0.000000e+00> : vector<8x512xf32>
    %484 = tpu.matmul %482, %483, %cst_286 {dimension_numbers = #tpu.dot_dimension_numbers<[1], [0], [0], [1], [0, 0, 1, 1], [], []>} : vector<8x256xf32>, vector<256x512xf32>, vector<8x512xf32> -> vector<8x512xf32>
    %c0_287 = arith.constant 0 : index
    %c0_288 = arith.constant 0 : index
    %485 = vector.load %arg5[%c0_287, %c0_288] : memref<1x512xf32, #tpu.memory_space<vmem>>, vector<1x512xf32>
    %486 = vector.broadcast %485 : vector<1x512xf32> to vector<8x512xf32>
    %487 = arith.addf %484, %486 : vector<8x512xf32>
    %488 = vector.extract_strided_slice %487 {offsets = [0, 0], sizes = [8, 128], strides = [1, 1]} : vector<8x512xf32> to vector<8x128xf32>
    %cst_289 = arith.constant 5.000000e-01 : f32
    %489 = vector.broadcast %cst_289 : f32 to vector<8x128xf32>
    %490 = arith.mulf %489, %488 : vector<8x128xf32>
    %491 = math.tanh %490 : vector<8x128xf32>
    %cst_290 = arith.constant 1.000000e+00 : f32
    %492 = vector.broadcast %cst_290 : f32 to vector<8x128xf32>
    %493 = arith.addf %491, %492 : vector<8x128xf32>
    %cst_291 = arith.constant 5.000000e-01 : f32
    %494 = vector.broadcast %cst_291 : f32 to vector<8x128xf32>
    %495 = arith.mulf %494, %493 : vector<8x128xf32>
    %496 = vector.extract_strided_slice %487 {offsets = [0, 128], sizes = [8, 128], strides = [1, 1]} : vector<8x512xf32> to vector<8x128xf32>
    %cst_292 = arith.constant 5.000000e-01 : f32
    %497 = vector.broadcast %cst_292 : f32 to vector<8x128xf32>
    %498 = arith.mulf %497, %496 : vector<8x128xf32>
    %499 = math.tanh %498 : vector<8x128xf32>
    %cst_293 = arith.constant 1.000000e+00 : f32
    %500 = vector.broadcast %cst_293 : f32 to vector<8x128xf32>
    %501 = arith.addf %499, %500 : vector<8x128xf32>
    %cst_294 = arith.constant 5.000000e-01 : f32
    %502 = vector.broadcast %cst_294 : f32 to vector<8x128xf32>
    %503 = arith.mulf %502, %501 : vector<8x128xf32>
    %504 = vector.extract_strided_slice %487 {offsets = [0, 256], sizes = [8, 128], strides = [1, 1]} : vector<8x512xf32> to vector<8x128xf32>
    %505 = math.tanh %504 : vector<8x128xf32>
    %506 = vector.extract_strided_slice %487 {offsets = [0, 384], sizes = [8, 128], strides = [1, 1]} : vector<8x512xf32> to vector<8x128xf32>
    %cst_295 = arith.constant 5.000000e-01 : f32
    %507 = vector.broadcast %cst_295 : f32 to vector<8x128xf32>
    %508 = arith.mulf %507, %506 : vector<8x128xf32>
    %509 = math.tanh %508 : vector<8x128xf32>
    %cst_296 = arith.constant 1.000000e+00 : f32
    %510 = vector.broadcast %cst_296 : f32 to vector<8x128xf32>
    %511 = arith.addf %509, %510 : vector<8x128xf32>
    %cst_297 = arith.constant 5.000000e-01 : f32
    %512 = vector.broadcast %cst_297 : f32 to vector<8x128xf32>
    %513 = arith.mulf %512, %511 : vector<8x128xf32>
    %c0_298 = arith.constant 0 : index
    %c0_299 = arith.constant 0 : index
    %c0_300 = arith.constant 0 : index
    %514 = vector.load %arg16[%c0_298, %c0_299, %c0_300] : memref<2x8x128xf32, #tpu.memory_space<vmem>>, vector<1x8x128xf32>
    %515 = vector.shape_cast %514 : vector<1x8x128xf32> to vector<8x128xf32>
    %516 = arith.mulf %503, %515 : vector<8x128xf32>
    %517 = arith.mulf %495, %505 : vector<8x128xf32>
    %518 = arith.addf %516, %517 : vector<8x128xf32>
    %519 = math.tanh %518 : vector<8x128xf32>
    %520 = arith.mulf %513, %519 : vector<8x128xf32>
    %c0_301 = arith.constant 0 : index
    %c0_302 = arith.constant 0 : index
    %c0_303 = arith.constant 0 : index
    %521 = vector.load %arg16[%c0_301, %c0_302, %c0_303] : memref<2x8x128xf32, #tpu.memory_space<vmem>>, vector<1x8x128xf32>
    %522 = vector.shape_cast %521 : vector<1x8x128xf32> to vector<8x128xf32>
    %523 = vector.shape_cast %518 : vector<8x128xf32> to vector<1x8x128xf32>
    tpu.vector_store %arg16[%c0_301, %c0_302, %c0_303], %523 {strides = array<i32>} : memref<2x8x128xf32, #tpu.memory_space<vmem>>, vector<1x8x128xf32>,
    %c0_304 = arith.constant 0 : index
    %c128_305 = arith.constant 128 : index
    %524 = vector.load %arg14[%c0_304, %c128_305] : memref<8x256xf32, #tpu.memory_space<vmem>>, vector<8x128xf32>
    tpu.vector_store %arg14[%c0_304, %c128_305], %520 {strides = array<i32>} : memref<8x256xf32, #tpu.memory_space<vmem>>, vector<8x128xf32>,
    %c0_306 = arith.constant 0 : index
    %c0_307 = arith.constant 0 : index
    %525 = vector.load %arg15[%c0_306, %c0_307] : memref<8x256xf32, #tpu.memory_space<vmem>>, vector<8x128xf32>
    tpu.vector_store %arg15[%c0_306, %c0_307], %520 {strides = array<i32>} : memref<8x256xf32, #tpu.memory_space<vmem>>, vector<8x128xf32>,
    %c0_308 = arith.constant 0 : index
    %c0_309 = arith.constant 0 : index
    %526 = vector.load %arg15[%c0_308, %c0_309] : memref<8x256xf32, #tpu.memory_space<vmem>>, vector<8x256xf32>
    %c0_310 = arith.constant 0 : index
    %c0_311 = arith.constant 0 : index
    %527 = vector.load %arg6[%c0_310, %c0_311] : memref<256x512xf32, #tpu.memory_space<vmem>>, vector<256x512xf32>
    %cst_312 = arith.constant dense<0.000000e+00> : vector<8x512xf32>
    %528 = tpu.matmul %526, %527, %cst_312 {dimension_numbers = #tpu.dot_dimension_numbers<[1], [0], [0], [1], [0, 0, 1, 1], [], []>} : vector<8x256xf32>, vector<256x512xf32>, vector<8x512xf32> -> vector<8x512xf32>
    %c0_313 = arith.constant 0 : index
    %c0_314 = arith.constant 0 : index
    %529 = vector.load %arg7[%c0_313, %c0_314] : memref<1x512xf32, #tpu.memory_space<vmem>>, vector<1x512xf32>
    %530 = vector.broadcast %529 : vector<1x512xf32> to vector<8x512xf32>
    %531 = arith.addf %528, %530 : vector<8x512xf32>
    %532 = vector.extract_strided_slice %531 {offsets = [0, 0], sizes = [8, 128], strides = [1, 1]} : vector<8x512xf32> to vector<8x128xf32>
    %cst_315 = arith.constant 5.000000e-01 : f32
    %533 = vector.broadcast %cst_315 : f32 to vector<8x128xf32>
    %534 = arith.mulf %533, %532 : vector<8x128xf32>
    %535 = math.tanh %534 : vector<8x128xf32>
    %cst_316 = arith.constant 1.000000e+00 : f32
    %536 = vector.broadcast %cst_316 : f32 to vector<8x128xf32>
    %537 = arith.addf %535, %536 : vector<8x128xf32>
    %cst_317 = arith.constant 5.000000e-01 : f32
    %538 = vector.broadcast %cst_317 : f32 to vector<8x128xf32>
    %539 = arith.mulf %538, %537 : vector<8x128xf32>
    %540 = vector.extract_strided_slice %531 {offsets = [0, 128], sizes = [8, 128], strides = [1, 1]} : vector<8x512xf32> to vector<8x128xf32>
    %cst_318 = arith.constant 5.000000e-01 : f32
    %541 = vector.broadcast %cst_318 : f32 to vector<8x128xf32>
    %542 = arith.mulf %541, %540 : vector<8x128xf32>
    %543 = math.tanh %542 : vector<8x128xf32>
    %cst_319 = arith.constant 1.000000e+00 : f32
    %544 = vector.broadcast %cst_319 : f32 to vector<8x128xf32>
    %545 = arith.addf %543, %544 : vector<8x128xf32>
    %cst_320 = arith.constant 5.000000e-01 : f32
    %546 = vector.broadcast %cst_320 : f32 to vector<8x128xf32>
    %547 = arith.mulf %546, %545 : vector<8x128xf32>
    %548 = vector.extract_strided_slice %531 {offsets = [0, 256], sizes = [8, 128], strides = [1, 1]} : vector<8x512xf32> to vector<8x128xf32>
    %549 = math.tanh %548 : vector<8x128xf32>
    %550 = vector.extract_strided_slice %531 {offsets = [0, 384], sizes = [8, 128], strides = [1, 1]} : vector<8x512xf32> to vector<8x128xf32>
    %cst_321 = arith.constant 5.000000e-01 : f32
    %551 = vector.broadcast %cst_321 : f32 to vector<8x128xf32>
    %552 = arith.mulf %551, %550 : vector<8x128xf32>
    %553 = math.tanh %552 : vector<8x128xf32>
    %cst_322 = arith.constant 1.000000e+00 : f32
    %554 = vector.broadcast %cst_322 : f32 to vector<8x128xf32>
    %555 = arith.addf %553, %554 : vector<8x128xf32>
    %cst_323 = arith.constant 5.000000e-01 : f32
    %556 = vector.broadcast %cst_323 : f32 to vector<8x128xf32>
    %557 = arith.mulf %556, %555 : vector<8x128xf32>
    %c1_324 = arith.constant 1 : index
    %c0_325 = arith.constant 0 : index
    %c0_326 = arith.constant 0 : index
    %558 = vector.load %arg16[%c1_324, %c0_325, %c0_326] : memref<2x8x128xf32, #tpu.memory_space<vmem>>, vector<1x8x128xf32>
    %559 = vector.shape_cast %558 : vector<1x8x128xf32> to vector<8x128xf32>
    %560 = arith.mulf %547, %559 : vector<8x128xf32>
    %561 = arith.mulf %539, %549 : vector<8x128xf32>
    %562 = arith.addf %560, %561 : vector<8x128xf32>
    %563 = math.tanh %562 : vector<8x128xf32>
    %564 = arith.mulf %557, %563 : vector<8x128xf32>
    %c1_327 = arith.constant 1 : index
    %c0_328 = arith.constant 0 : index
    %c0_329 = arith.constant 0 : index
    %565 = vector.load %arg16[%c1_327, %c0_328, %c0_329] : memref<2x8x128xf32, #tpu.memory_space<vmem>>, vector<1x8x128xf32>
    %566 = vector.shape_cast %565 : vector<1x8x128xf32> to vector<8x128xf32>
    %567 = vector.shape_cast %562 : vector<8x128xf32> to vector<1x8x128xf32>
    tpu.vector_store %arg16[%c1_327, %c0_328, %c0_329], %567 {strides = array<i32>} : memref<2x8x128xf32, #tpu.memory_space<vmem>>, vector<1x8x128xf32>,
    %c0_330 = arith.constant 0 : index
    %c128_331 = arith.constant 128 : index
    %568 = vector.load %arg15[%c0_330, %c128_331] : memref<8x256xf32, #tpu.memory_space<vmem>>, vector<8x128xf32>
    tpu.vector_store %arg15[%c0_330, %c128_331], %564 {strides = array<i32>} : memref<8x256xf32, #tpu.memory_space<vmem>>, vector<8x128xf32>,
    %569 = arith.index_cast %c5_i32 : i32 to index
    %c0_332 = arith.constant 0 : index
    %c0_333 = arith.constant 0 : index
    %570 = vector.load %arg17[%569, %c0_332, %c0_333] : memref<8x8x128xf32, #tpu.memory_space<vmem>>, vector<1x8x128xf32>
    %571 = vector.shape_cast %570 : vector<1x8x128xf32> to vector<8x128xf32>
    %572 = vector.shape_cast %564 : vector<8x128xf32> to vector<1x8x128xf32>
    tpu.vector_store %arg17[%569, %c0_332, %c0_333], %572 {strides = array<i32>} : memref<8x8x128xf32, #tpu.memory_space<vmem>>, vector<1x8x128xf32>,
    %c6_i32 = arith.constant 6 : i32
    %573 = arith.index_cast %c6_i32 : i32 to index
    %c0_334 = arith.constant 0 : index
    %c0_335 = arith.constant 0 : index
    %574 = vector.load %arg1[%573, %c0_334, %c0_335] : memref<8x8x128xf32, #tpu.memory_space<vmem>>, vector<1x8x128xf32>
    %575 = vector.shape_cast %574 : vector<1x8x128xf32> to vector<8x128xf32>
    %c0_336 = arith.constant 0 : index
    %c0_337 = arith.constant 0 : index
    %576 = vector.load %arg14[%c0_336, %c0_337] : memref<8x256xf32, #tpu.memory_space<vmem>>, vector<8x128xf32>
    tpu.vector_store %arg14[%c0_336, %c0_337], %575 {strides = array<i32>} : memref<8x256xf32, #tpu.memory_space<vmem>>, vector<8x128xf32>,
    %c0_338 = arith.constant 0 : index
    %c0_339 = arith.constant 0 : index
    %577 = vector.load %arg14[%c0_338, %c0_339] : memref<8x256xf32, #tpu.memory_space<vmem>>, vector<8x256xf32>
    %c0_340 = arith.constant 0 : index
    %c0_341 = arith.constant 0 : index
    %578 = vector.load %arg4[%c0_340, %c0_341] : memref<256x512xf32, #tpu.memory_space<vmem>>, vector<256x512xf32>
    %cst_342 = arith.constant dense<0.000000e+00> : vector<8x512xf32>
    %579 = tpu.matmul %577, %578, %cst_342 {dimension_numbers = #tpu.dot_dimension_numbers<[1], [0], [0], [1], [0, 0, 1, 1], [], []>} : vector<8x256xf32>, vector<256x512xf32>, vector<8x512xf32> -> vector<8x512xf32>
    %c0_343 = arith.constant 0 : index
    %c0_344 = arith.constant 0 : index
    %580 = vector.load %arg5[%c0_343, %c0_344] : memref<1x512xf32, #tpu.memory_space<vmem>>, vector<1x512xf32>
    %581 = vector.broadcast %580 : vector<1x512xf32> to vector<8x512xf32>
    %582 = arith.addf %579, %581 : vector<8x512xf32>
    %583 = vector.extract_strided_slice %582 {offsets = [0, 0], sizes = [8, 128], strides = [1, 1]} : vector<8x512xf32> to vector<8x128xf32>
    %cst_345 = arith.constant 5.000000e-01 : f32
    %584 = vector.broadcast %cst_345 : f32 to vector<8x128xf32>
    %585 = arith.mulf %584, %583 : vector<8x128xf32>
    %586 = math.tanh %585 : vector<8x128xf32>
    %cst_346 = arith.constant 1.000000e+00 : f32
    %587 = vector.broadcast %cst_346 : f32 to vector<8x128xf32>
    %588 = arith.addf %586, %587 : vector<8x128xf32>
    %cst_347 = arith.constant 5.000000e-01 : f32
    %589 = vector.broadcast %cst_347 : f32 to vector<8x128xf32>
    %590 = arith.mulf %589, %588 : vector<8x128xf32>
    %591 = vector.extract_strided_slice %582 {offsets = [0, 128], sizes = [8, 128], strides = [1, 1]} : vector<8x512xf32> to vector<8x128xf32>
    %cst_348 = arith.constant 5.000000e-01 : f32
    %592 = vector.broadcast %cst_348 : f32 to vector<8x128xf32>
    %593 = arith.mulf %592, %591 : vector<8x128xf32>
    %594 = math.tanh %593 : vector<8x128xf32>
    %cst_349 = arith.constant 1.000000e+00 : f32
    %595 = vector.broadcast %cst_349 : f32 to vector<8x128xf32>
    %596 = arith.addf %594, %595 : vector<8x128xf32>
    %cst_350 = arith.constant 5.000000e-01 : f32
    %597 = vector.broadcast %cst_350 : f32 to vector<8x128xf32>
    %598 = arith.mulf %597, %596 : vector<8x128xf32>
    %599 = vector.extract_strided_slice %582 {offsets = [0, 256], sizes = [8, 128], strides = [1, 1]} : vector<8x512xf32> to vector<8x128xf32>
    %600 = math.tanh %599 : vector<8x128xf32>
    %601 = vector.extract_strided_slice %582 {offsets = [0, 384], sizes = [8, 128], strides = [1, 1]} : vector<8x512xf32> to vector<8x128xf32>
    %cst_351 = arith.constant 5.000000e-01 : f32
    %602 = vector.broadcast %cst_351 : f32 to vector<8x128xf32>
    %603 = arith.mulf %602, %601 : vector<8x128xf32>
    %604 = math.tanh %603 : vector<8x128xf32>
    %cst_352 = arith.constant 1.000000e+00 : f32
    %605 = vector.broadcast %cst_352 : f32 to vector<8x128xf32>
    %606 = arith.addf %604, %605 : vector<8x128xf32>
    %cst_353 = arith.constant 5.000000e-01 : f32
    %607 = vector.broadcast %cst_353 : f32 to vector<8x128xf32>
    %608 = arith.mulf %607, %606 : vector<8x128xf32>
    %c0_354 = arith.constant 0 : index
    %c0_355 = arith.constant 0 : index
    %c0_356 = arith.constant 0 : index
    %609 = vector.load %arg16[%c0_354, %c0_355, %c0_356] : memref<2x8x128xf32, #tpu.memory_space<vmem>>, vector<1x8x128xf32>
    %610 = vector.shape_cast %609 : vector<1x8x128xf32> to vector<8x128xf32>
    %611 = arith.mulf %598, %610 : vector<8x128xf32>
    %612 = arith.mulf %590, %600 : vector<8x128xf32>
    %613 = arith.addf %611, %612 : vector<8x128xf32>
    %614 = math.tanh %613 : vector<8x128xf32>
    %615 = arith.mulf %608, %614 : vector<8x128xf32>
    %c0_357 = arith.constant 0 : index
    %c0_358 = arith.constant 0 : index
    %c0_359 = arith.constant 0 : index
    %616 = vector.load %arg16[%c0_357, %c0_358, %c0_359] : memref<2x8x128xf32, #tpu.memory_space<vmem>>, vector<1x8x128xf32>
    %617 = vector.shape_cast %616 : vector<1x8x128xf32> to vector<8x128xf32>
    %618 = vector.shape_cast %613 : vector<8x128xf32> to vector<1x8x128xf32>
    tpu.vector_store %arg16[%c0_357, %c0_358, %c0_359], %618 {strides = array<i32>} : memref<2x8x128xf32, #tpu.memory_space<vmem>>, vector<1x8x128xf32>,
    %c0_360 = arith.constant 0 : index
    %c128_361 = arith.constant 128 : index
    %619 = vector.load %arg14[%c0_360, %c128_361] : memref<8x256xf32, #tpu.memory_space<vmem>>, vector<8x128xf32>
    tpu.vector_store %arg14[%c0_360, %c128_361], %615 {strides = array<i32>} : memref<8x256xf32, #tpu.memory_space<vmem>>, vector<8x128xf32>,
    %c0_362 = arith.constant 0 : index
    %c0_363 = arith.constant 0 : index
    %620 = vector.load %arg15[%c0_362, %c0_363] : memref<8x256xf32, #tpu.memory_space<vmem>>, vector<8x128xf32>
    tpu.vector_store %arg15[%c0_362, %c0_363], %615 {strides = array<i32>} : memref<8x256xf32, #tpu.memory_space<vmem>>, vector<8x128xf32>,
    %c0_364 = arith.constant 0 : index
    %c0_365 = arith.constant 0 : index
    %621 = vector.load %arg15[%c0_364, %c0_365] : memref<8x256xf32, #tpu.memory_space<vmem>>, vector<8x256xf32>
    %c0_366 = arith.constant 0 : index
    %c0_367 = arith.constant 0 : index
    %622 = vector.load %arg6[%c0_366, %c0_367] : memref<256x512xf32, #tpu.memory_space<vmem>>, vector<256x512xf32>
    %cst_368 = arith.constant dense<0.000000e+00> : vector<8x512xf32>
    %623 = tpu.matmul %621, %622, %cst_368 {dimension_numbers = #tpu.dot_dimension_numbers<[1], [0], [0], [1], [0, 0, 1, 1], [], []>} : vector<8x256xf32>, vector<256x512xf32>, vector<8x512xf32> -> vector<8x512xf32>
    %c0_369 = arith.constant 0 : index
    %c0_370 = arith.constant 0 : index
    %624 = vector.load %arg7[%c0_369, %c0_370] : memref<1x512xf32, #tpu.memory_space<vmem>>, vector<1x512xf32>
    %625 = vector.broadcast %624 : vector<1x512xf32> to vector<8x512xf32>
    %626 = arith.addf %623, %625 : vector<8x512xf32>
    %627 = vector.extract_strided_slice %626 {offsets = [0, 0], sizes = [8, 128], strides = [1, 1]} : vector<8x512xf32> to vector<8x128xf32>
    %cst_371 = arith.constant 5.000000e-01 : f32
    %628 = vector.broadcast %cst_371 : f32 to vector<8x128xf32>
    %629 = arith.mulf %628, %627 : vector<8x128xf32>
    %630 = math.tanh %629 : vector<8x128xf32>
    %cst_372 = arith.constant 1.000000e+00 : f32
    %631 = vector.broadcast %cst_372 : f32 to vector<8x128xf32>
    %632 = arith.addf %630, %631 : vector<8x128xf32>
    %cst_373 = arith.constant 5.000000e-01 : f32
    %633 = vector.broadcast %cst_373 : f32 to vector<8x128xf32>
    %634 = arith.mulf %633, %632 : vector<8x128xf32>
    %635 = vector.extract_strided_slice %626 {offsets = [0, 128], sizes = [8, 128], strides = [1, 1]} : vector<8x512xf32> to vector<8x128xf32>
    %cst_374 = arith.constant 5.000000e-01 : f32
    %636 = vector.broadcast %cst_374 : f32 to vector<8x128xf32>
    %637 = arith.mulf %636, %635 : vector<8x128xf32>
    %638 = math.tanh %637 : vector<8x128xf32>
    %cst_375 = arith.constant 1.000000e+00 : f32
    %639 = vector.broadcast %cst_375 : f32 to vector<8x128xf32>
    %640 = arith.addf %638, %639 : vector<8x128xf32>
    %cst_376 = arith.constant 5.000000e-01 : f32
    %641 = vector.broadcast %cst_376 : f32 to vector<8x128xf32>
    %642 = arith.mulf %641, %640 : vector<8x128xf32>
    %643 = vector.extract_strided_slice %626 {offsets = [0, 256], sizes = [8, 128], strides = [1, 1]} : vector<8x512xf32> to vector<8x128xf32>
    %644 = math.tanh %643 : vector<8x128xf32>
    %645 = vector.extract_strided_slice %626 {offsets = [0, 384], sizes = [8, 128], strides = [1, 1]} : vector<8x512xf32> to vector<8x128xf32>
    %cst_377 = arith.constant 5.000000e-01 : f32
    %646 = vector.broadcast %cst_377 : f32 to vector<8x128xf32>
    %647 = arith.mulf %646, %645 : vector<8x128xf32>
    %648 = math.tanh %647 : vector<8x128xf32>
    %cst_378 = arith.constant 1.000000e+00 : f32
    %649 = vector.broadcast %cst_378 : f32 to vector<8x128xf32>
    %650 = arith.addf %648, %649 : vector<8x128xf32>
    %cst_379 = arith.constant 5.000000e-01 : f32
    %651 = vector.broadcast %cst_379 : f32 to vector<8x128xf32>
    %652 = arith.mulf %651, %650 : vector<8x128xf32>
    %c1_380 = arith.constant 1 : index
    %c0_381 = arith.constant 0 : index
    %c0_382 = arith.constant 0 : index
    %653 = vector.load %arg16[%c1_380, %c0_381, %c0_382] : memref<2x8x128xf32, #tpu.memory_space<vmem>>, vector<1x8x128xf32>
    %654 = vector.shape_cast %653 : vector<1x8x128xf32> to vector<8x128xf32>
    %655 = arith.mulf %642, %654 : vector<8x128xf32>
    %656 = arith.mulf %634, %644 : vector<8x128xf32>
    %657 = arith.addf %655, %656 : vector<8x128xf32>
    %658 = math.tanh %657 : vector<8x128xf32>
    %659 = arith.mulf %652, %658 : vector<8x128xf32>
    %c1_383 = arith.constant 1 : index
    %c0_384 = arith.constant 0 : index
    %c0_385 = arith.constant 0 : index
    %660 = vector.load %arg16[%c1_383, %c0_384, %c0_385] : memref<2x8x128xf32, #tpu.memory_space<vmem>>, vector<1x8x128xf32>
    %661 = vector.shape_cast %660 : vector<1x8x128xf32> to vector<8x128xf32>
    %662 = vector.shape_cast %657 : vector<8x128xf32> to vector<1x8x128xf32>
    tpu.vector_store %arg16[%c1_383, %c0_384, %c0_385], %662 {strides = array<i32>} : memref<2x8x128xf32, #tpu.memory_space<vmem>>, vector<1x8x128xf32>,
    %c0_386 = arith.constant 0 : index
    %c128_387 = arith.constant 128 : index
    %663 = vector.load %arg15[%c0_386, %c128_387] : memref<8x256xf32, #tpu.memory_space<vmem>>, vector<8x128xf32>
    tpu.vector_store %arg15[%c0_386, %c128_387], %659 {strides = array<i32>} : memref<8x256xf32, #tpu.memory_space<vmem>>, vector<8x128xf32>,
    %664 = arith.index_cast %c6_i32 : i32 to index
    %c0_388 = arith.constant 0 : index
    %c0_389 = arith.constant 0 : index
    %665 = vector.load %arg17[%664, %c0_388, %c0_389] : memref<8x8x128xf32, #tpu.memory_space<vmem>>, vector<1x8x128xf32>
    %666 = vector.shape_cast %665 : vector<1x8x128xf32> to vector<8x128xf32>
    %667 = vector.shape_cast %659 : vector<8x128xf32> to vector<1x8x128xf32>
    tpu.vector_store %arg17[%664, %c0_388, %c0_389], %667 {strides = array<i32>} : memref<8x8x128xf32, #tpu.memory_space<vmem>>, vector<1x8x128xf32>,
    %c7_i32 = arith.constant 7 : i32
    %668 = arith.index_cast %c7_i32 : i32 to index
    %c0_390 = arith.constant 0 : index
    %c0_391 = arith.constant 0 : index
    %669 = vector.load %arg1[%668, %c0_390, %c0_391] : memref<8x8x128xf32, #tpu.memory_space<vmem>>, vector<1x8x128xf32>
    %670 = vector.shape_cast %669 : vector<1x8x128xf32> to vector<8x128xf32>
    %c0_392 = arith.constant 0 : index
    %c0_393 = arith.constant 0 : index
    %671 = vector.load %arg14[%c0_392, %c0_393] : memref<8x256xf32, #tpu.memory_space<vmem>>, vector<8x128xf32>
    tpu.vector_store %arg14[%c0_392, %c0_393], %670 {strides = array<i32>} : memref<8x256xf32, #tpu.memory_space<vmem>>, vector<8x128xf32>,
    %c0_394 = arith.constant 0 : index
    %c0_395 = arith.constant 0 : index
    %672 = vector.load %arg14[%c0_394, %c0_395] : memref<8x256xf32, #tpu.memory_space<vmem>>, vector<8x256xf32>
    %c0_396 = arith.constant 0 : index
    %c0_397 = arith.constant 0 : index
    %673 = vector.load %arg4[%c0_396, %c0_397] : memref<256x512xf32, #tpu.memory_space<vmem>>, vector<256x512xf32>
    %cst_398 = arith.constant dense<0.000000e+00> : vector<8x512xf32>
    %674 = tpu.matmul %672, %673, %cst_398 {dimension_numbers = #tpu.dot_dimension_numbers<[1], [0], [0], [1], [0, 0, 1, 1], [], []>} : vector<8x256xf32>, vector<256x512xf32>, vector<8x512xf32> -> vector<8x512xf32>
    %c0_399 = arith.constant 0 : index
    %c0_400 = arith.constant 0 : index
    %675 = vector.load %arg5[%c0_399, %c0_400] : memref<1x512xf32, #tpu.memory_space<vmem>>, vector<1x512xf32>
    %676 = vector.broadcast %675 : vector<1x512xf32> to vector<8x512xf32>
    %677 = arith.addf %674, %676 : vector<8x512xf32>
    %678 = vector.extract_strided_slice %677 {offsets = [0, 0], sizes = [8, 128], strides = [1, 1]} : vector<8x512xf32> to vector<8x128xf32>
    %cst_401 = arith.constant 5.000000e-01 : f32
    %679 = vector.broadcast %cst_401 : f32 to vector<8x128xf32>
    %680 = arith.mulf %679, %678 : vector<8x128xf32>
    %681 = math.tanh %680 : vector<8x128xf32>
    %cst_402 = arith.constant 1.000000e+00 : f32
    %682 = vector.broadcast %cst_402 : f32 to vector<8x128xf32>
    %683 = arith.addf %681, %682 : vector<8x128xf32>
    %cst_403 = arith.constant 5.000000e-01 : f32
    %684 = vector.broadcast %cst_403 : f32 to vector<8x128xf32>
    %685 = arith.mulf %684, %683 : vector<8x128xf32>
    %686 = vector.extract_strided_slice %677 {offsets = [0, 128], sizes = [8, 128], strides = [1, 1]} : vector<8x512xf32> to vector<8x128xf32>
    %cst_404 = arith.constant 5.000000e-01 : f32
    %687 = vector.broadcast %cst_404 : f32 to vector<8x128xf32>
    %688 = arith.mulf %687, %686 : vector<8x128xf32>
    %689 = math.tanh %688 : vector<8x128xf32>
    %cst_405 = arith.constant 1.000000e+00 : f32
    %690 = vector.broadcast %cst_405 : f32 to vector<8x128xf32>
    %691 = arith.addf %689, %690 : vector<8x128xf32>
    %cst_406 = arith.constant 5.000000e-01 : f32
    %692 = vector.broadcast %cst_406 : f32 to vector<8x128xf32>
    %693 = arith.mulf %692, %691 : vector<8x128xf32>
    %694 = vector.extract_strided_slice %677 {offsets = [0, 256], sizes = [8, 128], strides = [1, 1]} : vector<8x512xf32> to vector<8x128xf32>
    %695 = math.tanh %694 : vector<8x128xf32>
    %696 = vector.extract_strided_slice %677 {offsets = [0, 384], sizes = [8, 128], strides = [1, 1]} : vector<8x512xf32> to vector<8x128xf32>
    %cst_407 = arith.constant 5.000000e-01 : f32
    %697 = vector.broadcast %cst_407 : f32 to vector<8x128xf32>
    %698 = arith.mulf %697, %696 : vector<8x128xf32>
    %699 = math.tanh %698 : vector<8x128xf32>
    %cst_408 = arith.constant 1.000000e+00 : f32
    %700 = vector.broadcast %cst_408 : f32 to vector<8x128xf32>
    %701 = arith.addf %699, %700 : vector<8x128xf32>
    %cst_409 = arith.constant 5.000000e-01 : f32
    %702 = vector.broadcast %cst_409 : f32 to vector<8x128xf32>
    %703 = arith.mulf %702, %701 : vector<8x128xf32>
    %c0_410 = arith.constant 0 : index
    %c0_411 = arith.constant 0 : index
    %c0_412 = arith.constant 0 : index
    %704 = vector.load %arg16[%c0_410, %c0_411, %c0_412] : memref<2x8x128xf32, #tpu.memory_space<vmem>>, vector<1x8x128xf32>
    %705 = vector.shape_cast %704 : vector<1x8x128xf32> to vector<8x128xf32>
    %706 = arith.mulf %693, %705 : vector<8x128xf32>
    %707 = arith.mulf %685, %695 : vector<8x128xf32>
    %708 = arith.addf %706, %707 : vector<8x128xf32>
    %709 = math.tanh %708 : vector<8x128xf32>
    %710 = arith.mulf %703, %709 : vector<8x128xf32>
    %c0_413 = arith.constant 0 : index
    %c0_414 = arith.constant 0 : index
    %c0_415 = arith.constant 0 : index
    %711 = vector.load %arg16[%c0_413, %c0_414, %c0_415] : memref<2x8x128xf32, #tpu.memory_space<vmem>>, vector<1x8x128xf32>
    %712 = vector.shape_cast %711 : vector<1x8x128xf32> to vector<8x128xf32>
    %713 = vector.shape_cast %708 : vector<8x128xf32> to vector<1x8x128xf32>
    tpu.vector_store %arg16[%c0_413, %c0_414, %c0_415], %713 {strides = array<i32>} : memref<2x8x128xf32, #tpu.memory_space<vmem>>, vector<1x8x128xf32>,
    %c0_416 = arith.constant 0 : index
    %c128_417 = arith.constant 128 : index
    %714 = vector.load %arg14[%c0_416, %c128_417] : memref<8x256xf32, #tpu.memory_space<vmem>>, vector<8x128xf32>
    tpu.vector_store %arg14[%c0_416, %c128_417], %710 {strides = array<i32>} : memref<8x256xf32, #tpu.memory_space<vmem>>, vector<8x128xf32>,
    %c0_418 = arith.constant 0 : index
    %c0_419 = arith.constant 0 : index
    %715 = vector.load %arg15[%c0_418, %c0_419] : memref<8x256xf32, #tpu.memory_space<vmem>>, vector<8x128xf32>
    tpu.vector_store %arg15[%c0_418, %c0_419], %710 {strides = array<i32>} : memref<8x256xf32, #tpu.memory_space<vmem>>, vector<8x128xf32>,
    %c0_420 = arith.constant 0 : index
    %c0_421 = arith.constant 0 : index
    %716 = vector.load %arg15[%c0_420, %c0_421] : memref<8x256xf32, #tpu.memory_space<vmem>>, vector<8x256xf32>
    %c0_422 = arith.constant 0 : index
    %c0_423 = arith.constant 0 : index
    %717 = vector.load %arg6[%c0_422, %c0_423] : memref<256x512xf32, #tpu.memory_space<vmem>>, vector<256x512xf32>
    %cst_424 = arith.constant dense<0.000000e+00> : vector<8x512xf32>
    %718 = tpu.matmul %716, %717, %cst_424 {dimension_numbers = #tpu.dot_dimension_numbers<[1], [0], [0], [1], [0, 0, 1, 1], [], []>} : vector<8x256xf32>, vector<256x512xf32>, vector<8x512xf32> -> vector<8x512xf32>
    %c0_425 = arith.constant 0 : index
    %c0_426 = arith.constant 0 : index
    %719 = vector.load %arg7[%c0_425, %c0_426] : memref<1x512xf32, #tpu.memory_space<vmem>>, vector<1x512xf32>
    %720 = vector.broadcast %719 : vector<1x512xf32> to vector<8x512xf32>
    %721 = arith.addf %718, %720 : vector<8x512xf32>
    %722 = vector.extract_strided_slice %721 {offsets = [0, 0], sizes = [8, 128], strides = [1, 1]} : vector<8x512xf32> to vector<8x128xf32>
    %cst_427 = arith.constant 5.000000e-01 : f32
    %723 = vector.broadcast %cst_427 : f32 to vector<8x128xf32>
    %724 = arith.mulf %723, %722 : vector<8x128xf32>
    %725 = math.tanh %724 : vector<8x128xf32>
    %cst_428 = arith.constant 1.000000e+00 : f32
    %726 = vector.broadcast %cst_428 : f32 to vector<8x128xf32>
    %727 = arith.addf %725, %726 : vector<8x128xf32>
    %cst_429 = arith.constant 5.000000e-01 : f32
    %728 = vector.broadcast %cst_429 : f32 to vector<8x128xf32>
    %729 = arith.mulf %728, %727 : vector<8x128xf32>
    %730 = vector.extract_strided_slice %721 {offsets = [0, 128], sizes = [8, 128], strides = [1, 1]} : vector<8x512xf32> to vector<8x128xf32>
    %cst_430 = arith.constant 5.000000e-01 : f32
    %731 = vector.broadcast %cst_430 : f32 to vector<8x128xf32>
    %732 = arith.mulf %731, %730 : vector<8x128xf32>
    %733 = math.tanh %732 : vector<8x128xf32>
    %cst_431 = arith.constant 1.000000e+00 : f32
    %734 = vector.broadcast %cst_431 : f32 to vector<8x128xf32>
    %735 = arith.addf %733, %734 : vector<8x128xf32>
    %cst_432 = arith.constant 5.000000e-01 : f32
    %736 = vector.broadcast %cst_432 : f32 to vector<8x128xf32>
    %737 = arith.mulf %736, %735 : vector<8x128xf32>
    %738 = vector.extract_strided_slice %721 {offsets = [0, 256], sizes = [8, 128], strides = [1, 1]} : vector<8x512xf32> to vector<8x128xf32>
    %739 = math.tanh %738 : vector<8x128xf32>
    %740 = vector.extract_strided_slice %721 {offsets = [0, 384], sizes = [8, 128], strides = [1, 1]} : vector<8x512xf32> to vector<8x128xf32>
    %cst_433 = arith.constant 5.000000e-01 : f32
    %741 = vector.broadcast %cst_433 : f32 to vector<8x128xf32>
    %742 = arith.mulf %741, %740 : vector<8x128xf32>
    %743 = math.tanh %742 : vector<8x128xf32>
    %cst_434 = arith.constant 1.000000e+00 : f32
    %744 = vector.broadcast %cst_434 : f32 to vector<8x128xf32>
    %745 = arith.addf %743, %744 : vector<8x128xf32>
    %cst_435 = arith.constant 5.000000e-01 : f32
    %746 = vector.broadcast %cst_435 : f32 to vector<8x128xf32>
    %747 = arith.mulf %746, %745 : vector<8x128xf32>
    %c1_436 = arith.constant 1 : index
    %c0_437 = arith.constant 0 : index
    %c0_438 = arith.constant 0 : index
    %748 = vector.load %arg16[%c1_436, %c0_437, %c0_438] : memref<2x8x128xf32, #tpu.memory_space<vmem>>, vector<1x8x128xf32>
    %749 = vector.shape_cast %748 : vector<1x8x128xf32> to vector<8x128xf32>
    %750 = arith.mulf %737, %749 : vector<8x128xf32>
    %751 = arith.mulf %729, %739 : vector<8x128xf32>
    %752 = arith.addf %750, %751 : vector<8x128xf32>
    %753 = math.tanh %752 : vector<8x128xf32>
    %754 = arith.mulf %747, %753 : vector<8x128xf32>
    %c1_439 = arith.constant 1 : index
    %c0_440 = arith.constant 0 : index
    %c0_441 = arith.constant 0 : index
    %755 = vector.load %arg16[%c1_439, %c0_440, %c0_441] : memref<2x8x128xf32, #tpu.memory_space<vmem>>, vector<1x8x128xf32>
    %756 = vector.shape_cast %755 : vector<1x8x128xf32> to vector<8x128xf32>
    %757 = vector.shape_cast %752 : vector<8x128xf32> to vector<1x8x128xf32>
    tpu.vector_store %arg16[%c1_439, %c0_440, %c0_441], %757 {strides = array<i32>} : memref<2x8x128xf32, #tpu.memory_space<vmem>>, vector<1x8x128xf32>,
    %c0_442 = arith.constant 0 : index
    %c128_443 = arith.constant 128 : index
    %758 = vector.load %arg15[%c0_442, %c128_443] : memref<8x256xf32, #tpu.memory_space<vmem>>, vector<8x128xf32>
    tpu.vector_store %arg15[%c0_442, %c128_443], %754 {strides = array<i32>} : memref<8x256xf32, #tpu.memory_space<vmem>>, vector<8x128xf32>,
    %759 = arith.index_cast %c7_i32 : i32 to index
    %c0_444 = arith.constant 0 : index
    %c0_445 = arith.constant 0 : index
    %760 = vector.load %arg17[%759, %c0_444, %c0_445] : memref<8x8x128xf32, #tpu.memory_space<vmem>>, vector<1x8x128xf32>
    %761 = vector.shape_cast %760 : vector<1x8x128xf32> to vector<8x128xf32>
    %762 = vector.shape_cast %754 : vector<8x128xf32> to vector<1x8x128xf32>
    tpu.vector_store %arg17[%759, %c0_444, %c0_445], %762 {strides = array<i32>} : memref<8x8x128xf32, #tpu.memory_space<vmem>>, vector<1x8x128xf32>,
    %c8_i32 = arith.constant 8 : i32
    %c0_446 = arith.constant 0 : index
    %c0_447 = arith.constant 0 : index
    %c0_448 = arith.constant 0 : index
    %763 = vector.load %arg17[%c0_446, %c0_447, %c0_448] : memref<8x8x128xf32, #tpu.memory_space<vmem>>, vector<8x8x128xf32>
    %764 = vector.shape_cast %763 : vector<8x8x128xf32> to vector<64x128xf32>
    %c0_449 = arith.constant 0 : index
    %c0_450 = arith.constant 0 : index
    %765 = vector.load %arg8[%c0_449, %c0_450] : memref<128x128xf32, #tpu.memory_space<vmem>>, vector<128x128xf32>
    %cst_451 = arith.constant dense<0.000000e+00> : vector<64x128xf32>
    %766 = tpu.matmul %764, %765, %cst_451 {dimension_numbers = #tpu.dot_dimension_numbers<[1], [0], [0], [1], [0, 0, 1, 1], [], []>} : vector<64x128xf32>, vector<128x128xf32>, vector<64x128xf32> -> vector<64x128xf32>
    %c0_452 = arith.constant 0 : index
    %c0_453 = arith.constant 0 : index
    %767 = vector.load %arg9[%c0_452, %c0_453] : memref<1x128xf32, #tpu.memory_space<vmem>>, vector<1x128xf32>
    %768 = vector.broadcast %767 : vector<1x128xf32> to vector<64x128xf32>
    %769 = arith.addf %766, %768 : vector<64x128xf32>
    %cst_454 = arith.constant dense<0xFF800000> : vector<64xf32>
    %770 = vector.multi_reduction <maximumf>, %769, %cst_454 [1] : vector<64x128xf32> to vector<64xf32>
    %771 = vector.shape_cast %770 : vector<64xf32> to vector<64x1xf32>
    %772 = vector.broadcast %771 : vector<64x1xf32> to vector<64x128xf32>
    %773 = arith.subf %769, %772 : vector<64x128xf32>
    %774 = math.exp %773 : vector<64x128xf32>
    %cst_455 = arith.constant dense<0.000000e+00> : vector<64xf32>
    %775 = vector.multi_reduction <add>, %774, %cst_455 [1] : vector<64x128xf32> to vector<64xf32>
    %776 = vector.shape_cast %775 : vector<64xf32> to vector<64x1xf32>
    %777 = math.log %776 : vector<64x1xf32>
    %778 = vector.broadcast %777 : vector<64x1xf32> to vector<64x128xf32>
    %779 = arith.subf %773, %778 : vector<64x128xf32>
    %c0_456 = arith.constant 0 : index
    %c0_457 = arith.constant 0 : index
    %780 = vector.load %arg10[%c0_456, %c0_457] : memref<64x128xf32, #tpu.memory_space<vmem>>, vector<64x128xf32>
    tpu.vector_store %arg10[%c0_456, %c0_457], %779 {strides = array<i32>} : memref<64x128xf32, #tpu.memory_space<vmem>>, vector<64x128xf32>,
    %781 = vector.shape_cast %769 : vector<64x128xf32> to vector<8x8x128xf32>
    %782 = vector.shape_cast %771 : vector<64x1xf32> to vector<8x8x1xf32>
    %783 = tpu.iota {dimensions = array<i32: 2>} : vector<8x8x128xi32>
    %784 = vector.broadcast %782 : vector<8x8x1xf32> to vector<8x8x128xf32>
    %785 = arith.cmpf oeq, %781, %784 : vector<8x8x128xf32>
    %c128_i32 = arith.constant 128 : i32
    %786 = vector.broadcast %c128_i32 : i32 to vector<8x8x128xi32>
    %787 = arith.select %785, %783, %786 : vector<8x8x128xi1>, vector<8x8x128xi32>
    %cst_458 = arith.constant dense<2147483647> : vector<8x8xi32>
    %788 = vector.multi_reduction <minsi>, %787, %cst_458 [2] : vector<8x8x128xi32> to vector<8x8xi32>
    %c8_i32_459 = arith.constant 8 : i32
    %789 = arith.muli %arg0, %c8_i32_459 : i32
    %790 = tpu.assume_multiple %789, 8 : i32
    %791 = arith.index_cast %790 : i32 to index
    %c0_460 = arith.constant 0 : index
    %792 = vector.load %arg11[%791, %c0_460] : memref<8x8xi32, #tpu.memory_space<vmem>>, vector<8x8xi32>
    tpu.vector_store %arg11[%791, %c0_460], %788 {strides = array<i32>} : memref<8x8xi32, #tpu.memory_space<vmem>>, vector<8x8xi32>,
    %c0_461 = arith.constant 0 : index
    %c128_462 = arith.constant 128 : index
    %793 = vector.load %arg14[%c0_461, %c128_462] : memref<8x256xf32, #tpu.memory_space<vmem>>, vector<8x128xf32>
    %c0_463 = arith.constant 0 : index
    %c0_464 = arith.constant 0 : index
    %c0_465 = arith.constant 0 : index
    %794 = vector.load %arg12[%c0_463, %c0_464, %c0_465] : memref<2x8x128xf32, #tpu.memory_space<vmem>>, vector<1x8x128xf32>
    %795 = vector.shape_cast %794 : vector<1x8x128xf32> to vector<8x128xf32>
    %796 = vector.shape_cast %793 : vector<8x128xf32> to vector<1x8x128xf32>
    tpu.vector_store %arg12[%c0_463, %c0_464, %c0_465], %796 {strides = array<i32>} : memref<2x8x128xf32, #tpu.memory_space<vmem>>, vector<1x8x128xf32>,
    %c0_466 = arith.constant 0 : index
    %c128_467 = arith.constant 128 : index
    %797 = vector.load %arg15[%c0_466, %c128_467] : memref<8x256xf32, #tpu.memory_space<vmem>>, vector<8x128xf32>
    %c1_468 = arith.constant 1 : index
    %c0_469 = arith.constant 0 : index
    %c0_470 = arith.constant 0 : index
    %798 = vector.load %arg12[%c1_468, %c0_469, %c0_470] : memref<2x8x128xf32, #tpu.memory_space<vmem>>, vector<1x8x128xf32>
    %799 = vector.shape_cast %798 : vector<1x8x128xf32> to vector<8x128xf32>
    %800 = vector.shape_cast %797 : vector<8x128xf32> to vector<1x8x128xf32>
    tpu.vector_store %arg12[%c1_468, %c0_469, %c0_470], %800 {strides = array<i32>} : memref<2x8x128xf32, #tpu.memory_space<vmem>>, vector<1x8x128xf32>,
    %c0_471 = arith.constant 0 : index
    %c0_472 = arith.constant 0 : index
    %c0_473 = arith.constant 0 : index
    %801 = vector.load %arg16[%c0_471, %c0_472, %c0_473] : memref<2x8x128xf32, #tpu.memory_space<vmem>>, vector<2x8x128xf32>
    %c0_474 = arith.constant 0 : index
    %c0_475 = arith.constant 0 : index
    %c0_476 = arith.constant 0 : index
    %802 = vector.load %arg13[%c0_474, %c0_475, %c0_476] : memref<2x8x128xf32, #tpu.memory_space<vmem>>, vector<2x8x128xf32>
    tpu.vector_store %arg13[%c0_474, %c0_475, %c0_476], %801 {strides = array<i32>} : memref<2x8x128xf32, #tpu.memory_space<vmem>>, vector<2x8x128xf32>,
    return
  }
  func.func @transform_0(%arg0: i32) -> (i32, i32, i32) {
    %c0_i32 = arith.constant 0 : i32
    %c0_i32_0 = arith.constant 0 : i32
    %c0_i32_1 = arith.constant 0 : i32
    return %arg0, %c0_i32, %c0_i32_0 : i32, i32, i32
  }
  func.func @transform_1(%arg0: i32) -> (i32, i32, i32) {
    %c0_i32 = arith.constant 0 : i32
    %c0_i32_0 = arith.constant 0 : i32
    %c0_i32_1 = arith.constant 0 : i32
    %c0_i32_2 = arith.constant 0 : i32
    return %c0_i32, %c0_i32_0, %c0_i32_1 : i32, i32, i32
  }
  func.func @transform_2(%arg0: i32) -> (i32, i32, i32) {
    %c0_i32 = arith.constant 0 : i32
    %c0_i32_0 = arith.constant 0 : i32
    %c0_i32_1 = arith.constant 0 : i32
    %c0_i32_2 = arith.constant 0 : i32
    return %c0_i32, %c0_i32_0, %c0_i32_1 : i32, i32, i32
  }
  func.func @transform_3(%arg0: i32) -> (i32, i32) {
    %c0_i32 = arith.constant 0 : i32
    %c0_i32_0 = arith.constant 0 : i32
    %c0_i32_1 = arith.constant 0 : i32
    return %c0_i32, %c0_i32_0 : i32, i32
  }
  func.func @transform_4(%arg0: i32) -> (i32, i32) {
    %c0_i32 = arith.constant 0 : i32
    %c0_i32_0 = arith.constant 0 : i32
    %c0_i32_1 = arith.constant 0 : i32
    return %c0_i32, %c0_i32_0 : i32, i32
  }
  func.func @transform_5(%arg0: i32) -> (i32, i32) {
    %c0_i32 = arith.constant 0 : i32
    %c0_i32_0 = arith.constant 0 : i32
    %c0_i32_1 = arith.constant 0 : i32
    return %c0_i32, %c0_i32_0 : i32, i32
  }
  func.func @transform_6(%arg0: i32) -> (i32, i32) {
    %c0_i32 = arith.constant 0 : i32
    %c0_i32_0 = arith.constant 0 : i32
    %c0_i32_1 = arith.constant 0 : i32
    return %c0_i32, %c0_i32_0 : i32, i32
  }
  func.func @transform_7(%arg0: i32) -> (i32, i32) {
    %c0_i32 = arith.constant 0 : i32
    %c0_i32_0 = arith.constant 0 : i32
    %c0_i32_1 = arith.constant 0 : i32
    return %c0_i32, %c0_i32_0 : i32, i32
  }
  func.func @transform_8(%arg0: i32) -> (i32, i32) {
    %c0_i32 = arith.constant 0 : i32
    %c0_i32_0 = arith.constant 0 : i32
    %c0_i32_1 = arith.constant 0 : i32
    return %c0_i32, %c0_i32_0 : i32, i32
  }
  func.func @transform_9(%arg0: i32) -> (i32, i32) {
    %c0_i32 = arith.constant 0 : i32
    %c0_i32_0 = arith.constant 0 : i32
    return %arg0, %c0_i32 : i32, i32
  }
  func.func @transform_10(%arg0: i32) -> (i32, i32) {
    %c0_i32 = arith.constant 0 : i32
    %c0_i32_0 = arith.constant 0 : i32
    %c0_i32_1 = arith.constant 0 : i32
    return %c0_i32, %c0_i32_0 : i32, i32
  }
  func.func @transform_11(%arg0: i32) -> (i32, i32, i32) {
    %c0_i32 = arith.constant 0 : i32
    %c0_i32_0 = arith.constant 0 : i32
    %c0_i32_1 = arith.constant 0 : i32
    %c0_i32_2 = arith.constant 0 : i32
    return %c0_i32, %c0_i32_0, %c0_i32_1 : i32, i32, i32
  }
  func.func @transform_12(%arg0: i32) -> (i32, i32, i32) {
    %c0_i32 = arith.constant 0 : i32
    %c0_i32_0 = arith.constant 0 : i32
    %c0_i32_1 = arith.constant 0 : i32
    %c0_i32_2 = arith.constant 0 : i32
    return %c0_i32, %c0_i32_0, %c0_i32_1 : i32, i32, i32
  }
}

</mosaic_0001>

<bundles_post_ra>
// kernel: tpu_custom_call.1
= control target key start
LH: loop header
LB: loop body
LE: loop exit
PB: predicated region body
PF: predicated region fallthrough
CT: control target
= control target key end

     0   :  { %18 = vsyncpa [#allocation7], 0  ;;  %s8946_s0 = inlined_call_operand.hbm [shape: f32[8,8,128], index: 0, kind: input, shape index: {}]   ;;  %s8947_s1 = inlined_call_operand.hbm [shape: f32[2,8,128], index: 1, kind: input, shape index: {}]   ;;  %s8948_s2 = inlined_call_operand.hbm [shape: f32[2,8,128], index: 2, kind: input, shape index: {}]   ;;  %s8949_s3 = inlined_call_operand.hbm [shape: f32[256,512], index: 3, kind: input, shape index: {}]   ;;  %s8950_s4 = inlined_call_operand.vmem [shape: f32[1,512], index: 4, kind: input, shape index: {}]   ;;  %s8951_s5 = inlined_call_operand.hbm [shape: f32[256,512], index: 5, kind: input, shape index: {}]   ;;  %s8952_s6 = inlined_call_operand.vmem [shape: f32[1,512], index: 6, kind: input, shape index: {}]   ;;  %s8953_s7 = inlined_call_operand.hbm [shape: f32[128,128], index: 7, kind: input, shape index: {}]   ;;  %s8954_s8 = inlined_call_operand.vmem [shape: f32[1,128], index: 8, kind: input, shape index: {}]   ;;  %s8955_s9 = inlined_call_operand.hbm [shape: f32[64,128], index: 9, kind: output, shape index: {0}]   ;;  %s8956_s10 = inlined_call_operand.hbm [shape: s32[8,8], index: 10, kind: output, shape index: {1}]   ;;  %s8957_s11 = inlined_call_operand.hbm [shape: f32[2,8,128], index: 11, kind: output, shape index: {2}]   ;;  %s8958_s12 = inlined_call_operand.hbm [shape: f32[2,8,128], index: 12, kind: output, shape index: {3}]  }
   0x1   :  { %19 = vsyncpa [#allocation10], 0 }
   0x2   :  { %20 = vsyncpa [#allocation13], 0 }
   0x3   :  { %21 = vsyncpa [#allocation16], 0 }
   0x4   :  { %22 = vsyncpa [#allocation8], 0 }
   0x5   :  { %23 = vsyncpa [#allocation19], 0 }
   0x6   :  { %24 = vsyncpa [#allocation22], 0  ;;  %s8306_s21 = smov [#allocation9]   ;;  %s8307_s23 = smov [#allocation12]  }
   0x7   :  { %s42_s22 = sshll.u32 %s8306_s21, 4  ;;  %s66_s24 = sshll.u32 %s8307_s23, 4  ;;  %s43_s22 = int_to_ptr.vmem [resolvable:$true] %s42_s22  ;;  %s8385_s24 = int_to_ptr.vmem [resolvable:$true] %s66_s24 }
   0x8   :  { %s8072_s27 = scalar_lea.hbm %s8947_s1, 256 }
   0x9   :  { %p8073_p0 = scmp.ne.s32.totalorder %s8947_s1, %s8072_s27  ;;  %p8076_p1 = scmp.lt.u32.totalorder %s8072_s27, %s8947_s1 }
   0xb   :  { %p8078_p2 = pnand %p8076_p1, %p8073_p0 }
   0xd   :  { %8081 = shalt.err (!%p8078_p2)
}
   0xe   :  { %s8082_s14 = scalar_lea.vmem %s43_s22, 256  ;;  %p8087_p4 = scmp.lt.s32.totalorder %s43_s22, %s43_s22 }
   0xf   :  { %p8083_p3 = scmp.ne.s32.totalorder %s43_s22, %s8082_s14  ;;  %p8088_p5 = scmp.lt.s32.totalorder %s8082_s14, %s8082_s14 }
  0x11   :  { %p8089_p6 = por %p8088_p5, %p8087_p4 }
  0x13   :  { %p8090_p7 = pnand %p8089_p6, %p8083_p3 }
  0x15   :  { %8093 = shalt.err (!%p8090_p7)
}
  0x16   :  { %s8308_s15 = smov 128   ;;  %s8309_s16 = smov 8  }
  0x17   :  { %48 = dma.hbm_to_vmem [thread:$0]  %s8947_s1, 256, %s43_s22, [#allocation10], %s8308_s15, %s8308_s15, %s8309_s16  }
  0x18   :  { %s8094_s21 = scalar_lea.hbm %s8949_s3, 16384 }
  0x19   :  { %p8095_p8 = scmp.ne.s32.totalorder %s8949_s3, %s8094_s21  ;;  %p8098_p9 = scmp.lt.u32.totalorder %s8094_s21, %s8949_s3 }
  0x1b   :  { %p8100_p10 = pnand %p8098_p9, %p8095_p8 }
  0x1d   :  { %8103 = shalt.err (!%p8100_p10)
}
  0x1e   :  { %s8104_s28 = scalar_lea.vmem %s8385_s24, 16384  ;;  %p8109_p12 = scmp.lt.s32.totalorder %s8385_s24, %s8385_s24 }
  0x1f   :  { %p8105_p11 = scmp.ne.s32.totalorder %s8385_s24, %s8104_s28  ;;  %p8110_p13 = scmp.lt.s32.totalorder %s8104_s28, %s8104_s28 }
  0x21   :  { %p8111_p0 = por %p8110_p13, %p8109_p12 }
  0x23   :  { %p8112_p1 = pnand %p8111_p0, %p8105_p11 }
  0x25   :  { %8115 = shalt.err (!%p8112_p1)
}
  0x26   :  { %s8310_s1 = smov 512   ;;  %s8311_s22 = smov 32  }
  0x27   :  { %72 = dma.hbm_to_vmem [thread:$0]  %s8949_s3, 16384, %s8385_s24, [#allocation13], %s8310_s1, %s8310_s1, %s8311_s22  }
  0x28   :  { %s8312_s13 = smov [#allocation6]   ;;  %s8313_s17 = smov [#allocation11]  }
  0x29   :  { %s30_s14 = sshll.u32 %s8312_s13, 4  ;;  %s54_s18 = sshll.u32 %s8313_s17, 4  ;;  %s31_s14 = int_to_ptr.vmem [resolvable:$true] %s30_s14  ;;  %s8422_s18 = int_to_ptr.vmem [resolvable:$true] %s54_s18 }
  0x2a   :  { %s8116_s21 = scalar_lea.hbm %s8946_s0, 1024 }
  0x2b   :  { %p8117_p2 = scmp.ne.s32.totalorder %s8946_s0, %s8116_s21  ;;  %p8120_p3 = scmp.lt.u32.totalorder %s8116_s21, %s8946_s0 }
  0x2d   :  { %p8122_p4 = pnand %p8120_p3, %p8117_p2 }
  0x2f   :  { %8125 = shalt.err (!%p8122_p4)
}
  0x30   :  { %s8126_s3 = scalar_lea.vmem %s31_s14, 1024  ;;  %p8131_p6 = scmp.lt.s32.totalorder %s31_s14, %s31_s14 }
  0x31   :  { %p8127_p5 = scmp.ne.s32.totalorder %s31_s14, %s8126_s3  ;;  %p8132_p7 = scmp.lt.s32.totalorder %s8126_s3, %s8126_s3 }
  0x33   :  { %p8133_p8 = por %p8132_p7, %p8131_p6 }
  0x35   :  { %p8134_p9 = pnand %p8133_p8, %p8127_p5 }
  0x37   :  { %8137 = shalt.err (!%p8134_p9)
}
  0x38   :  { %36 = dma.hbm_to_vmem [thread:$0]  %s8946_s0, 1024, %s31_s14, [#allocation7], %s8308_s15, %s8308_s15, %s8309_s16  }
  0x39   :  { %s8138_s13 = scalar_lea.hbm %s8948_s2, 256 }
  0x3a   :  { %p8139_p10 = scmp.ne.s32.totalorder %s8948_s2, %s8138_s13  ;;  %p8142_p11 = scmp.lt.u32.totalorder %s8138_s13, %s8948_s2 }
  0x3c   :  { %p8144_p12 = pnand %p8142_p11, %p8139_p10 }
  0x3e   :  { %8147 = shalt.err (!%p8144_p12)
}
  0x3f   :  { %s8148_s23 = scalar_lea.vmem %s8422_s18, 256  ;;  %p8153_p0 = scmp.lt.s32.totalorder %s8422_s18, %s8422_s18 }
  0x40   :  { %p8149_p13 = scmp.ne.s32.totalorder %s8422_s18, %s8148_s23  ;;  %p8154_p1 = scmp.lt.s32.totalorder %s8148_s23, %s8148_s23 }
  0x42   :  { %p8155_p2 = por %p8154_p1, %p8153_p0 }
  0x44   :  { %p8156_p3 = pnand %p8155_p2, %p8149_p13 }
  0x46   :  { %8159 = shalt.err (!%p8156_p3)
}
  0x47   :  { %60 = dma.hbm_to_vmem [thread:$0]  %s8948_s2, 256, %s8422_s18, [#allocation10], %s8308_s15, %s8308_s15, %s8309_s16  }
  0x48   :  { %s8314_s25 = smov [#allocation14]   ;;  %s8315_s27 = smov [#allocation15]  }
  0x49   :  { %s80_s26 = sshll.u32 %s8314_s25, 4  ;;  %s94_s3 = sshll.u32 %s8315_s27, 4  ;;  %s81_s26 = int_to_ptr.vmem [resolvable:$true] %s80_s26  ;;  %s8459_s3 = int_to_ptr.vmem [resolvable:$true] %s94_s3 }
  0x4a   :  { %s8160_s29 = scalar_lea.hbm %s8951_s5, 16384 }
  0x4b   :  { %p8161_p4 = scmp.ne.s32.totalorder %s8951_s5, %s8160_s29  ;;  %p8164_p5 = scmp.lt.u32.totalorder %s8160_s29, %s8951_s5 }
  0x4d   :  { %p8166_p6 = pnand %p8164_p5, %p8161_p4 }
  0x4f   :  { %8169 = shalt.err (!%p8166_p6)
}
  0x50   :  { %s8170_s2 = scalar_lea.vmem %s81_s26, 16384  ;;  %p8175_p8 = scmp.lt.s32.totalorder %s81_s26, %s81_s26 }
  0x51   :  { %p8171_p7 = scmp.ne.s32.totalorder %s81_s26, %s8170_s2  ;;  %p8176_p9 = scmp.lt.s32.totalorder %s8170_s2, %s8170_s2 }
  0x53   :  { %p8177_p10 = por %p8176_p9, %p8175_p8 }
  0x55   :  { %p8178_p11 = pnand %p8177_p10, %p8171_p7 }
  0x57   :  { %8181 = shalt.err (!%p8178_p11)
}
  0x58   :  { %86 = dma.hbm_to_vmem [thread:$0]  %s8951_s5, 16384, %s81_s26, [#allocation13], %s8310_s1, %s8310_s1, %s8311_s22  }
  0x59   :  { %s8182_s0 = scalar_lea.hbm %s8953_s7, 2048 }
  0x5a   :  { %p8183_p12 = scmp.ne.s32.totalorder %s8953_s7, %s8182_s0  ;;  %p8186_p13 = scmp.lt.u32.totalorder %s8182_s0, %s8953_s7 }
  0x5c   :  { %p8188_p0 = pnand %p8186_p13, %p8183_p12 }
  0x5e   :  { %8191 = shalt.err (!%p8188_p0)
}
  0x5f   :  { %s8192_s28 = scalar_lea.vmem %s8459_s3, 2048  ;;  %p8197_p2 = scmp.lt.s32.totalorder %s8459_s3, %s8459_s3 }
  0x60   :  { %p8193_p1 = scmp.ne.s32.totalorder %s8459_s3, %s8192_s28  ;;  %p8198_p3 = scmp.lt.s32.totalorder %s8192_s28, %s8192_s28 }
  0x62   :  { %p8199_p4 = por %p8198_p3, %p8197_p2 }
  0x64   :  { %p8200_p5 = pnand %p8199_p4, %p8193_p1 }
  0x66   :  { %8203 = shalt.err (!%p8200_p5)
}
  0x67   :  { %100 = dma.hbm_to_vmem [thread:$0]  %s8953_s7, 2048, %s8459_s3, [#allocation16], %s8308_s15, %s8308_s15, %s8309_s16  }
  0x68   :  { %8292 = dma.done.wait [#allocation7], 1024  }
  0x69   :  { %8293 = vsyncadd [#allocation7], 4294966272 }
  0x6a   :  { %8294 = dma.done.wait [#allocation10], 512  }
  0x6b   :  { %8295 = vsyncadd [#allocation10], 4294966784 }
  0x6c   :  { %8296 = dma.done.wait [#allocation13], 32768  }
  0x6d   :  { %8297 = vsyncadd [#allocation13], 4294934528 }
  0x6e   :  { %8298 = dma.done.wait [#allocation16], 2048  }
  0x6f   :  { %8299 = vsyncadd [#allocation16], 4294965248  ;;  %v141_v0 = vld [vmem:[#allocation12 + $0x8] sm:$0xff]  ;;  %v140_v2 = vld [vmem:[#allocation12] sm:$0xff] }
  0x70   :  { %v145_v1 = vld [vmem:[#allocation12 + $0x28] sm:$0xff]  ;;  %v144_v4 = vld [vmem:[#allocation12 + $0x20] sm:$0xff]  ;;  %v143_v11 = vld [vmem:[#allocation12 + $0x18] sm:$0xff] }
  0x71   :  { %v5770_v3 = vpack.c.bf16 %v145_v1, %v141_v0  ;;  %v149_v5 = vld [vmem:[#allocation12 + $0x48] sm:$0xff]  ;;  %v5772_v7 = vpack.c.bf16 %v144_v4, %v140_v2  ;;  %v148_v9 = vld [vmem:[#allocation12 + $0x40] sm:$0xff]  ;;  %v147_v12 = vld [vmem:[#allocation12 + $0x38] sm:$0xff] }
  0x72   :  { %v153_v6 = vld [vmem:[#allocation12 + $0x68] sm:$0xff]  ;;  %v152_v10 = vld [vmem:[#allocation12 + $0x60] sm:$0xff]  ;;  %v142_v13 = vld [vmem:[#allocation12 + $0x10] sm:$0xff]  ;;  %v5834_v16 = vpack.c.bf16 %v147_v12, %v143_v11 }
  0x73   :  { %v5774_v8 = vpack.c.bf16 %v153_v6, %v149_v5  ;;  %5771 = vmatprep.subr.bf16.mxu0 %v5770_v3  ;;  %v146_v14 = vld [vmem:[#allocation12 + $0x30] sm:$0xff]  ;;  %v5776_v15 = vpack.c.bf16 %v152_v10, %v148_v9  ;;  %v157_v18 = vld [vmem:[#allocation12 + $0x88] sm:$0xff]  ;;  %v156_v20 = vld [vmem:[#allocation12 + $0x80] sm:$0xff] }
  0x74   :  { %5773 = vmatpush1.bf16.msra.mxu0 %v5772_v7  ;;  %v5836_v17 = vpack.c.bf16 %v146_v14, %v142_v13  ;;  %v161_v19 = vld [vmem:[#allocation12 + $0xa8] sm:$0xff]  ;;  %v160_v22 = vld [vmem:[#allocation12 + $0xa0] sm:$0xff]  ;;  %v151_v23 = vld [vmem:[#allocation12 + $0x58] sm:$0xff]  ;;  %5835 = vmatprep.subr.bf16.mxu1 %v5834_v16 }
  0x75   :  { %5775 = vmatprep.subr.bf16.mxu0 %v5774_v8  ;;  %v5778_v21 = vpack.c.bf16 %v161_v19, %v157_v18  ;;  %v155_v24 = vld [vmem:[#allocation12 + $0x78] sm:$0xff]  ;;  %v150_v26 = vld [vmem:[#allocation12 + $0x50] sm:$0xff]  ;;  %v165_v28 = vld [vmem:[#allocation12 + $0xc8] sm:$0xff]  ;;  %v5780_v31 = vpack.c.bf16 %v160_v22, %v156_v20 }
  0x76   :  { %v5838_v25 = vpack.c.bf16 %v155_v24, %v151_v23  ;;  %v154_v27 = vld [vmem:[#allocation12 + $0x70] sm:$0xff]  ;;  %5837 = vmatpush1.bf16.msra.mxu1 %v5836_v17  ;;  %v169_v30 = vld [vmem:[#allocation12 + $0xe8] sm:$0xff]  ;;  %v159_v32 = vld [vmem:[#allocation12 + $0x98] sm:$0xff] }
  0x77   :  { %v5840_v29 = vpack.c.bf16 %v154_v27, %v150_v26  ;;  %v163_v33 = vld [vmem:[#allocation12 + $0xb8] sm:$0xff]  ;;  %v158_v34 = vld [vmem:[#allocation12 + $0x90] sm:$0xff]  ;;  %v5782_v35 = vpack.c.bf16 %v169_v30, %v165_v28  ;;  %v164_v36 = vld [vmem:[#allocation12 + $0xc0] sm:$0xff] }
  0x78   :  { %5777 = vmatpush1.bf16.msra.mxu0 %v5776_v15  ;;  %5839 = vmatprep.subr.bf16.mxu1 %v5838_v25  ;;  %v168_v37 = vld [vmem:[#allocation12 + $0xe0] sm:$0xff]  ;;  %v5842_v38 = vpack.c.bf16 %v163_v33, %v159_v32  ;;  %v162_v39 = vld [vmem:[#allocation12 + $0xb0] sm:$0xff]  ;;  %v173_v40 = vld [vmem:[#allocation12 + $0x108] sm:$0xff] }
  0x79   :  { %5779 = vmatprep.subr.bf16.mxu0 %v5778_v21  ;;  %v177_v41 = vld [vmem:[#allocation12 + $0x128] sm:$0xff]  ;;  %v167_v42 = vld [vmem:[#allocation12 + $0xd8] sm:$0xff]  ;;  %v5844_v43 = vpack.c.bf16 %v162_v39, %v158_v34  ;;  %v5784_v45 = vpack.c.bf16 %v168_v37, %v164_v36  ;;  %v172_v46 = vld [vmem:[#allocation12 + $0x100] sm:$0xff] }
  0x7a   :  { %5841 = vmatpush1.bf16.msra.mxu1 %v5840_v29  ;;  %v171_v44 = vld [vmem:[#allocation12 + $0xf8] sm:$0xff]  ;;  %v166_v48 = vld [vmem:[#allocation12 + $0xd0] sm:$0xff]  ;;  %v5786_v50 = vpack.c.bf16 %v177_v41, %v173_v40  ;;  %v176_v51 = vld [vmem:[#allocation12 + $0x120] sm:$0xff] }
  0x7b   :  { %5843 = vmatprep.subr.bf16.mxu1 %v5842_v38  ;;  %v5846_v47 = vpack.c.bf16 %v171_v44, %v167_v42  ;;  %v170_v49 = vld [vmem:[#allocation12 + $0xf0] sm:$0xff]  ;;  %v175_v52 = vld [vmem:[#allocation12 + $0x118] sm:$0xff]  ;;  %v181_v54 = vld [vmem:[#allocation12 + $0x148] sm:$0xff]  ;;  %v5788_v57 = vpack.c.bf16 %v176_v51, %v172_v46 }
  0x7c   :  { %5781 = vmatpush1.bf16.msra.mxu0 %v5780_v31  ;;  %v179_v53 = vld [vmem:[#allocation12 + $0x138] sm:$0xff]  ;;  %v185_v55 = vld [vmem:[#allocation12 + $0x168] sm:$0xff]  ;;  %v5848_v56 = vpack.c.bf16 %v170_v49, %v166_v48  ;;  %v180_v58 = vld [vmem:[#allocation12 + $0x140] sm:$0xff] }
  0x7d   :  { %5783 = vmatprep.subr.bf16.mxu0 %v5782_v35  ;;  %v5850_v59 = vpack.c.bf16 %v179_v53, %v175_v52  ;;  %v174_v60 = vld [vmem:[#allocation12 + $0x110] sm:$0xff]  ;;  %v5790_v62 = vpack.c.bf16 %v185_v55, %v181_v54  ;;  %v184_v63 = vld [vmem:[#allocation12 + $0x160] sm:$0xff]  ;;  %v183_v0 = vld [vmem:[#allocation12 + $0x158] sm:$0xff] }
  0x7e   :  { %5845 = vmatpush1.bf16.msra.mxu1 %v5844_v43  ;;  %v178_v61 = vld [vmem:[#allocation12 + $0x130] sm:$0xff]  ;;  %v187_v1 = vld [vmem:[#allocation12 + $0x178] sm:$0xff]  ;;  %v189_v2 = vld [vmem:[#allocation12 + $0x188] sm:$0xff]  ;;  %v5792_v5 = vpack.c.bf16 %v184_v63, %v180_v58 }
  0x7f   :  { %5847 = vmatprep.subr.bf16.mxu1 %v5846_v47  ;;  %v193_v3 = vld [vmem:[#allocation12 + $0x1a8] sm:$0xff]  ;;  %v5852_v4 = vpack.c.bf16 %v178_v61, %v174_v60  ;;  %v188_v6 = vld [vmem:[#allocation12 + $0x180] sm:$0xff]  ;;  %v5854_v7 = vpack.c.bf16 %v187_v1, %v183_v0  ;;  %v182_v8 = vld [vmem:[#allocation12 + $0x150] sm:$0xff] }
  0x80   :  { %5785 = vmatpush1.bf16.msra.mxu0 %v5784_v45  ;;  %v186_v9 = vld [vmem:[#allocation12 + $0x170] sm:$0xff]  ;;  %v5794_v10 = vpack.c.bf16 %v193_v3, %v189_v2  ;;  %v192_v11 = vld [vmem:[#allocation12 + $0x1a0] sm:$0xff]  ;;  %v191_v12 = vld [vmem:[#allocation12 + $0x198] sm:$0xff] }
  0x81   :  { %5787 = vmatprep.subr.bf16.mxu0 %v5786_v50  ;;  %v195_v13 = vld [vmem:[#allocation12 + $0x1b8] sm:$0xff]  ;;  %v197_v14 = vld [vmem:[#allocation12 + $0x1c8] sm:$0xff]  ;;  %v5856_v16 = vpack.c.bf16 %v186_v9, %v182_v8  ;;  %v5796_v17 = vpack.c.bf16 %v192_v11, %v188_v6  ;;  %v196_v18 = vld [vmem:[#allocation12 + $0x1c0] sm:$0xff] }
  0x82   :  { %5849 = vmatpush1.bf16.msra.mxu1 %v5848_v56  ;;  %v201_v15 = vld [vmem:[#allocation12 + $0x1e8] sm:$0xff]  ;;  %v5858_v19 = vpack.c.bf16 %v195_v13, %v191_v12  ;;  %v190_v20 = vld [vmem:[#allocation12 + $0x190] sm:$0xff]  ;;  %v200_v23 = vld [vmem:[#allocation12 + $0x1e0] sm:$0xff] }
  0x83   :  { %5851 = vmatprep.subr.bf16.mxu1 %v5850_v59  ;;  %v194_v21 = vld [vmem:[#allocation12 + $0x1b0] sm:$0xff]  ;;  %v5798_v22 = vpack.c.bf16 %v201_v15, %v197_v14  ;;  %v199_v24 = vld [vmem:[#allocation12 + $0x1d8] sm:$0xff]  ;;  %v205_v26 = vld [vmem:[#allocation12 + $0x208] sm:$0xff]  ;;  %v5800_v29 = vpack.c.bf16 %v200_v23, %v196_v18 }
  0x84   :  { %5789 = vmatpush1.bf16.msra.mxu0 %v5788_v57  ;;  %v203_v25 = vld [vmem:[#allocation12 + $0x1f8] sm:$0xff]  ;;  %v209_v27 = vld [vmem:[#allocation12 + $0x228] sm:$0xff]  ;;  %v5860_v28 = vpack.c.bf16 %v194_v21, %v190_v20  ;;  %v204_v30 = vld [vmem:[#allocation12 + $0x200] sm:$0xff] }
  0x85   :  { %5791 = vmatprep.subr.bf16.mxu0 %v5790_v62  ;;  %v5862_v31 = vpack.c.bf16 %v203_v25, %v199_v24  ;;  %v198_v32 = vld [vmem:[#allocation12 + $0x1d0] sm:$0xff]  ;;  %v5802_v34 = vpack.c.bf16 %v209_v27, %v205_v26  ;;  %v208_v35 = vld [vmem:[#allocation12 + $0x220] sm:$0xff]  ;;  %v207_v36 = vld [vmem:[#allocation12 + $0x218] sm:$0xff] }
  0x86   :  { %5853 = vmatpush1.bf16.msra.mxu1 %v5852_v4  ;;  %v202_v33 = vld [vmem:[#allocation12 + $0x1f0] sm:$0xff]  ;;  %v211_v37 = vld [vmem:[#allocation12 + $0x238] sm:$0xff]  ;;  %v213_v38 = vld [vmem:[#allocation12 + $0x248] sm:$0xff]  ;;  %v5804_v41 = vpack.c.bf16 %v208_v35, %v204_v30 }
  0x87   :  { %5855 = vmatprep.subr.bf16.mxu1 %v5854_v7  ;;  %v217_v39 = vld [vmem:[#allocation12 + $0x268] sm:$0xff]  ;;  %v5864_v40 = vpack.c.bf16 %v202_v33, %v198_v32  ;;  %v212_v42 = vld [vmem:[#allocation12 + $0x240] sm:$0xff]  ;;  %v5866_v43 = vpack.c.bf16 %v211_v37, %v207_v36  ;;  %v206_v44 = vld [vmem:[#allocation12 + $0x210] sm:$0xff] }
  0x88   :  { %5793 = vmatpush1.bf16.msra.mxu0 %v5792_v5  ;;  %v210_v45 = vld [vmem:[#allocation12 + $0x230] sm:$0xff]  ;;  %v5806_v46 = vpack.c.bf16 %v217_v39, %v213_v38  ;;  %v216_v47 = vld [vmem:[#allocation12 + $0x260] sm:$0xff]  ;;  %v215_v48 = vld [vmem:[#allocation12 + $0x258] sm:$0xff] }
  0x89   :  { %5795 = vmatprep.subr.bf16.mxu0 %v5794_v10  ;;  %v219_v49 = vld [vmem:[#allocation12 + $0x278] sm:$0xff]  ;;  %v221_v50 = vld [vmem:[#allocation12 + $0x288] sm:$0xff]  ;;  %v5868_v52 = vpack.c.bf16 %v210_v45, %v206_v44  ;;  %v5808_v53 = vpack.c.bf16 %v216_v47, %v212_v42  ;;  %v220_v54 = vld [vmem:[#allocation12 + $0x280] sm:$0xff] }
  0x8a   :  { %5857 = vmatpush1.bf16.msra.mxu1 %v5856_v16  ;;  %v225_v51 = vld [vmem:[#allocation12 + $0x2a8] sm:$0xff]  ;;  %v5870_v55 = vpack.c.bf16 %v219_v49, %v215_v48  ;;  %v214_v56 = vld [vmem:[#allocation12 + $0x250] sm:$0xff]  ;;  %v224_v59 = vld [vmem:[#allocation12 + $0x2a0] sm:$0xff] }
  0x8b   :  { %5859 = vmatprep.subr.bf16.mxu1 %v5858_v19  ;;  %v218_v57 = vld [vmem:[#allocation12 + $0x270] sm:$0xff]  ;;  %v5810_v58 = vpack.c.bf16 %v225_v51, %v221_v50  ;;  %v223_v60 = vld [vmem:[#allocation12 + $0x298] sm:$0xff]  ;;  %v229_v62 = vld [vmem:[#allocation12 + $0x2c8] sm:$0xff]  ;;  %v5812_v2 = vpack.c.bf16 %v224_v59, %v220_v54 }
  0x8c   :  { %5797 = vmatpush1.bf16.msra.mxu0 %v5796_v17  ;;  %v227_v61 = vld [vmem:[#allocation12 + $0x2b8] sm:$0xff]  ;;  %v233_v63 = vld [vmem:[#allocation12 + $0x2e8] sm:$0xff]  ;;  %v5872_v0 = vpack.c.bf16 %v218_v57, %v214_v56  ;;  %v228_v1 = vld [vmem:[#allocation12 + $0x2c0] sm:$0xff] }
  0x8d   :  { %5799 = vmatprep.subr.bf16.mxu0 %v5798_v22  ;;  %v5874_v3 = vpack.c.bf16 %v227_v61, %v223_v60  ;;  %v222_v4 = vld [vmem:[#allocation12 + $0x290] sm:$0xff]  ;;  %v126_v6 = vld [vmem:[#allocation9] sm:$0xff]  ;;  %v5814_v7 = vpack.c.bf16 %v233_v63, %v229_v62  ;;  %v231_v9 = vld [vmem:[#allocation12 + $0x2d8] sm:$0xff] }
  0x8e   :  { %5861 = vmatpush1.bf16.msra.mxu1 %v5860_v28  ;;  %v226_v5 = vld [vmem:[#allocation12 + $0x2b0] sm:$0xff]  ;;  %v232_v8 = vld [vmem:[#allocation12 + $0x2e0] sm:$0xff]  ;;  %v235_v10 = vld [vmem:[#allocation12 + $0x2f8] sm:$0xff]  ;;  %354 = vmatprep.mubr.f32.mxu0 %v126_v6 }
  0x8f   :  { %5863 = vmatprep.subr.bf16.mxu1 %v5862_v31  ;;  %v237_v11 = vld [vmem:[#allocation12 + $0x308] sm:$0xff]  ;;  %425 = vmatprep.mubr.f32.mxu1 %v126_v6  ;;  %v5876_v13 = vpack.c.bf16 %v226_v5, %v222_v4  ;;  %v5816_v14 = vpack.c.bf16 %v232_v8, %v228_v1  ;;  %v236_v15 = vld [vmem:[#allocation12 + $0x300] sm:$0xff]  ;;  %v5878_v16 = vpack.c.bf16 %v235_v10, %v231_v9  ;;  %v230_v17 = vld [vmem:[#allocation12 + $0x2d0] sm:$0xff] }
  0x90   :  { %5801 = vmatpush1.bf16.msra.mxu0 %v5800_v29  ;;  %v241_v12 = vld [vmem:[#allocation12 + $0x328] sm:$0xff]  ;;  %v234_v18 = vld [vmem:[#allocation12 + $0x2f0] sm:$0xff]  ;;  %v240_v20 = vld [vmem:[#allocation12 + $0x320] sm:$0xff] }
  0x91   :  { %5803 = vmatprep.subr.bf16.mxu0 %v5802_v34  ;;  %v5818_v19 = vpack.c.bf16 %v241_v12, %v237_v11  ;;  %v239_v21 = vld [vmem:[#allocation12 + $0x318] sm:$0xff]  ;;  %v245_v23 = vld [vmem:[#allocation12 + $0x348] sm:$0xff]  ;;  %v5880_v25 = vpack.c.bf16 %v234_v18, %v230_v17  ;;  %v5820_v26 = vpack.c.bf16 %v240_v20, %v236_v15  ;;  %v244_v27 = vld [vmem:[#allocation12 + $0x340] sm:$0xff] }
  0x92   :  { %5865 = vmatpush1.bf16.msra.mxu1 %v5864_v40  ;;  %v243_v22 = vld [vmem:[#allocation12 + $0x338] sm:$0xff]  ;;  %v249_v24 = vld [vmem:[#allocation12 + $0x368] sm:$0xff]  ;;  %v238_v29 = vld [vmem:[#allocation12 + $0x310] sm:$0xff] }
  0x93   :  { %5867 = vmatprep.subr.bf16.mxu1 %v5866_v43  ;;  %v5882_v28 = vpack.c.bf16 %v243_v22, %v239_v21  ;;  %v242_v30 = vld [vmem:[#allocation12 + $0x330] sm:$0xff]  ;;  %v5822_v31 = vpack.c.bf16 %v249_v24, %v245_v23  ;;  %v248_v32 = vld [vmem:[#allocation12 + $0x360] sm:$0xff]  ;;  %v247_v33 = vld [vmem:[#allocation12 + $0x358] sm:$0xff] }
  0x94   :  { %5805 = vmatpush1.bf16.msra.mxu0 %v5804_v41  ;;  %v251_v34 = vld [vmem:[#allocation12 + $0x378] sm:$0xff]  ;;  %v253_v35 = vld [vmem:[#allocation12 + $0x388] sm:$0xff]  ;;  %v5884_v37 = vpack.c.bf16 %v242_v30, %v238_v29  ;;  %v5824_v38 = vpack.c.bf16 %v248_v32, %v244_v27  ;;  %v252_v39 = vld [vmem:[#allocation12 + $0x380] sm:$0xff] }
  0x95   :  { %5807 = vmatprep.subr.bf16.mxu0 %v5806_v46  ;;  %v257_v36 = vld [vmem:[#allocation12 + $0x3a8] sm:$0xff]  ;;  %v5886_v40 = vpack.c.bf16 %v251_v34, %v247_v33  ;;  %v246_v41 = vld [vmem:[#allocation12 + $0x350] sm:$0xff]  ;;  %v256_v44 = vld [vmem:[#allocation12 + $0x3a0] sm:$0xff] }
  0x96   :  { %5869 = vmatpush1.bf16.msra.mxu1 %v5868_v52  ;;  %v250_v42 = vld [vmem:[#allocation12 + $0x370] sm:$0xff]  ;;  %v5826_v43 = vpack.c.bf16 %v257_v36, %v253_v35  ;;  %v255_v45 = vld [vmem:[#allocation12 + $0x398] sm:$0xff]  ;;  %v261_v47 = vld [vmem:[#allocation12 + $0x3c8] sm:$0xff]  ;;  %v5828_v50 = vpack.c.bf16 %v256_v44, %v252_v39 }
  0x97   :  { %5871 = vmatprep.subr.bf16.mxu1 %v5870_v55  ;;  %v259_v46 = vld [vmem:[#allocation12 + $0x3b8] sm:$0xff]  ;;  %v265_v48 = vld [vmem:[#allocation12 + $0x3e8] sm:$0xff]  ;;  %v5888_v49 = vpack.c.bf16 %v250_v42, %v246_v41  ;;  %v260_v51 = vld [vmem:[#allocation12 + $0x3c0] sm:$0xff] }
  0x98   :  { %5809 = vmatpush1.bf16.msra.mxu0 %v5808_v53  ;;  %v5890_v52 = vpack.c.bf16 %v259_v46, %v255_v45  ;;  %v254_v53 = vld [vmem:[#allocation12 + $0x390] sm:$0xff]  ;;  %v5830_v55 = vpack.c.bf16 %v265_v48, %v261_v47  ;;  %v264_v56 = vld [vmem:[#allocation12 + $0x3e0] sm:$0xff]  ;;  %v263_v57 = vld [vmem:[#allocation12 + $0x3d8] sm:$0xff] }
  0x99   :  { %5811 = vmatprep.subr.bf16.mxu0 %v5810_v58  ;;  %v258_v54 = vld [vmem:[#allocation12 + $0x3b0] sm:$0xff]  ;;  %v267_v58 = vld [vmem:[#allocation12 + $0x3f8] sm:$0xff]  ;;  %v457_v59 = vld [vmem:[#allocation14 + $0x8] sm:$0xff]  ;;  %v5832_v62 = vpack.c.bf16 %v264_v56, %v260_v51 }
  0x9a   :  { %5873 = vmatpush1.bf16.msra.mxu1 %v5872_v0  ;;  %v461_v60 = vld [vmem:[#allocation14 + $0x28] sm:$0xff]  ;;  %v5892_v61 = vpack.c.bf16 %v258_v54, %v254_v53  ;;  %v5894_v63 = vpack.c.bf16 %v267_v58, %v263_v57  ;;  %v262_v0 = vld [vmem:[#allocation12 + $0x3d0] sm:$0xff]  ;;  %v460_v4 = vld [vmem:[#allocation14 + $0x20] sm:$0xff] }
  0x9b   :  { %5875 = vmatprep.subr.bf16.mxu1 %v5874_v3  ;;  %v266_v1 = vld [vmem:[#allocation12 + $0x3f0] sm:$0xff]  ;;  %v5898_v3 = vpack.c.bf16 %v461_v60, %v457_v59  ;;  %v459_v5 = vld [vmem:[#allocation14 + $0x18] sm:$0xff]  ;;  %v469_v8 = vld [vmem:[#allocation14 + $0x68] sm:$0xff] }
  0x9c   :  { %5813 = vmatpush1.bf16.msra.mxu0 %v5812_v2  ;;  %v456_v2 = vld [vmem:[#allocation14] sm:$0xff]  ;;  %v463_v6 = vld [vmem:[#allocation14 + $0x38] sm:$0xff]  ;;  %v5896_v10 = vpack.c.bf16 %v266_v1, %v262_v0  ;;  %v473_v20 = vld [vmem:[#allocation14 + $0x88] sm:$0xff] }
  0x9d   :  { %5815 = vmatprep.subr.bf16.mxu0 %v5814_v7  ;;  %v465_v7 = vld [vmem:[#allocation14 + $0x48] sm:$0xff]  ;;  %v136_v9 = vld [vmem:[#allocation6] sm:$0xff]  ;;  %v5900_v11 = vpack.c.bf16 %v460_v4, %v456_v2  ;;  %v5962_v12 = vpack.c.bf16 %v463_v6, %v459_v5  ;;  %v467_v18 = vld [vmem:[#allocation14 + $0x58] sm:$0xff] }
  0x9e   :  { %5877 = vmatpush1.bf16.msra.mxu1 %v5876_v13  ;;  %v458_v13 = vld [vmem:[#allocation14 + $0x10] sm:$0xff]  ;;  %v464_v15 = vld [vmem:[#allocation14 + $0x40] sm:$0xff]  ;;  %v477_v21 = vld [vmem:[#allocation14 + $0xa8] sm:$0xff] }
  0x9f   :  { %5879 = vmatprep.subr.bf16.mxu1 %v5878_v16  ;;  %v5902_v16 = vpack.c.bf16 %v469_v8, %v465_v7  ;;  %v468_v17 = vld [vmem:[#allocation14 + $0x60] sm:$0xff]  ;;  %v475_v30 = vld [vmem:[#allocation14 + $0x98] sm:$0xff]  ;;  %v481_v32 = vld [vmem:[#allocation14 + $0xc8] sm:$0xff] }
  0xa0   :  { %5817 = vmatpush1.bf16.msra.mxu0 %v5816_v14  ;;  %v462_v14 = vld [vmem:[#allocation14 + $0x30] sm:$0xff]  ;;  %v5904_v23 = vpack.c.bf16 %v468_v17, %v464_v15  ;;  %v472_v27 = vld [vmem:[#allocation14 + $0x80] sm:$0xff]  ;;  %v485_v33 = vld [vmem:[#allocation14 + $0xe8] sm:$0xff] }
  0xa1   :  { %5819 = vmatprep.subr.bf16.mxu0 %v5818_v19  ;;  %v471_v19 = vld [vmem:[#allocation14 + $0x78] sm:$0xff]  ;;  %v5964_v22 = vpack.c.bf16 %v462_v14, %v458_v13  ;;  %v476_v29 = vld [vmem:[#allocation14 + $0xa0] sm:$0xff]  ;;  %v489_v44 = vld [vmem:[#allocation14 + $0x108] sm:$0xff] }
  0xa2   :  { %5881 = vmatpush1.bf16.msra.mxu1 %v5880_v25  ;;  %v5966_v24 = vpack.c.bf16 %v471_v19, %v467_v18  ;;  %v466_v25 = vld [vmem:[#allocation14 + $0x50] sm:$0xff]  ;;  %v5908_v35 = vpack.c.bf16 %v476_v29, %v472_v27  ;;  %v480_v39 = vld [vmem:[#allocation14 + $0xc0] sm:$0xff]  ;;  %v483_v42 = vld [vmem:[#allocation14 + $0xd8] sm:$0xff] }
  0xa3   :  { %5883 = vmatprep.subr.bf16.mxu1 %v5882_v28  ;;  %v5906_v28 = vpack.c.bf16 %v477_v21, %v473_v20  ;;  %v484_v41 = vld [vmem:[#allocation14 + $0xe0] sm:$0xff]  ;;  %v493_v45 = vld [vmem:[#allocation14 + $0x128] sm:$0xff]  ;;  %v491_v54 = vld [vmem:[#allocation14 + $0x118] sm:$0xff] }
  0xa4   :  { %5821 = vmatpush1.bf16.msra.mxu0 %v5820_v26  ;;  %v470_v26 = vld [vmem:[#allocation14 + $0x70] sm:$0xff]  ;;  %v5912_v47 = vpack.c.bf16 %v484_v41, %v480_v39  ;;  %v488_v51 = vld [vmem:[#allocation14 + $0x100] sm:$0xff]  ;;  %v497_v56 = vld [vmem:[#allocation14 + $0x148] sm:$0xff] }
  0xa5   :  { %5823 = vmatprep.subr.bf16.mxu0 %v5822_v31  ;;  %v479_v31 = vld [vmem:[#allocation14 + $0xb8] sm:$0xff]  ;;  %v5968_v34 = vpack.c.bf16 %v470_v26, %v466_v25  ;;  %v492_v53 = vld [vmem:[#allocation14 + $0x120] sm:$0xff]  ;;  %v501_v57 = vld [vmem:[#allocation14 + $0x168] sm:$0xff] }
  0xa6   :  { %5885 = vmatpush1.bf16.msra.mxu1 %v5884_v37  ;;  %v5970_v36 = vpack.c.bf16 %v479_v31, %v475_v30  ;;  %v474_v37 = vld [vmem:[#allocation14 + $0x90] sm:$0xff]  ;;  %v5916_v59 = vpack.c.bf16 %v492_v53, %v488_v51  ;;  %v5918_v0 = vpack.c.bf16 %v501_v57, %v497_v56  ;;  %v500_v1 = vld [vmem:[#allocation14 + $0x160] sm:$0xff]  ;;  %v499_v2 = vld [vmem:[#allocation14 + $0x158] sm:$0xff] }
  0xa7   :  { %5887 = vmatprep.subr.bf16.mxu1 %v5886_v40  ;;  %v5910_v40 = vpack.c.bf16 %v485_v33, %v481_v32  ;;  %v505_v4 = vld [vmem:[#allocation14 + $0x188] sm:$0xff]  ;;  %v508_v13 = vld [vmem:[#allocation14 + $0x1a0] sm:$0xff]  ;;  %v507_v14 = vld [vmem:[#allocation14 + $0x198] sm:$0xff] }
  0xa8   :  { %5825 = vmatpush1.bf16.msra.mxu0 %v5824_v38  ;;  %v478_v38 = vld [vmem:[#allocation14 + $0xb0] sm:$0xff]  ;;  %v509_v5 = vld [vmem:[#allocation14 + $0x1a8] sm:$0xff]  ;;  %v511_v15 = vld [vmem:[#allocation14 + $0x1b8] sm:$0xff] }
  0xa9   :  { %5827 = vmatprep.subr.bf16.mxu0 %v5826_v43  ;;  %v487_v43 = vld [vmem:[#allocation14 + $0xf8] sm:$0xff]  ;;  %v5972_v46 = vpack.c.bf16 %v478_v38, %v474_v37  ;;  %v5986_v18 = vpack.c.bf16 %v511_v15, %v507_v14  ;;  %v506_v19 = vld [vmem:[#allocation14 + $0x190] sm:$0xff]  ;;  %v512_v25 = vld [vmem:[#allocation14 + $0x1c0] sm:$0xff] }
  0xaa   :  { %5889 = vmatpush1.bf16.msra.mxu1 %v5888_v49  ;;  %v5974_v48 = vpack.c.bf16 %v487_v43, %v483_v42  ;;  %v482_v49 = vld [vmem:[#allocation14 + $0xd0] sm:$0xff]  ;;  %v516_v26 = vld [vmem:[#allocation14 + $0x1e0] sm:$0xff]  ;;  %v515_v27 = vld [vmem:[#allocation14 + $0x1d8] sm:$0xff] }
  0xab   :  { %5891 = vmatprep.subr.bf16.mxu1 %v5890_v52  ;;  %v5914_v52 = vpack.c.bf16 %v493_v45, %v489_v44  ;;  %v510_v20 = vld [vmem:[#allocation14 + $0x1b0] sm:$0xff]  ;;  %v519_v29 = vld [vmem:[#allocation14 + $0x1f8] sm:$0xff]  ;;  %v520_v37 = vld [vmem:[#allocation14 + $0x200] sm:$0xff] }
  0xac   :  { %5829 = vmatpush1.bf16.msra.mxu0 %v5828_v50  ;;  %v486_v50 = vld [vmem:[#allocation14 + $0xf0] sm:$0xff]  ;;  %v5988_v21 = vpack.c.bf16 %v510_v20, %v506_v19  ;;  %v5990_v32 = vpack.c.bf16 %v519_v29, %v515_v27  ;;  %v524_v38 = vld [vmem:[#allocation14 + $0x220] sm:$0xff]  ;;  %v523_v39 = vld [vmem:[#allocation14 + $0x218] sm:$0xff] }
  0xad   :  { %5831 = vmatprep.subr.bf16.mxu0 %v5830_v55  ;;  %v495_v55 = vld [vmem:[#allocation14 + $0x138] sm:$0xff]  ;;  %v5976_v58 = vpack.c.bf16 %v486_v50, %v482_v49  ;;  %v514_v30 = vld [vmem:[#allocation14 + $0x1d0] sm:$0xff]  ;;  %v528_v49 = vld [vmem:[#allocation14 + $0x240] sm:$0xff] }
  0xae   :  { %5893 = vmatpush1.bf16.msra.mxu1 %v5892_v61  ;;  %v5978_v60 = vpack.c.bf16 %v495_v55, %v491_v54  ;;  %v490_v61 = vld [vmem:[#allocation14 + $0x110] sm:$0xff]  ;;  %v527_v41 = vld [vmem:[#allocation14 + $0x238] sm:$0xff]  ;;  %v532_v50 = vld [vmem:[#allocation14 + $0x260] sm:$0xff] }
  0xaf   :  { %5895 = vmatprep.subr.bf16.mxu1 %v5894_v63  ;;  %v496_v63 = vld [vmem:[#allocation14 + $0x140] sm:$0xff]  ;;  %v518_v31 = vld [vmem:[#allocation14 + $0x1f0] sm:$0xff]  ;;  %v5994_v44 = vpack.c.bf16 %v527_v41, %v523_v39  ;;  %v531_v51 = vld [vmem:[#allocation14 + $0x258] sm:$0xff] }
  0xb0   :  { %5833 = vmatpush1.bf16.msra.mxu0 %v5832_v62  ;;  %v494_v62 = vld [vmem:[#allocation14 + $0x130] sm:$0xff]  ;;  %v5920_v7 = vpack.c.bf16 %v500_v1, %v496_v63  ;;  %v5992_v33 = vpack.c.bf16 %v518_v31, %v514_v30  ;;  %v535_v53 = vld [vmem:[#allocation14 + $0x278] sm:$0xff]  ;;  %v557_v19 = vld [vmem:[#allocation14 + $0x328] sm:$0xff] }
  0xb1   :  { %5899 = vmatprep.subr.bf16.mxu0 %v5898_v3  ;;  %v503_v3 = vld [vmem:[#allocation14 + $0x178] sm:$0xff]  ;;  %v5980_v6 = vpack.c.bf16 %v494_v62, %v490_v61  ;;  %v522_v42 = vld [vmem:[#allocation14 + $0x210] sm:$0xff]  ;;  %v5998_v56 = vpack.c.bf16 %v535_v53, %v531_v51  ;;  %v536_v61 = vld [vmem:[#allocation14 + $0x280] sm:$0xff] }
  0xb2   :  { %5897 = vmatpush1.bf16.msra.mxu1 %v5896_v10  ;;  %v5982_v8 = vpack.c.bf16 %v503_v3, %v499_v2  ;;  %v502_v10 = vld [vmem:[#allocation14 + $0x170] sm:$0xff]  ;;  %v540_v62 = vld [vmem:[#allocation14 + $0x2a0] sm:$0xff]  ;;  %v539_v63 = vld [vmem:[#allocation14 + $0x298] sm:$0xff] }
  0xb3   :  { %355 = vmatmul.mubr.f32.vlgmr.msra.gmra.mrb[0].mxu0 %v136_v9  ;;  %5963 = vmatprep.subr.bf16.mxu1 %v5962_v12  ;;  %v5922_v12 = vpack.c.bf16 %v509_v5, %v505_v4  ;;  %v526_v43 = vld [vmem:[#allocation14 + $0x230] sm:$0xff]  ;;  %v543_v1 = vld [vmem:[#allocation14 + $0x2b8] sm:$0xff]  ;;  %v561_v30 = vld [vmem:[#allocation14 + $0x348] sm:$0xff] }
  0xb4   :  { %5901 = vmatpush1.bf16.msra.mxu0 %v5900_v11  ;;  %v504_v11 = vld [vmem:[#allocation14 + $0x180] sm:$0xff]  ;;  %v5996_v45 = vpack.c.bf16 %v526_v43, %v522_v42  ;;  %v530_v54 = vld [vmem:[#allocation14 + $0x250] sm:$0xff]  ;;  %v6002_v4 = vpack.c.bf16 %v543_v1, %v539_v63  ;;  %v565_v31 = vld [vmem:[#allocation14 + $0x368] sm:$0xff] }
  0xb5   :  { %5903 = vmatprep.subr.bf16.mxu0 %v5902_v16  ;;  %426 = vmatmul.mubr.f32.vlgmr.msra.gmra.mrb[0].mxu1 %v136_v9  ;;  %v498_v9 = vld [vmem:[#allocation14 + $0x150] sm:$0xff]  ;;  %v5924_v17 = vpack.c.bf16 %v508_v13, %v504_v11  ;;  %v547_v11 = vld [vmem:[#allocation14 + $0x2d8] sm:$0xff]  ;;  %v569_v42 = vld [vmem:[#allocation14 + $0x388] sm:$0xff] }
  0xb6   :  { %5965 = vmatpush1.bf16.msra.mxu1 %v5964_v22  ;;  %v5984_v16 = vpack.c.bf16 %v502_v10, %v498_v9  ;;  %v513_v22 = vld [vmem:[#allocation14 + $0x1c8] sm:$0xff]  ;;  %v534_v55 = vld [vmem:[#allocation14 + $0x270] sm:$0xff]  ;;  %v544_v9 = vld [vmem:[#allocation14 + $0x2c0] sm:$0xff] }
  0xb7   :  { %5967 = vmatprep.subr.bf16.mxu1 %v5966_v24  ;;  %v6000_v57 = vpack.c.bf16 %v534_v55, %v530_v54  ;;  %v538_v2 = vld [vmem:[#allocation14 + $0x290] sm:$0xff]  ;;  %v548_v10 = vld [vmem:[#allocation14 + $0x2e0] sm:$0xff]  ;;  %v551_v13 = vld [vmem:[#allocation14 + $0x2f8] sm:$0xff] }
  0xb8   :  { %5905 = vmatpush1.bf16.msra.mxu0 %v5904_v23  ;;  %v517_v23 = vld [vmem:[#allocation14 + $0x1e8] sm:$0xff]  ;;  %v542_v3 = vld [vmem:[#allocation14 + $0x2b0] sm:$0xff] }
  0xb9   :  { %5907 = vmatprep.subr.bf16.mxu0 %v5906_v28  ;;  %v5926_v24 = vpack.c.bf16 %v517_v23, %v513_v22  ;;  %v5928_v28 = vpack.c.bf16 %v516_v26, %v512_v25  ;;  %v6004_v5 = vpack.c.bf16 %v542_v3, %v538_v2  ;;  %v546_v14 = vld [vmem:[#allocation14 + $0x2d0] sm:$0xff]  ;;  %v556_v22 = vld [vmem:[#allocation14 + $0x320] sm:$0xff]  ;;  %v555_v23 = vld [vmem:[#allocation14 + $0x318] sm:$0xff] }
  0xba   :  { %5969 = vmatpush1.bf16.msra.mxu1 %v5968_v34  ;;  %v521_v34 = vld [vmem:[#allocation14 + $0x208] sm:$0xff]  ;;  %v550_v15 = vld [vmem:[#allocation14 + $0x2f0] sm:$0xff]  ;;  %v559_v25 = vld [vmem:[#allocation14 + $0x338] sm:$0xff] }
  0xbb   :  { %5971 = vmatprep.subr.bf16.mxu1 %v5970_v36  ;;  %v554_v26 = vld [vmem:[#allocation14 + $0x310] sm:$0xff]  ;;  %v573_v43 = vld [vmem:[#allocation14 + $0x3a8] sm:$0xff] }
  0xbc   :  { %5909 = vmatpush1.bf16.msra.mxu0 %v5908_v35  ;;  %v525_v35 = vld [vmem:[#allocation14 + $0x228] sm:$0xff]  ;;  %v558_v27 = vld [vmem:[#allocation14 + $0x330] sm:$0xff] }
  0xbd   :  { %5911 = vmatprep.subr.bf16.mxu0 %v5910_v40  ;;  %v5930_v36 = vpack.c.bf16 %v525_v35, %v521_v34  ;;  %v5932_v40 = vpack.c.bf16 %v524_v38, %v520_v37  ;;  %v6012_v29 = vpack.c.bf16 %v558_v27, %v554_v26  ;;  %v564_v34 = vld [vmem:[#allocation14 + $0x360] sm:$0xff]  ;;  %v563_v35 = vld [vmem:[#allocation14 + $0x358] sm:$0xff]  ;;  %v562_v38 = vld [vmem:[#allocation14 + $0x350] sm:$0xff] }
  0xbe   :  { %5973 = vmatpush1.bf16.msra.mxu1 %v5972_v46  ;;  %v529_v46 = vld [vmem:[#allocation14 + $0x248] sm:$0xff]  ;;  %v567_v37 = vld [vmem:[#allocation14 + $0x378] sm:$0xff]  ;;  %v566_v39 = vld [vmem:[#allocation14 + $0x370] sm:$0xff] }
  0xbf   :  { %5975 = vmatprep.subr.bf16.mxu1 %v5974_v48  ;;  %v6016_v41 = vpack.c.bf16 %v566_v39, %v562_v38  ;;  %v574_v51 = vld [vmem:[#allocation14 + $0x3b0] sm:$0xff]  ;;  %v577_v54 = vld [vmem:[#allocation14 + $0x3c8] sm:$0xff] }
  0xc0   :  { %5913 = vmatpush1.bf16.msra.mxu0 %v5912_v47  ;;  %v533_v47 = vld [vmem:[#allocation14 + $0x268] sm:$0xff]  ;;  %v582_v63 = vld [vmem:[#allocation14 + $0x3f0] sm:$0xff] }
  0xc1   :  { %5915 = vmatprep.subr.bf16.mxu0 %v5914_v52  ;;  %v5934_v48 = vpack.c.bf16 %v533_v47, %v529_v46  ;;  %v5936_v52 = vpack.c.bf16 %v532_v50, %v528_v49  ;;  %v572_v46 = vld [vmem:[#allocation14 + $0x3a0] sm:$0xff]  ;;  %v571_v47 = vld [vmem:[#allocation14 + $0x398] sm:$0xff]  ;;  %v570_v50 = vld [vmem:[#allocation14 + $0x390] sm:$0xff] }
  0xc2   :  { %5977 = vmatpush1.bf16.msra.mxu1 %v5976_v58  ;;  %v537_v58 = vld [vmem:[#allocation14 + $0x288] sm:$0xff]  ;;  %v575_v49 = vld [vmem:[#allocation14 + $0x3b8] sm:$0xff]  ;;  %v6020_v53 = vpack.c.bf16 %v574_v51, %v570_v50  ;;  %v782_v50 = vld [vmem:[#allocation12 + $0x30] sm:$0xff] }
  0xc3   :  { %5979 = vmatprep.subr.bf16.mxu1 %v5978_v60  ;;  %v581_v55 = vld [vmem:[#allocation14 + $0x3e8] sm:$0xff] }
  0xc4   :  { %5917 = vmatpush1.bf16.msra.mxu0 %v5916_v59  ;;  %v541_v59 = vld [vmem:[#allocation14 + $0x2a8] sm:$0xff] }
  0xc5   :  { %5919 = vmatprep.subr.bf16.mxu0 %v5918_v0  ;;  %v5938_v60 = vpack.c.bf16 %v541_v59, %v537_v58  ;;  %v5940_v0 = vpack.c.bf16 %v540_v62, %v536_v61  ;;  %v580_v58 = vld [vmem:[#allocation14 + $0x3e0] sm:$0xff]  ;;  %v579_v59 = vld [vmem:[#allocation14 + $0x3d8] sm:$0xff]  ;;  %v578_v62 = vld [vmem:[#allocation14 + $0x3d0] sm:$0xff] }
  0xc6   :  { %5981 = vmatpush1.bf16.msra.mxu1 %v5980_v6  ;;  %v545_v6 = vld [vmem:[#allocation14 + $0x2c8] sm:$0xff]  ;;  %v583_v61 = vld [vmem:[#allocation14 + $0x3f8] sm:$0xff]  ;;  %v6024_v1 = vpack.c.bf16 %v582_v63, %v578_v62  ;;  %v786_v63 = vld [vmem:[#allocation12 + $0x50] sm:$0xff] }
  0xc7   :  { %5983 = vmatprep.subr.bf16.mxu1 %v5982_v8  ;;  %v777_v2 = vld [vmem:[#allocation12 + $0x8] sm:$0xff] }
  0xc8   :  { %5921 = vmatpush1.bf16.msra.mxu0 %v5920_v7  ;;  %v549_v7 = vld [vmem:[#allocation14 + $0x2e8] sm:$0xff] }
  0xc9   :  { %5923 = vmatprep.subr.bf16.mxu0 %v5922_v12  ;;  %v5942_v8 = vpack.c.bf16 %v549_v7, %v545_v6  ;;  %v5944_v12 = vpack.c.bf16 %v548_v10, %v544_v9  ;;  %v781_v3 = vld [vmem:[#allocation12 + $0x28] sm:$0xff]  ;;  %v779_v6 = vld [vmem:[#allocation12 + $0x18] sm:$0xff]  ;;  %v270_v9 = vlaneseq }
  0xca   :  { %5985 = vmatpush1.bf16.msra.mxu1 %v5984_v16  ;;  %v6006_v16 = vpack.c.bf16 %v551_v13, %v547_v11  ;;  %v783_v7 = vld [vmem:[#allocation12 + $0x38] sm:$0xff] }
  0xcb   :  { %5987 = vmatprep.subr.bf16.mxu1 %v5986_v18  ;;  %v553_v18 = vld [vmem:[#allocation14 + $0x308] sm:$0xff]  ;;  %v8497_v10 = vshrl.u32 %v270_v9, 7 }
  0xcc   :  { %5925 = vmatpush1.bf16.msra.mxu0 %v5924_v17  ;;  %v6008_v17 = vpack.c.bf16 %v550_v15, %v546_v14  ;;  %v5946_v20 = vpack.c.bf16 %v557_v19, %v553_v18 }
  0xcd   :  { %5927 = vmatprep.subr.bf16.mxu0 %v5926_v24  ;;  %v8500_v11 = vsub.s32 0, %v8497_v10  ;;  %v8506_v13 = vsub.s32 1, %v8497_v10  ;;  %v8509_v14 = vsub.s32 2, %v8497_v10 }
  0xce   :  { %5989 = vmatpush1.bf16.msra.mxu1 %v5988_v21  ;;  %v552_v21 = vld [vmem:[#allocation14 + $0x300] sm:$0xff] }
  0xcf   :  { %5991 = vmatprep.subr.bf16.mxu1 %v5990_v32  ;;  %v5948_v24 = vpack.c.bf16 %v556_v22, %v552_v21  ;;  %v5950_v32 = vpack.c.bf16 %v565_v31, %v561_v30  ;;  %v8515_v21 = vsub.s32 3, %v8497_v10 }
  0xd0   :  { %5929 = vmatpush1.bf16.msra.mxu0 %v5928_v28  ;;  %v6010_v28 = vpack.c.bf16 %v559_v25, %v555_v23 }
  0xd1   :  { %5931 = vmatprep.subr.bf16.mxu0 %v5930_v36 }
  0xd2   :  { %5993 = vmatpush1.bf16.msra.mxu1 %v5992_v33  ;;  %v560_v33 = vld [vmem:[#allocation14 + $0x340] sm:$0xff] }
  0xd3   :  { %5995 = vmatprep.subr.bf16.mxu1 %v5994_v44  ;;  %v5952_v36 = vpack.c.bf16 %v564_v34, %v560_v33  ;;  %v5954_v44 = vpack.c.bf16 %v573_v43, %v569_v42 }
  0xd4   :  { %5933 = vmatpush1.bf16.msra.mxu0 %v5932_v40  ;;  %v6014_v40 = vpack.c.bf16 %v567_v37, %v563_v35  ;;  %v132_v37 = vld [vmem:[#allocation11] sm:$0xff] }
  0xd5   :  { %5935 = vmatprep.subr.bf16.mxu0 %v5934_v48 }
  0xd6   :  { %5997 = vmatpush1.bf16.msra.mxu1 %v5996_v45  ;;  %v568_v45 = vld [vmem:[#allocation14 + $0x380] sm:$0xff] }
  0xd7   :  { %5999 = vmatprep.subr.bf16.mxu1 %v5998_v56  ;;  %v5956_v48 = vpack.c.bf16 %v572_v46, %v568_v45  ;;  %v5958_v56 = vpack.c.bf16 %v581_v55, %v577_v54  ;;  %v780_v45 = vld [vmem:[#allocation12 + $0x20] sm:$0xff]  ;;  %v785_v46 = vld [vmem:[#allocation12 + $0x48] sm:$0xff]  ;;  %v791_v54 = vld [vmem:[#allocation12 + $0x78] sm:$0xff] }
  0xd8   :  { %5937 = vmatpush1.bf16.msra.mxu0 %v5936_v52  ;;  %v6018_v52 = vpack.c.bf16 %v575_v49, %v571_v47  ;;  %v789_v47 = vld [vmem:[#allocation12 + $0x68] sm:$0xff]  ;;  %v778_v49 = vld [vmem:[#allocation12 + $0x10] sm:$0xff] }
  0xd9   :  { %5939 = vmatprep.subr.bf16.mxu0 %v5938_v60 }
  0xda   :  { %6001 = vmatpush1.bf16.msra.mxu1 %v6000_v57  ;;  %v576_v57 = vld [vmem:[#allocation14 + $0x3c0] sm:$0xff] }
  0xdb   :  { %6003 = vmatprep.subr.bf16.mxu1 %v6002_v4  ;;  %v5960_v60 = vpack.c.bf16 %v580_v58, %v576_v57  ;;  %v6026_v4 = vpack.c.bf16 %v781_v3, %v777_v2  ;;  %v784_v57 = vld [vmem:[#allocation12 + $0x40] sm:$0xff]  ;;  %v795_v2 = vld [vmem:[#allocation12 + $0x98] sm:$0xff] }
  0xdc   :  { %5941 = vmatpush1.bf16.msra.mxu0 %v5940_v0  ;;  %v6022_v0 = vpack.c.bf16 %v583_v61, %v579_v59  ;;  %v788_v58 = vld [vmem:[#allocation12 + $0x60] sm:$0xff]  ;;  %v6092_v59 = vpack.c.bf16 %v782_v50, %v778_v49  ;;  %v797_v61 = vld [vmem:[#allocation12 + $0xa8] sm:$0xff]  ;;  %v799_v3 = vld [vmem:[#allocation12 + $0xb8] sm:$0xff] }
  0xdd   :  { %5943 = vmatprep.subr.bf16.mxu0 %v5942_v8  ;;  %v6090_v8 = vpack.c.bf16 %v783_v7, %v779_v6  ;;  %v796_v6 = vld [vmem:[#allocation12 + $0xa0] sm:$0xff] }
  0xde   :  { %6005 = vmatpush1.bf16.msra.mxu1 %v6004_v5  ;;  %v130_v5 = vld [vmem:[#allocation9 + $0x8] sm:$0xff]  ;;  %v820_v49 = vld [vmem:[#allocation12 + $0x160] sm:$0xff] }
  0xdf   :  { %6007 = vmatprep.subr.bf16.mxu1 %v6006_v16  ;;  %670 = vmatprep.mubr.f32.mxu0 %v130_v5 }
  0xe0   :  { %5945 = vmatpush1.bf16.msra.mxu0 %v5944_v12  ;;  %741 = vmatprep.mubr.f32.mxu1 %v130_v5  ;;  %v268_v12 = vld [vmem:[%s8950_s4] sm:$0xf] }
  0xe1   :  { %5947 = vmatprep.subr.bf16.mxu0 %v5946_v20  ;;  %v273_v15 = vrot.slane %v268_v12, %v8500_v11  ;;  %v277_v16 = vrot.slane %v268_v12, %v8506_v13  ;;  %v281_v18 = vrot.slane %v268_v12, %v8509_v14  ;;  %v792_v5 = vld [vmem:[#allocation12 + $0x80] sm:$0xff] }
  0xe2   :  { %6009 = vmatpush1.bf16.msra.mxu1 %v6008_v17 }
  0xe3   :  { %6011 = vmatprep.subr.bf16.mxu1 %v6010_v28  ;;  %v285_v28 = vrot.slane %v268_v12, %v8515_v21  ;;  %v805_v12 = vld [vmem:[#allocation12 + $0xe8] sm:$0xff] }
  0xe4   :  { %5949 = vmatpush1.bf16.msra.mxu0 %v5948_v24 }
  0xe5   :  { %5951 = vmatprep.subr.bf16.mxu0 %v5950_v32 }
  0xe6   :  { %6013 = vmatpush1.bf16.msra.mxu1 %v6012_v29 }
  0xe7   :  { %6015 = vmatprep.subr.bf16.mxu1 %v6014_v40 }
  0xe8   :  { %5953 = vmatpush1.bf16.msra.mxu0 %v5952_v36 }
  0xe9   :  { %5955 = vmatprep.subr.bf16.mxu0 %v5954_v44  ;;  %v776_v44 = vld [vmem:[#allocation12] sm:$0xff] }
  0xea   :  { %6017 = vmatpush1.bf16.msra.mxu1 %v6016_v41 }
  0xeb   :  { %6019 = vmatprep.subr.bf16.mxu1 %v6018_v52  ;;  %v6028_v52 = vpack.c.bf16 %v780_v45, %v776_v44  ;;  %v819_v45 = vld [vmem:[#allocation12 + $0x158] sm:$0xff] }
  0xec   :  { %5957 = vmatpush1.bf16.msra.mxu0 %v5956_v48 }
  0xed   :  { %5959 = vmatprep.subr.bf16.mxu0 %v5958_v56  ;;  %v6030_v56 = vpack.c.bf16 %v789_v47, %v785_v46  ;;  %v823_v46 = vld [vmem:[#allocation12 + $0x178] sm:$0xff] }
  0xee   :  { %6021 = vmatpush1.bf16.msra.mxu1 %v6020_v53  ;;  %v787_v53 = vld [vmem:[#allocation12 + $0x58] sm:$0xff] }
  0xef   :  { %6023 = vmatprep.subr.bf16.mxu1 %v6022_v0  ;;  %v6094_v62 = vpack.c.bf16 %v791_v54, %v787_v53  ;;  %v790_v0 = vld [vmem:[#allocation12 + $0x70] sm:$0xff]  ;;  %v6110_v53 = vpack.c.bf16 %v823_v46, %v819_v45 }
  0xf0   :  { %5961 = vmatpush1.bf16.msra.mxu0 %v5960_v60  ;;  %v793_v60 = vld [vmem:[#allocation12 + $0x88] sm:$0xff]  ;;  %v6096_v7 = vpack.c.bf16 %v790_v0, %v786_v63  ;;  %v818_v54 = vld [vmem:[#allocation12 + $0x150] sm:$0xff] }
  0xf1   :  { %6027 = vmatprep.subr.bf16.mxu0 %v6026_v4  ;;  %v6034_v4 = vpack.c.bf16 %v797_v61, %v793_v60  ;;  %v824_v60 = vld [vmem:[#allocation12 + $0x180] sm:$0xff]  ;;  %v833_v63 = vld [vmem:[#allocation12 + $0x1c8] sm:$0xff]  ;;  %v850_v45 = vld [vmem:[#allocation12 + $0x250] sm:$0xff] }
  0xf2   :  { %6025 = vmatpush1.bf16.msra.mxu1 %v6024_v1  ;;  %v6032_v1 = vpack.c.bf16 %v788_v58, %v784_v57  ;;  %v827_v57 = vld [vmem:[#allocation12 + $0x198] sm:$0xff]  ;;  %v828_v61 = vld [vmem:[#allocation12 + $0x1a0] sm:$0xff]  ;;  %v837_v0 = vld [vmem:[#allocation12 + $0x1e8] sm:$0xff] }
  0xf3   :  { %6091 = vmatprep.subr.bf16.mxu1 %v6090_v8  ;;  %v801_v8 = vld [vmem:[#allocation12 + $0xc8] sm:$0xff]  ;;  %v831_v58 = vld [vmem:[#allocation12 + $0x1b8] sm:$0xff]  ;;  %v854_v46 = vld [vmem:[#allocation12 + $0x270] sm:$0xff] }
 0x186   :  { %v356_v17 = vpop.f32.mrb[0].mxu0 }
 0x187   :  { %v357_v19 = vadd.f32 %v356_v17, %v273_v15  ;;  %v358_v20 = vpop.f32.mrb[1].mxu0  ;;  %v6098_v15 = vpack.c.bf16 %v799_v3, %v795_v2  ;;  %v798_v17 = vld [vmem:[#allocation12 + $0xb0] sm:$0xff] }
 0x188   :  { %v359_v22 = vadd.f32 %v358_v20, %v277_v16  ;;  %v427_v24 = vpop.f32.mrb[0].mxu1  ;;  %v794_v16 = vld [vmem:[#allocation12 + $0x90] sm:$0xff]  ;;  %v807_v20 = vld [vmem:[#allocation12 + $0xf8] sm:$0xff] }
 0x189   :  { %v432_v23 = vmul.f32 0.5, %v357_v19  ;;  %v428_v26 = vadd.f32 %v427_v24, %v281_v18  ;;  %v429_v27 = vpop.f32.mrb[1].mxu1  ;;  %v6036_v18 = vpack.c.bf16 %v796_v6, %v792_v5  ;;  %v803_v19 = vld [vmem:[#allocation12 + $0xd8] sm:$0xff]  ;;  %v804_v24 = vld [vmem:[#allocation12 + $0xe0] sm:$0xff]  ;;  %v826_v2 = vld [vmem:[#allocation12 + $0x190] sm:$0xff] }
 0x18a   :  { %v436_v25 = vmul.f32 0.5, %v359_v22  ;;  %v430_v29 = vadd.f32 %v429_v27, %v285_v28  ;;  %v6038_v22 = vpack.c.bf16 %v805_v12, %v801_v8  ;;  %v813_v27 = vld [vmem:[#allocation12 + $0x128] sm:$0xff]  ;;  %v6102_v28 = vpack.c.bf16 %v807_v20, %v803_v19  ;;  %v830_v3 = vld [vmem:[#allocation12 + $0x1b0] sm:$0xff]  ;;  %v835_v5 = vld [vmem:[#allocation12 + $0x1d8] sm:$0xff] }
 0x18b   :  { %7880 = vtanh.f32 %v432_v23  ;;  %v800_v23 = vld [vmem:[#allocation12 + $0xc0] sm:$0xff]  ;;  %v839_v6 = vld [vmem:[#allocation12 + $0x1f8] sm:$0xff]  ;;  %v834_v19 = vld [vmem:[#allocation12 + $0x1d0] sm:$0xff] }
 0x18c   :  { %7882 = vtanh.f32 %v436_v25  ;;  %v441_v30 = vmul.f32 0.5, %v430_v29  ;;  %v6100_v25 = vpack.c.bf16 %v798_v17, %v794_v16  ;;  %v802_v29 = vld [vmem:[#allocation12 + $0xd0] sm:$0xff]  ;;  %v832_v8 = vld [vmem:[#allocation12 + $0x1c0] sm:$0xff]  ;;  %v841_v16 = vld [vmem:[#allocation12 + $0x208] sm:$0xff] }
 0x18d   :  { %7884 = vtanh.f32 %v428_v26  ;;  %v809_v26 = vld [vmem:[#allocation12 + $0x108] sm:$0xff]  ;;  %v836_v12 = vld [vmem:[#allocation12 + $0x1e0] sm:$0xff]  ;;  %v838_v20 = vld [vmem:[#allocation12 + $0x1f0] sm:$0xff] }
 0x18e   :  { %7886 = vtanh.f32 %v441_v30  ;;  %v806_v30 = vld [vmem:[#allocation12 + $0xf0] sm:$0xff]  ;;  %v845_v17 = vld [vmem:[#allocation12 + $0x228] sm:$0xff] }
 0x195   :  { %v7881_v31 = vpop.eup %7880 }
 0x196   :  { %v7883_v32 = vpop.eup %7882  ;;  %v434_v33 = vadd.f32 1.0, %v7881_v31  ;;  %v6040_v31 = vpack.c.bf16 %v804_v24, %v800_v23  ;;  %v843_v23 = vld [vmem:[#allocation12 + $0x218] sm:$0xff] }
 0x197   :  { %v7885_v34 = vpop.eup %7884  ;;  %v438_v35 = vadd.f32 1.0, %v7883_v32  ;;  %v811_v32 = vld [vmem:[#allocation12 + $0x118] sm:$0xff] }
 0x198   :  { %v435_v36 = vmul.f32 0.5, %v434_v33  ;;  %v7887_v42 = vpop.eup %7886  ;;  %v815_v33 = vld [vmem:[#allocation12 + $0x138] sm:$0xff] }
 0x199   :  { %v439_v38 = vmul.f32 0.5, %v438_v35  ;;  %v443_v43 = vadd.f32 1.0, %v7887_v42  ;;  %v808_v35 = vld [vmem:[#allocation12 + $0x100] sm:$0xff]  ;;  %v810_v42 = vld [vmem:[#allocation12 + $0x110] sm:$0xff]  ;;  %v847_v24 = vld [vmem:[#allocation12 + $0x238] sm:$0xff] }
 0x19a   :  { %v447_v39 = vmul.f32 %v7885_v34, %v435_v36  ;;  %v6042_v34 = vpack.c.bf16 %v813_v27, %v809_v26  ;;  %v812_v36 = vld [vmem:[#allocation12 + $0x120] sm:$0xff] }
 0x19b   :  { %v446_v40 = vmul.f32 %v439_v38, %v132_v37  ;;  %v444_v48 = vmul.f32 0.5, %v443_v43  ;;  %v6104_v37 = vpack.c.bf16 %v806_v30, %v802_v29  ;;  %v817_v38 = vld [vmem:[#allocation12 + $0x148] sm:$0xff]  ;;  %v814_v43 = vld [vmem:[#allocation12 + $0x130] sm:$0xff]  ;;  %v6044_v44 = vpack.c.bf16 %v812_v36, %v808_v35  ;;  %v840_v26 = vld [vmem:[#allocation12 + $0x200] sm:$0xff] }
 0x19c   :  { %v6108_v50 = vpack.c.bf16 %v814_v43, %v810_v42  ;;  %v844_v27 = vld [vmem:[#allocation12 + $0x220] sm:$0xff]  ;;  %v849_v29 = vld [vmem:[#allocation12 + $0x248] sm:$0xff]  ;;  %v851_v35 = vld [vmem:[#allocation12 + $0x258] sm:$0xff] }
 0x19d   :  { %v8518_v41 = vadd.f32 %v447_v39, %v446_v40  ;;  %v821_v39 = vld [vmem:[#allocation12 + $0x168] sm:$0xff]  ;;  %v6106_v40 = vpack.c.bf16 %v815_v33, %v811_v32  ;;  %v842_v32 = vld [vmem:[#allocation12 + $0x210] sm:$0xff]  ;;  %v855_v36 = vld [vmem:[#allocation12 + $0x278] sm:$0xff] }
 0x19e   :  { %v6046_v47 = vpack.c.bf16 %v821_v39, %v817_v38  ;;  %v853_v30 = vld [vmem:[#allocation12 + $0x268] sm:$0xff]  ;;  %v846_v33 = vld [vmem:[#allocation12 + $0x230] sm:$0xff]  ;;  %v848_v38 = vld [vmem:[#allocation12 + $0x240] sm:$0xff] }
 0x19f   :  { %7888 = vtanh.f32 %v8518_v41  ;;  %v852_v39 = vld [vmem:[#allocation12 + $0x260] sm:$0xff]  ;;  %v857_v42 = vld [vmem:[#allocation12 + $0x288] sm:$0xff] }
 0x1a0   :  { %v861_v43 = vld [vmem:[#allocation12 + $0x2a8] sm:$0xff] }
 0x1a9   :  { %v7889_v51 = vpop.eup %7888 }
 0x1aa   :  { %v450_v55 = vmul.f32 %v7889_v51, %v444_v48  ;;  %v816_v48 = vld [vmem:[#allocation12 + $0x140] sm:$0xff]  ;;  %v825_v51 = vld [vmem:[#allocation12 + $0x188] sm:$0xff] }
 0x1ac   :  { %671 = vmatmul.mubr.f32.vlgmr.msra.gmra.mrb[2].mxu0 %v450_v55  ;;  %742 = vmatmul.mubr.f32.vlgmr.msra.gmra.mrb[2].mxu1 %v450_v55 }
 0x1ad   :  { %6029 = vmatpush1.bf16.msra.mxu0 %v6028_v52  ;;  %990 = vmatprep.mubr.f32.mxu0 %v450_v55  ;;  %v829_v52 = vld [vmem:[#allocation12 + $0x1a8] sm:$0xff] }
 0x1ae   :  { %1061 = vmatprep.mubr.f32.mxu1 %v450_v55  ;;  %6031 = vmatprep.subr.bf16.mxu0 %v6030_v56  ;;  %v822_v55 = vld [vmem:[#allocation12 + $0x170] sm:$0xff]  ;;  %v6048_v56 = vpack.c.bf16 %v820_v49, %v816_v48  ;;  %v859_v48 = vld [vmem:[#allocation12 + $0x298] sm:$0xff] }
 0x1af   :  { %6093 = vmatpush1.bf16.msra.mxu1 %v6092_v59  ;;  %v6050_v59 = vpack.c.bf16 %v829_v52, %v825_v51  ;;  %v863_v49 = vld [vmem:[#allocation12 + $0x2b8] sm:$0xff]  ;;  %v856_v51 = vld [vmem:[#allocation12 + $0x280] sm:$0xff] }
 0x1b0   :  { %6095 = vmatprep.subr.bf16.mxu1 %v6094_v62  ;;  %v6112_v62 = vpack.c.bf16 %v822_v55, %v818_v54  ;;  %v860_v52 = vld [vmem:[#allocation12 + $0x2a0] sm:$0xff]  ;;  %v865_v54 = vld [vmem:[#allocation12 + $0x2c8] sm:$0xff] }
 0x1b1   :  { %6033 = vmatpush1.bf16.msra.mxu0 %v6032_v1  ;;  %v6114_v1 = vpack.c.bf16 %v831_v58, %v827_v57  ;;  %v869_v55 = vld [vmem:[#allocation12 + $0x2e8] sm:$0xff]  ;;  %v858_v57 = vld [vmem:[#allocation12 + $0x290] sm:$0xff] }
 0x1b2   :  { %6035 = vmatprep.subr.bf16.mxu0 %v6034_v4  ;;  %v6052_v4 = vpack.c.bf16 %v828_v61, %v824_v60  ;;  %v862_v58 = vld [vmem:[#allocation12 + $0x2b0] sm:$0xff]  ;;  %v867_v60 = vld [vmem:[#allocation12 + $0x2d8] sm:$0xff] }
 0x1b3   :  { %6097 = vmatpush1.bf16.msra.mxu1 %v6096_v7  ;;  %v6054_v7 = vpack.c.bf16 %v837_v0, %v833_v63  ;;  %v871_v61 = vld [vmem:[#allocation12 + $0x2f8] sm:$0xff]  ;;  %v864_v63 = vld [vmem:[#allocation12 + $0x2c0] sm:$0xff] }
 0x1b4   :  { %6099 = vmatprep.subr.bf16.mxu1 %v6098_v15  ;;  %v6116_v15 = vpack.c.bf16 %v830_v3, %v826_v2  ;;  %v868_v0 = vld [vmem:[#allocation12 + $0x2e0] sm:$0xff]  ;;  %v873_v2 = vld [vmem:[#allocation12 + $0x308] sm:$0xff] }
 0x1b5   :  { %6037 = vmatpush1.bf16.msra.mxu0 %v6036_v18  ;;  %v6118_v18 = vpack.c.bf16 %v839_v6, %v835_v5  ;;  %v877_v3 = vld [vmem:[#allocation12 + $0x328] sm:$0xff]  ;;  %v866_v5 = vld [vmem:[#allocation12 + $0x2d0] sm:$0xff] }
 0x1b6   :  { %6039 = vmatprep.subr.bf16.mxu0 %v6038_v22  ;;  %v6056_v22 = vpack.c.bf16 %v836_v12, %v832_v8  ;;  %v870_v6 = vld [vmem:[#allocation12 + $0x2f0] sm:$0xff]  ;;  %v875_v8 = vld [vmem:[#allocation12 + $0x318] sm:$0xff] }
 0x1b7   :  { %6101 = vmatpush1.bf16.msra.mxu1 %v6100_v25  ;;  %v6058_v25 = vpack.c.bf16 %v845_v17, %v841_v16  ;;  %v879_v12 = vld [vmem:[#allocation12 + $0x338] sm:$0xff]  ;;  %v872_v16 = vld [vmem:[#allocation12 + $0x300] sm:$0xff] }
 0x1b8   :  { %6103 = vmatprep.subr.bf16.mxu1 %v6102_v28  ;;  %v6120_v28 = vpack.c.bf16 %v838_v20, %v834_v19  ;;  %v876_v17 = vld [vmem:[#allocation12 + $0x320] sm:$0xff]  ;;  %v881_v19 = vld [vmem:[#allocation12 + $0x348] sm:$0xff] }
 0x1b9   :  { %6041 = vmatpush1.bf16.msra.mxu0 %v6040_v31  ;;  %v6122_v31 = vpack.c.bf16 %v847_v24, %v843_v23  ;;  %v885_v20 = vld [vmem:[#allocation12 + $0x368] sm:$0xff]  ;;  %v874_v23 = vld [vmem:[#allocation12 + $0x310] sm:$0xff] }
 0x1ba   :  { %6043 = vmatprep.subr.bf16.mxu0 %v6042_v34  ;;  %v6060_v34 = vpack.c.bf16 %v844_v27, %v840_v26  ;;  %v878_v24 = vld [vmem:[#allocation12 + $0x330] sm:$0xff]  ;;  %v883_v26 = vld [vmem:[#allocation12 + $0x358] sm:$0xff] }
 0x1bb   :  { %6105 = vmatpush1.bf16.msra.mxu1 %v6104_v37  ;;  %v6062_v37 = vpack.c.bf16 %v853_v30, %v849_v29  ;;  %v887_v27 = vld [vmem:[#allocation12 + $0x378] sm:$0xff]  ;;  %v880_v29 = vld [vmem:[#allocation12 + $0x340] sm:$0xff] }
 0x1bc   :  { %6107 = vmatprep.subr.bf16.mxu1 %v6106_v40  ;;  %v6124_v40 = vpack.c.bf16 %v846_v33, %v842_v32  ;;  %v884_v30 = vld [vmem:[#allocation12 + $0x360] sm:$0xff]  ;;  %v889_v32 = vld [vmem:[#allocation12 + $0x388] sm:$0xff] }
 0x1bd   :  { %6045 = vmatpush1.bf16.msra.mxu0 %v6044_v44  ;;  %v6126_v44 = vpack.c.bf16 %v855_v36, %v851_v35  ;;  %v893_v33 = vld [vmem:[#allocation12 + $0x3a8] sm:$0xff]  ;;  %v882_v35 = vld [vmem:[#allocation12 + $0x350] sm:$0xff] }
 0x1be   :  { %6047 = vmatprep.subr.bf16.mxu0 %v6046_v47  ;;  %v6064_v47 = vpack.c.bf16 %v852_v39, %v848_v38  ;;  %v886_v36 = vld [vmem:[#allocation12 + $0x370] sm:$0xff]  ;;  %v891_v38 = vld [vmem:[#allocation12 + $0x398] sm:$0xff] }
 0x1bf   :  { %6109 = vmatpush1.bf16.msra.mxu1 %v6108_v50  ;;  %v6066_v50 = vpack.c.bf16 %v861_v43, %v857_v42  ;;  %v895_v39 = vld [vmem:[#allocation12 + $0x3b8] sm:$0xff]  ;;  %v888_v42 = vld [vmem:[#allocation12 + $0x380] sm:$0xff] }
 0x1c0   :  { %6111 = vmatprep.subr.bf16.mxu1 %v6110_v53  ;;  %v6128_v53 = vpack.c.bf16 %v854_v46, %v850_v45  ;;  %v892_v43 = vld [vmem:[#allocation12 + $0x3a0] sm:$0xff]  ;;  %v897_v45 = vld [vmem:[#allocation12 + $0x3c8] sm:$0xff] }
 0x1c1   :  { %6049 = vmatpush1.bf16.msra.mxu0 %v6048_v56  ;;  %v6130_v56 = vpack.c.bf16 %v863_v49, %v859_v48  ;;  %v901_v46 = vld [vmem:[#allocation12 + $0x3e8] sm:$0xff]  ;;  %v890_v48 = vld [vmem:[#allocation12 + $0x390] sm:$0xff] }
 0x1c2   :  { %6051 = vmatprep.subr.bf16.mxu0 %v6050_v59  ;;  %v6068_v59 = vpack.c.bf16 %v860_v52, %v856_v51  ;;  %v894_v49 = vld [vmem:[#allocation12 + $0x3b0] sm:$0xff]  ;;  %v899_v51 = vld [vmem:[#allocation12 + $0x3d8] sm:$0xff] }
 0x1c3   :  { %6113 = vmatpush1.bf16.msra.mxu1 %v6112_v62  ;;  %v6070_v62 = vpack.c.bf16 %v869_v55, %v865_v54  ;;  %v903_v52 = vld [vmem:[#allocation12 + $0x3f8] sm:$0xff]  ;;  %v896_v54 = vld [vmem:[#allocation12 + $0x3c0] sm:$0xff] }
 0x1c4   :  { %6115 = vmatprep.subr.bf16.mxu1 %v6114_v1  ;;  %v6132_v1 = vpack.c.bf16 %v862_v58, %v858_v57  ;;  %v900_v55 = vld [vmem:[#allocation12 + $0x3e0] sm:$0xff]  ;;  %v6150_v57 = vpack.c.bf16 %v903_v52, %v899_v51  ;;  %v898_v58 = vld [vmem:[#allocation12 + $0x3d0] sm:$0xff] }
 0x1c5   :  { %6053 = vmatpush1.bf16.msra.mxu0 %v6052_v4  ;;  %v6134_v4 = vpack.c.bf16 %v871_v61, %v867_v60  ;;  %v6088_v60 = vpack.c.bf16 %v900_v55, %v896_v54  ;;  %v1129_v54 = vld [vmem:[#allocation14 + $0x128] sm:$0xff]  ;;  %v1124_v55 = vld [vmem:[#allocation14 + $0x100] sm:$0xff] }
 0x1c6   :  { %6055 = vmatprep.subr.bf16.mxu0 %v6054_v7  ;;  %v6072_v7 = vpack.c.bf16 %v868_v0, %v864_v63  ;;  %v1093_v63 = vld [vmem:[#allocation14 + $0x8] sm:$0xff] }
 0x1c7   :  { %6117 = vmatpush1.bf16.msra.mxu1 %v6116_v15  ;;  %v6074_v15 = vpack.c.bf16 %v877_v3, %v873_v2  ;;  %v1097_v0 = vld [vmem:[#allocation14 + $0x28] sm:$0xff]  ;;  %v1096_v3 = vld [vmem:[#allocation14 + $0x20] sm:$0xff] }
 0x1c8   :  { %6119 = vmatprep.subr.bf16.mxu1 %v6118_v18  ;;  %v6136_v18 = vpack.c.bf16 %v870_v6, %v866_v5  ;;  %v6154_v2 = vpack.c.bf16 %v1097_v0, %v1093_v63  ;;  %v1099_v5 = vld [vmem:[#allocation14 + $0x38] sm:$0xff]  ;;  %v1130_v63 = vld [vmem:[#allocation14 + $0x130] sm:$0xff]  ;;  %v1133_v0 = vld [vmem:[#allocation14 + $0x148] sm:$0xff] }
 0x1c9   :  { %6057 = vmatpush1.bf16.msra.mxu0 %v6056_v22  ;;  %v6138_v22 = vpack.c.bf16 %v879_v12, %v875_v8  ;;  %v1094_v8 = vld [vmem:[#allocation14 + $0x10] sm:$0xff] }
 0x1ca   :  { %6059 = vmatprep.subr.bf16.mxu0 %v6058_v25  ;;  %v6076_v25 = vpack.c.bf16 %v876_v17, %v872_v16  ;;  %v1098_v12 = vld [vmem:[#allocation14 + $0x30] sm:$0xff]  ;;  %v1101_v16 = vld [vmem:[#allocation14 + $0x48] sm:$0xff] }
 0x1cb   :  { %6121 = vmatpush1.bf16.msra.mxu1 %v6120_v28  ;;  %v6078_v28 = vpack.c.bf16 %v885_v20, %v881_v19  ;;  %v1105_v17 = vld [vmem:[#allocation14 + $0x68] sm:$0xff]  ;;  %v1104_v20 = vld [vmem:[#allocation14 + $0x60] sm:$0xff] }
 0x1cc   :  { %6123 = vmatprep.subr.bf16.mxu1 %v6122_v31  ;;  %v6140_v31 = vpack.c.bf16 %v878_v24, %v874_v23  ;;  %v6158_v19 = vpack.c.bf16 %v1105_v17, %v1101_v16  ;;  %v1107_v23 = vld [vmem:[#allocation14 + $0x78] sm:$0xff]  ;;  %v1138_v16 = vld [vmem:[#allocation14 + $0x170] sm:$0xff]  ;;  %v1141_v17 = vld [vmem:[#allocation14 + $0x188] sm:$0xff] }
 0x1cd   :  { %6061 = vmatpush1.bf16.msra.mxu0 %v6060_v34  ;;  %v6142_v34 = vpack.c.bf16 %v887_v27, %v883_v26  ;;  %v1102_v26 = vld [vmem:[#allocation14 + $0x50] sm:$0xff] }
 0x1ce   :  { %6063 = vmatprep.subr.bf16.mxu0 %v6062_v37  ;;  %v6080_v37 = vpack.c.bf16 %v884_v30, %v880_v29  ;;  %v1106_v27 = vld [vmem:[#allocation14 + $0x70] sm:$0xff]  ;;  %v1113_v30 = vld [vmem:[#allocation14 + $0xa8] sm:$0xff] }
 0x1cf   :  { %6125 = vmatpush1.bf16.msra.mxu1 %v6124_v40  ;;  %v6082_v40 = vpack.c.bf16 %v893_v33, %v889_v32  ;;  %v6224_v29 = vpack.c.bf16 %v1106_v27, %v1102_v26  ;;  %v1112_v32 = vld [vmem:[#allocation14 + $0xa0] sm:$0xff] }
 0x1d0   :  { %6127 = vmatprep.subr.bf16.mxu1 %v6126_v44  ;;  %v6144_v44 = vpack.c.bf16 %v886_v36, %v882_v35  ;;  %v1111_v35 = vld [vmem:[#allocation14 + $0x98] sm:$0xff]  ;;  %v1144_v26 = vld [vmem:[#allocation14 + $0x1a0] sm:$0xff] }
 0x1d1   :  { %6065 = vmatpush1.bf16.msra.mxu0 %v6064_v47  ;;  %v6146_v47 = vpack.c.bf16 %v895_v39, %v891_v38  ;;  %v1115_v36 = vld [vmem:[#allocation14 + $0xb8] sm:$0xff]  ;;  %v1114_v39 = vld [vmem:[#allocation14 + $0xb0] sm:$0xff] }
 0x1d2   :  { %6067 = vmatprep.subr.bf16.mxu0 %v6066_v50  ;;  %v6084_v50 = vpack.c.bf16 %v892_v43, %v888_v42  ;;  %v6226_v38 = vpack.c.bf16 %v1115_v36, %v1111_v35  ;;  %v1121_v42 = vld [vmem:[#allocation14 + $0xe8] sm:$0xff]  ;;  %v1148_v35 = vld [vmem:[#allocation14 + $0x1c0] sm:$0xff] }
 0x1d3   :  { %6129 = vmatpush1.bf16.msra.mxu1 %v6128_v53  ;;  %v6086_v53 = vpack.c.bf16 %v901_v46, %v897_v45  ;;  %v1116_v45 = vld [vmem:[#allocation14 + $0xc0] sm:$0xff] }
 0x1d4   :  { %6131 = vmatprep.subr.bf16.mxu1 %v6130_v56  ;;  %v6148_v56 = vpack.c.bf16 %v894_v49, %v890_v48  ;;  %v1120_v46 = vld [vmem:[#allocation14 + $0xe0] sm:$0xff]  ;;  %v1123_v48 = vld [vmem:[#allocation14 + $0xf8] sm:$0xff]  ;;  %v1118_v49 = vld [vmem:[#allocation14 + $0xd0] sm:$0xff] }
 0x1d5   :  { %6069 = vmatpush1.bf16.msra.mxu0 %v6068_v59  ;;  %v902_v59 = vld [vmem:[#allocation12 + $0x3f0] sm:$0xff]  ;;  %v6168_v51 = vpack.c.bf16 %v1120_v46, %v1116_v45  ;;  %v1152_v36 = vld [vmem:[#allocation14 + $0x1e0] sm:$0xff]  ;;  %v1157_v45 = vld [vmem:[#allocation14 + $0x208] sm:$0xff] }
 0x1d6   :  { %6071 = vmatprep.subr.bf16.mxu0 %v6070_v62  ;;  %v6152_v61 = vpack.c.bf16 %v902_v59, %v898_v58  ;;  %v772_v62 = vld [vmem:[#allocation6 + $0x8] sm:$0xff]  ;;  %v1128_v58 = vld [vmem:[#allocation14 + $0x120] sm:$0xff]  ;;  %v1127_v59 = vld [vmem:[#allocation14 + $0x118] sm:$0xff] }
 0x1d7   :  { %6133 = vmatpush1.bf16.msra.mxu1 %v6132_v1  ;;  %v1092_v1 = vld [vmem:[#allocation14] sm:$0xff]  ;;  %v1161_v46 = vld [vmem:[#allocation14 + $0x228] sm:$0xff] }
 0x1d8   :  { %6135 = vmatprep.subr.bf16.mxu1 %v6134_v4  ;;  %v1095_v4 = vld [vmem:[#allocation14 + $0x18] sm:$0xff]  ;;  %v6156_v6 = vpack.c.bf16 %v1096_v3, %v1092_v1  ;;  %v1137_v1 = vld [vmem:[#allocation14 + $0x168] sm:$0xff] }
 0x1d9   :  { %6073 = vmatpush1.bf16.msra.mxu0 %v6072_v7  ;;  %v6218_v7 = vpack.c.bf16 %v1099_v5, %v1095_v4  ;;  %v1135_v3 = vld [vmem:[#allocation14 + $0x158] sm:$0xff] }
 0x1da   :  { %6075 = vmatprep.subr.bf16.mxu0 %v6074_v15  ;;  %v6220_v15 = vpack.c.bf16 %v1098_v12, %v1094_v8  ;;  %v1139_v4 = vld [vmem:[#allocation14 + $0x178] sm:$0xff]  ;;  %v1136_v8 = vld [vmem:[#allocation14 + $0x160] sm:$0xff]  ;;  %v1134_v12 = vld [vmem:[#allocation14 + $0x150] sm:$0xff] }
 0x1db   :  { %6137 = vmatpush1.bf16.msra.mxu1 %v6136_v18  ;;  %v1100_v18 = vld [vmem:[#allocation14 + $0x40] sm:$0xff] }
 0x1dc   :  { %6139 = vmatprep.subr.bf16.mxu1 %v6138_v22  ;;  %v1103_v22 = vld [vmem:[#allocation14 + $0x58] sm:$0xff]  ;;  %v6160_v24 = vpack.c.bf16 %v1104_v20, %v1100_v18  ;;  %v1145_v18 = vld [vmem:[#allocation14 + $0x1a8] sm:$0xff] }
 0x1dd   :  { %6077 = vmatpush1.bf16.msra.mxu0 %v6076_v25  ;;  %v6222_v25 = vpack.c.bf16 %v1107_v23, %v1103_v22  ;;  %v1147_v20 = vld [vmem:[#allocation14 + $0x1b8] sm:$0xff]  ;;  %v6240_v23 = vpack.c.bf16 %v1138_v16, %v1134_v12  ;;  %v1176_v12 = vld [vmem:[#allocation14 + $0x2a0] sm:$0xff] }
 0x1de   :  { %6079 = vmatprep.subr.bf16.mxu0 %v6078_v28  ;;  %v1109_v28 = vld [vmem:[#allocation14 + $0x88] sm:$0xff] }
 0x1df   :  { %6141 = vmatpush1.bf16.msra.mxu1 %v6140_v31  ;;  %v1108_v31 = vld [vmem:[#allocation14 + $0x80] sm:$0xff]  ;;  %v6162_v33 = vpack.c.bf16 %v1113_v30, %v1109_v28  ;;  %v1142_v28 = vld [vmem:[#allocation14 + $0x190] sm:$0xff] }
 0x1e0   :  { %6143 = vmatprep.subr.bf16.mxu1 %v6142_v34  ;;  %v6164_v34 = vpack.c.bf16 %v1112_v32, %v1108_v31  ;;  %v1149_v32 = vld [vmem:[#allocation14 + $0x1c8] sm:$0xff] }
 0x1e1   :  { %6081 = vmatpush1.bf16.msra.mxu0 %v6080_v37  ;;  %v1110_v37 = vld [vmem:[#allocation14 + $0x90] sm:$0xff] }
 0x1e2   :  { %6083 = vmatprep.subr.bf16.mxu0 %v6082_v40  ;;  %v1117_v40 = vld [vmem:[#allocation14 + $0xc8] sm:$0xff]  ;;  %v6228_v43 = vpack.c.bf16 %v1114_v39, %v1110_v37  ;;  %v1151_v37 = vld [vmem:[#allocation14 + $0x1d8] sm:$0xff] }
 0x1e3   :  { %6145 = vmatpush1.bf16.msra.mxu1 %v6144_v44  ;;  %v6166_v44 = vpack.c.bf16 %v1121_v42, %v1117_v40  ;;  %v1155_v39 = vld [vmem:[#allocation14 + $0x1f8] sm:$0xff]  ;;  %v1150_v40 = vld [vmem:[#allocation14 + $0x1d0] sm:$0xff] }
 0x1e4   :  { %6147 = vmatprep.subr.bf16.mxu1 %v6146_v47  ;;  %v1119_v47 = vld [vmem:[#allocation14 + $0xd8] sm:$0xff]  ;;  %v1154_v42 = vld [vmem:[#allocation14 + $0x1f0] sm:$0xff] }
 0x1e5   :  { %6085 = vmatpush1.bf16.msra.mxu0 %v6084_v50  ;;  %v1122_v50 = vld [vmem:[#allocation14 + $0xf0] sm:$0xff]  ;;  %v6230_v52 = vpack.c.bf16 %v1123_v48, %v1119_v47  ;;  %v6186_v47 = vpack.c.bf16 %v1161_v46, %v1157_v45  ;;  %v1156_v48 = vld [vmem:[#allocation14 + $0x200] sm:$0xff] }
 0x1e6   :  { %6087 = vmatprep.subr.bf16.mxu0 %v6086_v53  ;;  %v1125_v53 = vld [vmem:[#allocation14 + $0x108] sm:$0xff]  ;;  %v1194_v45 = vld [vmem:[#allocation14 + $0x330] sm:$0xff] }
 0x1e7   :  { %6149 = vmatpush1.bf16.msra.mxu1 %v6148_v56  ;;  %v6232_v56 = vpack.c.bf16 %v1122_v50, %v1118_v49  ;;  %v1160_v49 = vld [vmem:[#allocation14 + $0x220] sm:$0xff]  ;;  %v1159_v50 = vld [vmem:[#allocation14 + $0x218] sm:$0xff] }
 0x1e8   :  { %6151 = vmatprep.subr.bf16.mxu1 %v6150_v57  ;;  %v6170_v57 = vpack.c.bf16 %v1129_v54, %v1125_v53  ;;  %v1158_v53 = vld [vmem:[#allocation14 + $0x210] sm:$0xff] }
 0x1e9   :  { %6089 = vmatpush1.bf16.msra.mxu0 %v6088_v60  ;;  %v1131_v60 = vld [vmem:[#allocation14 + $0x138] sm:$0xff]  ;;  %v1162_v54 = vld [vmem:[#allocation14 + $0x230] sm:$0xff] }
 0x1ea   :  { %6155 = vmatprep.subr.bf16.mxu0 %v6154_v2  ;;  %v6172_v2 = vpack.c.bf16 %v1128_v58, %v1124_v55  ;;  %v1169_v58 = vld [vmem:[#allocation14 + $0x268] sm:$0xff] }
 0x1eb   :  { %6153 = vmatpush1.bf16.msra.mxu1 %v6152_v61  ;;  %v6234_v61 = vpack.c.bf16 %v1131_v60, %v1127_v59  ;;  %v1164_v60 = vld [vmem:[#allocation14 + $0x240] sm:$0xff] }
 0x1ec   :  { %991 = vmatmul.mubr.f32.vlgmr.msra.gmra.mrb[4].mxu0 %v772_v62  ;;  %6219 = vmatprep.subr.bf16.mxu1 %v6218_v7  ;;  %v1132_v7 = vld [vmem:[#allocation14 + $0x140] sm:$0xff] }
 0x1ed   :  { %6157 = vmatpush1.bf16.msra.mxu0 %v6156_v6  ;;  %v6174_v6 = vpack.c.bf16 %v1137_v1, %v1133_v0  ;;  %v6176_v22 = vpack.c.bf16 %v1136_v8, %v1132_v7  ;;  %v1171_v0 = vld [vmem:[#allocation14 + $0x278] sm:$0xff]  ;;  %v1166_v1 = vld [vmem:[#allocation14 + $0x250] sm:$0xff]  ;;  %v1172_v8 = vld [vmem:[#allocation14 + $0x280] sm:$0xff] }
 0x1ee   :  { %1062 = vmatmul.mubr.f32.vlgmr.msra.gmra.mrb[4].mxu1 %v772_v62  ;;  %6159 = vmatprep.subr.bf16.mxu0 %v6158_v19  ;;  %v1126_v62 = vld [vmem:[#allocation14 + $0x110] sm:$0xff]  ;;  %v1143_v19 = vld [vmem:[#allocation14 + $0x198] sm:$0xff]  ;;  %v6196_v16 = vpack.c.bf16 %v1176_v12, %v1172_v8  ;;  %v1213_v8 = vld [vmem:[#allocation14 + $0x3c8] sm:$0xff] }
 0x1ef   :  { %6221 = vmatpush1.bf16.msra.mxu1 %v6220_v15  ;;  %v6236_v5 = vpack.c.bf16 %v1130_v63, %v1126_v62  ;;  %v6238_v15 = vpack.c.bf16 %v1139_v4, %v1135_v3  ;;  %v6242_v27 = vpack.c.bf16 %v1147_v20, %v1143_v19  ;;  %v1167_v62 = vld [vmem:[#allocation14 + $0x258] sm:$0xff]  ;;  %v1178_v19 = vld [vmem:[#allocation14 + $0x2b0] sm:$0xff]  ;;  %v1217_v12 = vld [vmem:[#allocation14 + $0x3e8] sm:$0xff] }
 0x1f0   :  { %6223 = vmatprep.subr.bf16.mxu1 %v6222_v25  ;;  %v1140_v25 = vld [vmem:[#allocation14 + $0x180] sm:$0xff]  ;;  %v6254_v3 = vpack.c.bf16 %v1171_v0, %v1167_v62 }
 0x1f1   :  { %6161 = vmatpush1.bf16.msra.mxu0 %v6160_v24  ;;  %v6178_v24 = vpack.c.bf16 %v1145_v18, %v1141_v17  ;;  %v6180_v30 = vpack.c.bf16 %v1144_v26, %v1140_v25  ;;  %v1179_v17 = vld [vmem:[#allocation14 + $0x2b8] sm:$0xff]  ;;  %v1174_v18 = vld [vmem:[#allocation14 + $0x290] sm:$0xff]  ;;  %v1180_v26 = vld [vmem:[#allocation14 + $0x2c0] sm:$0xff] }
 0x1f2   :  { %6163 = vmatprep.subr.bf16.mxu0 %v6162_v33  ;;  %v1153_v33 = vld [vmem:[#allocation14 + $0x1e8] sm:$0xff]  ;;  %v1208_v0 = vld [vmem:[#allocation14 + $0x3a0] sm:$0xff] }
 0x1f3   :  { %6225 = vmatpush1.bf16.msra.mxu1 %v6224_v29  ;;  %v1146_v29 = vld [vmem:[#allocation14 + $0x1b0] sm:$0xff] }
 0x1f4   :  { %6227 = vmatprep.subr.bf16.mxu1 %v6226_v38  ;;  %v6244_v31 = vpack.c.bf16 %v1146_v29, %v1142_v28  ;;  %v6184_v38 = vpack.c.bf16 %v1152_v36, %v1148_v35  ;;  %v1183_v28 = vld [vmem:[#allocation14 + $0x2d8] sm:$0xff]  ;;  %v1189_v35 = vld [vmem:[#allocation14 + $0x308] sm:$0xff] }
 0x1f5   :  { %6165 = vmatpush1.bf16.msra.mxu0 %v6164_v34  ;;  %v6182_v34 = vpack.c.bf16 %v1153_v33, %v1149_v32  ;;  %v1186_v32 = vld [vmem:[#allocation14 + $0x2f0] sm:$0xff]  ;;  %v1193_v36 = vld [vmem:[#allocation14 + $0x328] sm:$0xff] }
 0x1f6   :  { %6167 = vmatprep.subr.bf16.mxu0 %v6166_v44  ;;  %v6248_v44 = vpack.c.bf16 %v1154_v42, %v1150_v40  ;;  %v1191_v40 = vld [vmem:[#allocation14 + $0x318] sm:$0xff] }
 0x1f7   :  { %6229 = vmatpush1.bf16.msra.mxu1 %v6228_v43  ;;  %v6246_v43 = vpack.c.bf16 %v1155_v39, %v1151_v37  ;;  %v6202_v37 = vpack.c.bf16 %v1193_v36, %v1189_v35  ;;  %v1192_v39 = vld [vmem:[#allocation14 + $0x320] sm:$0xff] }
 0x1f8   :  { %6231 = vmatprep.subr.bf16.mxu1 %v6230_v52  ;;  %v1163_v52 = vld [vmem:[#allocation14 + $0x238] sm:$0xff] }
 0x1f9   :  { %6169 = vmatpush1.bf16.msra.mxu0 %v6168_v51  ;;  %v6188_v51 = vpack.c.bf16 %v1160_v49, %v1156_v48  ;;  %v6250_v55 = vpack.c.bf16 %v1163_v52, %v1159_v50  ;;  %v1197_v48 = vld [vmem:[#allocation14 + $0x348] sm:$0xff]  ;;  %v1200_v52 = vld [vmem:[#allocation14 + $0x360] sm:$0xff] }
 0x1fa   :  { %6171 = vmatprep.subr.bf16.mxu0 %v6170_v57  ;;  %v1165_v57 = vld [vmem:[#allocation14 + $0x248] sm:$0xff] }
 0x1fb   :  { %6233 = vmatpush1.bf16.msra.mxu1 %v6232_v56  ;;  %v6252_v56 = vpack.c.bf16 %v1162_v54, %v1158_v53  ;;  %v6190_v59 = vpack.c.bf16 %v1169_v58, %v1165_v57  ;;  %v1201_v49 = vld [vmem:[#allocation14 + $0x368] sm:$0xff]  ;;  %v1199_v53 = vld [vmem:[#allocation14 + $0x358] sm:$0xff]  ;;  %v1202_v57 = vld [vmem:[#allocation14 + $0x370] sm:$0xff] }
 0x1fc   :  { %6235 = vmatprep.subr.bf16.mxu1 %v6234_v61  ;;  %v1168_v61 = vld [vmem:[#allocation14 + $0x260] sm:$0xff]  ;;  %v6206_v50 = vpack.c.bf16 %v1201_v49, %v1197_v48 }
 0x1fd   :  { %6173 = vmatpush1.bf16.msra.mxu0 %v6172_v2  ;;  %v6192_v63 = vpack.c.bf16 %v1168_v61, %v1164_v60  ;;  %v1170_v2 = vld [vmem:[#allocation14 + $0x270] sm:$0xff]  ;;  %v1205_v60 = vld [vmem:[#allocation14 + $0x388] sm:$0xff] }
 0x1fe   :  { %6175 = vmatprep.subr.bf16.mxu0 %v6174_v6  ;;  %v6256_v4 = vpack.c.bf16 %v1170_v2, %v1166_v1  ;;  %v1177_v6 = vld [vmem:[#allocation14 + $0x2a8] sm:$0xff]  ;;  %v1207_v1 = vld [vmem:[#allocation14 + $0x398] sm:$0xff] }
 0x1ff   :  { %6237 = vmatpush1.bf16.msra.mxu1 %v6236_v5  ;;  %v1173_v5 = vld [vmem:[#allocation14 + $0x288] sm:$0xff] }
 0x200   :  { %6239 = vmatprep.subr.bf16.mxu1 %v6238_v15  ;;  %v6194_v7 = vpack.c.bf16 %v1177_v6, %v1173_v5  ;;  %v1175_v15 = vld [vmem:[#allocation14 + $0x298] sm:$0xff]  ;;  %v1209_v61 = vld [vmem:[#allocation14 + $0x3a8] sm:$0xff]  ;;  %v1210_v5 = vld [vmem:[#allocation14 + $0x3b0] sm:$0xff] }
 0x201   :  { %6177 = vmatpush1.bf16.msra.mxu0 %v6176_v22  ;;  %v6258_v20 = vpack.c.bf16 %v1179_v17, %v1175_v15  ;;  %v6260_v22 = vpack.c.bf16 %v1178_v19, %v1174_v18  ;;  %v6210_v62 = vpack.c.bf16 %v1209_v61, %v1205_v60  ;;  %v6214_v15 = vpack.c.bf16 %v1217_v12, %v1213_v8  ;;  %v1216_v17 = vld [vmem:[#allocation14 + $0x3e0] sm:$0xff]  ;;  %v1215_v18 = vld [vmem:[#allocation14 + $0x3d8] sm:$0xff] }
 0x202   :  { %6179 = vmatprep.subr.bf16.mxu0 %v6178_v24  ;;  %v1185_v24 = vld [vmem:[#allocation14 + $0x2e8] sm:$0xff] }
 0x203   :  { %6241 = vmatpush1.bf16.msra.mxu1 %v6240_v23  ;;  %v1181_v23 = vld [vmem:[#allocation14 + $0x2c8] sm:$0xff] }
 0x204   :  { %6243 = vmatprep.subr.bf16.mxu1 %v6242_v27  ;;  %v6198_v25 = vpack.c.bf16 %v1185_v24, %v1181_v23  ;;  %v1184_v27 = vld [vmem:[#allocation14 + $0x2e0] sm:$0xff]  ;;  %v1218_v23 = vld [vmem:[#allocation14 + $0x3f0] sm:$0xff] }
 0x205   :  { %6181 = vmatpush1.bf16.msra.mxu0 %v6180_v30  ;;  %v6200_v29 = vpack.c.bf16 %v1184_v27, %v1180_v26  ;;  %v1187_v30 = vld [vmem:[#allocation14 + $0x2f8] sm:$0xff]  ;;  %v1413_v26 = vld [vmem:[#allocation12 + $0x8] sm:$0xff] }
 0x206   :  { %6183 = vmatprep.subr.bf16.mxu0 %v6182_v34  ;;  %v6262_v33 = vpack.c.bf16 %v1187_v30, %v1183_v28  ;;  %v1417_v27 = vld [vmem:[#allocation12 + $0x28] sm:$0xff]  ;;  %v1419_v30 = vld [vmem:[#allocation12 + $0x38] sm:$0xff] }
 0x207   :  { %6245 = vmatpush1.bf16.msra.mxu1 %v6244_v31  ;;  %v1182_v31 = vld [vmem:[#allocation14 + $0x2d0] sm:$0xff]  ;;  %v6282_v28 = vpack.c.bf16 %v1417_v27, %v1413_v26 }
 0x208   :  { %6247 = vmatprep.subr.bf16.mxu1 %v6246_v43  ;;  %v6264_v34 = vpack.c.bf16 %v1186_v32, %v1182_v31  ;;  %v1195_v43 = vld [vmem:[#allocation14 + $0x338] sm:$0xff]  ;;  %v584_v32 = vld [vmem:[%s8952_s6] sm:$0xf] }
 0x209   :  { %6185 = vmatpush1.bf16.msra.mxu0 %v6184_v38  ;;  %v1188_v38 = vld [vmem:[#allocation14 + $0x300] sm:$0xff]  ;;  %v6266_v46 = vpack.c.bf16 %v1195_v43, %v1191_v40 }
 0x20a   :  { %6187 = vmatprep.subr.bf16.mxu0 %v6186_v47  ;;  %v6204_v42 = vpack.c.bf16 %v1192_v39, %v1188_v38  ;;  %v597_v38 = vrot.slane %v584_v32, %v8509_v14 }
 0x20b   :  { %6249 = vmatpush1.bf16.msra.mxu1 %v6248_v44  ;;  %v1190_v44 = vld [vmem:[#allocation14 + $0x310] sm:$0xff] }
 0x20c   :  { %6251 = vmatprep.subr.bf16.mxu1 %v6250_v55  ;;  %v6268_v47 = vpack.c.bf16 %v1194_v45, %v1190_v44  ;;  %v1203_v55 = vld [vmem:[#allocation14 + $0x378] sm:$0xff] }
 0x20d   :  { %6189 = vmatpush1.bf16.msra.mxu0 %v6188_v51  ;;  %v1196_v51 = vld [vmem:[#allocation14 + $0x340] sm:$0xff]  ;;  %v6270_v58 = vpack.c.bf16 %v1203_v55, %v1199_v53 }
 0x20e   :  { %6191 = vmatprep.subr.bf16.mxu0 %v6190_v59  ;;  %v6208_v54 = vpack.c.bf16 %v1200_v52, %v1196_v51 }
 0x20f   :  { %6253 = vmatpush1.bf16.msra.mxu1 %v6252_v56  ;;  %v1198_v56 = vld [vmem:[#allocation14 + $0x350] sm:$0xff] }
 0x210   :  { %6255 = vmatprep.subr.bf16.mxu1 %v6254_v3  ;;  %v6272_v59 = vpack.c.bf16 %v1202_v57, %v1198_v56  ;;  %v1211_v3 = vld [vmem:[#allocation14 + $0x3b8] sm:$0xff] }
 0x211   :  { %6193 = vmatpush1.bf16.msra.mxu0 %v6192_v63  ;;  %v1204_v63 = vld [vmem:[#allocation14 + $0x380] sm:$0xff]  ;;  %v6274_v6 = vpack.c.bf16 %v1211_v3, %v1207_v1 }
 0x212   :  { %6195 = vmatprep.subr.bf16.mxu0 %v6194_v7  ;;  %v6212_v2 = vpack.c.bf16 %v1208_v0, %v1204_v63  ;;  %v904_v1 = vld [vmem:[%s8950_s4] sm:$0xf] }
 0x213   :  { %6257 = vmatpush1.bf16.msra.mxu1 %v6256_v4  ;;  %v1206_v4 = vld [vmem:[#allocation14 + $0x390] sm:$0xff]  ;;  %v913_v3 = vrot.slane %v904_v1, %v8506_v13 }
 0x214   :  { %6259 = vmatprep.subr.bf16.mxu1 %v6258_v20  ;;  %v6276_v7 = vpack.c.bf16 %v1210_v5, %v1206_v4  ;;  %v1219_v20 = vld [vmem:[#allocation14 + $0x3f8] sm:$0xff]  ;;  %v917_v4 = vrot.slane %v904_v1, %v8509_v14 }
 0x215   :  { %6197 = vmatpush1.bf16.msra.mxu0 %v6196_v16  ;;  %v1212_v16 = vld [vmem:[#allocation14 + $0x3c0] sm:$0xff]  ;;  %v6278_v24 = vpack.c.bf16 %v1219_v20, %v1215_v18 }
 0x216   :  { %6199 = vmatprep.subr.bf16.mxu0 %v6198_v25  ;;  %v6216_v19 = vpack.c.bf16 %v1216_v17, %v1212_v16 }
 0x217   :  { %6261 = vmatpush1.bf16.msra.mxu1 %v6260_v22  ;;  %v1214_v22 = vld [vmem:[#allocation14 + $0x3d0] sm:$0xff] }
 0x218   :  { %6263 = vmatprep.subr.bf16.mxu1 %v6262_v33  ;;  %v6280_v25 = vpack.c.bf16 %v1218_v23, %v1214_v22  ;;  %v589_v33 = vrot.slane %v584_v32, %v8500_v11 }
 0x219   :  { %6201 = vmatpush1.bf16.msra.mxu0 %v6200_v29  ;;  %v1415_v29 = vld [vmem:[#allocation12 + $0x18] sm:$0xff] }
 0x21a   :  { %6203 = vmatprep.subr.bf16.mxu0 %v6202_v37  ;;  %v6346_v31 = vpack.c.bf16 %v1419_v30, %v1415_v29 }
 0x21b   :  { %6265 = vmatpush1.bf16.msra.mxu1 %v6264_v34  ;;  %v593_v34 = vrot.slane %v584_v32, %v8506_v13 }
 0x21c   :  { %6267 = vmatprep.subr.bf16.mxu1 %v6266_v46  ;;  %v601_v46 = vrot.slane %v584_v32, %v8515_v21 }
 0x21d   :  { %6205 = vmatpush1.bf16.msra.mxu0 %v6204_v42 }
 0x21e   :  { %6207 = vmatprep.subr.bf16.mxu0 %v6206_v50 }
 0x21f   :  { %6269 = vmatpush1.bf16.msra.mxu1 %v6268_v47 }
 0x220   :  { %6271 = vmatprep.subr.bf16.mxu1 %v6270_v58 }
 0x221   :  { %6209 = vmatpush1.bf16.msra.mxu0 %v6208_v54  ;;  %v133_v54 = vld [vmem:[#allocation11 + $0x8] sm:$0xff] }
 0x222   :  { %6211 = vmatprep.subr.bf16.mxu0 %v6210_v62 }
 0x223   :  { %6273 = vmatpush1.bf16.msra.mxu1 %v6272_v59 }
 0x224   :  { %6275 = vmatprep.subr.bf16.mxu1 %v6274_v6 }
 0x225   :  { %6213 = vmatpush1.bf16.msra.mxu0 %v6212_v2  ;;  %v909_v2 = vrot.slane %v904_v1, %v8500_v11 }
 0x226   :  { %6215 = vmatprep.subr.bf16.mxu0 %v6214_v15 }
 0x227   :  { %6277 = vmatpush1.bf16.msra.mxu1 %v6276_v7 }
 0x228   :  { %6279 = vmatprep.subr.bf16.mxu1 %v6278_v24 }
 0x229   :  { %6217 = vmatpush1.bf16.msra.mxu0 %v6216_v19  ;;  %v921_v19 = vrot.slane %v904_v1, %v8515_v21  ;;  %v1437_v1 = vld [vmem:[#allocation12 + $0xc8] sm:$0xff] }
 0x22a   :  { %6283 = vmatprep.subr.bf16.mxu0 %v6282_v28 }
 0x22b   :  { %6281 = vmatpush1.bf16.msra.mxu1 %v6280_v25 }
 0x22c   :  { %6347 = vmatprep.subr.bf16.mxu1 %v6346_v31 }
 0x27f   :  { %v672_v35 = vpop.f32.mrb[2].mxu0  ;;  %v743_v36 = vpop.f32.mrb[2].mxu1 }
 0x280   :  { %v673_v37 = vadd.f32 %v672_v35, %v589_v33  ;;  %v674_v39 = vpop.f32.mrb[3].mxu0  ;;  %v745_v40 = vpop.f32.mrb[3].mxu1  ;;  %v744_v45 = vadd.f32 %v743_v36, %v597_v38  ;;  %v1412_v35 = vld [vmem:[#allocation12] sm:$0xff]  ;;  %v1425_v38 = vld [vmem:[#allocation12 + $0x68] sm:$0xff] }
 0x281   :  { %v675_v42 = vadd.f32 %v674_v39, %v593_v34  ;;  %v746_v47 = vadd.f32 %v745_v40, %v601_v46  ;;  %v1416_v36 = vld [vmem:[#allocation12 + $0x20] sm:$0xff]  ;;  %v1414_v40 = vld [vmem:[#allocation12 + $0x10] sm:$0xff]  ;;  %v1427_v46 = vld [vmem:[#allocation12 + $0x78] sm:$0xff] }
 0x282   :  { %v748_v43 = vmul.f32 0.5, %v673_v37  ;;  %v1421_v37 = vld [vmem:[#allocation12 + $0x48] sm:$0xff] }
 0x283   :  { %v752_v44 = vmul.f32 0.5, %v675_v42  ;;  %v757_v48 = vmul.f32 0.5, %v746_v47  ;;  %v1418_v42 = vld [vmem:[#allocation12 + $0x30] sm:$0xff] }
 0x284   :  { %7890 = vtanh.f32 %v748_v43 }
 0x285   :  { %7892 = vtanh.f32 %v752_v44  ;;  %v6284_v44 = vpack.c.bf16 %v1416_v36, %v1412_v35  ;;  %v1446_v35 = vld [vmem:[#allocation12 + $0x110] sm:$0xff] }
 0x286   :  { %7894 = vtanh.f32 %v744_v45  ;;  %v1423_v45 = vld [vmem:[#allocation12 + $0x58] sm:$0xff]  ;;  %v1450_v36 = vld [vmem:[#allocation12 + $0x130] sm:$0xff] }
 0x287   :  { %7896 = vtanh.f32 %v757_v48  ;;  %v6286_v48 = vpack.c.bf16 %v1425_v38, %v1421_v37  ;;  %v1455_v38 = vld [vmem:[#allocation12 + $0x158] sm:$0xff] }
 0x28e   :  { %v7891_v49 = vpop.eup %7890 }
 0x28f   :  { %v7893_v50 = vpop.eup %7892  ;;  %v750_v51 = vadd.f32 1.0, %v7891_v49  ;;  %v1424_v49 = vld [vmem:[#allocation12 + $0x60] sm:$0xff] }
 0x290   :  { %v754_v52 = vadd.f32 1.0, %v7893_v50  ;;  %v7895_v55 = vpop.eup %7894  ;;  %v6348_v50 = vpack.c.bf16 %v1418_v42, %v1414_v40  ;;  %v1452_v42 = vld [vmem:[#allocation12 + $0x140] sm:$0xff] }
 0x291   :  { %v751_v53 = vmul.f32 0.5, %v750_v51  ;;  %v7897_v60 = vpop.eup %7896  ;;  %v1429_v51 = vld [vmem:[#allocation12 + $0x88] sm:$0xff] }
 0x292   :  { %v755_v56 = vmul.f32 0.5, %v754_v52  ;;  %v759_v61 = vadd.f32 1.0, %v7897_v60  ;;  %v1433_v52 = vld [vmem:[#allocation12 + $0xa8] sm:$0xff] }
 0x293   :  { %v764_v57 = vmul.f32 %v7895_v55, %v751_v53  ;;  %v6350_v53 = vpack.c.bf16 %v1427_v46, %v1423_v45  ;;  %v1426_v55 = vld [vmem:[#allocation12 + $0x70] sm:$0xff]  ;;  %v6290_v60 = vpack.c.bf16 %v1433_v52, %v1429_v51  ;;  %v1461_v45 = vld [vmem:[#allocation12 + $0x188] sm:$0xff]  ;;  %v1467_v51 = vld [vmem:[#allocation12 + $0x1b8] sm:$0xff] }
 0x294   :  { %v763_v58 = vmul.f32 %v755_v56, %v133_v54  ;;  %v760_v62 = vmul.f32 0.5, %v759_v61  ;;  %v1422_v54 = vld [vmem:[#allocation12 + $0x50] sm:$0xff]  ;;  %v1428_v61 = vld [vmem:[#allocation12 + $0x80] sm:$0xff]  ;;  %v1465_v46 = vld [vmem:[#allocation12 + $0x1a8] sm:$0xff] }
 0x295   :  { %v6306_v52 = vpack.c.bf16 %v1465_v46, %v1461_v45  ;;  %v1499_v45 = vld [vmem:[#allocation12 + $0x2b8] sm:$0xff] }
 0x296   :  { %v8528_v59 = vadd.f32 %v764_v57, %v763_v58  ;;  %v1431_v57 = vld [vmem:[#allocation12 + $0x98] sm:$0xff] }
 0x297   :  { %v1435_v58 = vld [vmem:[#allocation12 + $0xb8] sm:$0xff] }
 0x298   :  { %7898 = vtanh.f32 %v8528_v59 }
 0x2a2   :  { %v7899_v63 = vpop.eup %7898 }
 0x2a3   :  { %v8531_v0 = vmul.f32 %v7899_v63, %v760_v62  ;;  %v1432_v62 = vld [vmem:[#allocation12 + $0xa0] sm:$0xff]  ;;  %v6352_v63 = vpack.c.bf16 %v1426_v55, %v1422_v54 }
 0x2a4   :  { %v1464_v54 = vld [vmem:[#allocation12 + $0x1a0] sm:$0xff] }
 0x2a5   :  { %1306 = vmatprep.mubr.f32.mxu0 %v8531_v0  ;;  %1377 = vmatprep.mubr.f32.mxu1 %v8531_v0 }
 0x2bf   :  { %v992_v5 = vpop.f32.mrb[4].mxu0 }
 0x2c0   :  { %v993_v6 = vadd.f32 %v992_v5, %v909_v2  ;;  %v994_v7 = vpop.f32.mrb[5].mxu0  ;;  %v1441_v2 = vld [vmem:[#allocation12 + $0xe8] sm:$0xff]  ;;  %v1434_v5 = vld [vmem:[#allocation12 + $0xb0] sm:$0xff] }
 0x2c1   :  { %v995_v8 = vadd.f32 %v994_v7, %v913_v3  ;;  %v1063_v12 = vpop.f32.mrb[4].mxu1  ;;  %v6354_v3 = vpack.c.bf16 %v1435_v58, %v1431_v57  ;;  %v1439_v7 = vld [vmem:[#allocation12 + $0xd8] sm:$0xff]  ;;  %v1473_v57 = vld [vmem:[#allocation12 + $0x1e8] sm:$0xff] }
 0x2c2   :  { %v1068_v15 = vmul.f32 0.5, %v993_v6  ;;  %v1064_v16 = vadd.f32 %v1063_v12, %v917_v4  ;;  %v1065_v17 = vpop.f32.mrb[5].mxu1  ;;  %v1430_v4 = vld [vmem:[#allocation12 + $0x90] sm:$0xff]  ;;  %v6292_v6 = vpack.c.bf16 %v1432_v62, %v1428_v61  ;;  %v6294_v12 = vpack.c.bf16 %v1441_v2, %v1437_v1  ;;  %v1475_v1 = vld [vmem:[#allocation12 + $0x1f8] sm:$0xff] }
 0x2c3   :  { %v1072_v18 = vmul.f32 0.5, %v995_v8  ;;  %v1066_v20 = vadd.f32 %v1065_v17, %v921_v19  ;;  %v1443_v8 = vld [vmem:[#allocation12 + $0xf8] sm:$0xff]  ;;  %v6356_v17 = vpack.c.bf16 %v1434_v5, %v1430_v4  ;;  %v1449_v19 = vld [vmem:[#allocation12 + $0x128] sm:$0xff]  ;;  %v1466_v61 = vld [vmem:[#allocation12 + $0x1b0] sm:$0xff] }
 0x2c4   :  { %7900 = vtanh.f32 %v1068_v15  ;;  %v1436_v15 = vld [vmem:[#allocation12 + $0xc0] sm:$0xff] }
 0x2c5   :  { %7902 = vtanh.f32 %v1072_v18  ;;  %v1077_v22 = vmul.f32 0.5, %v1066_v20  ;;  %v1445_v18 = vld [vmem:[#allocation12 + $0x108] sm:$0xff]  ;;  %v6358_v20 = vpack.c.bf16 %v1443_v8, %v1439_v7  ;;  %v1472_v4 = vld [vmem:[#allocation12 + $0x1e0] sm:$0xff] }
 0x2c6   :  { %7904 = vtanh.f32 %v1064_v16  ;;  %v1440_v16 = vld [vmem:[#allocation12 + $0xe0] sm:$0xff]  ;;  %v1481_v7 = vld [vmem:[#allocation12 + $0x228] sm:$0xff] }
 0x2c7   :  { %7906 = vtanh.f32 %v1077_v22  ;;  %v1438_v22 = vld [vmem:[#allocation12 + $0xd0] sm:$0xff] }
 0x2ce   :  { %v7901_v23 = vpop.eup %7900 }
 0x2cf   :  { %v7903_v24 = vpop.eup %7902  ;;  %v1070_v25 = vadd.f32 1.0, %v7901_v23  ;;  %v1442_v23 = vld [vmem:[#allocation12 + $0xf0] sm:$0xff] }
 0x2d0   :  { %v7905_v26 = vpop.eup %7904  ;;  %v1074_v27 = vadd.f32 1.0, %v7903_v24  ;;  %v6296_v24 = vpack.c.bf16 %v1440_v16, %v1436_v15  ;;  %v1474_v15 = vld [vmem:[#allocation12 + $0x1f0] sm:$0xff] }
 0x2d1   :  { %v1071_v28 = vmul.f32 0.5, %v1070_v25  ;;  %v7907_v33 = vpop.eup %7906  ;;  %v1447_v25 = vld [vmem:[#allocation12 + $0x118] sm:$0xff] }
 0x2d2   :  { %v1075_v29 = vmul.f32 0.5, %v1074_v27  ;;  %v1079_v34 = vadd.f32 1.0, %v7907_v33  ;;  %v6298_v27 = vpack.c.bf16 %v1449_v19, %v1445_v18  ;;  %v1457_v33 = vld [vmem:[#allocation12 + $0x168] sm:$0xff]  ;;  %v1483_v18 = vld [vmem:[#allocation12 + $0x238] sm:$0xff] }
 0x2d3   :  { %v1083_v30 = vmul.f32 %v7905_v26, %v1071_v28  ;;  %v1451_v26 = vld [vmem:[#allocation12 + $0x138] sm:$0xff]  ;;  %v1444_v28 = vld [vmem:[#allocation12 + $0x100] sm:$0xff] }
 0x2d4   :  { %v1082_v31 = vmul.f32 %v1075_v29, %v8518_v41  ;;  %v1080_v39 = vmul.f32 0.5, %v1079_v34  ;;  %v1420_v41 = vld [vmem:[#allocation12 + $0x40] sm:$0xff]  ;;  %v6362_v34 = vpack.c.bf16 %v1451_v26, %v1447_v25  ;;  %v1489_v25 = vld [vmem:[#allocation12 + $0x268] sm:$0xff] }
 0x2d5   :  { %v6288_v56 = vpack.c.bf16 %v1424_v49, %v1420_v41  ;;  %v1448_v29 = vld [vmem:[#allocation12 + $0x120] sm:$0xff]  ;;  %v1458_v41 = vld [vmem:[#allocation12 + $0x170] sm:$0xff] }
 0x2d6   :  { %v8543_v32 = vadd.f32 %v1083_v30, %v1082_v31  ;;  %v6360_v30 = vpack.c.bf16 %v1442_v23, %v1438_v22  ;;  %v1453_v31 = vld [vmem:[#allocation12 + $0x148] sm:$0xff]  ;;  %v6300_v37 = vpack.c.bf16 %v1448_v29, %v1444_v28  ;;  %v1480_v22 = vld [vmem:[#allocation12 + $0x220] sm:$0xff]  ;;  %v1482_v28 = vld [vmem:[#allocation12 + $0x230] sm:$0xff] }
 0x2d7   :  { %v6302_v40 = vpack.c.bf16 %v1457_v33, %v1453_v31  ;;  %v1491_v31 = vld [vmem:[#allocation12 + $0x278] sm:$0xff] }
 0x2d8   :  { %7908 = vtanh.f32 %v8543_v32 }
 0x2e2   :  { %v7909_v43 = vpop.eup %7908 }
 0x2e3   :  { %v1086_v47 = vmul.f32 %v7909_v43, %v1080_v39  ;;  %v1459_v39 = vld [vmem:[#allocation12 + $0x178] sm:$0xff]  ;;  %v1456_v43 = vld [vmem:[#allocation12 + $0x160] sm:$0xff] }
 0x2e4   :  { %v6304_v49 = vpack.c.bf16 %v1456_v43, %v1452_v42  ;;  %v1490_v42 = vld [vmem:[#allocation12 + $0x270] sm:$0xff] }
 0x2e5   :  { %1307 = vmatmul.mubr.f32.vlgmr.msra.gmra.mrb[6].mxu0 %v1086_v47  ;;  %1378 = vmatmul.mubr.f32.vlgmr.msra.gmra.mrb[6].mxu1 %v1086_v47 }
 0x2e6   :  { %6285 = vmatpush1.bf16.msra.mxu0 %v6284_v44  ;;  %1626 = vmatprep.mubr.f32.mxu0 %v1086_v47  ;;  %v6364_v44 = vpack.c.bf16 %v1450_v36, %v1446_v35  ;;  %v1488_v35 = vld [vmem:[#allocation12 + $0x260] sm:$0xff] }
 0x2e7   :  { %1697 = vmatprep.mubr.f32.mxu1 %v1086_v47  ;;  %6287 = vmatprep.subr.bf16.mxu0 %v6286_v48  ;;  %v6366_v47 = vpack.c.bf16 %v1459_v39, %v1455_v38  ;;  %v1454_v48 = vld [vmem:[#allocation12 + $0x150] sm:$0xff]  ;;  %v1497_v38 = vld [vmem:[#allocation12 + $0x2a8] sm:$0xff] }
 0x2e8   :  { %6349 = vmatpush1.bf16.msra.mxu1 %v6348_v50  ;;  %v1463_v50 = vld [vmem:[#allocation12 + $0x198] sm:$0xff]  ;;  %v6368_v55 = vpack.c.bf16 %v1458_v41, %v1454_v48  ;;  %v1496_v48 = vld [vmem:[#allocation12 + $0x2a0] sm:$0xff] }
 0x2e9   :  { %6351 = vmatprep.subr.bf16.mxu1 %v6350_v53  ;;  %v1460_v53 = vld [vmem:[#allocation12 + $0x180] sm:$0xff]  ;;  %v6370_v58 = vpack.c.bf16 %v1467_v51, %v1463_v50  ;;  %v1505_v50 = vld [vmem:[#allocation12 + $0x2e8] sm:$0xff] }
 0x2ea   :  { %6289 = vmatpush1.bf16.msra.mxu0 %v6288_v56  ;;  %v1469_v56 = vld [vmem:[#allocation12 + $0x1c8] sm:$0xff]  ;;  %v6308_v62 = vpack.c.bf16 %v1464_v54, %v1460_v53  ;;  %v1498_v53 = vld [vmem:[#allocation12 + $0x2b0] sm:$0xff] }
 0x2eb   :  { %6291 = vmatprep.subr.bf16.mxu0 %v6290_v60  ;;  %v1462_v60 = vld [vmem:[#allocation12 + $0x190] sm:$0xff]  ;;  %v6310_v2 = vpack.c.bf16 %v1473_v57, %v1469_v56  ;;  %v1507_v56 = vld [vmem:[#allocation12 + $0x2f8] sm:$0xff] }
 0x2ec   :  { %6353 = vmatpush1.bf16.msra.mxu1 %v6352_v63  ;;  %v1471_v63 = vld [vmem:[#allocation12 + $0x1d8] sm:$0xff]  ;;  %v6372_v5 = vpack.c.bf16 %v1466_v61, %v1462_v60  ;;  %v1504_v60 = vld [vmem:[#allocation12 + $0x2e0] sm:$0xff] }
 0x2ed   :  { %6355 = vmatprep.subr.bf16.mxu1 %v6354_v3  ;;  %v1468_v3 = vld [vmem:[#allocation12 + $0x1c0] sm:$0xff]  ;;  %v6374_v8 = vpack.c.bf16 %v1475_v1, %v1471_v63  ;;  %v1513_v63 = vld [vmem:[#allocation12 + $0x328] sm:$0xff] }
 0x2ee   :  { %6293 = vmatpush1.bf16.msra.mxu0 %v6292_v6  ;;  %v1477_v6 = vld [vmem:[#allocation12 + $0x208] sm:$0xff]  ;;  %v6312_v16 = vpack.c.bf16 %v1472_v4, %v1468_v3  ;;  %v1506_v3 = vld [vmem:[#allocation12 + $0x2f0] sm:$0xff] }
 0x2ef   :  { %6295 = vmatprep.subr.bf16.mxu0 %v6294_v12  ;;  %v1470_v12 = vld [vmem:[#allocation12 + $0x1d0] sm:$0xff]  ;;  %v6314_v19 = vpack.c.bf16 %v1481_v7, %v1477_v6  ;;  %v1515_v6 = vld [vmem:[#allocation12 + $0x338] sm:$0xff] }
 0x2f0   :  { %6357 = vmatpush1.bf16.msra.mxu1 %v6356_v17  ;;  %v1479_v17 = vld [vmem:[#allocation12 + $0x218] sm:$0xff]  ;;  %v6376_v23 = vpack.c.bf16 %v1474_v15, %v1470_v12  ;;  %v1512_v12 = vld [vmem:[#allocation12 + $0x320] sm:$0xff] }
 0x2f1   :  { %6359 = vmatprep.subr.bf16.mxu1 %v6358_v20  ;;  %v1476_v20 = vld [vmem:[#allocation12 + $0x200] sm:$0xff]  ;;  %v6378_v26 = vpack.c.bf16 %v1483_v18, %v1479_v17  ;;  %v1521_v17 = vld [vmem:[#allocation12 + $0x368] sm:$0xff] }
 0x2f2   :  { %6297 = vmatpush1.bf16.msra.mxu0 %v6296_v24  ;;  %v1485_v24 = vld [vmem:[#allocation12 + $0x248] sm:$0xff]  ;;  %v6316_v29 = vpack.c.bf16 %v1480_v22, %v1476_v20  ;;  %v1514_v20 = vld [vmem:[#allocation12 + $0x330] sm:$0xff] }
 0x2f3   :  { %6299 = vmatprep.subr.bf16.mxu0 %v6298_v27  ;;  %v1478_v27 = vld [vmem:[#allocation12 + $0x210] sm:$0xff]  ;;  %v6318_v33 = vpack.c.bf16 %v1489_v25, %v1485_v24  ;;  %v1523_v24 = vld [vmem:[#allocation12 + $0x378] sm:$0xff] }
 0x2f4   :  { %6361 = vmatpush1.bf16.msra.mxu1 %v6360_v30  ;;  %v1487_v30 = vld [vmem:[#allocation12 + $0x258] sm:$0xff]  ;;  %v6380_v36 = vpack.c.bf16 %v1482_v28, %v1478_v27  ;;  %v1520_v27 = vld [vmem:[#allocation12 + $0x360] sm:$0xff] }
 0x2f5   :  { %6363 = vmatprep.subr.bf16.mxu1 %v6362_v34  ;;  %v1484_v34 = vld [vmem:[#allocation12 + $0x240] sm:$0xff]  ;;  %v6382_v39 = vpack.c.bf16 %v1491_v31, %v1487_v30  ;;  %v1529_v30 = vld [vmem:[#allocation12 + $0x3a8] sm:$0xff] }
 0x2f6   :  { %6301 = vmatpush1.bf16.msra.mxu0 %v6300_v37  ;;  %v1493_v37 = vld [vmem:[#allocation12 + $0x288] sm:$0xff]  ;;  %v6320_v43 = vpack.c.bf16 %v1488_v35, %v1484_v34  ;;  %v1522_v34 = vld [vmem:[#allocation12 + $0x370] sm:$0xff] }
 0x2f7   :  { %6303 = vmatprep.subr.bf16.mxu0 %v6302_v40  ;;  %v1486_v40 = vld [vmem:[#allocation12 + $0x250] sm:$0xff]  ;;  %v6322_v46 = vpack.c.bf16 %v1497_v38, %v1493_v37  ;;  %v1531_v37 = vld [vmem:[#allocation12 + $0x3b8] sm:$0xff] }
 0x2f8   :  { %6365 = vmatpush1.bf16.msra.mxu1 %v6364_v44  ;;  %v1495_v44 = vld [vmem:[#allocation12 + $0x298] sm:$0xff]  ;;  %v6384_v41 = vpack.c.bf16 %v1490_v42, %v1486_v40  ;;  %v1528_v40 = vld [vmem:[#allocation12 + $0x3a0] sm:$0xff] }
 0x2f9   :  { %6367 = vmatprep.subr.bf16.mxu1 %v6366_v47  ;;  %v1492_v47 = vld [vmem:[#allocation12 + $0x280] sm:$0xff]  ;;  %v6386_v51 = vpack.c.bf16 %v1499_v45, %v1495_v44  ;;  %v1537_v44 = vld [vmem:[#allocation12 + $0x3e8] sm:$0xff] }
 0x2fa   :  { %6305 = vmatpush1.bf16.msra.mxu0 %v6304_v49  ;;  %v1501_v49 = vld [vmem:[#allocation12 + $0x2c8] sm:$0xff]  ;;  %v6324_v54 = vpack.c.bf16 %v1496_v48, %v1492_v47  ;;  %v1530_v47 = vld [vmem:[#allocation12 + $0x3b0] sm:$0xff] }
 0x2fb   :  { %6307 = vmatprep.subr.bf16.mxu0 %v6306_v52  ;;  %v1494_v52 = vld [vmem:[#allocation12 + $0x290] sm:$0xff]  ;;  %v6326_v57 = vpack.c.bf16 %v1505_v50, %v1501_v49  ;;  %v1539_v49 = vld [vmem:[#allocation12 + $0x3f8] sm:$0xff] }
 0x2fc   :  { %6369 = vmatpush1.bf16.msra.mxu1 %v6368_v55  ;;  %v1503_v55 = vld [vmem:[#allocation12 + $0x2d8] sm:$0xff]  ;;  %v6388_v61 = vpack.c.bf16 %v1498_v53, %v1494_v52  ;;  %v1536_v52 = vld [vmem:[#allocation12 + $0x3e0] sm:$0xff] }
 0x2fd   :  { %6371 = vmatprep.subr.bf16.mxu1 %v6370_v58  ;;  %v1500_v58 = vld [vmem:[#allocation12 + $0x2c0] sm:$0xff]  ;;  %v6390_v1 = vpack.c.bf16 %v1507_v56, %v1503_v55  ;;  %v1534_v55 = vld [vmem:[#allocation12 + $0x3d0] sm:$0xff] }
 0x2fe   :  { %6309 = vmatpush1.bf16.msra.mxu0 %v6308_v62  ;;  %v1509_v62 = vld [vmem:[#allocation12 + $0x308] sm:$0xff]  ;;  %v6328_v4 = vpack.c.bf16 %v1504_v60, %v1500_v58  ;;  %v1538_v56 = vld [vmem:[#allocation12 + $0x3f0] sm:$0xff] }
 0x2ff   :  { %6311 = vmatprep.subr.bf16.mxu0 %v6310_v2  ;;  %v1502_v2 = vld [vmem:[#allocation12 + $0x2d0] sm:$0xff]  ;;  %v6330_v7 = vpack.c.bf16 %v1513_v63, %v1509_v62  ;;  %v6408_v58 = vpack.c.bf16 %v1538_v56, %v1534_v55  ;;  %v1733_v62 = vld [vmem:[#allocation14 + $0x28] sm:$0xff]  ;;  %v1728_v63 = vld [vmem:[#allocation14] sm:$0xff] }
 0x300   :  { %6373 = vmatpush1.bf16.msra.mxu1 %v6372_v5  ;;  %v1511_v5 = vld [vmem:[#allocation12 + $0x318] sm:$0xff]  ;;  %v6392_v15 = vpack.c.bf16 %v1506_v3, %v1502_v2  ;;  %v1408_v60 = vld [vmem:[#allocation6 + $0x10] sm:$0xff]  ;;  %v1732_v2 = vld [vmem:[#allocation14 + $0x20] sm:$0xff] }
 0x301   :  { %6375 = vmatprep.subr.bf16.mxu1 %v6374_v8  ;;  %v1508_v8 = vld [vmem:[#allocation12 + $0x300] sm:$0xff]  ;;  %v6394_v18 = vpack.c.bf16 %v1515_v6, %v1511_v5  ;;  %v1731_v3 = vld [vmem:[#allocation14 + $0x18] sm:$0xff]  ;;  %v6412_v5 = vpack.c.bf16 %v1732_v2, %v1728_v63  ;;  %v1766_v63 = vld [vmem:[#allocation14 + $0x130] sm:$0xff] }
 0x302   :  { %6313 = vmatpush1.bf16.msra.mxu0 %v6312_v16  ;;  %v1517_v16 = vld [vmem:[#allocation12 + $0x348] sm:$0xff]  ;;  %v6332_v22 = vpack.c.bf16 %v1512_v12, %v1508_v8  ;;  %v1734_v8 = vld [vmem:[#allocation14 + $0x30] sm:$0xff] }
 0x303   :  { %6315 = vmatprep.subr.bf16.mxu0 %v6314_v19  ;;  %v1510_v19 = vld [vmem:[#allocation12 + $0x310] sm:$0xff]  ;;  %v6334_v25 = vpack.c.bf16 %v1521_v17, %v1517_v16  ;;  %v1741_v16 = vld [vmem:[#allocation14 + $0x68] sm:$0xff]  ;;  %v1736_v17 = vld [vmem:[#allocation14 + $0x40] sm:$0xff] }
 0x304   :  { %6377 = vmatpush1.bf16.msra.mxu1 %v6376_v23  ;;  %v1519_v23 = vld [vmem:[#allocation12 + $0x358] sm:$0xff]  ;;  %v6396_v28 = vpack.c.bf16 %v1514_v20, %v1510_v19  ;;  %v1740_v19 = vld [vmem:[#allocation14 + $0x60] sm:$0xff]  ;;  %v1773_v2 = vld [vmem:[#allocation14 + $0x168] sm:$0xff] }
 0x305   :  { %6379 = vmatprep.subr.bf16.mxu1 %v6378_v26  ;;  %v1516_v26 = vld [vmem:[#allocation12 + $0x340] sm:$0xff]  ;;  %v6398_v31 = vpack.c.bf16 %v1523_v24, %v1519_v23  ;;  %v1739_v20 = vld [vmem:[#allocation14 + $0x58] sm:$0xff]  ;;  %v6416_v23 = vpack.c.bf16 %v1740_v19, %v1736_v17  ;;  %v1774_v17 = vld [vmem:[#allocation14 + $0x170] sm:$0xff] }
 0x306   :  { %6317 = vmatpush1.bf16.msra.mxu0 %v6316_v29  ;;  %v1525_v29 = vld [vmem:[#allocation12 + $0x388] sm:$0xff]  ;;  %v6336_v35 = vpack.c.bf16 %v1520_v27, %v1516_v26  ;;  %v1742_v26 = vld [vmem:[#allocation14 + $0x70] sm:$0xff] }
 0x307   :  { %6319 = vmatprep.subr.bf16.mxu0 %v6318_v33  ;;  %v1518_v33 = vld [vmem:[#allocation12 + $0x350] sm:$0xff]  ;;  %v6338_v38 = vpack.c.bf16 %v1529_v30, %v1525_v29  ;;  %v1745_v27 = vld [vmem:[#allocation14 + $0x88] sm:$0xff]  ;;  %v1744_v30 = vld [vmem:[#allocation14 + $0x80] sm:$0xff] }
 0x308   :  { %6381 = vmatpush1.bf16.msra.mxu1 %v6380_v36  ;;  %v1527_v36 = vld [vmem:[#allocation12 + $0x398] sm:$0xff]  ;;  %v6400_v42 = vpack.c.bf16 %v1522_v34, %v1518_v33  ;;  %v1749_v29 = vld [vmem:[#allocation14 + $0xa8] sm:$0xff] }
 0x309   :  { %6383 = vmatprep.subr.bf16.mxu1 %v6382_v39  ;;  %v1524_v39 = vld [vmem:[#allocation12 + $0x380] sm:$0xff]  ;;  %v6402_v45 = vpack.c.bf16 %v1531_v37, %v1527_v36  ;;  %v6418_v33 = vpack.c.bf16 %v1749_v29, %v1745_v27  ;;  %v1751_v36 = vld [vmem:[#allocation14 + $0xb8] sm:$0xff]  ;;  %v1746_v37 = vld [vmem:[#allocation14 + $0x90] sm:$0xff] }
 0x30a   :  { %6321 = vmatpush1.bf16.msra.mxu0 %v6320_v43  ;;  %v1533_v43 = vld [vmem:[#allocation12 + $0x3c8] sm:$0xff]  ;;  %v6340_v48 = vpack.c.bf16 %v1528_v40, %v1524_v39  ;;  %v1750_v39 = vld [vmem:[#allocation14 + $0xb0] sm:$0xff]  ;;  %v1780_v27 = vld [vmem:[#allocation14 + $0x1a0] sm:$0xff] }
 0x30b   :  { %6323 = vmatprep.subr.bf16.mxu0 %v6322_v46  ;;  %v1526_v46 = vld [vmem:[#allocation12 + $0x390] sm:$0xff]  ;;  %v6342_v50 = vpack.c.bf16 %v1537_v44, %v1533_v43  ;;  %v1753_v40 = vld [vmem:[#allocation14 + $0xc8] sm:$0xff]  ;;  %v6484_v43 = vpack.c.bf16 %v1750_v39, %v1746_v37  ;;  %v1784_v37 = vld [vmem:[#allocation14 + $0x1c0] sm:$0xff] }
 0x30c   :  { %6385 = vmatpush1.bf16.msra.mxu1 %v6384_v41  ;;  %v1535_v41 = vld [vmem:[#allocation12 + $0x3d8] sm:$0xff]  ;;  %v6404_v53 = vpack.c.bf16 %v1530_v47, %v1526_v46  ;;  %v1756_v46 = vld [vmem:[#allocation14 + $0xe0] sm:$0xff]  ;;  %v1781_v19 = vld [vmem:[#allocation14 + $0x1a8] sm:$0xff] }
 0x30d   :  { %6387 = vmatprep.subr.bf16.mxu1 %v6386_v51  ;;  %v1532_v51 = vld [vmem:[#allocation12 + $0x3c0] sm:$0xff]  ;;  %v1755_v47 = vld [vmem:[#allocation14 + $0xd8] sm:$0xff]  ;;  %v1778_v29 = vld [vmem:[#allocation14 + $0x190] sm:$0xff] }
 0x30e   :  { %6325 = vmatpush1.bf16.msra.mxu0 %v6324_v54  ;;  %v6406_v54 = vpack.c.bf16 %v1539_v49, %v1535_v41  ;;  %v1754_v41 = vld [vmem:[#allocation14 + $0xd0] sm:$0xff]  ;;  %v1787_v39 = vld [vmem:[#allocation14 + $0x1d8] sm:$0xff] }
 0x30f   :  { %6327 = vmatprep.subr.bf16.mxu0 %v6326_v57  ;;  %v6344_v57 = vpack.c.bf16 %v1536_v52, %v1532_v51  ;;  %v1758_v49 = vld [vmem:[#allocation14 + $0xf0] sm:$0xff]  ;;  %v1761_v52 = vld [vmem:[#allocation14 + $0x108] sm:$0xff] }
 0x310   :  { %6389 = vmatpush1.bf16.msra.mxu1 %v6388_v61  ;;  %v1729_v61 = vld [vmem:[#allocation14 + $0x8] sm:$0xff]  ;;  %v6488_v55 = vpack.c.bf16 %v1758_v49, %v1754_v41  ;;  %v1792_v49 = vld [vmem:[#allocation14 + $0x200] sm:$0xff] }
 0x311   :  { %6391 = vmatprep.subr.bf16.mxu1 %v6390_v1  ;;  %v6410_v1 = vpack.c.bf16 %v1733_v62, %v1729_v61  ;;  %v1762_v62 = vld [vmem:[#allocation14 + $0x110] sm:$0xff] }
 0x312   :  { %6329 = vmatpush1.bf16.msra.mxu0 %v6328_v4  ;;  %v1735_v4 = vld [vmem:[#allocation14 + $0x38] sm:$0xff] }
 0x313   :  { %6331 = vmatprep.subr.bf16.mxu0 %v6330_v7  ;;  %v6474_v6 = vpack.c.bf16 %v1735_v4, %v1731_v3  ;;  %v1730_v7 = vld [vmem:[#allocation14 + $0x10] sm:$0xff]  ;;  %v1771_v4 = vld [vmem:[#allocation14 + $0x158] sm:$0xff] }
 0x314   :  { %6393 = vmatpush1.bf16.msra.mxu1 %v6392_v15  ;;  %v6476_v12 = vpack.c.bf16 %v1734_v8, %v1730_v7  ;;  %v1737_v15 = vld [vmem:[#allocation14 + $0x48] sm:$0xff]  ;;  %v1768_v8 = vld [vmem:[#allocation14 + $0x140] sm:$0xff] }
 0x315   :  { %6395 = vmatprep.subr.bf16.mxu1 %v6394_v18  ;;  %v6414_v18 = vpack.c.bf16 %v1741_v16, %v1737_v15  ;;  %v1770_v15 = vld [vmem:[#allocation14 + $0x150] sm:$0xff] }
 0x316   :  { %6333 = vmatpush1.bf16.msra.mxu0 %v6332_v22  ;;  %v1743_v22 = vld [vmem:[#allocation14 + $0x78] sm:$0xff] }
 0x317   :  { %6335 = vmatprep.subr.bf16.mxu0 %v6334_v25  ;;  %v6478_v24 = vpack.c.bf16 %v1743_v22, %v1739_v20  ;;  %v1738_v25 = vld [vmem:[#allocation14 + $0x50] sm:$0xff]  ;;  %v1779_v20 = vld [vmem:[#allocation14 + $0x198] sm:$0xff] }
 0x318   :  { %6397 = vmatpush1.bf16.msra.mxu1 %v6396_v28  ;;  %v6480_v28 = vpack.c.bf16 %v1742_v26, %v1738_v25  ;;  %v1783_v22 = vld [vmem:[#allocation14 + $0x1b8] sm:$0xff]  ;;  %v1776_v26 = vld [vmem:[#allocation14 + $0x180] sm:$0xff] }
 0x319   :  { %6399 = vmatprep.subr.bf16.mxu1 %v6398_v31  ;;  %v1748_v31 = vld [vmem:[#allocation14 + $0xa0] sm:$0xff] }
 0x31a   :  { %6337 = vmatpush1.bf16.msra.mxu0 %v6336_v35  ;;  %v6420_v34 = vpack.c.bf16 %v1748_v31, %v1744_v30  ;;  %v1747_v35 = vld [vmem:[#allocation14 + $0x98] sm:$0xff]  ;;  %v1782_v30 = vld [vmem:[#allocation14 + $0x1b0] sm:$0xff]  ;;  %v6436_v31 = vpack.c.bf16 %v1780_v27, %v1776_v26  ;;  %v1817_v26 = vld [vmem:[#allocation14 + $0x2c8] sm:$0xff] }
 0x31b   :  { %6339 = vmatprep.subr.bf16.mxu0 %v6338_v38  ;;  %v6482_v38 = vpack.c.bf16 %v1751_v36, %v1747_v35  ;;  %v1789_v35 = vld [vmem:[#allocation14 + $0x1e8] sm:$0xff] }
 0x31c   :  { %6401 = vmatpush1.bf16.msra.mxu1 %v6400_v42  ;;  %v1757_v42 = vld [vmem:[#allocation14 + $0xe8] sm:$0xff] }
 0x31d   :  { %6403 = vmatprep.subr.bf16.mxu1 %v6402_v45  ;;  %v6422_v44 = vpack.c.bf16 %v1757_v42, %v1753_v40  ;;  %v1752_v45 = vld [vmem:[#allocation14 + $0xc0] sm:$0xff]  ;;  %v1791_v42 = vld [vmem:[#allocation14 + $0x1f8] sm:$0xff]  ;;  %v1821_v27 = vld [vmem:[#allocation14 + $0x2e8] sm:$0xff] }
 0x31e   :  { %6341 = vmatpush1.bf16.msra.mxu0 %v6340_v48  ;;  %v1759_v48 = vld [vmem:[#allocation14 + $0xf8] sm:$0xff] }
 0x31f   :  { %6343 = vmatprep.subr.bf16.mxu0 %v6342_v50  ;;  %v6424_v50 = vpack.c.bf16 %v1756_v46, %v1752_v45  ;;  %v6486_v51 = vpack.c.bf16 %v1759_v48, %v1755_v47  ;;  %v6502_v45 = vpack.c.bf16 %v1791_v42, %v1787_v39  ;;  %v1793_v47 = vld [vmem:[#allocation14 + $0x208] sm:$0xff] }
 0x320   :  { %6405 = vmatpush1.bf16.msra.mxu1 %v6404_v53  ;;  %v1765_v53 = vld [vmem:[#allocation14 + $0x128] sm:$0xff] }
 0x321   :  { %6407 = vmatprep.subr.bf16.mxu1 %v6406_v54  ;;  %v1760_v54 = vld [vmem:[#allocation14 + $0x100] sm:$0xff]  ;;  %v6426_v56 = vpack.c.bf16 %v1765_v53, %v1761_v52  ;;  %v1797_v48 = vld [vmem:[#allocation14 + $0x228] sm:$0xff]  ;;  %v1799_v53 = vld [vmem:[#allocation14 + $0x238] sm:$0xff] }
 0x322   :  { %6345 = vmatpush1.bf16.msra.mxu0 %v6344_v57  ;;  %v1764_v57 = vld [vmem:[#allocation14 + $0x120] sm:$0xff]  ;;  %v6442_v41 = vpack.c.bf16 %v1797_v48, %v1793_v47  ;;  %v1825_v39 = vld [vmem:[#allocation14 + $0x308] sm:$0xff]  ;;  %v1831_v47 = vld [vmem:[#allocation14 + $0x338] sm:$0xff] }
 0x323   :  { %6411 = vmatprep.subr.bf16.mxu0 %v6410_v1  ;;  %v1769_v1 = vld [vmem:[#allocation14 + $0x148] sm:$0xff]  ;;  %v6428_v3 = vpack.c.bf16 %v1764_v57, %v1760_v54  ;;  %v1794_v54 = vld [vmem:[#allocation14 + $0x210] sm:$0xff] }
 0x324   :  { %6409 = vmatpush1.bf16.msra.mxu1 %v6408_v58  ;;  %v1763_v58 = vld [vmem:[#allocation14 + $0x118] sm:$0xff]  ;;  %v6430_v7 = vpack.c.bf16 %v1773_v2, %v1769_v1  ;;  %v1826_v48 = vld [vmem:[#allocation14 + $0x310] sm:$0xff] }
 0x325   :  { %1627 = vmatmul.mubr.f32.vlgmr.msra.gmra.mrb[8].mxu0 %v1408_v60  ;;  %6475 = vmatprep.subr.bf16.mxu1 %v6474_v6  ;;  %v6492_v6 = vpack.c.bf16 %v1766_v63, %v1762_v62  ;;  %v1800_v62 = vld [vmem:[#allocation14 + $0x240] sm:$0xff]  ;;  %v1803_v1 = vld [vmem:[#allocation14 + $0x258] sm:$0xff] }
 0x326   :  { %6413 = vmatpush1.bf16.msra.mxu0 %v6412_v5  ;;  %v1775_v5 = vld [vmem:[#allocation14 + $0x178] sm:$0xff]  ;;  %v1804_v63 = vld [vmem:[#allocation14 + $0x260] sm:$0xff] }
 0x327   :  { %1698 = vmatmul.mubr.f32.vlgmr.msra.gmra.mrb[8].mxu1 %v1408_v60  ;;  %6415 = vmatprep.subr.bf16.mxu0 %v6414_v18  ;;  %v1767_v60 = vld [vmem:[#allocation14 + $0x138] sm:$0xff]  ;;  %v6494_v16 = vpack.c.bf16 %v1775_v5, %v1771_v4  ;;  %v1777_v18 = vld [vmem:[#allocation14 + $0x188] sm:$0xff]  ;;  %v6448_v2 = vpack.c.bf16 %v1804_v63, %v1800_v62  ;;  %v1802_v4 = vld [vmem:[#allocation14 + $0x250] sm:$0xff] }
 0x328   :  { %6477 = vmatpush1.bf16.msra.mxu1 %v6476_v12  ;;  %v6490_v61 = vpack.c.bf16 %v1767_v60, %v1763_v58  ;;  %v1772_v12 = vld [vmem:[#allocation14 + $0x160] sm:$0xff]  ;;  %v6434_v25 = vpack.c.bf16 %v1781_v19, %v1777_v18  ;;  %v1801_v58 = vld [vmem:[#allocation14 + $0x248] sm:$0xff]  ;;  %v1806_v5 = vld [vmem:[#allocation14 + $0x270] sm:$0xff] }
 0x329   :  { %6479 = vmatprep.subr.bf16.mxu1 %v6478_v24  ;;  %v6496_v24 = vpack.c.bf16 %v1774_v17, %v1770_v15  ;;  %v1805_v60 = vld [vmem:[#allocation14 + $0x268] sm:$0xff]  ;;  %v1812_v17 = vld [vmem:[#allocation14 + $0x2a0] sm:$0xff]  ;;  %v1811_v18 = vld [vmem:[#allocation14 + $0x298] sm:$0xff] }
 0x32a   :  { %6417 = vmatpush1.bf16.msra.mxu0 %v6416_v23  ;;  %v6432_v23 = vpack.c.bf16 %v1772_v12, %v1768_v8  ;;  %v1809_v8 = vld [vmem:[#allocation14 + $0x288] sm:$0xff] }
 0x32b   :  { %6419 = vmatprep.subr.bf16.mxu0 %v6418_v33  ;;  %v6500_v33 = vpack.c.bf16 %v1782_v30, %v1778_v29  ;;  %v1813_v12 = vld [vmem:[#allocation14 + $0x2a8] sm:$0xff]  ;;  %v1816_v29 = vld [vmem:[#allocation14 + $0x2c0] sm:$0xff] }
 0x32c   :  { %6481 = vmatpush1.bf16.msra.mxu1 %v6480_v28  ;;  %v6498_v28 = vpack.c.bf16 %v1783_v22, %v1779_v20  ;;  %v6450_v15 = vpack.c.bf16 %v1813_v12, %v1809_v8  ;;  %v1815_v20 = vld [vmem:[#allocation14 + $0x2b8] sm:$0xff]  ;;  %v1810_v22 = vld [vmem:[#allocation14 + $0x290] sm:$0xff]  ;;  %v1820_v30 = vld [vmem:[#allocation14 + $0x2e0] sm:$0xff] }
 0x32d   :  { %6483 = vmatprep.subr.bf16.mxu1 %v6482_v38  ;;  %v1788_v38 = vld [vmem:[#allocation14 + $0x1e0] sm:$0xff]  ;;  %v1847_v8 = vld [vmem:[#allocation14 + $0x3b8] sm:$0xff]  ;;  %v1842_v12 = vld [vmem:[#allocation14 + $0x390] sm:$0xff] }
 0x32e   :  { %6421 = vmatpush1.bf16.msra.mxu0 %v6420_v34  ;;  %v1785_v34 = vld [vmem:[#allocation14 + $0x1c8] sm:$0xff]  ;;  %v6440_v40 = vpack.c.bf16 %v1788_v38, %v1784_v37 }
 0x32f   :  { %6423 = vmatprep.subr.bf16.mxu0 %v6422_v44  ;;  %v6438_v36 = vpack.c.bf16 %v1789_v35, %v1785_v34  ;;  %v1790_v44 = vld [vmem:[#allocation14 + $0x1f0] sm:$0xff]  ;;  %v1823_v34 = vld [vmem:[#allocation14 + $0x2f8] sm:$0xff] }
 0x330   :  { %6485 = vmatpush1.bf16.msra.mxu1 %v6484_v43  ;;  %v1786_v43 = vld [vmem:[#allocation14 + $0x1d0] sm:$0xff] }
 0x331   :  { %6487 = vmatprep.subr.bf16.mxu1 %v6486_v51  ;;  %v6504_v46 = vpack.c.bf16 %v1790_v44, %v1786_v43  ;;  %v1795_v51 = vld [vmem:[#allocation14 + $0x218] sm:$0xff]  ;;  %v1818_v35 = vld [vmem:[#allocation14 + $0x2d0] sm:$0xff]  ;;  %v1824_v43 = vld [vmem:[#allocation14 + $0x300] sm:$0xff] }
 0x332   :  { %6425 = vmatpush1.bf16.msra.mxu0 %v6424_v50  ;;  %v1796_v50 = vld [vmem:[#allocation14 + $0x220] sm:$0xff] }
 0x333   :  { %6427 = vmatprep.subr.bf16.mxu0 %v6426_v56  ;;  %v6444_v52 = vpack.c.bf16 %v1796_v50, %v1792_v49  ;;  %v6506_v56 = vpack.c.bf16 %v1799_v53, %v1795_v51  ;;  %v1828_v44 = vld [vmem:[#allocation14 + $0x320] sm:$0xff]  ;;  %v1833_v51 = vld [vmem:[#allocation14 + $0x348] sm:$0xff] }
 0x334   :  { %6489 = vmatpush1.bf16.msra.mxu1 %v6488_v55  ;;  %v1798_v55 = vld [vmem:[#allocation14 + $0x230] sm:$0xff] }
 0x335   :  { %6491 = vmatprep.subr.bf16.mxu1 %v6490_v61  ;;  %v6508_v57 = vpack.c.bf16 %v1798_v55, %v1794_v54  ;;  %v6446_v61 = vpack.c.bf16 %v1805_v60, %v1801_v58  ;;  %v1832_v54 = vld [vmem:[#allocation14 + $0x340] sm:$0xff]  ;;  %v1839_v58 = vld [vmem:[#allocation14 + $0x378] sm:$0xff]  ;;  %v1834_v60 = vld [vmem:[#allocation14 + $0x350] sm:$0xff] }
 0x336   :  { %6429 = vmatpush1.bf16.msra.mxu0 %v6428_v3  ;;  %v1807_v3 = vld [vmem:[#allocation14 + $0x278] sm:$0xff]  ;;  %v1836_v55 = vld [vmem:[#allocation14 + $0x360] sm:$0xff] }
 0x337   :  { %6431 = vmatprep.subr.bf16.mxu0 %v6430_v7  ;;  %v6512_v7 = vpack.c.bf16 %v1806_v5, %v1802_v4  ;;  %v1840_v4 = vld [vmem:[#allocation14 + $0x380] sm:$0xff] }
 0x338   :  { %6493 = vmatpush1.bf16.msra.mxu1 %v6492_v6  ;;  %v6510_v6 = vpack.c.bf16 %v1807_v3, %v1803_v1  ;;  %v1841_v1 = vld [vmem:[#allocation14 + $0x388] sm:$0xff]  ;;  %v1844_v5 = vld [vmem:[#allocation14 + $0x3a0] sm:$0xff] }
 0x339   :  { %6495 = vmatprep.subr.bf16.mxu1 %v6494_v16  ;;  %v1808_v16 = vld [vmem:[#allocation14 + $0x280] sm:$0xff] }
 0x33a   :  { %6433 = vmatpush1.bf16.msra.mxu0 %v6432_v23  ;;  %v6452_v19 = vpack.c.bf16 %v1812_v17, %v1808_v16  ;;  %v1814_v23 = vld [vmem:[#allocation14 + $0x2b0] sm:$0xff] }
 0x33b   :  { %6435 = vmatprep.subr.bf16.mxu0 %v6434_v25  ;;  %v6516_v25 = vpack.c.bf16 %v1814_v23, %v1810_v22  ;;  %v1848_v22 = vld [vmem:[#allocation14 + $0x3c0] sm:$0xff] }
 0x33c   :  { %6497 = vmatpush1.bf16.msra.mxu1 %v6496_v24  ;;  %v6514_v24 = vpack.c.bf16 %v1815_v20, %v1811_v18  ;;  %v1849_v18 = vld [vmem:[#allocation14 + $0x3c8] sm:$0xff]  ;;  %v1852_v23 = vld [vmem:[#allocation14 + $0x3e0] sm:$0xff] }
 0x33d   :  { %6499 = vmatprep.subr.bf16.mxu1 %v6498_v28  ;;  %v6454_v28 = vpack.c.bf16 %v1821_v27, %v1817_v26  ;;  %v1855_v26 = vld [vmem:[#allocation14 + $0x3f8] sm:$0xff]  ;;  %v1850_v27 = vld [vmem:[#allocation14 + $0x3d0] sm:$0xff] }
 0x33e   :  { %6437 = vmatpush1.bf16.msra.mxu0 %v6436_v31  ;;  %v1819_v31 = vld [vmem:[#allocation14 + $0x2d8] sm:$0xff] }
 0x33f   :  { %6439 = vmatprep.subr.bf16.mxu0 %v6438_v36  ;;  %v1822_v36 = vld [vmem:[#allocation14 + $0x2f0] sm:$0xff]  ;;  %v6518_v37 = vpack.c.bf16 %v1823_v34, %v1819_v31  ;;  %v2049_v31 = vld [vmem:[#allocation12 + $0x8] sm:$0xff] }
 0x340   :  { %6501 = vmatpush1.bf16.msra.mxu1 %v6500_v33  ;;  %v6456_v33 = vpack.c.bf16 %v1820_v30, %v1816_v29  ;;  %v6520_v38 = vpack.c.bf16 %v1822_v36, %v1818_v35  ;;  %v2051_v35 = vld [vmem:[#allocation12 + $0x18] sm:$0xff] }
 0x341   :  { %6503 = vmatprep.subr.bf16.mxu1 %v6502_v45  ;;  %v1827_v45 = vld [vmem:[#allocation14 + $0x318] sm:$0xff] }
 0x342   :  { %6441 = vmatpush1.bf16.msra.mxu0 %v6440_v40  ;;  %v1829_v40 = vld [vmem:[#allocation14 + $0x328] sm:$0xff]  ;;  %v6522_v49 = vpack.c.bf16 %v1831_v47, %v1827_v45  ;;  %v2055_v36 = vld [vmem:[#allocation12 + $0x38] sm:$0xff] }
 0x343   :  { %6443 = vmatprep.subr.bf16.mxu0 %v6442_v41  ;;  %v6458_v42 = vpack.c.bf16 %v1829_v40, %v1825_v39  ;;  %v1830_v41 = vld [vmem:[#allocation14 + $0x330] sm:$0xff] }
 0x344   :  { %6505 = vmatpush1.bf16.msra.mxu1 %v6504_v46  ;;  %v6460_v46 = vpack.c.bf16 %v1828_v44, %v1824_v43  ;;  %v6524_v50 = vpack.c.bf16 %v1830_v41, %v1826_v48 }
 0x345   :  { %6507 = vmatprep.subr.bf16.mxu1 %v6506_v56  ;;  %v1835_v56 = vld [vmem:[#allocation14 + $0x358] sm:$0xff] }
 0x346   :  { %6445 = vmatpush1.bf16.msra.mxu0 %v6444_v52  ;;  %v1837_v52 = vld [vmem:[#allocation14 + $0x368] sm:$0xff]  ;;  %v6526_v62 = vpack.c.bf16 %v1839_v58, %v1835_v56 }
 0x347   :  { %6447 = vmatprep.subr.bf16.mxu0 %v6446_v61  ;;  %v6462_v53 = vpack.c.bf16 %v1837_v52, %v1833_v51  ;;  %v1838_v61 = vld [vmem:[#allocation14 + $0x370] sm:$0xff] }
 0x348   :  { %6509 = vmatpush1.bf16.msra.mxu1 %v6508_v57  ;;  %v6464_v57 = vpack.c.bf16 %v1836_v55, %v1832_v54  ;;  %v6528_v63 = vpack.c.bf16 %v1838_v61, %v1834_v60 }
 0x349   :  { %6511 = vmatprep.subr.bf16.mxu1 %v6510_v6  ;;  %v1843_v6 = vld [vmem:[#allocation14 + $0x398] sm:$0xff] }
 0x34a   :  { %6449 = vmatpush1.bf16.msra.mxu0 %v6448_v2  ;;  %v1845_v2 = vld [vmem:[#allocation14 + $0x3a8] sm:$0xff]  ;;  %v6530_v16 = vpack.c.bf16 %v1847_v8, %v1843_v6 }
 0x34b   :  { %6451 = vmatprep.subr.bf16.mxu0 %v6450_v15  ;;  %v6466_v3 = vpack.c.bf16 %v1845_v2, %v1841_v1  ;;  %v1846_v15 = vld [vmem:[#allocation14 + $0x3b0] sm:$0xff] }
 0x34c   :  { %6513 = vmatpush1.bf16.msra.mxu1 %v6512_v7  ;;  %v6468_v7 = vpack.c.bf16 %v1844_v5, %v1840_v4  ;;  %v6532_v17 = vpack.c.bf16 %v1846_v15, %v1842_v12 }
 0x34d   :  { %6515 = vmatprep.subr.bf16.mxu1 %v6514_v24  ;;  %v1851_v24 = vld [vmem:[#allocation14 + $0x3d8] sm:$0xff] }
 0x34e   :  { %6453 = vmatpush1.bf16.msra.mxu0 %v6452_v19  ;;  %v1853_v19 = vld [vmem:[#allocation14 + $0x3e8] sm:$0xff]  ;;  %v6534_v29 = vpack.c.bf16 %v1855_v26, %v1851_v24 }
 0x34f   :  { %6455 = vmatprep.subr.bf16.mxu0 %v6454_v28  ;;  %v6470_v20 = vpack.c.bf16 %v1853_v19, %v1849_v18  ;;  %v1854_v28 = vld [vmem:[#allocation14 + $0x3f0] sm:$0xff] }
 0x350   :  { %6517 = vmatpush1.bf16.msra.mxu1 %v6516_v25  ;;  %v6472_v25 = vpack.c.bf16 %v1852_v23, %v1848_v22  ;;  %v6536_v30 = vpack.c.bf16 %v1854_v28, %v1850_v27 }
 0x351   :  { %6519 = vmatprep.subr.bf16.mxu1 %v6518_v37  ;;  %v6602_v37 = vpack.c.bf16 %v2055_v36, %v2051_v35 }
 0x352   :  { %6457 = vmatpush1.bf16.msra.mxu0 %v6456_v33  ;;  %v2053_v33 = vld [vmem:[#allocation12 + $0x28] sm:$0xff] }
 0x353   :  { %6459 = vmatprep.subr.bf16.mxu0 %v6458_v42  ;;  %v6538_v34 = vpack.c.bf16 %v2053_v33, %v2049_v31 }
 0x354   :  { %6521 = vmatpush1.bf16.msra.mxu1 %v6520_v38  ;;  %v1220_v38 = vld [vmem:[%s8952_s6] sm:$0xf] }
 0x355   :  { %6523 = vmatprep.subr.bf16.mxu1 %v6522_v49  ;;  %v1225_v39 = vrot.slane %v1220_v38, %v8500_v11  ;;  %v1229_v40 = vrot.slane %v1220_v38, %v8506_v13  ;;  %v1233_v45 = vrot.slane %v1220_v38, %v8509_v14  ;;  %v1237_v51 = vrot.slane %v1220_v38, %v8515_v21 }
 0x356   :  { %6461 = vmatpush1.bf16.msra.mxu0 %v6460_v46 }
 0x357   :  { %6463 = vmatprep.subr.bf16.mxu0 %v6462_v53 }
 0x358   :  { %6525 = vmatpush1.bf16.msra.mxu1 %v6524_v50 }
 0x359   :  { %6527 = vmatprep.subr.bf16.mxu1 %v6526_v62 }
 0x35a   :  { %6465 = vmatpush1.bf16.msra.mxu0 %v6464_v57 }
 0x35b   :  { %6467 = vmatprep.subr.bf16.mxu0 %v6466_v3 }
 0x35c   :  { %6529 = vmatpush1.bf16.msra.mxu1 %v6528_v63 }
 0x35d   :  { %6531 = vmatprep.subr.bf16.mxu1 %v6530_v16 }
 0x35e   :  { %6469 = vmatpush1.bf16.msra.mxu0 %v6468_v7  ;;  %v1540_v7 = vld [vmem:[%s8950_s4] sm:$0xf] }
 0x35f   :  { %6471 = vmatprep.subr.bf16.mxu0 %v6470_v20  ;;  %v1549_v8 = vrot.slane %v1540_v7, %v8506_v13  ;;  %v1553_v12 = vrot.slane %v1540_v7, %v8509_v14 }
 0x360   :  { %6533 = vmatpush1.bf16.msra.mxu1 %v6532_v17 }
 0x361   :  { %6535 = vmatprep.subr.bf16.mxu1 %v6534_v29 }
 0x362   :  { %6473 = vmatpush1.bf16.msra.mxu0 %v6472_v25  ;;  %v1557_v25 = vrot.slane %v1540_v7, %v8515_v21 }
 0x363   :  { %6539 = vmatprep.subr.bf16.mxu0 %v6538_v34 }
 0x364   :  { %6537 = vmatpush1.bf16.msra.mxu1 %v6536_v30 }
 0x365   :  { %6603 = vmatprep.subr.bf16.mxu1 %v6602_v37 }
 0x3b8   :  { %v1308_v42 = vpop.f32.mrb[6].mxu0  ;;  %v1379_v43 = vpop.f32.mrb[6].mxu1 }
 0x3b9   :  { %v1309_v44 = vadd.f32 %v1308_v42, %v1225_v39  ;;  %v1310_v46 = vpop.f32.mrb[7].mxu0  ;;  %v1381_v47 = vpop.f32.mrb[7].mxu1  ;;  %v1380_v50 = vadd.f32 %v1379_v43, %v1233_v45  ;;  %v2048_v42 = vld [vmem:[#allocation12] sm:$0xff]  ;;  %v2061_v45 = vld [vmem:[#allocation12 + $0x68] sm:$0xff] }
 0x3ba   :  { %v1311_v48 = vadd.f32 %v1310_v46, %v1229_v40  ;;  %v1382_v52 = vadd.f32 %v1381_v47, %v1237_v51  ;;  %v2052_v43 = vld [vmem:[#allocation12 + $0x20] sm:$0xff]  ;;  %v2050_v47 = vld [vmem:[#allocation12 + $0x10] sm:$0xff]  ;;  %v2063_v51 = vld [vmem:[#allocation12 + $0x78] sm:$0xff] }
 0x3bb   :  { %v1384_v41 = vmul.f32 0.5, %v1309_v44  ;;  %v2057_v44 = vld [vmem:[#allocation12 + $0x48] sm:$0xff] }
 0x3bc   :  { %v1388_v49 = vmul.f32 0.5, %v1311_v48  ;;  %v1393_v53 = vmul.f32 0.5, %v1382_v52  ;;  %v2054_v48 = vld [vmem:[#allocation12 + $0x30] sm:$0xff] }
 0x3bd   :  { %7910 = vtanh.f32 %v1384_v41 }
 0x3be   :  { %7912 = vtanh.f32 %v1388_v49  ;;  %v6540_v49 = vpack.c.bf16 %v2052_v43, %v2048_v42  ;;  %v2082_v43 = vld [vmem:[#allocation12 + $0x110] sm:$0xff] }
 0x3bf   :  { %7914 = vtanh.f32 %v1380_v50  ;;  %v2059_v50 = vld [vmem:[#allocation12 + $0x58] sm:$0xff] }
 0x3c0   :  { %7916 = vtanh.f32 %v1393_v53  ;;  %v6542_v53 = vpack.c.bf16 %v2061_v45, %v2057_v44  ;;  %v2086_v44 = vld [vmem:[#allocation12 + $0x130] sm:$0xff] }
 0x3c7   :  { %v7911_v54 = vpop.eup %7910 }
 0x3c8   :  { %v7913_v55 = vpop.eup %7912  ;;  %v1386_v56 = vadd.f32 1.0, %v7911_v54  ;;  %v2060_v54 = vld [vmem:[#allocation12 + $0x60] sm:$0xff] }
 0x3c9   :  { %v1390_v57 = vadd.f32 1.0, %v7913_v55  ;;  %v7915_v60 = vpop.eup %7914  ;;  %v6604_v55 = vpack.c.bf16 %v2054_v48, %v2050_v47  ;;  %v2095_v47 = vld [vmem:[#allocation12 + $0x178] sm:$0xff] }
 0x3ca   :  { %v1387_v58 = vmul.f32 0.5, %v1386_v56  ;;  %v7917_v2 = vpop.eup %7916  ;;  %v2065_v56 = vld [vmem:[#allocation12 + $0x88] sm:$0xff] }
 0x3cb   :  { %v1391_v61 = vmul.f32 0.5, %v1390_v57  ;;  %v1395_v3 = vadd.f32 1.0, %v7917_v2  ;;  %v2069_v57 = vld [vmem:[#allocation12 + $0xa8] sm:$0xff]  ;;  %v2071_v2 = vld [vmem:[#allocation12 + $0xb8] sm:$0xff] }
 0x3cc   :  { %v1399_v62 = vmul.f32 %v7915_v60, %v1387_v58  ;;  %v6606_v58 = vpack.c.bf16 %v2063_v51, %v2059_v50  ;;  %v2058_v60 = vld [vmem:[#allocation12 + $0x50] sm:$0xff]  ;;  %v6620_v50 = vpack.c.bf16 %v2086_v44, %v2082_v43  ;;  %v2097_v51 = vld [vmem:[#allocation12 + $0x188] sm:$0xff]  ;;  %v2120_v43 = vld [vmem:[#allocation12 + $0x240] sm:$0xff] }
 0x3cd   :  { %v1398_v63 = vmul.f32 %v1391_v61, %v8528_v59  ;;  %v1396_v4 = vmul.f32 0.5, %v1395_v3  ;;  %v1545_v59 = vrot.slane %v1540_v7, %v8500_v11  ;;  %v2062_v61 = vld [vmem:[#allocation12 + $0x70] sm:$0xff]  ;;  %v6546_v3 = vpack.c.bf16 %v2069_v57, %v2065_v56  ;;  %v2099_v56 = vld [vmem:[#allocation12 + $0x198] sm:$0xff]  ;;  %v2124_v44 = vld [vmem:[#allocation12 + $0x260] sm:$0xff] }
 0x3ce   :  { %v6608_v7 = vpack.c.bf16 %v2062_v61, %v2058_v60  ;;  %v2103_v57 = vld [vmem:[#allocation12 + $0x1b8] sm:$0xff]  ;;  %v2096_v60 = vld [vmem:[#allocation12 + $0x180] sm:$0xff] }
 0x3cf   :  { %v8554_v1 = vadd.f32 %v1399_v62, %v1398_v63  ;;  %v2067_v63 = vld [vmem:[#allocation12 + $0x98] sm:$0xff]  ;;  %v2100_v61 = vld [vmem:[#allocation12 + $0x1a0] sm:$0xff] }
 0x3d1   :  { %7918 = vtanh.f32 %v8554_v1 }
 0x3db   :  { %v7919_v5 = vpop.eup %7918 }
 0x3dc   :  { %v8557_v6 = vmul.f32 %v7919_v5, %v1396_v4  ;;  %v2064_v4 = vld [vmem:[#allocation12 + $0x80] sm:$0xff] }
 0x3dd   :  { %v2068_v5 = vld [vmem:[#allocation12 + $0xa0] sm:$0xff] }
 0x3de   :  { %1942 = vmatprep.mubr.f32.mxu0 %v8557_v6  ;;  %2013 = vmatprep.mubr.f32.mxu1 %v8557_v6 }
 0x3f8   :  { %v1628_v15 = vpop.f32.mrb[8].mxu0 }
 0x3f9   :  { %v1629_v16 = vadd.f32 %v1628_v15, %v1545_v59  ;;  %v1630_v17 = vpop.f32.mrb[9].mxu0  ;;  %v2073_v59 = vld [vmem:[#allocation12 + $0xc8] sm:$0xff]  ;;  %v2066_v15 = vld [vmem:[#allocation12 + $0x90] sm:$0xff] }
 0x3fa   :  { %v1631_v18 = vadd.f32 %v1630_v17, %v1549_v8  ;;  %v1699_v19 = vpop.f32.mrb[8].mxu1  ;;  %v2077_v8 = vld [vmem:[#allocation12 + $0xe8] sm:$0xff]  ;;  %v6548_v17 = vpack.c.bf16 %v2068_v5, %v2064_v4  ;;  %v2098_v4 = vld [vmem:[#allocation12 + $0x190] sm:$0xff] }
 0x3fb   :  { %v1704_v20 = vmul.f32 0.5, %v1629_v16  ;;  %v1700_v22 = vadd.f32 %v1699_v19, %v1553_v12  ;;  %v1701_v23 = vpop.f32.mrb[9].mxu1  ;;  %v6610_v12 = vpack.c.bf16 %v2071_v2, %v2067_v63  ;;  %v2070_v16 = vld [vmem:[#allocation12 + $0xb0] sm:$0xff]  ;;  %v2079_v19 = vld [vmem:[#allocation12 + $0xf8] sm:$0xff]  ;;  %v2105_v63 = vld [vmem:[#allocation12 + $0x1c8] sm:$0xff] }
 0x3fc   :  { %v1708_v24 = vmul.f32 0.5, %v1631_v18  ;;  %v1702_v26 = vadd.f32 %v1701_v23, %v1557_v25  ;;  %v2075_v18 = vld [vmem:[#allocation12 + $0xd8] sm:$0xff]  ;;  %v2076_v23 = vld [vmem:[#allocation12 + $0xe0] sm:$0xff]  ;;  %v2081_v25 = vld [vmem:[#allocation12 + $0x108] sm:$0xff] }
 0x3fd   :  { %7920 = vtanh.f32 %v1704_v20  ;;  %v6550_v20 = vpack.c.bf16 %v2077_v8, %v2073_v59  ;;  %v2109_v2 = vld [vmem:[#allocation12 + $0x1e8] sm:$0xff]  ;;  %v2102_v5 = vld [vmem:[#allocation12 + $0x1b0] sm:$0xff]  ;;  %v2107_v59 = vld [vmem:[#allocation12 + $0x1d8] sm:$0xff] }
 0x3fe   :  { %7922 = vtanh.f32 %v1708_v24  ;;  %v1713_v27 = vmul.f32 0.5, %v1702_v26  ;;  %v6612_v24 = vpack.c.bf16 %v2070_v16, %v2066_v15  ;;  %v2085_v26 = vld [vmem:[#allocation12 + $0x128] sm:$0xff]  ;;  %v2111_v8 = vld [vmem:[#allocation12 + $0x1f8] sm:$0xff]  ;;  %v2104_v15 = vld [vmem:[#allocation12 + $0x1c0] sm:$0xff] }
 0x3ff   :  { %7924 = vtanh.f32 %v1700_v22  ;;  %v2072_v22 = vld [vmem:[#allocation12 + $0xc0] sm:$0xff] }
 0x400   :  { %7926 = vtanh.f32 %v1713_v27  ;;  %v6614_v27 = vpack.c.bf16 %v2079_v19, %v2075_v18  ;;  %v2108_v16 = vld [vmem:[#allocation12 + $0x1e0] sm:$0xff]  ;;  %v2113_v18 = vld [vmem:[#allocation12 + $0x208] sm:$0xff] }
 0x401   :  { %v2117_v19 = vld [vmem:[#allocation12 + $0x228] sm:$0xff] }
 0x407   :  { %v7921_v28 = vpop.eup %7920 }
 0x408   :  { %v7923_v29 = vpop.eup %7922  ;;  %v1706_v30 = vadd.f32 1.0, %v7921_v28  ;;  %v2074_v28 = vld [vmem:[#allocation12 + $0xd0] sm:$0xff] }
 0x409   :  { %v7925_v31 = vpop.eup %7924  ;;  %v1710_v33 = vadd.f32 1.0, %v7923_v29  ;;  %v2078_v29 = vld [vmem:[#allocation12 + $0xf0] sm:$0xff] }
 0x40a   :  { %v1707_v34 = vmul.f32 0.5, %v1706_v30  ;;  %v7927_v39 = vpop.eup %7926  ;;  %v6552_v30 = vpack.c.bf16 %v2076_v23, %v2072_v22  ;;  %v2106_v22 = vld [vmem:[#allocation12 + $0x1d0] sm:$0xff] }
 0x40b   :  { %v1711_v35 = vmul.f32 0.5, %v1710_v33  ;;  %v1715_v40 = vadd.f32 1.0, %v7927_v39  ;;  %v2087_v33 = vld [vmem:[#allocation12 + $0x138] sm:$0xff]  ;;  %v2089_v39 = vld [vmem:[#allocation12 + $0x148] sm:$0xff]  ;;  %v2110_v23 = vld [vmem:[#allocation12 + $0x1f0] sm:$0xff] }
 0x40c   :  { %v1719_v36 = vmul.f32 %v7925_v31, %v1707_v34  ;;  %v2083_v31 = vld [vmem:[#allocation12 + $0x118] sm:$0xff]  ;;  %v6554_v34 = vpack.c.bf16 %v2085_v26, %v2081_v25 }
 0x40d   :  { %v1718_v37 = vmul.f32 %v1711_v35, %v8543_v32  ;;  %v1716_v46 = vmul.f32 0.5, %v1715_v40  ;;  %v2056_v32 = vld [vmem:[#allocation12 + $0x40] sm:$0xff]  ;;  %v2093_v40 = vld [vmem:[#allocation12 + $0x168] sm:$0xff]  ;;  %v6618_v42 = vpack.c.bf16 %v2087_v33, %v2083_v31  ;;  %v2115_v25 = vld [vmem:[#allocation12 + $0x218] sm:$0xff] }
 0x40e   :  { %v6544_v62 = vpack.c.bf16 %v2060_v54, %v2056_v32  ;;  %v2080_v35 = vld [vmem:[#allocation12 + $0x100] sm:$0xff]  ;;  %v6558_v48 = vpack.c.bf16 %v2093_v40, %v2089_v39  ;;  %v2090_v32 = vld [vmem:[#allocation12 + $0x150] sm:$0xff]  ;;  %v2119_v26 = vld [vmem:[#allocation12 + $0x238] sm:$0xff] }
 0x40f   :  { %v8569_v38 = vadd.f32 %v1719_v36, %v1718_v37  ;;  %v2084_v36 = vld [vmem:[#allocation12 + $0x120] sm:$0xff]  ;;  %v6616_v37 = vpack.c.bf16 %v2078_v29, %v2074_v28  ;;  %v2094_v54 = vld [vmem:[#allocation12 + $0x170] sm:$0xff]  ;;  %v2121_v31 = vld [vmem:[#allocation12 + $0x248] sm:$0xff] }
 0x410   :  { %v6556_v45 = vpack.c.bf16 %v2084_v36, %v2080_v35  ;;  %v2112_v28 = vld [vmem:[#allocation12 + $0x200] sm:$0xff]  ;;  %v2125_v33 = vld [vmem:[#allocation12 + $0x268] sm:$0xff]  ;;  %v2114_v35 = vld [vmem:[#allocation12 + $0x210] sm:$0xff] }
 0x411   :  { %7928 = vtanh.f32 %v8569_v38  ;;  %v2116_v29 = vld [vmem:[#allocation12 + $0x220] sm:$0xff]  ;;  %v2118_v36 = vld [vmem:[#allocation12 + $0x230] sm:$0xff]  ;;  %v2123_v39 = vld [vmem:[#allocation12 + $0x258] sm:$0xff] }
 0x412   :  { %v2127_v40 = vld [vmem:[#allocation12 + $0x278] sm:$0xff] }
 0x41b   :  { %v7929_v41 = vpop.eup %7928 }
 0x41c   :  { %v1722_v52 = vmul.f32 %v7929_v41, %v1716_v46  ;;  %v2091_v46 = vld [vmem:[#allocation12 + $0x158] sm:$0xff]  ;;  %v2088_v41 = vld [vmem:[#allocation12 + $0x140] sm:$0xff] }
 0x41e   :  { %1943 = vmatmul.mubr.f32.vlgmr.msra.gmra.mrb[10].mxu0 %v1722_v52  ;;  %2014 = vmatmul.mubr.f32.vlgmr.msra.gmra.mrb[10].mxu1 %v1722_v52 }
 0x41f   :  { %6541 = vmatpush1.bf16.msra.mxu0 %v6540_v49  ;;  %2262 = vmatprep.mubr.f32.mxu0 %v1722_v52  ;;  %v2092_v49 = vld [vmem:[#allocation12 + $0x160] sm:$0xff] }
 0x420   :  { %2333 = vmatprep.mubr.f32.mxu1 %v1722_v52  ;;  %6543 = vmatprep.subr.bf16.mxu0 %v6542_v53  ;;  %v2101_v52 = vld [vmem:[#allocation12 + $0x1a8] sm:$0xff]  ;;  %v6622_v53 = vpack.c.bf16 %v2095_v47, %v2091_v46 }
 0x421   :  { %6605 = vmatpush1.bf16.msra.mxu1 %v6604_v55  ;;  %v6560_v55 = vpack.c.bf16 %v2092_v49, %v2088_v41  ;;  %v2129_v46 = vld [vmem:[#allocation12 + $0x288] sm:$0xff]  ;;  %v2122_v41 = vld [vmem:[#allocation12 + $0x250] sm:$0xff] }
 0x422   :  { %6607 = vmatprep.subr.bf16.mxu1 %v6606_v58  ;;  %v6562_v58 = vpack.c.bf16 %v2101_v52, %v2097_v51  ;;  %v2133_v47 = vld [vmem:[#allocation12 + $0x2a8] sm:$0xff]  ;;  %v2126_v49 = vld [vmem:[#allocation12 + $0x270] sm:$0xff]  ;;  %v2131_v51 = vld [vmem:[#allocation12 + $0x298] sm:$0xff] }
 0x423   :  { %6545 = vmatpush1.bf16.msra.mxu0 %v6544_v62  ;;  %v6624_v62 = vpack.c.bf16 %v2094_v54, %v2090_v32  ;;  %v2135_v52 = vld [vmem:[#allocation12 + $0x2b8] sm:$0xff]  ;;  %v2128_v32 = vld [vmem:[#allocation12 + $0x280] sm:$0xff] }
 0x424   :  { %6547 = vmatprep.subr.bf16.mxu0 %v6546_v3  ;;  %v6626_v3 = vpack.c.bf16 %v2103_v57, %v2099_v56  ;;  %v2132_v54 = vld [vmem:[#allocation12 + $0x2a0] sm:$0xff]  ;;  %v2137_v56 = vld [vmem:[#allocation12 + $0x2c8] sm:$0xff] }
 0x425   :  { %6609 = vmatpush1.bf16.msra.mxu1 %v6608_v7  ;;  %v6564_v7 = vpack.c.bf16 %v2100_v61, %v2096_v60  ;;  %v2141_v57 = vld [vmem:[#allocation12 + $0x2e8] sm:$0xff]  ;;  %v2130_v60 = vld [vmem:[#allocation12 + $0x290] sm:$0xff] }
 0x426   :  { %6611 = vmatprep.subr.bf16.mxu1 %v6610_v12  ;;  %v6566_v12 = vpack.c.bf16 %v2109_v2, %v2105_v63  ;;  %v2134_v61 = vld [vmem:[#allocation12 + $0x2b0] sm:$0xff]  ;;  %v2139_v63 = vld [vmem:[#allocation12 + $0x2d8] sm:$0xff] }
 0x427   :  { %6549 = vmatpush1.bf16.msra.mxu0 %v6548_v17  ;;  %v6628_v17 = vpack.c.bf16 %v2102_v5, %v2098_v4  ;;  %v2143_v2 = vld [vmem:[#allocation12 + $0x2f8] sm:$0xff]  ;;  %v2136_v4 = vld [vmem:[#allocation12 + $0x2c0] sm:$0xff] }
 0x428   :  { %6551 = vmatprep.subr.bf16.mxu0 %v6550_v20  ;;  %v6630_v20 = vpack.c.bf16 %v2111_v8, %v2107_v59  ;;  %v2140_v5 = vld [vmem:[#allocation12 + $0x2e0] sm:$0xff]  ;;  %v2145_v59 = vld [vmem:[#allocation12 + $0x308] sm:$0xff] }
 0x429   :  { %6613 = vmatpush1.bf16.msra.mxu1 %v6612_v24  ;;  %v6568_v24 = vpack.c.bf16 %v2108_v16, %v2104_v15  ;;  %v2149_v8 = vld [vmem:[#allocation12 + $0x328] sm:$0xff]  ;;  %v2138_v15 = vld [vmem:[#allocation12 + $0x2d0] sm:$0xff] }
 0x42a   :  { %6615 = vmatprep.subr.bf16.mxu1 %v6614_v27  ;;  %v6570_v27 = vpack.c.bf16 %v2117_v19, %v2113_v18  ;;  %v2142_v16 = vld [vmem:[#allocation12 + $0x2f0] sm:$0xff]  ;;  %v2147_v18 = vld [vmem:[#allocation12 + $0x318] sm:$0xff] }
 0x42b   :  { %6553 = vmatpush1.bf16.msra.mxu0 %v6552_v30  ;;  %v6632_v30 = vpack.c.bf16 %v2110_v23, %v2106_v22  ;;  %v2151_v19 = vld [vmem:[#allocation12 + $0x338] sm:$0xff]  ;;  %v2144_v22 = vld [vmem:[#allocation12 + $0x300] sm:$0xff] }
 0x42c   :  { %6555 = vmatprep.subr.bf16.mxu0 %v6554_v34  ;;  %v6634_v34 = vpack.c.bf16 %v2119_v26, %v2115_v25  ;;  %v2148_v23 = vld [vmem:[#allocation12 + $0x320] sm:$0xff]  ;;  %v2153_v25 = vld [vmem:[#allocation12 + $0x348] sm:$0xff] }
 0x42d   :  { %6617 = vmatpush1.bf16.msra.mxu1 %v6616_v37  ;;  %v6572_v37 = vpack.c.bf16 %v2116_v29, %v2112_v28  ;;  %v2157_v26 = vld [vmem:[#allocation12 + $0x368] sm:$0xff]  ;;  %v2146_v28 = vld [vmem:[#allocation12 + $0x310] sm:$0xff] }
 0x42e   :  { %6619 = vmatprep.subr.bf16.mxu1 %v6618_v42  ;;  %v6574_v42 = vpack.c.bf16 %v2125_v33, %v2121_v31  ;;  %v2150_v29 = vld [vmem:[#allocation12 + $0x330] sm:$0xff]  ;;  %v2155_v31 = vld [vmem:[#allocation12 + $0x358] sm:$0xff] }
 0x42f   :  { %6557 = vmatpush1.bf16.msra.mxu0 %v6556_v45  ;;  %v6636_v45 = vpack.c.bf16 %v2118_v36, %v2114_v35  ;;  %v2159_v33 = vld [vmem:[#allocation12 + $0x378] sm:$0xff]  ;;  %v2152_v35 = vld [vmem:[#allocation12 + $0x340] sm:$0xff] }
 0x430   :  { %6559 = vmatprep.subr.bf16.mxu0 %v6558_v48  ;;  %v6638_v48 = vpack.c.bf16 %v2127_v40, %v2123_v39  ;;  %v2156_v36 = vld [vmem:[#allocation12 + $0x360] sm:$0xff]  ;;  %v2161_v39 = vld [vmem:[#allocation12 + $0x388] sm:$0xff] }
 0x431   :  { %6621 = vmatpush1.bf16.msra.mxu1 %v6620_v50  ;;  %v6576_v50 = vpack.c.bf16 %v2124_v44, %v2120_v43  ;;  %v2165_v40 = vld [vmem:[#allocation12 + $0x3a8] sm:$0xff]  ;;  %v2154_v43 = vld [vmem:[#allocation12 + $0x350] sm:$0xff] }
 0x432   :  { %6623 = vmatprep.subr.bf16.mxu1 %v6622_v53  ;;  %v6578_v53 = vpack.c.bf16 %v2133_v47, %v2129_v46  ;;  %v2158_v44 = vld [vmem:[#allocation12 + $0x370] sm:$0xff]  ;;  %v2163_v46 = vld [vmem:[#allocation12 + $0x398] sm:$0xff] }
 0x433   :  { %6561 = vmatpush1.bf16.msra.mxu0 %v6560_v55  ;;  %v6640_v55 = vpack.c.bf16 %v2126_v49, %v2122_v41  ;;  %v2167_v47 = vld [vmem:[#allocation12 + $0x3b8] sm:$0xff]  ;;  %v2160_v41 = vld [vmem:[#allocation12 + $0x380] sm:$0xff] }
 0x434   :  { %6563 = vmatprep.subr.bf16.mxu0 %v6562_v58  ;;  %v6642_v58 = vpack.c.bf16 %v2135_v52, %v2131_v51  ;;  %v2164_v49 = vld [vmem:[#allocation12 + $0x3a0] sm:$0xff]  ;;  %v2169_v51 = vld [vmem:[#allocation12 + $0x3c8] sm:$0xff] }
 0x435   :  { %6625 = vmatpush1.bf16.msra.mxu1 %v6624_v62  ;;  %v6580_v62 = vpack.c.bf16 %v2132_v54, %v2128_v32  ;;  %v2173_v52 = vld [vmem:[#allocation12 + $0x3e8] sm:$0xff]  ;;  %v2162_v32 = vld [vmem:[#allocation12 + $0x390] sm:$0xff] }
 0x436   :  { %6627 = vmatprep.subr.bf16.mxu1 %v6626_v3  ;;  %v6582_v3 = vpack.c.bf16 %v2141_v57, %v2137_v56  ;;  %v2166_v54 = vld [vmem:[#allocation12 + $0x3b0] sm:$0xff]  ;;  %v2171_v56 = vld [vmem:[#allocation12 + $0x3d8] sm:$0xff] }
 0x437   :  { %6565 = vmatpush1.bf16.msra.mxu0 %v6564_v7  ;;  %v6644_v7 = vpack.c.bf16 %v2134_v61, %v2130_v60  ;;  %v2175_v57 = vld [vmem:[#allocation12 + $0x3f8] sm:$0xff]  ;;  %v2168_v60 = vld [vmem:[#allocation12 + $0x3c0] sm:$0xff] }
 0x438   :  { %6567 = vmatprep.subr.bf16.mxu0 %v6566_v12  ;;  %v6646_v12 = vpack.c.bf16 %v2143_v2, %v2139_v63  ;;  %v2172_v61 = vld [vmem:[#allocation12 + $0x3e0] sm:$0xff]  ;;  %v6662_v63 = vpack.c.bf16 %v2175_v57, %v2171_v56  ;;  %v2170_v2 = vld [vmem:[#allocation12 + $0x3d0] sm:$0xff]  ;;  %v2395_v56 = vld [vmem:[#allocation14 + $0xf8] sm:$0xff] }
 0x439   :  { %6629 = vmatpush1.bf16.msra.mxu1 %v6628_v17  ;;  %v6584_v17 = vpack.c.bf16 %v2140_v5, %v2136_v4  ;;  %v6600_v4 = vpack.c.bf16 %v2172_v61, %v2168_v60  ;;  %v2390_v57 = vld [vmem:[#allocation14 + $0xd0] sm:$0xff] }
 0x43a   :  { %6631 = vmatprep.subr.bf16.mxu1 %v6630_v20  ;;  %v6586_v20 = vpack.c.bf16 %v2149_v8, %v2145_v59  ;;  %v2365_v59 = vld [vmem:[#allocation14 + $0x8] sm:$0xff] }
 0x43b   :  { %6569 = vmatpush1.bf16.msra.mxu0 %v6568_v24  ;;  %v6648_v24 = vpack.c.bf16 %v2142_v16, %v2138_v15  ;;  %v2369_v8 = vld [vmem:[#allocation14 + $0x28] sm:$0xff]  ;;  %v2368_v16 = vld [vmem:[#allocation14 + $0x20] sm:$0xff] }
 0x43c   :  { %6571 = vmatprep.subr.bf16.mxu0 %v6570_v27  ;;  %v6650_v27 = vpack.c.bf16 %v2151_v19, %v2147_v18  ;;  %v6666_v15 = vpack.c.bf16 %v2369_v8, %v2365_v59  ;;  %v2371_v18 = vld [vmem:[#allocation14 + $0x38] sm:$0xff] }
 0x43d   :  { %6633 = vmatpush1.bf16.msra.mxu1 %v6632_v30  ;;  %v6588_v30 = vpack.c.bf16 %v2148_v23, %v2144_v22  ;;  %v2366_v22 = vld [vmem:[#allocation14 + $0x10] sm:$0xff]  ;;  %v2403_v59 = vld [vmem:[#allocation14 + $0x138] sm:$0xff] }
 0x43e   :  { %6635 = vmatprep.subr.bf16.mxu1 %v6634_v34  ;;  %v6590_v34 = vpack.c.bf16 %v2157_v26, %v2153_v25  ;;  %v2370_v23 = vld [vmem:[#allocation14 + $0x30] sm:$0xff]  ;;  %v2373_v25 = vld [vmem:[#allocation14 + $0x48] sm:$0xff] }
 0x43f   :  { %6573 = vmatpush1.bf16.msra.mxu0 %v6572_v37  ;;  %v6652_v37 = vpack.c.bf16 %v2150_v29, %v2146_v28  ;;  %v2377_v26 = vld [vmem:[#allocation14 + $0x68] sm:$0xff]  ;;  %v2376_v29 = vld [vmem:[#allocation14 + $0x60] sm:$0xff] }
 0x440   :  { %6575 = vmatprep.subr.bf16.mxu0 %v6574_v42  ;;  %v6654_v42 = vpack.c.bf16 %v2159_v33, %v2155_v31  ;;  %v6670_v28 = vpack.c.bf16 %v2377_v26, %v2373_v25  ;;  %v2379_v31 = vld [vmem:[#allocation14 + $0x78] sm:$0xff]  ;;  %v2408_v25 = vld [vmem:[#allocation14 + $0x160] sm:$0xff]  ;;  %v2406_v26 = vld [vmem:[#allocation14 + $0x150] sm:$0xff] }
 0x441   :  { %6637 = vmatpush1.bf16.msra.mxu1 %v6636_v45  ;;  %v6592_v45 = vpack.c.bf16 %v2156_v36, %v2152_v35  ;;  %v2374_v35 = vld [vmem:[#allocation14 + $0x50] sm:$0xff] }
 0x442   :  { %6639 = vmatprep.subr.bf16.mxu1 %v6638_v48  ;;  %v6594_v48 = vpack.c.bf16 %v2165_v40, %v2161_v39  ;;  %v2378_v36 = vld [vmem:[#allocation14 + $0x70] sm:$0xff]  ;;  %v2385_v40 = vld [vmem:[#allocation14 + $0xa8] sm:$0xff] }
 0x443   :  { %6577 = vmatpush1.bf16.msra.mxu0 %v6576_v50  ;;  %v6656_v50 = vpack.c.bf16 %v2158_v44, %v2154_v43  ;;  %v6736_v39 = vpack.c.bf16 %v2378_v36, %v2374_v35  ;;  %v2384_v43 = vld [vmem:[#allocation14 + $0xa0] sm:$0xff] }
 0x444   :  { %6579 = vmatprep.subr.bf16.mxu0 %v6578_v53  ;;  %v6658_v53 = vpack.c.bf16 %v2167_v47, %v2163_v46  ;;  %v2383_v46 = vld [vmem:[#allocation14 + $0x98] sm:$0xff] }
 0x445   :  { %6641 = vmatpush1.bf16.msra.mxu1 %v6640_v55  ;;  %v6596_v55 = vpack.c.bf16 %v2164_v49, %v2160_v41  ;;  %v2387_v47 = vld [vmem:[#allocation14 + $0xb8] sm:$0xff]  ;;  %v2386_v49 = vld [vmem:[#allocation14 + $0xb0] sm:$0xff] }
 0x446   :  { %6643 = vmatprep.subr.bf16.mxu1 %v6642_v58  ;;  %v6598_v58 = vpack.c.bf16 %v2173_v52, %v2169_v51  ;;  %v6738_v41 = vpack.c.bf16 %v2387_v47, %v2383_v46  ;;  %v2393_v51 = vld [vmem:[#allocation14 + $0xe8] sm:$0xff] }
 0x447   :  { %6581 = vmatpush1.bf16.msra.mxu0 %v6580_v62  ;;  %v6660_v62 = vpack.c.bf16 %v2166_v54, %v2162_v32  ;;  %v2388_v32 = vld [vmem:[#allocation14 + $0xc0] sm:$0xff]  ;;  %v2421_v46 = vld [vmem:[#allocation14 + $0x1c8] sm:$0xff] }
 0x448   :  { %6583 = vmatprep.subr.bf16.mxu0 %v6582_v3  ;;  %v2174_v3 = vld [vmem:[#allocation12 + $0x3f0] sm:$0xff]  ;;  %v2392_v54 = vld [vmem:[#allocation14 + $0xe0] sm:$0xff]  ;;  %v2425_v47 = vld [vmem:[#allocation14 + $0x1e8] sm:$0xff] }
 0x449   :  { %6645 = vmatpush1.bf16.msra.mxu1 %v6644_v7  ;;  %v6664_v5 = vpack.c.bf16 %v2174_v3, %v2170_v2  ;;  %v2044_v7 = vld [vmem:[#allocation6 + $0x18] sm:$0xff]  ;;  %v6680_v60 = vpack.c.bf16 %v2392_v54, %v2388_v32  ;;  %v2396_v2 = vld [vmem:[#allocation14 + $0x100] sm:$0xff]  ;;  %v2426_v32 = vld [vmem:[#allocation14 + $0x1f0] sm:$0xff] }
 0x44a   :  { %6647 = vmatprep.subr.bf16.mxu1 %v6646_v12  ;;  %v2364_v12 = vld [vmem:[#allocation14] sm:$0xff] }
 0x44b   :  { %6585 = vmatpush1.bf16.msra.mxu0 %v6584_v17  ;;  %v2367_v17 = vld [vmem:[#allocation14 + $0x18] sm:$0xff]  ;;  %v6668_v19 = vpack.c.bf16 %v2368_v16, %v2364_v12  ;;  %v2398_v12 = vld [vmem:[#allocation14 + $0x110] sm:$0xff]  ;;  %v2405_v16 = vld [vmem:[#allocation14 + $0x148] sm:$0xff] }
 0x44c   :  { %6587 = vmatprep.subr.bf16.mxu0 %v6586_v20  ;;  %v6730_v20 = vpack.c.bf16 %v2371_v18, %v2367_v17  ;;  %v2409_v17 = vld [vmem:[#allocation14 + $0x168] sm:$0xff] }
 0x44d   :  { %6649 = vmatpush1.bf16.msra.mxu1 %v6648_v24  ;;  %v6732_v24 = vpack.c.bf16 %v2370_v23, %v2366_v22  ;;  %v6686_v23 = vpack.c.bf16 %v2409_v17, %v2405_v16  ;;  %v2440_v16 = vld [vmem:[#allocation14 + $0x260] sm:$0xff]  ;;  %v2439_v17 = vld [vmem:[#allocation14 + $0x258] sm:$0xff] }
 0x44e   :  { %6651 = vmatprep.subr.bf16.mxu1 %v6650_v27  ;;  %v2372_v27 = vld [vmem:[#allocation14 + $0x40] sm:$0xff] }
 0x44f   :  { %6589 = vmatpush1.bf16.msra.mxu0 %v6588_v30  ;;  %v2375_v30 = vld [vmem:[#allocation14 + $0x58] sm:$0xff]  ;;  %v6672_v33 = vpack.c.bf16 %v2376_v29, %v2372_v27  ;;  %v2413_v29 = vld [vmem:[#allocation14 + $0x188] sm:$0xff] }
 0x450   :  { %6591 = vmatprep.subr.bf16.mxu0 %v6590_v34  ;;  %v6734_v34 = vpack.c.bf16 %v2379_v31, %v2375_v30  ;;  %v2417_v30 = vld [vmem:[#allocation14 + $0x1a8] sm:$0xff]  ;;  %v2415_v31 = vld [vmem:[#allocation14 + $0x198] sm:$0xff] }
 0x451   :  { %6653 = vmatpush1.bf16.msra.mxu1 %v6652_v37  ;;  %v2381_v37 = vld [vmem:[#allocation14 + $0x88] sm:$0xff]  ;;  %v6690_v36 = vpack.c.bf16 %v2417_v30, %v2413_v29  ;;  %v2448_v29 = vld [vmem:[#allocation14 + $0x2a0] sm:$0xff]  ;;  %v2447_v30 = vld [vmem:[#allocation14 + $0x298] sm:$0xff] }
 0x452   :  { %6655 = vmatprep.subr.bf16.mxu1 %v6654_v42  ;;  %v2380_v42 = vld [vmem:[#allocation14 + $0x80] sm:$0xff]  ;;  %v6674_v44 = vpack.c.bf16 %v2385_v40, %v2381_v37 }
 0x453   :  { %6593 = vmatpush1.bf16.msra.mxu0 %v6592_v45  ;;  %v6676_v45 = vpack.c.bf16 %v2384_v43, %v2380_v42  ;;  %v2412_v37 = vld [vmem:[#allocation14 + $0x180] sm:$0xff]  ;;  %v2414_v42 = vld [vmem:[#allocation14 + $0x190] sm:$0xff] }
 0x454   :  { %6595 = vmatprep.subr.bf16.mxu0 %v6594_v48  ;;  %v2382_v48 = vld [vmem:[#allocation14 + $0x90] sm:$0xff] }
 0x455   :  { %6657 = vmatpush1.bf16.msra.mxu1 %v6656_v50  ;;  %v2389_v50 = vld [vmem:[#allocation14 + $0xc8] sm:$0xff]  ;;  %v6740_v52 = vpack.c.bf16 %v2386_v49, %v2382_v48  ;;  %v2418_v43 = vld [vmem:[#allocation14 + $0x1b0] sm:$0xff]  ;;  %v6694_v48 = vpack.c.bf16 %v2425_v47, %v2421_v46  ;;  %v2424_v49 = vld [vmem:[#allocation14 + $0x1e0] sm:$0xff] }
 0x456   :  { %6659 = vmatprep.subr.bf16.mxu1 %v6658_v53  ;;  %v6678_v53 = vpack.c.bf16 %v2393_v51, %v2389_v50  ;;  %v2423_v50 = vld [vmem:[#allocation14 + $0x1d8] sm:$0xff] }
 0x457   :  { %6597 = vmatpush1.bf16.msra.mxu0 %v6596_v55  ;;  %v2391_v55 = vld [vmem:[#allocation14 + $0xd8] sm:$0xff] }
 0x458   :  { %6599 = vmatprep.subr.bf16.mxu0 %v6598_v58  ;;  %v2394_v58 = vld [vmem:[#allocation14 + $0xf0] sm:$0xff]  ;;  %v6742_v61 = vpack.c.bf16 %v2395_v56, %v2391_v55  ;;  %v2429_v56 = vld [vmem:[#allocation14 + $0x208] sm:$0xff]  ;;  %v2459_v47 = vld [vmem:[#allocation14 + $0x2f8] sm:$0xff] }
 0x459   :  { %6661 = vmatpush1.bf16.msra.mxu1 %v6660_v62  ;;  %v2397_v62 = vld [vmem:[#allocation14 + $0x108] sm:$0xff]  ;;  %v6744_v3 = vpack.c.bf16 %v2394_v58, %v2390_v57 }
 0x45a   :  { %6663 = vmatprep.subr.bf16.mxu1 %v6662_v63  ;;  %v2401_v63 = vld [vmem:[#allocation14 + $0x128] sm:$0xff] }
 0x45b   :  { %6601 = vmatpush1.bf16.msra.mxu0 %v6600_v4  ;;  %v6682_v4 = vpack.c.bf16 %v2401_v63, %v2397_v62  ;;  %v2433_v57 = vld [vmem:[#allocation14 + $0x228] sm:$0xff]  ;;  %v2431_v62 = vld [vmem:[#allocation14 + $0x218] sm:$0xff] }
 0x45c   :  { %6667 = vmatprep.subr.bf16.mxu0 %v6666_v15  ;;  %v2402_v15 = vld [vmem:[#allocation14 + $0x130] sm:$0xff]  ;;  %v6698_v58 = vpack.c.bf16 %v2433_v57, %v2429_v56  ;;  %v2467_v57 = vld [vmem:[#allocation14 + $0x338] sm:$0xff] }
 0x45d   :  { %6665 = vmatpush1.bf16.msra.mxu1 %v6664_v5  ;;  %v2400_v5 = vld [vmem:[#allocation14 + $0x120] sm:$0xff]  ;;  %v6748_v22 = vpack.c.bf16 %v2402_v15, %v2398_v12 }
 0x45e   :  { %2263 = vmatmul.mubr.f32.vlgmr.msra.gmra.mrb[12].mxu0 %v2044_v7  ;;  %6731 = vmatprep.subr.bf16.mxu1 %v6730_v20  ;;  %v6684_v18 = vpack.c.bf16 %v2400_v5, %v2396_v2  ;;  %v2411_v20 = vld [vmem:[#allocation14 + $0x178] sm:$0xff]  ;;  %v2436_v15 = vld [vmem:[#allocation14 + $0x240] sm:$0xff] }
 0x45f   :  { %6669 = vmatpush1.bf16.msra.mxu0 %v6668_v19  ;;  %v2407_v19 = vld [vmem:[#allocation14 + $0x158] sm:$0xff] }
 0x460   :  { %2334 = vmatmul.mubr.f32.vlgmr.msra.gmra.mrb[12].mxu1 %v2044_v7  ;;  %6671 = vmatprep.subr.bf16.mxu0 %v6670_v28  ;;  %v2399_v7 = vld [vmem:[#allocation14 + $0x118] sm:$0xff]  ;;  %v6750_v27 = vpack.c.bf16 %v2411_v20, %v2407_v19  ;;  %v2410_v28 = vld [vmem:[#allocation14 + $0x170] sm:$0xff] }
 0x461   :  { %6733 = vmatpush1.bf16.msra.mxu1 %v6732_v24  ;;  %v6746_v8 = vpack.c.bf16 %v2403_v59, %v2399_v7  ;;  %v2404_v24 = vld [vmem:[#allocation14 + $0x140] sm:$0xff]  ;;  %v6752_v35 = vpack.c.bf16 %v2410_v28, %v2406_v26  ;;  %v2435_v2 = vld [vmem:[#allocation14 + $0x238] sm:$0xff]  ;;  %v2437_v59 = vld [vmem:[#allocation14 + $0x248] sm:$0xff] }
 0x462   :  { %6735 = vmatprep.subr.bf16.mxu1 %v6734_v34  ;;  %v6688_v34 = vpack.c.bf16 %v2408_v25, %v2404_v24  ;;  %v6762_v5 = vpack.c.bf16 %v2435_v2, %v2431_v62  ;;  %v2443_v19 = vld [vmem:[#allocation14 + $0x278] sm:$0xff]  ;;  %v2438_v20 = vld [vmem:[#allocation14 + $0x250] sm:$0xff]  ;;  %v2445_v25 = vld [vmem:[#allocation14 + $0x288] sm:$0xff] }
 0x463   :  { %6673 = vmatpush1.bf16.msra.mxu0 %v6672_v33  ;;  %v2419_v33 = vld [vmem:[#allocation14 + $0x1b8] sm:$0xff]  ;;  %v2449_v26 = vld [vmem:[#allocation14 + $0x2a8] sm:$0xff]  ;;  %v2444_v28 = vld [vmem:[#allocation14 + $0x280] sm:$0xff] }
 0x464   :  { %6675 = vmatprep.subr.bf16.mxu0 %v6674_v44  ;;  %v6754_v40 = vpack.c.bf16 %v2419_v33, %v2415_v31  ;;  %v6708_v31 = vpack.c.bf16 %v2448_v29, %v2444_v28  ;;  %v2451_v33 = vld [vmem:[#allocation14 + $0x2b8] sm:$0xff]  ;;  %v2473_v2 = vld [vmem:[#allocation14 + $0x368] sm:$0xff]  ;;  %v2482_v28 = vld [vmem:[#allocation14 + $0x3b0] sm:$0xff] }
 0x465   :  { %6737 = vmatpush1.bf16.msra.mxu1 %v6736_v39  ;;  %v2416_v39 = vld [vmem:[#allocation14 + $0x1a0] sm:$0xff] }
 0x466   :  { %6739 = vmatprep.subr.bf16.mxu1 %v6738_v41  ;;  %v6692_v44 = vpack.c.bf16 %v2416_v39, %v2412_v37  ;;  %v2420_v41 = vld [vmem:[#allocation14 + $0x1c0] sm:$0xff]  ;;  %v2453_v39 = vld [vmem:[#allocation14 + $0x2c8] sm:$0xff] }
 0x467   :  { %6677 = vmatpush1.bf16.msra.mxu0 %v6676_v45  ;;  %v6756_v45 = vpack.c.bf16 %v2418_v43, %v2414_v42  ;;  %v6696_v51 = vpack.c.bf16 %v2424_v49, %v2420_v41  ;;  %v2452_v43 = vld [vmem:[#allocation14 + $0x2c0] sm:$0xff]  ;;  %v2458_v41 = vld [vmem:[#allocation14 + $0x2f0] sm:$0xff] }
 0x468   :  { %6679 = vmatprep.subr.bf16.mxu0 %v6678_v53  ;;  %v2422_v53 = vld [vmem:[#allocation14 + $0x1d0] sm:$0xff] }
 0x469   :  { %6741 = vmatpush1.bf16.msra.mxu1 %v6740_v52  ;;  %v2427_v52 = vld [vmem:[#allocation14 + $0x1f8] sm:$0xff]  ;;  %v6760_v55 = vpack.c.bf16 %v2426_v32, %v2422_v53  ;;  %v2460_v32 = vld [vmem:[#allocation14 + $0x300] sm:$0xff] }
 0x46a   :  { %6743 = vmatprep.subr.bf16.mxu1 %v6742_v61  ;;  %v6758_v54 = vpack.c.bf16 %v2427_v52, %v2423_v50  ;;  %v2432_v61 = vld [vmem:[#allocation14 + $0x220] sm:$0xff]  ;;  %v2465_v52 = vld [vmem:[#allocation14 + $0x328] sm:$0xff] }
 0x46b   :  { %6681 = vmatpush1.bf16.msra.mxu0 %v6680_v60  ;;  %v2428_v60 = vld [vmem:[#allocation14 + $0x200] sm:$0xff] }
 0x46c   :  { %6683 = vmatprep.subr.bf16.mxu0 %v6682_v4  ;;  %v6700_v63 = vpack.c.bf16 %v2432_v61, %v2428_v60  ;;  %v2434_v4 = vld [vmem:[#allocation14 + $0x230] sm:$0xff] }
 0x46d   :  { %6745 = vmatpush1.bf16.msra.mxu1 %v6744_v3  ;;  %v2430_v3 = vld [vmem:[#allocation14 + $0x210] sm:$0xff] }
 0x46e   :  { %6747 = vmatprep.subr.bf16.mxu1 %v6746_v8  ;;  %v6764_v7 = vpack.c.bf16 %v2434_v4, %v2430_v3  ;;  %v2441_v8 = vld [vmem:[#allocation14 + $0x268] sm:$0xff]  ;;  %v2466_v60 = vld [vmem:[#allocation14 + $0x330] sm:$0xff]  ;;  %v2468_v4 = vld [vmem:[#allocation14 + $0x340] sm:$0xff] }
 0x46f   :  { %6685 = vmatpush1.bf16.msra.mxu0 %v6684_v18  ;;  %v6702_v12 = vpack.c.bf16 %v2441_v8, %v2437_v59  ;;  %v6704_v18 = vpack.c.bf16 %v2440_v16, %v2436_v15  ;;  %v2475_v8 = vld [vmem:[#allocation14 + $0x378] sm:$0xff]  ;;  %v2474_v15 = vld [vmem:[#allocation14 + $0x370] sm:$0xff] }
 0x470   :  { %6687 = vmatprep.subr.bf16.mxu0 %v6686_v23  ;;  %v6766_v23 = vpack.c.bf16 %v2443_v19, %v2439_v17  ;;  %v2481_v19 = vld [vmem:[#allocation14 + $0x3a8] sm:$0xff] }
 0x471   :  { %6749 = vmatpush1.bf16.msra.mxu1 %v6748_v22  ;;  %v2442_v22 = vld [vmem:[#allocation14 + $0x270] sm:$0xff] }
 0x472   :  { %6751 = vmatprep.subr.bf16.mxu1 %v6750_v27  ;;  %v6768_v24 = vpack.c.bf16 %v2442_v22, %v2438_v20  ;;  %v6706_v27 = vpack.c.bf16 %v2449_v26, %v2445_v25  ;;  %v2476_v22 = vld [vmem:[#allocation14 + $0x380] sm:$0xff]  ;;  %v2483_v26 = vld [vmem:[#allocation14 + $0x3b8] sm:$0xff] }
 0x473   :  { %6689 = vmatpush1.bf16.msra.mxu0 %v6688_v34  ;;  %v2446_v34 = vld [vmem:[#allocation14 + $0x290] sm:$0xff] }
 0x474   :  { %6691 = vmatprep.subr.bf16.mxu0 %v6690_v36  ;;  %v6770_v36 = vpack.c.bf16 %v2451_v33, %v2447_v30  ;;  %v2489_v33 = vld [vmem:[#allocation14 + $0x3e8] sm:$0xff] }
 0x475   :  { %6753 = vmatpush1.bf16.msra.mxu1 %v6752_v35  ;;  %v2450_v35 = vld [vmem:[#allocation14 + $0x2b0] sm:$0xff] }
 0x476   :  { %6755 = vmatprep.subr.bf16.mxu1 %v6754_v40  ;;  %v6772_v37 = vpack.c.bf16 %v2450_v35, %v2446_v34  ;;  %v2457_v40 = vld [vmem:[#allocation14 + $0x2e8] sm:$0xff]  ;;  %v2484_v35 = vld [vmem:[#allocation14 + $0x3c0] sm:$0xff] }
 0x477   :  { %6693 = vmatpush1.bf16.msra.mxu0 %v6692_v44  ;;  %v6710_v42 = vpack.c.bf16 %v2457_v40, %v2453_v39  ;;  %v2456_v44 = vld [vmem:[#allocation14 + $0x2e0] sm:$0xff]  ;;  %v2491_v40 = vld [vmem:[#allocation14 + $0x3f8] sm:$0xff] }
 0x478   :  { %6695 = vmatprep.subr.bf16.mxu0 %v6694_v48  ;;  %v6712_v46 = vpack.c.bf16 %v2456_v44, %v2452_v43  ;;  %v2454_v48 = vld [vmem:[#allocation14 + $0x2d0] sm:$0xff] }
 0x479   :  { %6757 = vmatpush1.bf16.msra.mxu1 %v6756_v45  ;;  %v2455_v45 = vld [vmem:[#allocation14 + $0x2d8] sm:$0xff]  ;;  %v6776_v50 = vpack.c.bf16 %v2458_v41, %v2454_v48  ;;  %v2490_v43 = vld [vmem:[#allocation14 + $0x3f0] sm:$0xff] }
 0x47a   :  { %6759 = vmatprep.subr.bf16.mxu1 %v6758_v54  ;;  %v6774_v49 = vpack.c.bf16 %v2459_v47, %v2455_v45  ;;  %v2464_v54 = vld [vmem:[#allocation14 + $0x320] sm:$0xff]  ;;  %v2689_v47 = vld [vmem:[#allocation12 + $0x28] sm:$0xff]  ;;  %v2687_v41 = vld [vmem:[#allocation12 + $0x18] sm:$0xff] }
 0x47b   :  { %6697 = vmatpush1.bf16.msra.mxu0 %v6696_v51  ;;  %v2461_v51 = vld [vmem:[#allocation14 + $0x308] sm:$0xff]  ;;  %v6716_v56 = vpack.c.bf16 %v2464_v54, %v2460_v32 }
 0x47c   :  { %6699 = vmatprep.subr.bf16.mxu0 %v6698_v58  ;;  %v6714_v53 = vpack.c.bf16 %v2465_v52, %v2461_v51  ;;  %v2462_v58 = vld [vmem:[#allocation14 + $0x310] sm:$0xff]  ;;  %v1856_v51 = vld [vmem:[%s8952_s6] sm:$0xf] }
 0x47d   :  { %6761 = vmatpush1.bf16.msra.mxu1 %v6760_v55  ;;  %v2463_v55 = vld [vmem:[#allocation14 + $0x318] sm:$0xff]  ;;  %v6780_v62 = vpack.c.bf16 %v2466_v60, %v2462_v58  ;;  %v1861_v52 = vrot.slane %v1856_v51, %v8500_v11 }
 0x47e   :  { %6763 = vmatprep.subr.bf16.mxu1 %v6762_v5  ;;  %v6778_v61 = vpack.c.bf16 %v2467_v57, %v2463_v55  ;;  %v2472_v5 = vld [vmem:[#allocation14 + $0x360] sm:$0xff] }
 0x47f   :  { %6701 = vmatpush1.bf16.msra.mxu0 %v6700_v63  ;;  %v2469_v63 = vld [vmem:[#allocation14 + $0x348] sm:$0xff]  ;;  %v6720_v59 = vpack.c.bf16 %v2472_v5, %v2468_v4 }
 0x480   :  { %6703 = vmatprep.subr.bf16.mxu0 %v6702_v12  ;;  %v6718_v3 = vpack.c.bf16 %v2473_v2, %v2469_v63  ;;  %v2470_v12 = vld [vmem:[#allocation14 + $0x350] sm:$0xff]  ;;  %v1873_v2 = vrot.slane %v1856_v51, %v8515_v21 }
 0x481   :  { %6765 = vmatpush1.bf16.msra.mxu1 %v6764_v7  ;;  %v2471_v7 = vld [vmem:[#allocation14 + $0x358] sm:$0xff]  ;;  %v6784_v17 = vpack.c.bf16 %v2474_v15, %v2470_v12 }
 0x482   :  { %6767 = vmatprep.subr.bf16.mxu1 %v6766_v23  ;;  %v6782_v16 = vpack.c.bf16 %v2475_v8, %v2471_v7  ;;  %v2480_v23 = vld [vmem:[#allocation14 + $0x3a0] sm:$0xff] }
 0x483   :  { %6705 = vmatpush1.bf16.msra.mxu0 %v6704_v18  ;;  %v2477_v18 = vld [vmem:[#allocation14 + $0x388] sm:$0xff]  ;;  %v6724_v25 = vpack.c.bf16 %v2480_v23, %v2476_v22 }
 0x484   :  { %6707 = vmatprep.subr.bf16.mxu0 %v6706_v27  ;;  %v6722_v20 = vpack.c.bf16 %v2481_v19, %v2477_v18  ;;  %v2478_v27 = vld [vmem:[#allocation14 + $0x390] sm:$0xff] }
 0x485   :  { %6769 = vmatpush1.bf16.msra.mxu1 %v6768_v24  ;;  %v2479_v24 = vld [vmem:[#allocation14 + $0x398] sm:$0xff]  ;;  %v6788_v30 = vpack.c.bf16 %v2482_v28, %v2478_v27 }
 0x486   :  { %6771 = vmatprep.subr.bf16.mxu1 %v6770_v36  ;;  %v6786_v29 = vpack.c.bf16 %v2483_v26, %v2479_v24  ;;  %v2488_v36 = vld [vmem:[#allocation14 + $0x3e0] sm:$0xff] }
 0x487   :  { %6709 = vmatpush1.bf16.msra.mxu0 %v6708_v31  ;;  %v2485_v31 = vld [vmem:[#allocation14 + $0x3c8] sm:$0xff]  ;;  %v6728_v39 = vpack.c.bf16 %v2488_v36, %v2484_v35  ;;  %v2176_v26 = vld [vmem:[%s8950_s4] sm:$0xf] }
 0x488   :  { %6711 = vmatprep.subr.bf16.mxu0 %v6710_v42  ;;  %v6726_v34 = vpack.c.bf16 %v2489_v33, %v2485_v31  ;;  %v2486_v42 = vld [vmem:[#allocation14 + $0x3d0] sm:$0xff]  ;;  %v2185_v27 = vrot.slane %v2176_v26, %v8506_v13  ;;  %v2189_v28 = vrot.slane %v2176_v26, %v8509_v14 }
 0x489   :  { %6773 = vmatpush1.bf16.msra.mxu1 %v6772_v37  ;;  %v2487_v37 = vld [vmem:[#allocation14 + $0x3d8] sm:$0xff]  ;;  %v6792_v45 = vpack.c.bf16 %v2490_v43, %v2486_v42 }
 0x48a   :  { %6775 = vmatprep.subr.bf16.mxu1 %v6774_v49  ;;  %v6790_v44 = vpack.c.bf16 %v2491_v40, %v2487_v37  ;;  %v2691_v49 = vld [vmem:[#allocation12 + $0x38] sm:$0xff]  ;;  %v2193_v40 = vrot.slane %v2176_v26, %v8515_v21 }
 0x48b   :  { %6713 = vmatpush1.bf16.msra.mxu0 %v6712_v46  ;;  %v2685_v46 = vld [vmem:[#allocation12 + $0x8] sm:$0xff] }
 0x48c   :  { %6715 = vmatprep.subr.bf16.mxu0 %v6714_v53  ;;  %v6794_v48 = vpack.c.bf16 %v2689_v47, %v2685_v46  ;;  %v1865_v53 = vrot.slane %v1856_v51, %v8506_v13 }
 0x48d   :  { %6777 = vmatpush1.bf16.msra.mxu1 %v6776_v50  ;;  %v6858_v50 = vpack.c.bf16 %v2691_v49, %v2687_v41 }
 0x48e   :  { %6779 = vmatprep.subr.bf16.mxu1 %v6778_v61 }
 0x48f   :  { %6717 = vmatpush1.bf16.msra.mxu0 %v6716_v56  ;;  %v1869_v56 = vrot.slane %v1856_v51, %v8509_v14 }
 0x490   :  { %6719 = vmatprep.subr.bf16.mxu0 %v6718_v3 }
 0x491   :  { %6781 = vmatpush1.bf16.msra.mxu1 %v6780_v62 }
 0x492   :  { %6783 = vmatprep.subr.bf16.mxu1 %v6782_v16 }
 0x493   :  { %6721 = vmatpush1.bf16.msra.mxu0 %v6720_v59 }
 0x494   :  { %6723 = vmatprep.subr.bf16.mxu0 %v6722_v20 }
 0x495   :  { %6785 = vmatpush1.bf16.msra.mxu1 %v6784_v17 }
 0x496   :  { %6787 = vmatprep.subr.bf16.mxu1 %v6786_v29 }
 0x497   :  { %6725 = vmatpush1.bf16.msra.mxu0 %v6724_v25 }
 0x498   :  { %6727 = vmatprep.subr.bf16.mxu0 %v6726_v34 }
 0x499   :  { %6789 = vmatpush1.bf16.msra.mxu1 %v6788_v30 }
 0x49a   :  { %6791 = vmatprep.subr.bf16.mxu1 %v6790_v44 }
 0x49b   :  { %6729 = vmatpush1.bf16.msra.mxu0 %v6728_v39 }
 0x49c   :  { %6795 = vmatprep.subr.bf16.mxu0 %v6794_v48 }
 0x49d   :  { %6793 = vmatpush1.bf16.msra.mxu1 %v6792_v45 }
 0x49e   :  { %6859 = vmatprep.subr.bf16.mxu1 %v6858_v50 }
 0x4f1   :  { %v1944_v32 = vpop.f32.mrb[10].mxu0  ;;  %v2015_v54 = vpop.f32.mrb[10].mxu1 }
 0x4f2   :  { %v1945_v55 = vadd.f32 %v1944_v32, %v1861_v52  ;;  %v1946_v57 = vpop.f32.mrb[11].mxu0  ;;  %v2017_v58 = vpop.f32.mrb[11].mxu1  ;;  %v2016_v63 = vadd.f32 %v2015_v54, %v1869_v56  ;;  %v2684_v54 = vld [vmem:[#allocation12] sm:$0xff]  ;;  %v2693_v56 = vld [vmem:[#allocation12 + $0x48] sm:$0xff] }
 0x4f3   :  { %v1947_v60 = vadd.f32 %v1946_v57, %v1865_v53  ;;  %v2018_v3 = vadd.f32 %v2017_v58, %v1873_v2  ;;  %v2697_v57 = vld [vmem:[#allocation12 + $0x68] sm:$0xff]  ;;  %v2695_v2 = vld [vmem:[#allocation12 + $0x58] sm:$0xff] }
 0x4f4   :  { %v2020_v61 = vmul.f32 0.5, %v1945_v55  ;;  %v2688_v55 = vld [vmem:[#allocation12 + $0x20] sm:$0xff] }
 0x4f5   :  { %v2024_v62 = vmul.f32 0.5, %v1947_v60  ;;  %v2029_v4 = vmul.f32 0.5, %v2018_v3  ;;  %v2686_v60 = vld [vmem:[#allocation12 + $0x10] sm:$0xff]  ;;  %v2699_v3 = vld [vmem:[#allocation12 + $0x78] sm:$0xff] }
 0x4f6   :  { %7930 = vtanh.f32 %v2020_v61  ;;  %v2690_v61 = vld [vmem:[#allocation12 + $0x30] sm:$0xff] }
 0x4f7   :  { %7932 = vtanh.f32 %v2024_v62 }
 0x4f8   :  { %7934 = vtanh.f32 %v2016_v63  ;;  %v6796_v63 = vpack.c.bf16 %v2688_v55, %v2684_v54  ;;  %v2729_v54 = vld [vmem:[#allocation12 + $0x168] sm:$0xff] }
 0x4f9   :  { %7936 = vtanh.f32 %v2029_v4 }
 0x500   :  { %v7931_v5 = vpop.eup %7930 }
 0x501   :  { %v7933_v7 = vpop.eup %7932  ;;  %v2022_v59 = vadd.f32 1.0, %v7931_v5  ;;  %v6798_v5 = vpack.c.bf16 %v2697_v57, %v2693_v56  ;;  %v2718_v56 = vld [vmem:[#allocation12 + $0x110] sm:$0xff] }
 0x502   :  { %v2026_v8 = vadd.f32 1.0, %v7933_v7  ;;  %v7935_v15 = vpop.eup %7934  ;;  %v2696_v7 = vld [vmem:[#allocation12 + $0x60] sm:$0xff]  ;;  %v2722_v57 = vld [vmem:[#allocation12 + $0x130] sm:$0xff] }
 0x503   :  { %v2023_v12 = vmul.f32 0.5, %v2022_v59  ;;  %v7937_v20 = vpop.eup %7936  ;;  %v6860_v59 = vpack.c.bf16 %v2690_v61, %v2686_v60  ;;  %v2727_v60 = vld [vmem:[#allocation12 + $0x158] sm:$0xff] }
 0x504   :  { %v2027_v16 = vmul.f32 0.5, %v2026_v8  ;;  %v2031_v22 = vadd.f32 1.0, %v7937_v20  ;;  %v2701_v8 = vld [vmem:[#allocation12 + $0x88] sm:$0xff]  ;;  %v2703_v20 = vld [vmem:[#allocation12 + $0x98] sm:$0xff] }
 0x505   :  { %v2035_v17 = vmul.f32 %v7935_v15, %v2023_v12  ;;  %v2705_v12 = vld [vmem:[#allocation12 + $0xa8] sm:$0xff]  ;;  %v6862_v15 = vpack.c.bf16 %v2699_v3, %v2695_v2  ;;  %v2731_v61 = vld [vmem:[#allocation12 + $0x178] sm:$0xff]  ;;  %v2728_v2 = vld [vmem:[#allocation12 + $0x160] sm:$0xff]  ;;  %v6876_v3 = vpack.c.bf16 %v2722_v57, %v2718_v56 }
 0x506   :  { %v2034_v18 = vmul.f32 %v2027_v16, %v8554_v1  ;;  %v2032_v23 = vmul.f32 0.5, %v2031_v22  ;;  %v2181_v1 = vrot.slane %v2176_v26, %v8500_v11  ;;  %v2694_v16 = vld [vmem:[#allocation12 + $0x50] sm:$0xff]  ;;  %v2707_v22 = vld [vmem:[#allocation12 + $0xb8] sm:$0xff]  ;;  %v2704_v26 = vld [vmem:[#allocation12 + $0xa0] sm:$0xff] }
 0x507   :  { %v2756_v57 = vld [vmem:[#allocation12 + $0x240] sm:$0xff] }
 0x508   :  { %v8580_v19 = vadd.f32 %v2035_v17, %v2034_v18  ;;  %v2698_v17 = vld [vmem:[#allocation12 + $0x70] sm:$0xff] }
 0x50a   :  { %7938 = vtanh.f32 %v8580_v19 }
 0x514   :  { %v7939_v24 = vpop.eup %7938 }
 0x515   :  { %v8583_v25 = vmul.f32 %v7939_v24, %v2032_v23  ;;  %v6802_v23 = vpack.c.bf16 %v2705_v12, %v2701_v8  ;;  %v2700_v24 = vld [vmem:[#allocation12 + $0x80] sm:$0xff]  ;;  %v2735_v12 = vld [vmem:[#allocation12 + $0x198] sm:$0xff] }
 0x517   :  { %2578 = vmatprep.mubr.f32.mxu0 %v8583_v25  ;;  %2649 = vmatprep.mubr.f32.mxu1 %v8583_v25 }
 0x531   :  { %v2264_v29 = vpop.f32.mrb[12].mxu0 }
 0x532   :  { %v2265_v30 = vadd.f32 %v2264_v29, %v2181_v1  ;;  %v2266_v31 = vpop.f32.mrb[13].mxu0  ;;  %v6864_v1 = vpack.c.bf16 %v2698_v17, %v2694_v16  ;;  %v6866_v29 = vpack.c.bf16 %v2707_v22, %v2703_v20  ;;  %v2732_v17 = vld [vmem:[#allocation12 + $0x180] sm:$0xff]  ;;  %v2741_v22 = vld [vmem:[#allocation12 + $0x1c8] sm:$0xff] }
 0x533   :  { %v2267_v33 = vadd.f32 %v2266_v31, %v2185_v27  ;;  %v2335_v34 = vpop.f32.mrb[12].mxu1  ;;  %v2709_v27 = vld [vmem:[#allocation12 + $0xc8] sm:$0xff]  ;;  %v2706_v31 = vld [vmem:[#allocation12 + $0xb0] sm:$0xff] }
 0x534   :  { %v2340_v35 = vmul.f32 0.5, %v2265_v30  ;;  %v2336_v36 = vadd.f32 %v2335_v34, %v2189_v28  ;;  %v2337_v37 = vpop.f32.mrb[13].mxu1  ;;  %v2713_v28 = vld [vmem:[#allocation12 + $0xe8] sm:$0xff]  ;;  %v2702_v30 = vld [vmem:[#allocation12 + $0x90] sm:$0xff]  ;;  %v2711_v34 = vld [vmem:[#allocation12 + $0xd8] sm:$0xff] }
 0x535   :  { %v2344_v39 = vmul.f32 0.5, %v2267_v33  ;;  %v2338_v42 = vadd.f32 %v2337_v37, %v2193_v40  ;;  %v6804_v33 = vpack.c.bf16 %v2704_v26, %v2700_v24  ;;  %v2708_v37 = vld [vmem:[#allocation12 + $0xc0] sm:$0xff]  ;;  %v6868_v40 = vpack.c.bf16 %v2706_v31, %v2702_v30  ;;  %v2734_v26 = vld [vmem:[#allocation12 + $0x190] sm:$0xff] }
 0x536   :  { %7940 = vtanh.f32 %v2340_v35  ;;  %v2715_v35 = vld [vmem:[#allocation12 + $0xf8] sm:$0xff]  ;;  %v2740_v31 = vld [vmem:[#allocation12 + $0x1c0] sm:$0xff] }
 0x537   :  { %7942 = vtanh.f32 %v2344_v39  ;;  %v2349_v43 = vmul.f32 0.5, %v2338_v42  ;;  %v2712_v39 = vld [vmem:[#allocation12 + $0xe0] sm:$0xff]  ;;  %v2717_v42 = vld [vmem:[#allocation12 + $0x108] sm:$0xff] }
 0x538   :  { %7944 = vtanh.f32 %v2336_v36  ;;  %v6806_v36 = vpack.c.bf16 %v2713_v28, %v2709_v27  ;;  %v2743_v28 = vld [vmem:[#allocation12 + $0x1d8] sm:$0xff] }
 0x539   :  { %7946 = vtanh.f32 %v2349_v43  ;;  %v2721_v43 = vld [vmem:[#allocation12 + $0x128] sm:$0xff] }
 0x540   :  { %v7941_v44 = vpop.eup %7940 }
 0x541   :  { %v7943_v45 = vpop.eup %7942  ;;  %v2342_v46 = vadd.f32 1.0, %v7941_v44  ;;  %v6870_v44 = vpack.c.bf16 %v2715_v35, %v2711_v34  ;;  %v2749_v35 = vld [vmem:[#allocation12 + $0x208] sm:$0xff] }
 0x542   :  { %v7945_v47 = vpop.eup %7944  ;;  %v2346_v48 = vadd.f32 1.0, %v7943_v45  ;;  %v2710_v45 = vld [vmem:[#allocation12 + $0xd0] sm:$0xff] }
 0x543   :  { %v2343_v41 = vmul.f32 0.5, %v2342_v46  ;;  %v7947_v53 = vpop.eup %7946  ;;  %v2714_v46 = vld [vmem:[#allocation12 + $0xf0] sm:$0xff] }
 0x544   :  { %v2347_v49 = vmul.f32 0.5, %v2346_v48  ;;  %v2351_v32 = vadd.f32 1.0, %v7947_v53  ;;  %v2719_v48 = vld [vmem:[#allocation12 + $0x118] sm:$0xff]  ;;  %v6872_v53 = vpack.c.bf16 %v2714_v46, %v2710_v45  ;;  %v2748_v46 = vld [vmem:[#allocation12 + $0x200] sm:$0xff] }
 0x545   :  { %v2355_v50 = vmul.f32 %v7945_v47, %v2343_v41  ;;  %v6808_v47 = vpack.c.bf16 %v2712_v39, %v2708_v37  ;;  %v2723_v41 = vld [vmem:[#allocation12 + $0x138] sm:$0xff]  ;;  %v2742_v39 = vld [vmem:[#allocation12 + $0x1d0] sm:$0xff] }
 0x546   :  { %v2354_v51 = vmul.f32 %v2347_v49, %v8569_v38  ;;  %v2352_v58 = vmul.f32 0.5, %v2351_v32  ;;  %v2692_v38 = vld [vmem:[#allocation12 + $0x40] sm:$0xff]  ;;  %v6810_v49 = vpack.c.bf16 %v2721_v43, %v2717_v42  ;;  %v2725_v32 = vld [vmem:[#allocation12 + $0x148] sm:$0xff]  ;;  %v6874_v55 = vpack.c.bf16 %v2723_v41, %v2719_v48  ;;  %v2751_v43 = vld [vmem:[#allocation12 + $0x218] sm:$0xff] }
 0x547   :  { %v6800_v18 = vpack.c.bf16 %v2696_v7, %v2692_v38  ;;  %v6878_v38 = vpack.c.bf16 %v2731_v61, %v2727_v60  ;;  %v2726_v7 = vld [vmem:[#allocation12 + $0x150] sm:$0xff]  ;;  %v2757_v41 = vld [vmem:[#allocation12 + $0x248] sm:$0xff] }
 0x548   :  { %v8595_v52 = vadd.f32 %v2355_v50, %v2354_v51  ;;  %v2716_v50 = vld [vmem:[#allocation12 + $0x100] sm:$0xff]  ;;  %v2765_v61 = vld [vmem:[#allocation12 + $0x288] sm:$0xff] }
 0x549   :  { %v2720_v51 = vld [vmem:[#allocation12 + $0x120] sm:$0xff] }
 0x54a   :  { %7948 = vtanh.f32 %v8595_v52 }
 0x554   :  { %v7949_v62 = vpop.eup %7948 }
 0x555   :  { %v2358_v4 = vmul.f32 %v7949_v62, %v2352_v58  ;;  %v6812_v58 = vpack.c.bf16 %v2720_v51, %v2716_v50  ;;  %v6814_v62 = vpack.c.bf16 %v2729_v54, %v2725_v32  ;;  %v2750_v51 = vld [vmem:[#allocation12 + $0x210] sm:$0xff]  ;;  %v2759_v54 = vld [vmem:[#allocation12 + $0x258] sm:$0xff] }
 0x557   :  { %2579 = vmatmul.mubr.f32.vlgmr.msra.gmra.mrb[14].mxu0 %v2358_v4  ;;  %2650 = vmatmul.mubr.f32.vlgmr.msra.gmra.mrb[14].mxu1 %v2358_v4 }
 0x558   :  { %6797 = vmatpush1.bf16.msra.mxu0 %v6796_v63  ;;  %2898 = vmatprep.mubr.f32.mxu0 %v2358_v4  ;;  %v2724_v63 = vld [vmem:[#allocation12 + $0x140] sm:$0xff] }
 0x559   :  { %2969 = vmatprep.mubr.f32.mxu1 %v2358_v4  ;;  %6799 = vmatprep.subr.bf16.mxu0 %v6798_v5  ;;  %v2733_v4 = vld [vmem:[#allocation12 + $0x188] sm:$0xff]  ;;  %v6816_v8 = vpack.c.bf16 %v2728_v2, %v2724_v63  ;;  %v2758_v2 = vld [vmem:[#allocation12 + $0x250] sm:$0xff] }
 0x55a   :  { %6861 = vmatpush1.bf16.msra.mxu1 %v6860_v59  ;;  %v2737_v5 = vld [vmem:[#allocation12 + $0x1a8] sm:$0xff]  ;;  %v2730_v59 = vld [vmem:[#allocation12 + $0x170] sm:$0xff] }
 0x55b   :  { %6863 = vmatprep.subr.bf16.mxu1 %v6862_v15  ;;  %v2739_v15 = vld [vmem:[#allocation12 + $0x1b8] sm:$0xff]  ;;  %v6818_v16 = vpack.c.bf16 %v2737_v5, %v2733_v4  ;;  %v6880_v20 = vpack.c.bf16 %v2730_v59, %v2726_v7  ;;  %v2764_v59 = vld [vmem:[#allocation12 + $0x280] sm:$0xff] }
 0x55c   :  { %6801 = vmatpush1.bf16.msra.mxu0 %v6800_v18  ;;  %v2736_v18 = vld [vmem:[#allocation12 + $0x1a0] sm:$0xff]  ;;  %v6882_v24 = vpack.c.bf16 %v2739_v15, %v2735_v12  ;;  %v2767_v5 = vld [vmem:[#allocation12 + $0x298] sm:$0xff]  ;;  %v2773_v15 = vld [vmem:[#allocation12 + $0x2c8] sm:$0xff] }
 0x55d   :  { %6803 = vmatprep.subr.bf16.mxu0 %v6802_v23  ;;  %v2745_v23 = vld [vmem:[#allocation12 + $0x1e8] sm:$0xff]  ;;  %v6820_v27 = vpack.c.bf16 %v2736_v18, %v2732_v17  ;;  %v2766_v18 = vld [vmem:[#allocation12 + $0x290] sm:$0xff] }
 0x55e   :  { %6865 = vmatpush1.bf16.msra.mxu1 %v6864_v1  ;;  %v2738_v1 = vld [vmem:[#allocation12 + $0x1b0] sm:$0xff]  ;;  %v6822_v30 = vpack.c.bf16 %v2745_v23, %v2741_v22  ;;  %v2775_v23 = vld [vmem:[#allocation12 + $0x2d8] sm:$0xff] }
 0x55f   :  { %6867 = vmatprep.subr.bf16.mxu1 %v6866_v29  ;;  %v2747_v29 = vld [vmem:[#allocation12 + $0x1f8] sm:$0xff]  ;;  %v6884_v34 = vpack.c.bf16 %v2738_v1, %v2734_v26  ;;  %v2772_v1 = vld [vmem:[#allocation12 + $0x2c0] sm:$0xff] }
 0x560   :  { %6805 = vmatpush1.bf16.msra.mxu0 %v6804_v33  ;;  %v2744_v33 = vld [vmem:[#allocation12 + $0x1e0] sm:$0xff]  ;;  %v6886_v37 = vpack.c.bf16 %v2747_v29, %v2743_v28  ;;  %v2781_v29 = vld [vmem:[#allocation12 + $0x308] sm:$0xff] }
 0x561   :  { %6807 = vmatprep.subr.bf16.mxu0 %v6806_v36  ;;  %v2753_v36 = vld [vmem:[#allocation12 + $0x228] sm:$0xff]  ;;  %v6824_v42 = vpack.c.bf16 %v2744_v33, %v2740_v31  ;;  %v2774_v33 = vld [vmem:[#allocation12 + $0x2d0] sm:$0xff] }
 0x562   :  { %6869 = vmatpush1.bf16.msra.mxu1 %v6868_v40  ;;  %v2746_v40 = vld [vmem:[#allocation12 + $0x1f0] sm:$0xff]  ;;  %v6826_v45 = vpack.c.bf16 %v2753_v36, %v2749_v35  ;;  %v2783_v36 = vld [vmem:[#allocation12 + $0x318] sm:$0xff] }
 0x563   :  { %6871 = vmatprep.subr.bf16.mxu1 %v6870_v44  ;;  %v2755_v44 = vld [vmem:[#allocation12 + $0x238] sm:$0xff]  ;;  %v6888_v48 = vpack.c.bf16 %v2746_v40, %v2742_v39  ;;  %v2780_v40 = vld [vmem:[#allocation12 + $0x300] sm:$0xff] }
 0x564   :  { %6809 = vmatpush1.bf16.msra.mxu0 %v6808_v47  ;;  %v2752_v47 = vld [vmem:[#allocation12 + $0x220] sm:$0xff]  ;;  %v6890_v50 = vpack.c.bf16 %v2755_v44, %v2751_v43  ;;  %v2789_v44 = vld [vmem:[#allocation12 + $0x348] sm:$0xff] }
 0x565   :  { %6811 = vmatprep.subr.bf16.mxu0 %v6810_v49  ;;  %v2761_v49 = vld [vmem:[#allocation12 + $0x268] sm:$0xff]  ;;  %v6828_v32 = vpack.c.bf16 %v2752_v47, %v2748_v46  ;;  %v2782_v47 = vld [vmem:[#allocation12 + $0x310] sm:$0xff] }
 0x566   :  { %6873 = vmatpush1.bf16.msra.mxu1 %v6872_v53  ;;  %v2754_v53 = vld [vmem:[#allocation12 + $0x230] sm:$0xff]  ;;  %v6830_v56 = vpack.c.bf16 %v2761_v49, %v2757_v41  ;;  %v2791_v49 = vld [vmem:[#allocation12 + $0x358] sm:$0xff] }
 0x567   :  { %6875 = vmatprep.subr.bf16.mxu1 %v6874_v55  ;;  %v2763_v55 = vld [vmem:[#allocation12 + $0x278] sm:$0xff]  ;;  %v6892_v60 = vpack.c.bf16 %v2754_v53, %v2750_v51  ;;  %v2788_v53 = vld [vmem:[#allocation12 + $0x340] sm:$0xff] }
 0x568   :  { %6813 = vmatpush1.bf16.msra.mxu0 %v6812_v58  ;;  %v2760_v58 = vld [vmem:[#allocation12 + $0x260] sm:$0xff]  ;;  %v6894_v63 = vpack.c.bf16 %v2763_v55, %v2759_v54  ;;  %v2797_v55 = vld [vmem:[#allocation12 + $0x388] sm:$0xff] }
 0x569   :  { %6815 = vmatprep.subr.bf16.mxu0 %v6814_v62  ;;  %v2769_v62 = vld [vmem:[#allocation12 + $0x2a8] sm:$0xff]  ;;  %v6832_v4 = vpack.c.bf16 %v2760_v58, %v2756_v57  ;;  %v2790_v58 = vld [vmem:[#allocation12 + $0x350] sm:$0xff] }
 0x56a   :  { %6877 = vmatpush1.bf16.msra.mxu1 %v6876_v3  ;;  %v2762_v3 = vld [vmem:[#allocation12 + $0x270] sm:$0xff]  ;;  %v6834_v7 = vpack.c.bf16 %v2769_v62, %v2765_v61  ;;  %v2799_v62 = vld [vmem:[#allocation12 + $0x398] sm:$0xff] }
 0x56b   :  { %6879 = vmatprep.subr.bf16.mxu1 %v6878_v38  ;;  %v2771_v38 = vld [vmem:[#allocation12 + $0x2b8] sm:$0xff]  ;;  %v6896_v12 = vpack.c.bf16 %v2762_v3, %v2758_v2  ;;  %v2796_v3 = vld [vmem:[#allocation12 + $0x380] sm:$0xff] }
 0x56c   :  { %6817 = vmatpush1.bf16.msra.mxu0 %v6816_v8  ;;  %v2768_v8 = vld [vmem:[#allocation12 + $0x2a0] sm:$0xff]  ;;  %v6898_v17 = vpack.c.bf16 %v2771_v38, %v2767_v5  ;;  %v2805_v38 = vld [vmem:[#allocation12 + $0x3c8] sm:$0xff] }
 0x56d   :  { %6819 = vmatprep.subr.bf16.mxu0 %v6818_v16  ;;  %v2777_v16 = vld [vmem:[#allocation12 + $0x2e8] sm:$0xff]  ;;  %v6836_v22 = vpack.c.bf16 %v2768_v8, %v2764_v59  ;;  %v2798_v8 = vld [vmem:[#allocation12 + $0x390] sm:$0xff] }
 0x56e   :  { %6881 = vmatpush1.bf16.msra.mxu1 %v6880_v20  ;;  %v2770_v20 = vld [vmem:[#allocation12 + $0x2b0] sm:$0xff]  ;;  %v6838_v26 = vpack.c.bf16 %v2777_v16, %v2773_v15  ;;  %v2807_v16 = vld [vmem:[#allocation12 + $0x3d8] sm:$0xff] }
 0x56f   :  { %6883 = vmatprep.subr.bf16.mxu1 %v6882_v24  ;;  %v2779_v24 = vld [vmem:[#allocation12 + $0x2f8] sm:$0xff]  ;;  %v6900_v28 = vpack.c.bf16 %v2770_v20, %v2766_v18  ;;  %v2804_v20 = vld [vmem:[#allocation12 + $0x3c0] sm:$0xff] }
 0x570   :  { %6821 = vmatpush1.bf16.msra.mxu0 %v6820_v27  ;;  %v2776_v27 = vld [vmem:[#allocation12 + $0x2e0] sm:$0xff]  ;;  %v6902_v31 = vpack.c.bf16 %v2779_v24, %v2775_v23 }
 0x571   :  { %6823 = vmatprep.subr.bf16.mxu0 %v6822_v30  ;;  %v2785_v30 = vld [vmem:[#allocation12 + $0x328] sm:$0xff]  ;;  %v6840_v35 = vpack.c.bf16 %v2776_v27, %v2772_v1  ;;  %v2810_v1 = vld [vmem:[#allocation12 + $0x3f0] sm:$0xff] }
 0x572   :  { %6885 = vmatpush1.bf16.msra.mxu1 %v6884_v34  ;;  %v2778_v34 = vld [vmem:[#allocation12 + $0x2f0] sm:$0xff]  ;;  %v6842_v39 = vpack.c.bf16 %v2785_v30, %v2781_v29  ;;  %v2680_v29 = vld [vmem:[#allocation6 + $0x20] sm:$0xff]  ;;  %v3001_v30 = vld [vmem:[#allocation14 + $0x8] sm:$0xff] }
 0x573   :  { %6887 = vmatprep.subr.bf16.mxu1 %v6886_v37  ;;  %v2787_v37 = vld [vmem:[#allocation12 + $0x338] sm:$0xff]  ;;  %v6904_v43 = vpack.c.bf16 %v2778_v34, %v2774_v33  ;;  %v3000_v33 = vld [vmem:[#allocation14] sm:$0xff] }
 0x574   :  { %6825 = vmatpush1.bf16.msra.mxu0 %v6824_v42  ;;  %v2784_v42 = vld [vmem:[#allocation12 + $0x320] sm:$0xff]  ;;  %v6906_v46 = vpack.c.bf16 %v2787_v37, %v2783_v36  ;;  %v3003_v36 = vld [vmem:[#allocation14 + $0x18] sm:$0xff] }
 0x575   :  { %6827 = vmatprep.subr.bf16.mxu0 %v6826_v45  ;;  %v2793_v45 = vld [vmem:[#allocation12 + $0x368] sm:$0xff]  ;;  %v6844_v41 = vpack.c.bf16 %v2784_v42, %v2780_v40  ;;  %v3007_v37 = vld [vmem:[#allocation14 + $0x38] sm:$0xff]  ;;  %v3002_v42 = vld [vmem:[#allocation14 + $0x10] sm:$0xff] }
 0x576   :  { %6889 = vmatpush1.bf16.msra.mxu1 %v6888_v48  ;;  %v2786_v48 = vld [vmem:[#allocation12 + $0x330] sm:$0xff]  ;;  %v6846_v51 = vpack.c.bf16 %v2793_v45, %v2789_v44  ;;  %v6986_v40 = vpack.c.bf16 %v3007_v37, %v3003_v36  ;;  %v3009_v45 = vld [vmem:[#allocation14 + $0x48] sm:$0xff] }
 0x577   :  { %6891 = vmatprep.subr.bf16.mxu1 %v6890_v50  ;;  %v2795_v50 = vld [vmem:[#allocation12 + $0x378] sm:$0xff]  ;;  %v6908_v54 = vpack.c.bf16 %v2786_v48, %v2782_v47  ;;  %v3008_v47 = vld [vmem:[#allocation14 + $0x40] sm:$0xff]  ;;  %v3041_v36 = vld [vmem:[#allocation14 + $0x148] sm:$0xff] }
 0x578   :  { %6829 = vmatpush1.bf16.msra.mxu0 %v6828_v32  ;;  %v2792_v32 = vld [vmem:[#allocation12 + $0x360] sm:$0xff]  ;;  %v6910_v57 = vpack.c.bf16 %v2795_v50, %v2791_v49  ;;  %v3011_v49 = vld [vmem:[#allocation14 + $0x58] sm:$0xff]  ;;  %v3045_v37 = vld [vmem:[#allocation14 + $0x168] sm:$0xff] }
 0x579   :  { %6831 = vmatprep.subr.bf16.mxu0 %v6830_v56  ;;  %v2801_v56 = vld [vmem:[#allocation12 + $0x3a8] sm:$0xff]  ;;  %v6848_v61 = vpack.c.bf16 %v2792_v32, %v2788_v53  ;;  %v3015_v50 = vld [vmem:[#allocation14 + $0x78] sm:$0xff]  ;;  %v3010_v32 = vld [vmem:[#allocation14 + $0x50] sm:$0xff] }
 0x57a   :  { %6893 = vmatpush1.bf16.msra.mxu1 %v6892_v60  ;;  %v2794_v60 = vld [vmem:[#allocation12 + $0x370] sm:$0xff]  ;;  %v6850_v2 = vpack.c.bf16 %v2801_v56, %v2797_v55  ;;  %v6990_v53 = vpack.c.bf16 %v3015_v50, %v3011_v49  ;;  %v3017_v55 = vld [vmem:[#allocation14 + $0x88] sm:$0xff] }
 0x57b   :  { %6895 = vmatprep.subr.bf16.mxu1 %v6894_v63  ;;  %v2803_v63 = vld [vmem:[#allocation12 + $0x3b8] sm:$0xff]  ;;  %v6912_v5 = vpack.c.bf16 %v2794_v60, %v2790_v58  ;;  %v3016_v58 = vld [vmem:[#allocation14 + $0x80] sm:$0xff]  ;;  %v3049_v49 = vld [vmem:[#allocation14 + $0x188] sm:$0xff] }
 0x57c   :  { %6833 = vmatpush1.bf16.msra.mxu0 %v6832_v4  ;;  %v2800_v4 = vld [vmem:[#allocation12 + $0x3a0] sm:$0xff]  ;;  %v6914_v59 = vpack.c.bf16 %v2803_v63, %v2799_v62  ;;  %v3019_v63 = vld [vmem:[#allocation14 + $0x98] sm:$0xff]  ;;  %v3053_v50 = vld [vmem:[#allocation14 + $0x1a8] sm:$0xff] }
 0x57d   :  { %6835 = vmatprep.subr.bf16.mxu0 %v6834_v7  ;;  %v2809_v7 = vld [vmem:[#allocation12 + $0x3e8] sm:$0xff]  ;;  %v6852_v15 = vpack.c.bf16 %v2800_v4, %v2796_v3  ;;  %v3020_v60 = vld [vmem:[#allocation14 + $0xa0] sm:$0xff]  ;;  %v3018_v3 = vld [vmem:[#allocation14 + $0x90] sm:$0xff] }
 0x57e   :  { %6897 = vmatpush1.bf16.msra.mxu1 %v6896_v12  ;;  %v2802_v12 = vld [vmem:[#allocation12 + $0x3b0] sm:$0xff]  ;;  %v6854_v18 = vpack.c.bf16 %v2809_v7, %v2805_v38  ;;  %v6932_v62 = vpack.c.bf16 %v3020_v60, %v3016_v58  ;;  %v3025_v38 = vld [vmem:[#allocation14 + $0xc8] sm:$0xff] }
 0x57f   :  { %6899 = vmatprep.subr.bf16.mxu1 %v6898_v17  ;;  %v2811_v17 = vld [vmem:[#allocation12 + $0x3f8] sm:$0xff]  ;;  %v6916_v23 = vpack.c.bf16 %v2802_v12, %v2798_v8  ;;  %v3029_v7 = vld [vmem:[#allocation14 + $0xe8] sm:$0xff]  ;;  %v3024_v12 = vld [vmem:[#allocation14 + $0xc0] sm:$0xff] }
 0x580   :  { %6837 = vmatpush1.bf16.msra.mxu0 %v6836_v22  ;;  %v2808_v22 = vld [vmem:[#allocation12 + $0x3e0] sm:$0xff]  ;;  %v6918_v24 = vpack.c.bf16 %v2811_v17, %v2807_v16  ;;  %v6934_v8 = vpack.c.bf16 %v3029_v7, %v3025_v38  ;;  %v3027_v16 = vld [vmem:[#allocation14 + $0xd8] sm:$0xff]  ;;  %v3050_v60 = vld [vmem:[#allocation14 + $0x190] sm:$0xff] }
 0x581   :  { %6839 = vmatprep.subr.bf16.mxu0 %v6838_v26  ;;  %v2806_v26 = vld [vmem:[#allocation12 + $0x3d0] sm:$0xff]  ;;  %v6856_v27 = vpack.c.bf16 %v2808_v22, %v2804_v20  ;;  %v3031_v17 = vld [vmem:[#allocation14 + $0xf8] sm:$0xff]  ;;  %v3060_v38 = vld [vmem:[#allocation14 + $0x1e0] sm:$0xff] }
 0x582   :  { %6901 = vmatpush1.bf16.msra.mxu1 %v6900_v28  ;;  %v6920_v28 = vpack.c.bf16 %v2810_v1, %v2806_v26  ;;  %v3030_v20 = vld [vmem:[#allocation14 + $0xf0] sm:$0xff]  ;;  %v3037_v26 = vld [vmem:[#allocation14 + $0x128] sm:$0xff]  ;;  %v3032_v1 = vld [vmem:[#allocation14 + $0x100] sm:$0xff] }
 0x583   :  { %6903 = vmatprep.subr.bf16.mxu1 %v6902_v31  ;;  %v3005_v31 = vld [vmem:[#allocation14 + $0x28] sm:$0xff]  ;;  %v3059_v7 = vld [vmem:[#allocation14 + $0x1d8] sm:$0xff] }
 0x584   :  { %6841 = vmatpush1.bf16.msra.mxu0 %v6840_v35  ;;  %v6922_v34 = vpack.c.bf16 %v3005_v31, %v3001_v30  ;;  %v3004_v35 = vld [vmem:[#allocation14 + $0x20] sm:$0xff]  ;;  %v3035_v30 = vld [vmem:[#allocation14 + $0x118] sm:$0xff] }
 0x585   :  { %6843 = vmatprep.subr.bf16.mxu0 %v6842_v39  ;;  %v6924_v39 = vpack.c.bf16 %v3004_v35, %v3000_v33  ;;  %v3039_v31 = vld [vmem:[#allocation14 + $0x138] sm:$0xff]  ;;  %v3038_v35 = vld [vmem:[#allocation14 + $0x130] sm:$0xff] }
 0x586   :  { %6905 = vmatpush1.bf16.msra.mxu1 %v6904_v43  ;;  %v3006_v43 = vld [vmem:[#allocation14 + $0x30] sm:$0xff]  ;;  %v7002_v33 = vpack.c.bf16 %v3039_v31, %v3035_v30 }
 0x587   :  { %6907 = vmatprep.subr.bf16.mxu1 %v6906_v46  ;;  %v6988_v44 = vpack.c.bf16 %v3006_v43, %v3002_v42  ;;  %v3013_v46 = vld [vmem:[#allocation14 + $0x68] sm:$0xff]  ;;  %v3047_v42 = vld [vmem:[#allocation14 + $0x178] sm:$0xff] }
 0x588   :  { %6845 = vmatpush1.bf16.msra.mxu0 %v6844_v41  ;;  %v6926_v48 = vpack.c.bf16 %v3013_v46, %v3009_v45  ;;  %v3012_v41 = vld [vmem:[#allocation14 + $0x60] sm:$0xff] }
 0x589   :  { %6847 = vmatprep.subr.bf16.mxu0 %v6846_v51  ;;  %v6928_v51 = vpack.c.bf16 %v3012_v41, %v3008_v47  ;;  %v3040_v45 = vld [vmem:[#allocation14 + $0x140] sm:$0xff]  ;;  %v3042_v47 = vld [vmem:[#allocation14 + $0x150] sm:$0xff] }
 0x58a   :  { %6909 = vmatpush1.bf16.msra.mxu1 %v6908_v54  ;;  %v3014_v54 = vld [vmem:[#allocation14 + $0x70] sm:$0xff]  ;;  %v3044_v46 = vld [vmem:[#allocation14 + $0x160] sm:$0xff] }
 0x58b   :  { %6911 = vmatprep.subr.bf16.mxu1 %v6910_v57  ;;  %v6992_v56 = vpack.c.bf16 %v3014_v54, %v3010_v32  ;;  %v3021_v57 = vld [vmem:[#allocation14 + $0xa8] sm:$0xff]  ;;  %v3046_v41 = vld [vmem:[#allocation14 + $0x170] sm:$0xff]  ;;  %v6944_v32 = vpack.c.bf16 %v3044_v46, %v3040_v45 }
 0x58c   :  { %6849 = vmatpush1.bf16.msra.mxu0 %v6848_v61  ;;  %v6930_v61 = vpack.c.bf16 %v3021_v57, %v3017_v55  ;;  %v7008_v54 = vpack.c.bf16 %v3046_v41, %v3042_v47  ;;  %v6946_v55 = vpack.c.bf16 %v3053_v50, %v3049_v49  ;;  %v3052_v57 = vld [vmem:[#allocation14 + $0x1a0] sm:$0xff]  ;;  %v3081_v47 = vld [vmem:[#allocation14 + $0x288] sm:$0xff] }
 0x58d   :  { %6851 = vmatprep.subr.bf16.mxu0 %v6850_v2  ;;  %v3023_v2 = vld [vmem:[#allocation14 + $0xb8] sm:$0xff]  ;;  %v3080_v49 = vld [vmem:[#allocation14 + $0x280] sm:$0xff] }
 0x58e   :  { %6913 = vmatpush1.bf16.msra.mxu1 %v6912_v5  ;;  %v6994_v4 = vpack.c.bf16 %v3023_v2, %v3019_v63  ;;  %v3022_v5 = vld [vmem:[#allocation14 + $0xb0] sm:$0xff]  ;;  %v3057_v2 = vld [vmem:[#allocation14 + $0x1c8] sm:$0xff]  ;;  %v3084_v50 = vld [vmem:[#allocation14 + $0x2a0] sm:$0xff] }
 0x58f   :  { %6915 = vmatprep.subr.bf16.mxu1 %v6914_v59  ;;  %v6996_v59 = vpack.c.bf16 %v3022_v5, %v3018_v3  ;;  %v3061_v3 = vld [vmem:[#allocation14 + $0x1e8] sm:$0xff]  ;;  %v3056_v5 = vld [vmem:[#allocation14 + $0x1c0] sm:$0xff] }
 0x590   :  { %6853 = vmatpush1.bf16.msra.mxu0 %v6852_v15  ;;  %v3028_v15 = vld [vmem:[#allocation14 + $0xe0] sm:$0xff] }
 0x591   :  { %6855 = vmatprep.subr.bf16.mxu0 %v6854_v18  ;;  %v3026_v18 = vld [vmem:[#allocation14 + $0xd0] sm:$0xff]  ;;  %v6936_v22 = vpack.c.bf16 %v3028_v15, %v3024_v12 }
 0x592   :  { %6917 = vmatpush1.bf16.msra.mxu1 %v6916_v23  ;;  %v6998_v23 = vpack.c.bf16 %v3031_v17, %v3027_v16  ;;  %v3058_v12 = vld [vmem:[#allocation14 + $0x1d0] sm:$0xff] }
 0x593   :  { %6919 = vmatprep.subr.bf16.mxu1 %v6918_v24  ;;  %v3033_v24 = vld [vmem:[#allocation14 + $0x108] sm:$0xff]  ;;  %v3062_v15 = vld [vmem:[#allocation14 + $0x1f0] sm:$0xff] }
 0x594   :  { %6857 = vmatpush1.bf16.msra.mxu0 %v6856_v27  ;;  %v7000_v27 = vpack.c.bf16 %v3030_v20, %v3026_v18  ;;  %v7016_v17 = vpack.c.bf16 %v3062_v15, %v3058_v12  ;;  %v3065_v18 = vld [vmem:[#allocation14 + $0x208] sm:$0xff] }
 0x595   :  { %6923 = vmatprep.subr.bf16.mxu0 %v6922_v34  ;;  %v3034_v34 = vld [vmem:[#allocation14 + $0x110] sm:$0xff]  ;;  %v3069_v20 = vld [vmem:[#allocation14 + $0x228] sm:$0xff] }
 0x596   :  { %6921 = vmatpush1.bf16.msra.mxu1 %v6920_v28  ;;  %v6938_v28 = vpack.c.bf16 %v3037_v26, %v3033_v24  ;;  %v7004_v43 = vpack.c.bf16 %v3038_v35, %v3034_v34  ;;  %v3068_v24 = vld [vmem:[#allocation14 + $0x220] sm:$0xff]  ;;  %v3067_v26 = vld [vmem:[#allocation14 + $0x218] sm:$0xff]  ;;  %v3077_v34 = vld [vmem:[#allocation14 + $0x268] sm:$0xff] }
 0x597   :  { %2899 = vmatmul.mubr.f32.vlgmr.msra.gmra.mrb[16].mxu0 %v2680_v29  ;;  %6987 = vmatprep.subr.bf16.mxu1 %v6986_v40  ;;  %v3043_v40 = vld [vmem:[#allocation14 + $0x158] sm:$0xff]  ;;  %v3101_v12 = vld [vmem:[#allocation14 + $0x328] sm:$0xff] }
 0x598   :  { %6925 = vmatpush1.bf16.msra.mxu0 %v6924_v39 }
 0x599   :  { %2970 = vmatmul.mubr.f32.vlgmr.msra.gmra.mrb[16].mxu1 %v2680_v29  ;;  %6927 = vmatprep.subr.bf16.mxu0 %v6926_v48  ;;  %v3036_v29 = vld [vmem:[#allocation14 + $0x120] sm:$0xff]  ;;  %v7006_v48 = vpack.c.bf16 %v3047_v42, %v3043_v40  ;;  %v3079_v42 = vld [vmem:[#allocation14 + $0x278] sm:$0xff] }
 0x59a   :  { %6989 = vmatpush1.bf16.msra.mxu1 %v6988_v44  ;;  %v6940_v39 = vpack.c.bf16 %v3036_v29, %v3032_v1  ;;  %v6942_v44 = vpack.c.bf16 %v3045_v37, %v3041_v36  ;;  %v3070_v29 = vld [vmem:[#allocation14 + $0x230] sm:$0xff]  ;;  %v3072_v36 = vld [vmem:[#allocation14 + $0x240] sm:$0xff] }
 0x59b   :  { %6991 = vmatprep.subr.bf16.mxu1 %v6990_v53  ;;  %v3055_v53 = vld [vmem:[#allocation14 + $0x1b8] sm:$0xff]  ;;  %v3076_v37 = vld [vmem:[#allocation14 + $0x260] sm:$0xff] }
 0x59c   :  { %6929 = vmatpush1.bf16.msra.mxu0 %v6928_v51  ;;  %v3051_v51 = vld [vmem:[#allocation14 + $0x198] sm:$0xff]  ;;  %v6960_v40 = vpack.c.bf16 %v3076_v37, %v3072_v36  ;;  %v3106_v36 = vld [vmem:[#allocation14 + $0x350] sm:$0xff] }
 0x59d   :  { %6931 = vmatprep.subr.bf16.mxu0 %v6930_v61  ;;  %v7010_v58 = vpack.c.bf16 %v3055_v53, %v3051_v51  ;;  %v3054_v61 = vld [vmem:[#allocation14 + $0x1b0] sm:$0xff]  ;;  %v3083_v51 = vld [vmem:[#allocation14 + $0x298] sm:$0xff]  ;;  %v6964_v53 = vpack.c.bf16 %v3084_v50, %v3080_v49 }
 0x59e   :  { %6993 = vmatpush1.bf16.msra.mxu1 %v6992_v56  ;;  %v3048_v56 = vld [vmem:[#allocation14 + $0x180] sm:$0xff]  ;;  %v7012_v63 = vpack.c.bf16 %v3054_v61, %v3050_v60  ;;  %v3093_v60 = vld [vmem:[#allocation14 + $0x2e8] sm:$0xff]  ;;  %v3110_v37 = vld [vmem:[#allocation14 + $0x370] sm:$0xff] }
 0x59f   :  { %6995 = vmatprep.subr.bf16.mxu1 %v6994_v4  ;;  %v6950_v4 = vpack.c.bf16 %v3061_v3, %v3057_v2  ;;  %v3091_v2 = vld [vmem:[#allocation14 + $0x2d8] sm:$0xff]  ;;  %v3114_v49 = vld [vmem:[#allocation14 + $0x390] sm:$0xff] }
 0x5a0   :  { %6933 = vmatpush1.bf16.msra.mxu0 %v6932_v62  ;;  %v6948_v62 = vpack.c.bf16 %v3052_v57, %v3048_v56  ;;  %v3118_v50 = vld [vmem:[#allocation14 + $0x3b0] sm:$0xff] }
 0x5a1   :  { %6935 = vmatprep.subr.bf16.mxu0 %v6934_v8  ;;  %v3063_v8 = vld [vmem:[#allocation14 + $0x1f8] sm:$0xff] }
 0x5a2   :  { %6997 = vmatpush1.bf16.msra.mxu1 %v6996_v59  ;;  %v6952_v59 = vpack.c.bf16 %v3060_v38, %v3056_v5  ;;  %v7014_v16 = vpack.c.bf16 %v3063_v8, %v3059_v7  ;;  %v3090_v5 = vld [vmem:[#allocation14 + $0x2d0] sm:$0xff]  ;;  %v3097_v8 = vld [vmem:[#allocation14 + $0x308] sm:$0xff] }
 0x5a3   :  { %6999 = vmatprep.subr.bf16.mxu1 %v6998_v23  ;;  %v3064_v23 = vld [vmem:[#allocation14 + $0x200] sm:$0xff]  ;;  %v3094_v38 = vld [vmem:[#allocation14 + $0x2f0] sm:$0xff]  ;;  %v6970_v15 = vpack.c.bf16 %v3101_v12, %v3097_v8 }
 0x5a4   :  { %6937 = vmatpush1.bf16.msra.mxu0 %v6936_v22  ;;  %v6954_v22 = vpack.c.bf16 %v3069_v20, %v3065_v18  ;;  %v6956_v1 = vpack.c.bf16 %v3068_v24, %v3064_v23  ;;  %v3099_v18 = vld [vmem:[#allocation14 + $0x318] sm:$0xff]  ;;  %v3098_v23 = vld [vmem:[#allocation14 + $0x310] sm:$0xff]  ;;  %v2492_v12 = vld [vmem:[%s8952_s6] sm:$0xf] }
 0x5a5   :  { %6939 = vmatprep.subr.bf16.mxu0 %v6938_v28  ;;  %v3066_v28 = vld [vmem:[#allocation14 + $0x210] sm:$0xff] }
 0x5a6   :  { %7001 = vmatpush1.bf16.msra.mxu1 %v7000_v27  ;;  %v3071_v27 = vld [vmem:[#allocation14 + $0x238] sm:$0xff]  ;;  %v7020_v31 = vpack.c.bf16 %v3070_v29, %v3066_v28  ;;  %v3102_v24 = vld [vmem:[#allocation14 + $0x330] sm:$0xff]  ;;  %v3109_v28 = vld [vmem:[#allocation14 + $0x368] sm:$0xff] }
 0x5a7   :  { %7003 = vmatprep.subr.bf16.mxu1 %v7002_v33  ;;  %v7018_v30 = vpack.c.bf16 %v3071_v27, %v3067_v26  ;;  %v3073_v33 = vld [vmem:[#allocation14 + $0x248] sm:$0xff] }
 0x5a8   :  { %6941 = vmatpush1.bf16.msra.mxu0 %v6940_v39  ;;  %v6958_v35 = vpack.c.bf16 %v3077_v34, %v3073_v33  ;;  %v3075_v39 = vld [vmem:[#allocation14 + $0x258] sm:$0xff]  ;;  %v3105_v27 = vld [vmem:[#allocation14 + $0x348] sm:$0xff] }
 0x5a9   :  { %6943 = vmatprep.subr.bf16.mxu0 %v6942_v44  ;;  %v3078_v44 = vld [vmem:[#allocation14 + $0x270] sm:$0xff]  ;;  %v7022_v45 = vpack.c.bf16 %v3079_v42, %v3075_v39  ;;  %v6974_v29 = vpack.c.bf16 %v3109_v28, %v3105_v27  ;;  %v3107_v33 = vld [vmem:[#allocation14 + $0x358] sm:$0xff]  ;;  %v3113_v42 = vld [vmem:[#allocation14 + $0x388] sm:$0xff] }
 0x5aa   :  { %7005 = vmatpush1.bf16.msra.mxu1 %v7004_v43  ;;  %v3074_v43 = vld [vmem:[#allocation14 + $0x250] sm:$0xff] }
 0x5ab   :  { %7007 = vmatprep.subr.bf16.mxu1 %v7006_v48  ;;  %v7024_v46 = vpack.c.bf16 %v3078_v44, %v3074_v43  ;;  %v3085_v48 = vld [vmem:[#allocation14 + $0x2a8] sm:$0xff] }
 0x5ac   :  { %6945 = vmatpush1.bf16.msra.mxu0 %v6944_v32  ;;  %v6962_v41 = vpack.c.bf16 %v3085_v48, %v3081_v47  ;;  %v3087_v32 = vld [vmem:[#allocation14 + $0x2b8] sm:$0xff]  ;;  %v3117_v43 = vld [vmem:[#allocation14 + $0x3a8] sm:$0xff] }
 0x5ad   :  { %6947 = vmatprep.subr.bf16.mxu0 %v6946_v55  ;;  %v3086_v55 = vld [vmem:[#allocation14 + $0x2b0] sm:$0xff]  ;;  %v7026_v56 = vpack.c.bf16 %v3087_v32, %v3083_v51  ;;  %v6978_v44 = vpack.c.bf16 %v3117_v43, %v3113_v42  ;;  %v3115_v47 = vld [vmem:[#allocation14 + $0x398] sm:$0xff]  ;;  %v3121_v32 = vld [vmem:[#allocation14 + $0x3c8] sm:$0xff] }
 0x5ae   :  { %7009 = vmatpush1.bf16.msra.mxu1 %v7008_v54  ;;  %v3082_v54 = vld [vmem:[#allocation14 + $0x290] sm:$0xff] }
 0x5af   :  { %7011 = vmatprep.subr.bf16.mxu1 %v7010_v58  ;;  %v7028_v57 = vpack.c.bf16 %v3086_v55, %v3082_v54  ;;  %v3089_v58 = vld [vmem:[#allocation14 + $0x2c8] sm:$0xff] }
 0x5b0   :  { %6949 = vmatpush1.bf16.msra.mxu0 %v6948_v62  ;;  %v6966_v61 = vpack.c.bf16 %v3093_v60, %v3089_v58  ;;  %v3088_v62 = vld [vmem:[#allocation14 + $0x2c0] sm:$0xff]  ;;  %v3125_v54 = vld [vmem:[#allocation14 + $0x3e8] sm:$0xff]  ;;  %v3123_v58 = vld [vmem:[#allocation14 + $0x3d8] sm:$0xff] }
 0x5b1   :  { %6951 = vmatprep.subr.bf16.mxu0 %v6950_v4  ;;  %v3095_v4 = vld [vmem:[#allocation14 + $0x2f8] sm:$0xff]  ;;  %v6982_v55 = vpack.c.bf16 %v3125_v54, %v3121_v32 }
 0x5b2   :  { %7013 = vmatpush1.bf16.msra.mxu1 %v7012_v63  ;;  %v3092_v63 = vld [vmem:[#allocation14 + $0x2e0] sm:$0xff]  ;;  %v7030_v7 = vpack.c.bf16 %v3095_v4, %v3091_v2  ;;  %v3321_v4 = vld [vmem:[#allocation12 + $0x8] sm:$0xff] }
 0x5b3   :  { %7015 = vmatprep.subr.bf16.mxu1 %v7014_v16  ;;  %v6968_v3 = vpack.c.bf16 %v3092_v63, %v3088_v62  ;;  %v3096_v16 = vld [vmem:[#allocation14 + $0x300] sm:$0xff]  ;;  %v3122_v62 = vld [vmem:[#allocation14 + $0x3d0] sm:$0xff] }
 0x5b4   :  { %6953 = vmatpush1.bf16.msra.mxu0 %v6952_v59  ;;  %v7032_v59 = vpack.c.bf16 %v3094_v38, %v3090_v5  ;;  %v3126_v63 = vld [vmem:[#allocation14 + $0x3f0] sm:$0xff]  ;;  %v3325_v5 = vld [vmem:[#allocation12 + $0x28] sm:$0xff] }
 0x5b5   :  { %6955 = vmatprep.subr.bf16.mxu0 %v6954_v22  ;;  %v3103_v22 = vld [vmem:[#allocation14 + $0x338] sm:$0xff]  ;;  %v7050_v38 = vpack.c.bf16 %v3325_v5, %v3321_v4 }
 0x5b6   :  { %7017 = vmatpush1.bf16.msra.mxu1 %v7016_v17  ;;  %v3100_v17 = vld [vmem:[#allocation14 + $0x320] sm:$0xff]  ;;  %v7034_v26 = vpack.c.bf16 %v3103_v22, %v3099_v18  ;;  %v2505_v22 = vrot.slane %v2492_v12, %v8509_v14 }
 0x5b7   :  { %7019 = vmatprep.subr.bf16.mxu1 %v7018_v30  ;;  %v6972_v20 = vpack.c.bf16 %v3100_v17, %v3096_v16  ;;  %v3104_v30 = vld [vmem:[#allocation14 + $0x340] sm:$0xff]  ;;  %v2501_v16 = vrot.slane %v2492_v12, %v8506_v13 }
 0x5b8   :  { %6957 = vmatpush1.bf16.msra.mxu0 %v6956_v1  ;;  %v7036_v1 = vpack.c.bf16 %v3102_v24, %v3098_v23 }
 0x5b9   :  { %6959 = vmatprep.subr.bf16.mxu0 %v6958_v35  ;;  %v3111_v35 = vld [vmem:[#allocation14 + $0x378] sm:$0xff] }
 0x5ba   :  { %7021 = vmatpush1.bf16.msra.mxu1 %v7020_v31  ;;  %v3108_v31 = vld [vmem:[#allocation14 + $0x360] sm:$0xff]  ;;  %v7038_v39 = vpack.c.bf16 %v3111_v35, %v3107_v33 }
 0x5bb   :  { %7023 = vmatprep.subr.bf16.mxu1 %v7022_v45  ;;  %v6976_v34 = vpack.c.bf16 %v3108_v31, %v3104_v30  ;;  %v3112_v45 = vld [vmem:[#allocation14 + $0x380] sm:$0xff] }
 0x5bc   :  { %6961 = vmatpush1.bf16.msra.mxu0 %v6960_v40  ;;  %v7040_v40 = vpack.c.bf16 %v3110_v37, %v3106_v36 }
 0x5bd   :  { %6963 = vmatprep.subr.bf16.mxu0 %v6962_v41  ;;  %v3119_v41 = vld [vmem:[#allocation14 + $0x3b8] sm:$0xff] }
 0x5be   :  { %7025 = vmatpush1.bf16.msra.mxu1 %v7024_v46  ;;  %v3116_v46 = vld [vmem:[#allocation14 + $0x3a0] sm:$0xff]  ;;  %v7042_v51 = vpack.c.bf16 %v3119_v41, %v3115_v47 }
 0x5bf   :  { %7027 = vmatprep.subr.bf16.mxu1 %v7026_v56  ;;  %v6980_v48 = vpack.c.bf16 %v3116_v46, %v3112_v45  ;;  %v3120_v56 = vld [vmem:[#allocation14 + $0x3c0] sm:$0xff] }
 0x5c0   :  { %6965 = vmatpush1.bf16.msra.mxu0 %v6964_v53  ;;  %v7044_v53 = vpack.c.bf16 %v3118_v50, %v3114_v49  ;;  %v2812_v49 = vld [vmem:[%s8950_s4] sm:$0xf] }
 0x5c1   :  { %6967 = vmatprep.subr.bf16.mxu0 %v6966_v61  ;;  %v3127_v61 = vld [vmem:[#allocation14 + $0x3f8] sm:$0xff]  ;;  %v2821_v50 = vrot.slane %v2812_v49, %v8506_v13 }
 0x5c2   :  { %7029 = vmatpush1.bf16.msra.mxu1 %v7028_v57  ;;  %v3124_v57 = vld [vmem:[#allocation14 + $0x3e0] sm:$0xff]  ;;  %v7046_v2 = vpack.c.bf16 %v3127_v61, %v3123_v58 }
 0x5c3   :  { %7031 = vmatprep.subr.bf16.mxu1 %v7030_v7  ;;  %v6984_v60 = vpack.c.bf16 %v3124_v57, %v3120_v56  ;;  %v3323_v7 = vld [vmem:[#allocation12 + $0x18] sm:$0xff] }
 0x5c4   :  { %6969 = vmatpush1.bf16.msra.mxu0 %v6968_v3  ;;  %v7048_v3 = vpack.c.bf16 %v3126_v63, %v3122_v62  ;;  %v2829_v62 = vrot.slane %v2812_v49, %v8515_v21 }
 0x5c5   :  { %6971 = vmatprep.subr.bf16.mxu0 %v6970_v15  ;;  %v2497_v15 = vrot.slane %v2492_v12, %v8500_v11 }
 0x5c6   :  { %7033 = vmatpush1.bf16.msra.mxu1 %v7032_v59  ;;  %v3327_v59 = vld [vmem:[#allocation12 + $0x38] sm:$0xff] }
 0x5c7   :  { %7035 = vmatprep.subr.bf16.mxu1 %v7034_v26  ;;  %v7114_v8 = vpack.c.bf16 %v3327_v59, %v3323_v7 }
 0x5c8   :  { %6973 = vmatpush1.bf16.msra.mxu0 %v6972_v20 }
 0x5c9   :  { %6975 = vmatprep.subr.bf16.mxu0 %v6974_v29  ;;  %v2509_v29 = vrot.slane %v2492_v12, %v8515_v21 }
 0x5ca   :  { %7037 = vmatpush1.bf16.msra.mxu1 %v7036_v1 }
 0x5cb   :  { %7039 = vmatprep.subr.bf16.mxu1 %v7038_v39 }
 0x5cc   :  { %6977 = vmatpush1.bf16.msra.mxu0 %v6976_v34 }
 0x5cd   :  { %6979 = vmatprep.subr.bf16.mxu0 %v6978_v44 }
 0x5ce   :  { %7041 = vmatpush1.bf16.msra.mxu1 %v7040_v40 }
 0x5cf   :  { %7043 = vmatprep.subr.bf16.mxu1 %v7042_v51  ;;  %v2825_v51 = vrot.slane %v2812_v49, %v8509_v14 }
 0x5d0   :  { %6981 = vmatpush1.bf16.msra.mxu0 %v6980_v48 }
 0x5d1   :  { %6983 = vmatprep.subr.bf16.mxu0 %v6982_v55 }
 0x5d2   :  { %7045 = vmatpush1.bf16.msra.mxu1 %v7044_v53 }
 0x5d3   :  { %7047 = vmatprep.subr.bf16.mxu1 %v7046_v2 }
 0x5d4   :  { %6985 = vmatpush1.bf16.msra.mxu0 %v6984_v60 }
 0x5d5   :  { %7051 = vmatprep.subr.bf16.mxu0 %v7050_v38 }
 0x5d6   :  { %7049 = vmatpush1.bf16.msra.mxu1 %v7048_v3 }
 0x5d7   :  { %7115 = vmatprep.subr.bf16.mxu1 %v7114_v8 }
 0x62a   :  { %v2580_v17 = vpop.f32.mrb[14].mxu0  ;;  %v2651_v18 = vpop.f32.mrb[14].mxu1 }
 0x62b   :  { %v2581_v20 = vadd.f32 %v2580_v17, %v2497_v15  ;;  %v2582_v23 = vpop.f32.mrb[15].mxu0  ;;  %v2653_v24 = vpop.f32.mrb[15].mxu1  ;;  %v2652_v28 = vadd.f32 %v2651_v18, %v2505_v22  ;;  %v3324_v22 = vld [vmem:[#allocation12 + $0x20] sm:$0xff] }
 0x62c   :  { %v2583_v26 = vadd.f32 %v2582_v23, %v2501_v16  ;;  %v2654_v30 = vadd.f32 %v2653_v24, %v2509_v29  ;;  %v3329_v23 = vld [vmem:[#allocation12 + $0x48] sm:$0xff] }
 0x62d   :  { %v2656_v1 = vmul.f32 0.5, %v2581_v20  ;;  %v3320_v20 = vld [vmem:[#allocation12] sm:$0xff]  ;;  %v3333_v24 = vld [vmem:[#allocation12 + $0x68] sm:$0xff] }
 0x62e   :  { %v2660_v27 = vmul.f32 0.5, %v2583_v26  ;;  %v2665_v31 = vmul.f32 0.5, %v2654_v30  ;;  %v7052_v29 = vpack.c.bf16 %v3324_v22, %v3320_v20  ;;  %v3331_v30 = vld [vmem:[#allocation12 + $0x58] sm:$0xff]  ;;  %v3361_v20 = vld [vmem:[#allocation12 + $0x148] sm:$0xff] }
 0x62f   :  { %7950 = vtanh.f32 %v2656_v1  ;;  %v3322_v1 = vld [vmem:[#allocation12 + $0x10] sm:$0xff]  ;;  %v3365_v22 = vld [vmem:[#allocation12 + $0x168] sm:$0xff] }
 0x630   :  { %7952 = vtanh.f32 %v2660_v27  ;;  %v3326_v27 = vld [vmem:[#allocation12 + $0x30] sm:$0xff] }
 0x631   :  { %7954 = vtanh.f32 %v2652_v28 }
 0x632   :  { %7956 = vtanh.f32 %v2665_v31  ;;  %v3335_v31 = vld [vmem:[#allocation12 + $0x78] sm:$0xff] }
 0x639   :  { %v7951_v33 = vpop.eup %7950 }
 0x63a   :  { %v7953_v34 = vpop.eup %7952  ;;  %v2658_v35 = vadd.f32 1.0, %v7951_v33 }
 0x63b   :  { %v2662_v36 = vadd.f32 1.0, %v7953_v34  ;;  %v7955_v39 = vpop.eup %7954  ;;  %v7054_v34 = vpack.c.bf16 %v3333_v24, %v3329_v23  ;;  %v3354_v24 = vld [vmem:[#allocation12 + $0x110] sm:$0xff] }
 0x63c   :  { %v2659_v37 = vmul.f32 0.5, %v2658_v35  ;;  %v7957_v45 = vpop.eup %7956  ;;  %v3332_v35 = vld [vmem:[#allocation12 + $0x60] sm:$0xff] }
 0x63d   :  { %v2663_v40 = vmul.f32 0.5, %v2662_v36  ;;  %v2667_v46 = vadd.f32 1.0, %v7957_v45  ;;  %v7116_v36 = vpack.c.bf16 %v3326_v27, %v3322_v1  ;;  %v3363_v27 = vld [vmem:[#allocation12 + $0x158] sm:$0xff] }
 0x63e   :  { %v2671_v42 = vmul.f32 %v7955_v39, %v2659_v37  ;;  %v3337_v37 = vld [vmem:[#allocation12 + $0x88] sm:$0xff] }
 0x63f   :  { %v2670_v43 = vmul.f32 %v2663_v40, %v8580_v19  ;;  %v2668_v47 = vmul.f32 0.5, %v2667_v46  ;;  %v2817_v19 = vrot.slane %v2812_v49, %v8500_v11  ;;  %v3341_v39 = vld [vmem:[#allocation12 + $0xa8] sm:$0xff]  ;;  %v7118_v40 = vpack.c.bf16 %v3335_v31, %v3331_v30  ;;  %v3339_v46 = vld [vmem:[#allocation12 + $0x98] sm:$0xff]  ;;  %v3336_v49 = vld [vmem:[#allocation12 + $0x80] sm:$0xff] }
 0x640   :  { %v3360_v30 = vld [vmem:[#allocation12 + $0x140] sm:$0xff] }
 0x641   :  { %v8606_v44 = vadd.f32 %v2671_v42, %v2670_v43  ;;  %v3330_v42 = vld [vmem:[#allocation12 + $0x50] sm:$0xff]  ;;  %v3364_v31 = vld [vmem:[#allocation12 + $0x160] sm:$0xff] }
 0x642   :  { %v3334_v43 = vld [vmem:[#allocation12 + $0x70] sm:$0xff] }
 0x643   :  { %7958 = vtanh.f32 %v8606_v44 }
 0x64d   :  { %v7959_v48 = vpop.eup %7958 }
 0x64e   :  { %v8609_v41 = vmul.f32 %v7959_v48, %v2668_v47  ;;  %v3343_v47 = vld [vmem:[#allocation12 + $0xb8] sm:$0xff]  ;;  %v7058_v48 = vpack.c.bf16 %v3341_v39, %v3337_v37  ;;  %v3366_v37 = vld [vmem:[#allocation12 + $0x170] sm:$0xff]  ;;  %v7072_v39 = vpack.c.bf16 %v3364_v31, %v3360_v30  ;;  %v3405_v30 = vld [vmem:[#allocation12 + $0x2a8] sm:$0xff] }
 0x650   :  { %3214 = vmatprep.mubr.f32.mxu0 %v8609_v41  ;;  %3285 = vmatprep.mubr.f32.mxu1 %v8609_v41 }
 0x66a   :  { %v2900_v53 = vpop.f32.mrb[16].mxu0 }
 0x66b   :  { %v2901_v32 = vadd.f32 %v2900_v53, %v2817_v19  ;;  %v2902_v54 = vpop.f32.mrb[17].mxu0  ;;  %v3340_v19 = vld [vmem:[#allocation12 + $0xa0] sm:$0xff]  ;;  %v3349_v53 = vld [vmem:[#allocation12 + $0xe8] sm:$0xff] }
 0x66c   :  { %v2903_v55 = vadd.f32 %v2902_v54, %v2821_v50  ;;  %v2971_v56 = vpop.f32.mrb[16].mxu1  ;;  %v7120_v50 = vpack.c.bf16 %v3334_v43, %v3330_v42  ;;  %v3338_v54 = vld [vmem:[#allocation12 + $0x90] sm:$0xff]  ;;  %v3375_v42 = vld [vmem:[#allocation12 + $0x1b8] sm:$0xff] }
 0x66d   :  { %v2976_v57 = vmul.f32 0.5, %v2901_v32  ;;  %v2972_v58 = vadd.f32 %v2971_v56, %v2825_v51  ;;  %v2973_v60 = vpop.f32.mrb[17].mxu1  ;;  %v3345_v51 = vld [vmem:[#allocation12 + $0xc8] sm:$0xff]  ;;  %v7122_v32 = vpack.c.bf16 %v3343_v47, %v3339_v46  ;;  %v7060_v56 = vpack.c.bf16 %v3340_v19, %v3336_v49  ;;  %v3372_v46 = vld [vmem:[#allocation12 + $0x1a0] sm:$0xff] }
 0x66e   :  { %v2980_v61 = vmul.f32 0.5, %v2903_v55  ;;  %v2974_v63 = vadd.f32 %v2973_v60, %v2829_v62  ;;  %v3342_v55 = vld [vmem:[#allocation12 + $0xb0] sm:$0xff]  ;;  %v7062_v60 = vpack.c.bf16 %v3349_v53, %v3345_v51  ;;  %v3348_v62 = vld [vmem:[#allocation12 + $0xe0] sm:$0xff]  ;;  %v3381_v49 = vld [vmem:[#allocation12 + $0x1e8] sm:$0xff] }
 0x66f   :  { %7960 = vtanh.f32 %v2976_v57  ;;  %v3347_v57 = vld [vmem:[#allocation12 + $0xd8] sm:$0xff]  ;;  %v3374_v51 = vld [vmem:[#allocation12 + $0x1b0] sm:$0xff] }
 0x670   :  { %7962 = vtanh.f32 %v2980_v61  ;;  %v2985_v2 = vmul.f32 0.5, %v2974_v63  ;;  %v3344_v61 = vld [vmem:[#allocation12 + $0xc0] sm:$0xff]  ;;  %v7124_v63 = vpack.c.bf16 %v3342_v55, %v3338_v54  ;;  %v3383_v54 = vld [vmem:[#allocation12 + $0x1f8] sm:$0xff] }
 0x671   :  { %7964 = vtanh.f32 %v2972_v58  ;;  %v3351_v58 = vld [vmem:[#allocation12 + $0xf8] sm:$0xff] }
 0x672   :  { %7966 = vtanh.f32 %v2985_v2  ;;  %v3353_v2 = vld [vmem:[#allocation12 + $0x108] sm:$0xff] }
 0x679   :  { %v7961_v3 = vpop.eup %7960 }
 0x67a   :  { %v7963_v4 = vpop.eup %7962  ;;  %v2978_v5 = vadd.f32 1.0, %v7961_v3  ;;  %v3357_v3 = vld [vmem:[#allocation12 + $0x128] sm:$0xff] }
 0x67b   :  { %v7965_v38 = vpop.eup %7964  ;;  %v2982_v7 = vadd.f32 1.0, %v7963_v4  ;;  %v7126_v4 = vpack.c.bf16 %v3351_v58, %v3347_v57  ;;  %v3380_v57 = vld [vmem:[#allocation12 + $0x1e0] sm:$0xff] }
 0x67c   :  { %v2979_v59 = vmul.f32 0.5, %v2978_v5  ;;  %v7967_v17 = vpop.eup %7966  ;;  %v3346_v5 = vld [vmem:[#allocation12 + $0xd0] sm:$0xff] }
 0x67d   :  { %v2983_v8 = vmul.f32 0.5, %v2982_v7  ;;  %v2987_v18 = vadd.f32 1.0, %v7967_v17  ;;  %v7064_v7 = vpack.c.bf16 %v3348_v62, %v3344_v61  ;;  %v3356_v17 = vld [vmem:[#allocation12 + $0x120] sm:$0xff]  ;;  %v3389_v61 = vld [vmem:[#allocation12 + $0x228] sm:$0xff] }
 0x67e   :  { %v2991_v12 = vmul.f32 %v7965_v38, %v2979_v59  ;;  %v3350_v38 = vld [vmem:[#allocation12 + $0xf0] sm:$0xff]  ;;  %v3355_v59 = vld [vmem:[#allocation12 + $0x118] sm:$0xff] }
 0x67f   :  { %v2990_v15 = vmul.f32 %v2983_v8, %v8595_v52  ;;  %v2988_v26 = vmul.f32 0.5, %v2987_v18  ;;  %v3328_v52 = vld [vmem:[#allocation12 + $0x40] sm:$0xff]  ;;  %v3359_v8 = vld [vmem:[#allocation12 + $0x138] sm:$0xff]  ;;  %v7128_v18 = vpack.c.bf16 %v3350_v38, %v3346_v5 }
 0x680   :  { %v7056_v45 = vpack.c.bf16 %v3332_v35, %v3328_v52  ;;  %v7130_v23 = vpack.c.bf16 %v3359_v8, %v3355_v59  ;;  %v3373_v52 = vld [vmem:[#allocation12 + $0x1a8] sm:$0xff]  ;;  %v3391_v5 = vld [vmem:[#allocation12 + $0x238] sm:$0xff]  ;;  %v3388_v59 = vld [vmem:[#allocation12 + $0x220] sm:$0xff] }
 0x681   :  { %v8621_v16 = vadd.f32 %v2991_v12, %v2990_v15  ;;  %v7066_v12 = vpack.c.bf16 %v3357_v3, %v3353_v2  ;;  %v3352_v15 = vld [vmem:[#allocation12 + $0x100] sm:$0xff]  ;;  %v3382_v2 = vld [vmem:[#allocation12 + $0x1f0] sm:$0xff] }
 0x682   :  { %v7068_v1 = vpack.c.bf16 %v3356_v17, %v3352_v15  ;;  %v3397_v15 = vld [vmem:[#allocation12 + $0x268] sm:$0xff] }
 0x683   :  { %7968 = vtanh.f32 %v8621_v16 }
 0x68d   :  { %v7969_v28 = vpop.eup %7968 }
 0x68e   :  { %v2994_v33 = vmul.f32 %v7969_v28, %v2988_v26  ;;  %v3358_v26 = vld [vmem:[#allocation12 + $0x130] sm:$0xff]  ;;  %v3367_v28 = vld [vmem:[#allocation12 + $0x178] sm:$0xff] }
 0x68f   :  { %v7134_v35 = vpack.c.bf16 %v3367_v28, %v3363_v27  ;;  %v3396_v27 = vld [vmem:[#allocation12 + $0x260] sm:$0xff] }
 0x690   :  { %3215 = vmatmul.mubr.f32.vlgmr.msra.gmra.mrb[18].mxu0 %v2994_v33  ;;  %3286 = vmatmul.mubr.f32.vlgmr.msra.gmra.mrb[18].mxu1 %v2994_v33 }
 0x691   :  { %7053 = vmatpush1.bf16.msra.mxu0 %v7052_v29  ;;  %3534 = vmatprep.mubr.f32.mxu0 %v2994_v33  ;;  %v7070_v29 = vpack.c.bf16 %v3365_v22, %v3361_v20  ;;  %v3390_v20 = vld [vmem:[#allocation12 + $0x230] sm:$0xff] }
 0x692   :  { %3605 = vmatprep.mubr.f32.mxu1 %v2994_v33  ;;  %7055 = vmatprep.subr.bf16.mxu0 %v7054_v34  ;;  %v7132_v33 = vpack.c.bf16 %v3358_v26, %v3354_v24  ;;  %v3369_v34 = vld [vmem:[#allocation12 + $0x188] sm:$0xff]  ;;  %v3399_v24 = vld [vmem:[#allocation12 + $0x278] sm:$0xff] }
 0x693   :  { %7117 = vmatpush1.bf16.msra.mxu1 %v7116_v36  ;;  %v3362_v36 = vld [vmem:[#allocation12 + $0x150] sm:$0xff]  ;;  %v7074_v43 = vpack.c.bf16 %v3373_v52, %v3369_v34 }
 0x694   :  { %7119 = vmatprep.subr.bf16.mxu1 %v7118_v40  ;;  %v3371_v40 = vld [vmem:[#allocation12 + $0x198] sm:$0xff]  ;;  %v7136_v47 = vpack.c.bf16 %v3366_v37, %v3362_v36  ;;  %v3398_v34 = vld [vmem:[#allocation12 + $0x270] sm:$0xff] }
 0x695   :  { %7057 = vmatpush1.bf16.msra.mxu0 %v7056_v45  ;;  %v3368_v45 = vld [vmem:[#allocation12 + $0x180] sm:$0xff]  ;;  %v7138_v19 = vpack.c.bf16 %v3375_v42, %v3371_v40  ;;  %v3407_v36 = vld [vmem:[#allocation12 + $0x2b8] sm:$0xff] }
 0x696   :  { %7059 = vmatprep.subr.bf16.mxu0 %v7058_v48  ;;  %v3377_v48 = vld [vmem:[#allocation12 + $0x1c8] sm:$0xff]  ;;  %v7076_v53 = vpack.c.bf16 %v3372_v46, %v3368_v45  ;;  %v3404_v40 = vld [vmem:[#allocation12 + $0x2a0] sm:$0xff] }
 0x697   :  { %7121 = vmatpush1.bf16.msra.mxu1 %v7120_v50  ;;  %v3370_v50 = vld [vmem:[#allocation12 + $0x190] sm:$0xff]  ;;  %v7078_v55 = vpack.c.bf16 %v3381_v49, %v3377_v48  ;;  %v3413_v45 = vld [vmem:[#allocation12 + $0x2e8] sm:$0xff] }
 0x698   :  { %7123 = vmatprep.subr.bf16.mxu1 %v7122_v32  ;;  %v3379_v32 = vld [vmem:[#allocation12 + $0x1d8] sm:$0xff]  ;;  %v7140_v58 = vpack.c.bf16 %v3374_v51, %v3370_v50  ;;  %v3406_v48 = vld [vmem:[#allocation12 + $0x2b0] sm:$0xff] }
 0x699   :  { %7061 = vmatpush1.bf16.msra.mxu0 %v7060_v56  ;;  %v3376_v56 = vld [vmem:[#allocation12 + $0x1c0] sm:$0xff]  ;;  %v7142_v62 = vpack.c.bf16 %v3383_v54, %v3379_v32  ;;  %v3415_v50 = vld [vmem:[#allocation12 + $0x2f8] sm:$0xff] }
 0x69a   :  { %7063 = vmatprep.subr.bf16.mxu0 %v7062_v60  ;;  %v3385_v60 = vld [vmem:[#allocation12 + $0x208] sm:$0xff]  ;;  %v7080_v3 = vpack.c.bf16 %v3380_v57, %v3376_v56  ;;  %v3412_v32 = vld [vmem:[#allocation12 + $0x2e0] sm:$0xff] }
 0x69b   :  { %7125 = vmatpush1.bf16.msra.mxu1 %v7124_v63  ;;  %v3378_v63 = vld [vmem:[#allocation12 + $0x1d0] sm:$0xff]  ;;  %v7082_v38 = vpack.c.bf16 %v3389_v61, %v3385_v60  ;;  %v3421_v56 = vld [vmem:[#allocation12 + $0x328] sm:$0xff] }
 0x69c   :  { %7127 = vmatprep.subr.bf16.mxu1 %v7126_v4  ;;  %v3387_v4 = vld [vmem:[#allocation12 + $0x218] sm:$0xff]  ;;  %v7144_v8 = vpack.c.bf16 %v3382_v2, %v3378_v63  ;;  %v3414_v60 = vld [vmem:[#allocation12 + $0x2f0] sm:$0xff] }
 0x69d   :  { %7065 = vmatpush1.bf16.msra.mxu0 %v7064_v7  ;;  %v3384_v7 = vld [vmem:[#allocation12 + $0x200] sm:$0xff]  ;;  %v7146_v17 = vpack.c.bf16 %v3391_v5, %v3387_v4  ;;  %v3423_v63 = vld [vmem:[#allocation12 + $0x338] sm:$0xff] }
 0x69e   :  { %7067 = vmatprep.subr.bf16.mxu0 %v7066_v12  ;;  %v3393_v12 = vld [vmem:[#allocation12 + $0x248] sm:$0xff]  ;;  %v7084_v22 = vpack.c.bf16 %v3388_v59, %v3384_v7  ;;  %v3420_v4 = vld [vmem:[#allocation12 + $0x320] sm:$0xff] }
 0x69f   :  { %7129 = vmatpush1.bf16.msra.mxu1 %v7128_v18  ;;  %v3386_v18 = vld [vmem:[#allocation12 + $0x210] sm:$0xff]  ;;  %v7086_v26 = vpack.c.bf16 %v3397_v15, %v3393_v12  ;;  %v3429_v7 = vld [vmem:[#allocation12 + $0x368] sm:$0xff] }
 0x6a0   :  { %7131 = vmatprep.subr.bf16.mxu1 %v7130_v23  ;;  %v3395_v23 = vld [vmem:[#allocation12 + $0x258] sm:$0xff]  ;;  %v7148_v28 = vpack.c.bf16 %v3390_v20, %v3386_v18  ;;  %v3422_v12 = vld [vmem:[#allocation12 + $0x330] sm:$0xff] }
 0x6a1   :  { %7069 = vmatpush1.bf16.msra.mxu0 %v7068_v1  ;;  %v3392_v1 = vld [vmem:[#allocation12 + $0x240] sm:$0xff]  ;;  %v7150_v31 = vpack.c.bf16 %v3399_v24, %v3395_v23  ;;  %v3431_v18 = vld [vmem:[#allocation12 + $0x378] sm:$0xff] }
 0x6a2   :  { %7071 = vmatprep.subr.bf16.mxu0 %v7070_v29  ;;  %v3401_v29 = vld [vmem:[#allocation12 + $0x288] sm:$0xff]  ;;  %v7088_v52 = vpack.c.bf16 %v3396_v27, %v3392_v1  ;;  %v3428_v23 = vld [vmem:[#allocation12 + $0x360] sm:$0xff] }
 0x6a3   :  { %7133 = vmatpush1.bf16.msra.mxu1 %v7132_v33  ;;  %v3394_v33 = vld [vmem:[#allocation12 + $0x250] sm:$0xff]  ;;  %v7090_v37 = vpack.c.bf16 %v3405_v30, %v3401_v29  ;;  %v3437_v1 = vld [vmem:[#allocation12 + $0x3a8] sm:$0xff] }
 0x6a4   :  { %7135 = vmatprep.subr.bf16.mxu1 %v7134_v35  ;;  %v3403_v35 = vld [vmem:[#allocation12 + $0x298] sm:$0xff]  ;;  %v7152_v42 = vpack.c.bf16 %v3398_v34, %v3394_v33  ;;  %v3430_v29 = vld [vmem:[#allocation12 + $0x370] sm:$0xff] }
 0x6a5   :  { %7073 = vmatpush1.bf16.msra.mxu0 %v7072_v39  ;;  %v3400_v39 = vld [vmem:[#allocation12 + $0x280] sm:$0xff]  ;;  %v7154_v46 = vpack.c.bf16 %v3407_v36, %v3403_v35  ;;  %v3439_v33 = vld [vmem:[#allocation12 + $0x3b8] sm:$0xff] }
 0x6a6   :  { %7075 = vmatprep.subr.bf16.mxu0 %v7074_v43  ;;  %v3409_v43 = vld [vmem:[#allocation12 + $0x2c8] sm:$0xff]  ;;  %v7092_v49 = vpack.c.bf16 %v3404_v40, %v3400_v39  ;;  %v3436_v35 = vld [vmem:[#allocation12 + $0x3a0] sm:$0xff] }
 0x6a7   :  { %7137 = vmatpush1.bf16.msra.mxu1 %v7136_v47  ;;  %v3402_v47 = vld [vmem:[#allocation12 + $0x290] sm:$0xff]  ;;  %v7094_v51 = vpack.c.bf16 %v3413_v45, %v3409_v43  ;;  %v3445_v39 = vld [vmem:[#allocation12 + $0x3e8] sm:$0xff] }
 0x6a8   :  { %7139 = vmatprep.subr.bf16.mxu1 %v7138_v19  ;;  %v3411_v19 = vld [vmem:[#allocation12 + $0x2d8] sm:$0xff]  ;;  %v7156_v54 = vpack.c.bf16 %v3406_v48, %v3402_v47  ;;  %v3438_v43 = vld [vmem:[#allocation12 + $0x3b0] sm:$0xff] }
 0x6a9   :  { %7077 = vmatpush1.bf16.msra.mxu0 %v7076_v53  ;;  %v3408_v53 = vld [vmem:[#allocation12 + $0x2c0] sm:$0xff]  ;;  %v7158_v57 = vpack.c.bf16 %v3415_v50, %v3411_v19  ;;  %v3447_v47 = vld [vmem:[#allocation12 + $0x3f8] sm:$0xff] }
 0x6aa   :  { %7079 = vmatprep.subr.bf16.mxu0 %v7078_v55  ;;  %v3417_v55 = vld [vmem:[#allocation12 + $0x308] sm:$0xff]  ;;  %v7096_v61 = vpack.c.bf16 %v3412_v32, %v3408_v53  ;;  %v3444_v19 = vld [vmem:[#allocation12 + $0x3e0] sm:$0xff]  ;;  %v3442_v53 = vld [vmem:[#allocation12 + $0x3d0] sm:$0xff] }
 0x6ab   :  { %7141 = vmatpush1.bf16.msra.mxu1 %v7140_v58  ;;  %v3410_v58 = vld [vmem:[#allocation12 + $0x2d0] sm:$0xff]  ;;  %v7098_v2 = vpack.c.bf16 %v3421_v56, %v3417_v55  ;;  %v3316_v56 = vld [vmem:[#allocation6 + $0x28] sm:$0xff] }
 0x6ac   :  { %7143 = vmatprep.subr.bf16.mxu1 %v7142_v62  ;;  %v3419_v62 = vld [vmem:[#allocation12 + $0x318] sm:$0xff]  ;;  %v7160_v5 = vpack.c.bf16 %v3414_v60, %v3410_v58  ;;  %v3446_v32 = vld [vmem:[#allocation12 + $0x3f0] sm:$0xff]  ;;  %v3641_v58 = vld [vmem:[#allocation14 + $0x28] sm:$0xff] }
 0x6ad   :  { %7081 = vmatpush1.bf16.msra.mxu0 %v7080_v3  ;;  %v3416_v3 = vld [vmem:[#allocation12 + $0x300] sm:$0xff]  ;;  %v7162_v59 = vpack.c.bf16 %v3423_v63, %v3419_v62  ;;  %v7176_v55 = vpack.c.bf16 %v3446_v32, %v3442_v53  ;;  %v3639_v63 = vld [vmem:[#allocation14 + $0x18] sm:$0xff]  ;;  %v3669_v53 = vld [vmem:[#allocation14 + $0x108] sm:$0xff] }
 0x6ae   :  { %7083 = vmatprep.subr.bf16.mxu0 %v7082_v38  ;;  %v3425_v38 = vld [vmem:[#allocation12 + $0x348] sm:$0xff]  ;;  %v7100_v15 = vpack.c.bf16 %v3420_v4, %v3416_v3  ;;  %v3636_v60 = vld [vmem:[#allocation14] sm:$0xff] }
 0x6af   :  { %7145 = vmatpush1.bf16.msra.mxu1 %v7144_v8  ;;  %v3418_v8 = vld [vmem:[#allocation12 + $0x310] sm:$0xff]  ;;  %v7102_v20 = vpack.c.bf16 %v3429_v7, %v3425_v38  ;;  %v3640_v62 = vld [vmem:[#allocation14 + $0x20] sm:$0xff]  ;;  %v3673_v32 = vld [vmem:[#allocation14 + $0x128] sm:$0xff] }
 0x6b0   :  { %7147 = vmatprep.subr.bf16.mxu1 %v7146_v17  ;;  %v3427_v17 = vld [vmem:[#allocation12 + $0x358] sm:$0xff]  ;;  %v7164_v24 = vpack.c.bf16 %v3422_v12, %v3418_v8  ;;  %v7180_v3 = vpack.c.bf16 %v3640_v62, %v3636_v60  ;;  %v3642_v38 = vld [vmem:[#allocation14 + $0x30] sm:$0xff]  ;;  %v3649_v8 = vld [vmem:[#allocation14 + $0x68] sm:$0xff] }
 0x6b1   :  { %7085 = vmatpush1.bf16.msra.mxu0 %v7084_v22  ;;  %v3424_v22 = vld [vmem:[#allocation12 + $0x340] sm:$0xff]  ;;  %v7166_v27 = vpack.c.bf16 %v3431_v18, %v3427_v17  ;;  %v3647_v18 = vld [vmem:[#allocation14 + $0x58] sm:$0xff]  ;;  %v3670_v62 = vld [vmem:[#allocation14 + $0x110] sm:$0xff] }
 0x6b2   :  { %7087 = vmatprep.subr.bf16.mxu0 %v7086_v26  ;;  %v3433_v26 = vld [vmem:[#allocation12 + $0x388] sm:$0xff]  ;;  %v7104_v30 = vpack.c.bf16 %v3428_v23, %v3424_v22  ;;  %v3644_v12 = vld [vmem:[#allocation14 + $0x40] sm:$0xff]  ;;  %v3675_v60 = vld [vmem:[#allocation14 + $0x138] sm:$0xff] }
 0x6b3   :  { %7149 = vmatpush1.bf16.msra.mxu1 %v7148_v28  ;;  %v3426_v28 = vld [vmem:[#allocation12 + $0x350] sm:$0xff]  ;;  %v7106_v34 = vpack.c.bf16 %v3437_v1, %v3433_v26  ;;  %v3648_v17 = vld [vmem:[#allocation14 + $0x60] sm:$0xff]  ;;  %v3653_v1 = vld [vmem:[#allocation14 + $0x88] sm:$0xff] }
 0x6b4   :  { %7151 = vmatprep.subr.bf16.mxu1 %v7150_v31  ;;  %v3435_v31 = vld [vmem:[#allocation12 + $0x398] sm:$0xff]  ;;  %v7168_v36 = vpack.c.bf16 %v3430_v29, %v3426_v28  ;;  %v7184_v22 = vpack.c.bf16 %v3648_v17, %v3644_v12  ;;  %v3650_v26 = vld [vmem:[#allocation14 + $0x70] sm:$0xff]  ;;  %v3657_v28 = vld [vmem:[#allocation14 + $0xa8] sm:$0xff] }
 0x6b5   :  { %7089 = vmatpush1.bf16.msra.mxu0 %v7088_v52  ;;  %v3432_v52 = vld [vmem:[#allocation12 + $0x380] sm:$0xff]  ;;  %v7170_v40 = vpack.c.bf16 %v3439_v33, %v3435_v31  ;;  %v7186_v31 = vpack.c.bf16 %v3657_v28, %v3653_v1 }
 0x6b6   :  { %7091 = vmatprep.subr.bf16.mxu0 %v7090_v37  ;;  %v3441_v37 = vld [vmem:[#allocation12 + $0x3c8] sm:$0xff]  ;;  %v7108_v45 = vpack.c.bf16 %v3436_v35, %v3432_v52  ;;  %v3652_v29 = vld [vmem:[#allocation14 + $0x80] sm:$0xff]  ;;  %v3659_v52 = vld [vmem:[#allocation14 + $0xb8] sm:$0xff] }
 0x6b7   :  { %7153 = vmatpush1.bf16.msra.mxu1 %v7152_v42  ;;  %v3434_v42 = vld [vmem:[#allocation12 + $0x390] sm:$0xff]  ;;  %v7110_v48 = vpack.c.bf16 %v3445_v39, %v3441_v37  ;;  %v3661_v39 = vld [vmem:[#allocation14 + $0xc8] sm:$0xff]  ;;  %v3680_v12 = vld [vmem:[#allocation14 + $0x160] sm:$0xff] }
 0x6b8   :  { %7155 = vmatprep.subr.bf16.mxu1 %v7154_v46  ;;  %v3443_v46 = vld [vmem:[#allocation12 + $0x3d8] sm:$0xff]  ;;  %v7172_v50 = vpack.c.bf16 %v3438_v43, %v3434_v42  ;;  %v3654_v35 = vld [vmem:[#allocation14 + $0x90] sm:$0xff]  ;;  %v3684_v28 = vld [vmem:[#allocation14 + $0x180] sm:$0xff] }
 0x6b9   :  { %7093 = vmatpush1.bf16.msra.mxu0 %v7092_v49  ;;  %v3440_v49 = vld [vmem:[#allocation12 + $0x3c0] sm:$0xff]  ;;  %v3658_v37 = vld [vmem:[#allocation14 + $0xb0] sm:$0xff] }
 0x6ba   :  { %7095 = vmatprep.subr.bf16.mxu0 %v7094_v51  ;;  %v7174_v51 = vpack.c.bf16 %v3447_v47, %v3443_v46  ;;  %v7252_v42 = vpack.c.bf16 %v3658_v37, %v3654_v35  ;;  %v3664_v46 = vld [vmem:[#allocation14 + $0xe0] sm:$0xff]  ;;  %v3663_v47 = vld [vmem:[#allocation14 + $0xd8] sm:$0xff]  ;;  %v3693_v35 = vld [vmem:[#allocation14 + $0x1c8] sm:$0xff] }
 0x6bb   :  { %7157 = vmatpush1.bf16.msra.mxu1 %v7156_v54  ;;  %v7112_v54 = vpack.c.bf16 %v3444_v19, %v3440_v49  ;;  %v3662_v49 = vld [vmem:[#allocation14 + $0xd0] sm:$0xff] }
 0x6bc   :  { %7159 = vmatprep.subr.bf16.mxu1 %v7158_v57  ;;  %v3637_v57 = vld [vmem:[#allocation14 + $0x8] sm:$0xff]  ;;  %v3666_v19 = vld [vmem:[#allocation14 + $0xf0] sm:$0xff] }
 0x6bd   :  { %7097 = vmatpush1.bf16.msra.mxu0 %v7096_v61  ;;  %v7178_v61 = vpack.c.bf16 %v3641_v58, %v3637_v57  ;;  %v3672_v57 = vld [vmem:[#allocation14 + $0x120] sm:$0xff]  ;;  %v3671_v58 = vld [vmem:[#allocation14 + $0x118] sm:$0xff] }
 0x6be   :  { %7099 = vmatprep.subr.bf16.mxu0 %v7098_v2  ;;  %v3643_v2 = vld [vmem:[#allocation14 + $0x38] sm:$0xff] }
 0x6bf   :  { %7161 = vmatpush1.bf16.msra.mxu1 %v7160_v5  ;;  %v7242_v4 = vpack.c.bf16 %v3643_v2, %v3639_v63  ;;  %v3638_v5 = vld [vmem:[#allocation14 + $0x10] sm:$0xff]  ;;  %v3677_v2 = vld [vmem:[#allocation14 + $0x148] sm:$0xff] }
 0x6c0   :  { %7163 = vmatprep.subr.bf16.mxu1 %v7162_v59  ;;  %v7244_v7 = vpack.c.bf16 %v3642_v38, %v3638_v5  ;;  %v3645_v59 = vld [vmem:[#allocation14 + $0x48] sm:$0xff]  ;;  %v3674_v63 = vld [vmem:[#allocation14 + $0x130] sm:$0xff]  ;;  %v3679_v5 = vld [vmem:[#allocation14 + $0x158] sm:$0xff] }
 0x6c1   :  { %7101 = vmatpush1.bf16.msra.mxu0 %v7100_v15  ;;  %v7182_v15 = vpack.c.bf16 %v3649_v8, %v3645_v59  ;;  %v3683_v38 = vld [vmem:[#allocation14 + $0x178] sm:$0xff]  ;;  %v3676_v8 = vld [vmem:[#allocation14 + $0x140] sm:$0xff] }
 0x6c2   :  { %7103 = vmatprep.subr.bf16.mxu0 %v7102_v20  ;;  %v3651_v20 = vld [vmem:[#allocation14 + $0x78] sm:$0xff]  ;;  %v7262_v17 = vpack.c.bf16 %v3683_v38, %v3679_v5 }
 0x6c3   :  { %7165 = vmatpush1.bf16.msra.mxu1 %v7164_v24  ;;  %v7246_v23 = vpack.c.bf16 %v3651_v20, %v3647_v18  ;;  %v3646_v24 = vld [vmem:[#allocation14 + $0x50] sm:$0xff]  ;;  %v3685_v20 = vld [vmem:[#allocation14 + $0x188] sm:$0xff]  ;;  %v3711_v5 = vld [vmem:[#allocation14 + $0x258] sm:$0xff] }
 0x6c4   :  { %7167 = vmatprep.subr.bf16.mxu1 %v7166_v27  ;;  %v7248_v27 = vpack.c.bf16 %v3650_v26, %v3646_v24  ;;  %v3682_v18 = vld [vmem:[#allocation14 + $0x170] sm:$0xff]  ;;  %v3691_v24 = vld [vmem:[#allocation14 + $0x1b8] sm:$0xff]  ;;  %v7200_v26 = vpack.c.bf16 %v3680_v12, %v3676_v8 }
 0x6c5   :  { %7105 = vmatpush1.bf16.msra.mxu0 %v7104_v30  ;;  %v3656_v30 = vld [vmem:[#allocation14 + $0xa0] sm:$0xff]  ;;  %v3714_v8 = vld [vmem:[#allocation14 + $0x270] sm:$0xff] }
 0x6c6   :  { %7107 = vmatprep.subr.bf16.mxu0 %v7106_v34  ;;  %v7188_v33 = vpack.c.bf16 %v3656_v30, %v3652_v29  ;;  %v3655_v34 = vld [vmem:[#allocation14 + $0x98] sm:$0xff]  ;;  %v3688_v29 = vld [vmem:[#allocation14 + $0x1a0] sm:$0xff] }
 0x6c7   :  { %7169 = vmatpush1.bf16.msra.mxu1 %v7168_v36  ;;  %v7250_v36 = vpack.c.bf16 %v3659_v52, %v3655_v34  ;;  %v7204_v34 = vpack.c.bf16 %v3688_v29, %v3684_v28  ;;  %v3722_v28 = vld [vmem:[#allocation14 + $0x2b0] sm:$0xff] }
 0x6c8   :  { %7171 = vmatprep.subr.bf16.mxu1 %v7170_v40  ;;  %v3665_v40 = vld [vmem:[#allocation14 + $0xe8] sm:$0xff] }
 0x6c9   :  { %7109 = vmatpush1.bf16.msra.mxu0 %v7108_v45  ;;  %v7190_v43 = vpack.c.bf16 %v3665_v40, %v3661_v39  ;;  %v3660_v45 = vld [vmem:[#allocation14 + $0xc0] sm:$0xff] }
 0x6ca   :  { %7111 = vmatprep.subr.bf16.mxu0 %v7110_v48  ;;  %v3667_v48 = vld [vmem:[#allocation14 + $0xf8] sm:$0xff]  ;;  %v3692_v39 = vld [vmem:[#allocation14 + $0x1c0] sm:$0xff] }
 0x6cb   :  { %7173 = vmatpush1.bf16.msra.mxu1 %v7172_v50  ;;  %v7192_v50 = vpack.c.bf16 %v3664_v46, %v3660_v45  ;;  %v3696_v40 = vld [vmem:[#allocation14 + $0x1e0] sm:$0xff]  ;;  %v3699_v45 = vld [vmem:[#allocation14 + $0x1f8] sm:$0xff]  ;;  %v3694_v46 = vld [vmem:[#allocation14 + $0x1d0] sm:$0xff] }
 0x6cc   :  { %7175 = vmatprep.subr.bf16.mxu1 %v7174_v51  ;;  %v7254_v51 = vpack.c.bf16 %v3667_v48, %v3663_v47  ;;  %v3698_v47 = vld [vmem:[#allocation14 + $0x1f0] sm:$0xff] }
 0x6cd   :  { %7113 = vmatpush1.bf16.msra.mxu0 %v7112_v54  ;;  %v3668_v54 = vld [vmem:[#allocation14 + $0x100] sm:$0xff] }
 0x6ce   :  { %7179 = vmatprep.subr.bf16.mxu0 %v7178_v61  ;;  %v7258_v61 = vpack.c.bf16 %v3675_v60, %v3671_v58  ;;  %v3706_v58 = vld [vmem:[#allocation14 + $0x230] sm:$0xff] }
 0x6cf   :  { %7177 = vmatpush1.bf16.msra.mxu1 %v7176_v55  ;;  %v7256_v55 = vpack.c.bf16 %v3666_v19, %v3662_v49  ;;  %v7272_v49 = vpack.c.bf16 %v3698_v47, %v3694_v46  ;;  %v3701_v19 = vld [vmem:[#allocation14 + $0x208] sm:$0xff] }
 0x6d0   :  { %3535 = vmatmul.mubr.f32.vlgmr.msra.gmra.mrb[20].mxu0 %v3316_v56  ;;  %7243 = vmatprep.subr.bf16.mxu1 %v7242_v4  ;;  %v7196_v4 = vpack.c.bf16 %v3672_v57, %v3668_v54  ;;  %v3703_v54 = vld [vmem:[#allocation14 + $0x218] sm:$0xff]  ;;  %v3702_v57 = vld [vmem:[#allocation14 + $0x210] sm:$0xff]  ;;  %v3733_v46 = vld [vmem:[#allocation14 + $0x308] sm:$0xff] }
 0x6d1   :  { %7181 = vmatpush1.bf16.msra.mxu0 %v7180_v3  ;;  %v3681_v3 = vld [vmem:[#allocation14 + $0x168] sm:$0xff] }
 0x6d2   :  { %3606 = vmatmul.mubr.f32.vlgmr.msra.gmra.mrb[20].mxu1 %v3316_v56  ;;  %7183 = vmatprep.subr.bf16.mxu0 %v7182_v15  ;;  %v7194_v56 = vpack.c.bf16 %v3673_v32, %v3669_v53  ;;  %v7198_v59 = vpack.c.bf16 %v3681_v3, %v3677_v2  ;;  %v3678_v15 = vld [vmem:[#allocation14 + $0x150] sm:$0xff]  ;;  %v3700_v53 = vld [vmem:[#allocation14 + $0x200] sm:$0xff]  ;;  %v3737_v47 = vld [vmem:[#allocation14 + $0x328] sm:$0xff] }
 0x6d3   :  { %7245 = vmatpush1.bf16.msra.mxu1 %v7244_v7  ;;  %v7260_v7 = vpack.c.bf16 %v3674_v63, %v3670_v62  ;;  %v7264_v1 = vpack.c.bf16 %v3682_v18, %v3678_v15  ;;  %v3704_v32 = vld [vmem:[#allocation14 + $0x220] sm:$0xff]  ;;  %v3709_v62 = vld [vmem:[#allocation14 + $0x248] sm:$0xff] }
 0x6d4   :  { %7247 = vmatprep.subr.bf16.mxu1 %v7246_v23  ;;  %v3687_v23 = vld [vmem:[#allocation14 + $0x198] sm:$0xff]  ;;  %v3713_v63 = vld [vmem:[#allocation14 + $0x268] sm:$0xff]  ;;  %v3708_v3 = vld [vmem:[#allocation14 + $0x240] sm:$0xff] }
 0x6d5   :  { %7185 = vmatpush1.bf16.msra.mxu0 %v7184_v22  ;;  %v3689_v22 = vld [vmem:[#allocation14 + $0x1a8] sm:$0xff]  ;;  %v7266_v30 = vpack.c.bf16 %v3691_v24, %v3687_v23  ;;  %v7214_v2 = vpack.c.bf16 %v3713_v63, %v3709_v62  ;;  %v3720_v23 = vld [vmem:[#allocation14 + $0x2a0] sm:$0xff]  ;;  %v3719_v24 = vld [vmem:[#allocation14 + $0x298] sm:$0xff] }
 0x6d6   :  { %7187 = vmatprep.subr.bf16.mxu0 %v7186_v31  ;;  %v3686_v31 = vld [vmem:[#allocation14 + $0x190] sm:$0xff]  ;;  %v3721_v18 = vld [vmem:[#allocation14 + $0x2a8] sm:$0xff]  ;;  %v3744_v62 = vld [vmem:[#allocation14 + $0x360] sm:$0xff] }
 0x6d7   :  { %7249 = vmatpush1.bf16.msra.mxu1 %v7248_v27  ;;  %v7202_v27 = vpack.c.bf16 %v3689_v22, %v3685_v20  ;;  %v3716_v22 = vld [vmem:[#allocation14 + $0x280] sm:$0xff]  ;;  %v3743_v63 = vld [vmem:[#allocation14 + $0x358] sm:$0xff] }
 0x6d8   :  { %7251 = vmatprep.subr.bf16.mxu1 %v7250_v36  ;;  %v3697_v36 = vld [vmem:[#allocation14 + $0x1e8] sm:$0xff] }
 0x6d9   :  { %7189 = vmatpush1.bf16.msra.mxu0 %v7188_v33  ;;  %v3690_v33 = vld [vmem:[#allocation14 + $0x1b0] sm:$0xff]  ;;  %v7206_v37 = vpack.c.bf16 %v3697_v36, %v3693_v35  ;;  %v3728_v35 = vld [vmem:[#allocation14 + $0x2e0] sm:$0xff]  ;;  %v3727_v36 = vld [vmem:[#allocation14 + $0x2d8] sm:$0xff] }
 0x6da   :  { %7191 = vmatprep.subr.bf16.mxu0 %v7190_v43  ;;  %v7268_v52 = vpack.c.bf16 %v3690_v33, %v3686_v31  ;;  %v7208_v43 = vpack.c.bf16 %v3696_v40, %v3692_v39  ;;  %v3725_v31 = vld [vmem:[#allocation14 + $0x2c8] sm:$0xff]  ;;  %v3731_v39 = vld [vmem:[#allocation14 + $0x2f8] sm:$0xff]  ;;  %v3726_v40 = vld [vmem:[#allocation14 + $0x2d0] sm:$0xff] }
 0x6db   :  { %7253 = vmatpush1.bf16.msra.mxu1 %v7252_v42  ;;  %v3695_v42 = vld [vmem:[#allocation14 + $0x1d8] sm:$0xff]  ;;  %v3729_v33 = vld [vmem:[#allocation14 + $0x2e8] sm:$0xff] }
 0x6dc   :  { %7255 = vmatprep.subr.bf16.mxu1 %v7254_v51  ;;  %v7270_v48 = vpack.c.bf16 %v3699_v45, %v3695_v42  ;;  %v3730_v42 = vld [vmem:[#allocation14 + $0x2f0] sm:$0xff] }
 0x6dd   :  { %7193 = vmatpush1.bf16.msra.mxu0 %v7192_v50  ;;  %v3705_v50 = vld [vmem:[#allocation14 + $0x228] sm:$0xff]  ;;  %v7288_v45 = vpack.c.bf16 %v3730_v42, %v3726_v40 }
 0x6de   :  { %7195 = vmatprep.subr.bf16.mxu0 %v7194_v56  ;;  %v7210_v51 = vpack.c.bf16 %v3705_v50, %v3701_v19  ;;  %v3707_v56 = vld [vmem:[#allocation14 + $0x238] sm:$0xff]  ;;  %v3736_v19 = vld [vmem:[#allocation14 + $0x320] sm:$0xff]  ;;  %v3957_v40 = vld [vmem:[#allocation12 + $0x8] sm:$0xff] }
 0x6df   :  { %7257 = vmatpush1.bf16.msra.mxu1 %v7256_v55  ;;  %v7212_v55 = vpack.c.bf16 %v3704_v32, %v3700_v53  ;;  %v7274_v60 = vpack.c.bf16 %v3707_v56, %v3703_v54  ;;  %v3735_v50 = vld [vmem:[#allocation14 + $0x318] sm:$0xff]  ;;  %v3734_v32 = vld [vmem:[#allocation14 + $0x310] sm:$0xff]  ;;  %v3961_v42 = vld [vmem:[#allocation12 + $0x28] sm:$0xff] }
 0x6e0   :  { %7259 = vmatprep.subr.bf16.mxu1 %v7258_v61  ;;  %v7276_v61 = vpack.c.bf16 %v3706_v58, %v3702_v57  ;;  %v3739_v53 = vld [vmem:[#allocation14 + $0x338] sm:$0xff]  ;;  %v3738_v54 = vld [vmem:[#allocation14 + $0x330] sm:$0xff]  ;;  %v3741_v57 = vld [vmem:[#allocation14 + $0x348] sm:$0xff] }
 0x6e1   :  { %7197 = vmatpush1.bf16.msra.mxu0 %v7196_v4  ;;  %v3712_v4 = vld [vmem:[#allocation14 + $0x260] sm:$0xff]  ;;  %v7292_v56 = vpack.c.bf16 %v3738_v54, %v3734_v32  ;;  %v3745_v58 = vld [vmem:[#allocation14 + $0x368] sm:$0xff] }
 0x6e2   :  { %7199 = vmatprep.subr.bf16.mxu0 %v7198_v59  ;;  %v7216_v38 = vpack.c.bf16 %v3712_v4, %v3708_v3  ;;  %v3710_v59 = vld [vmem:[#allocation14 + $0x250] sm:$0xff]  ;;  %v3747_v3 = vld [vmem:[#allocation14 + $0x378] sm:$0xff] }
 0x6e3   :  { %7261 = vmatpush1.bf16.msra.mxu1 %v7260_v7  ;;  %v3715_v7 = vld [vmem:[#allocation14 + $0x278] sm:$0xff]  ;;  %v7280_v15 = vpack.c.bf16 %v3714_v8, %v3710_v59  ;;  %v3742_v4 = vld [vmem:[#allocation14 + $0x350] sm:$0xff]  ;;  %v3749_v59 = vld [vmem:[#allocation14 + $0x388] sm:$0xff] }
 0x6e4   :  { %7263 = vmatprep.subr.bf16.mxu1 %v7262_v17  ;;  %v7278_v12 = vpack.c.bf16 %v3715_v7, %v3711_v5  ;;  %v3717_v17 = vld [vmem:[#allocation14 + $0x288] sm:$0xff]  ;;  %v3746_v5 = vld [vmem:[#allocation14 + $0x370] sm:$0xff] }
 0x6e5   :  { %7201 = vmatpush1.bf16.msra.mxu0 %v7200_v26  ;;  %v7218_v20 = vpack.c.bf16 %v3721_v18, %v3717_v17  ;;  %v7220_v26 = vpack.c.bf16 %v3720_v23, %v3716_v22  ;;  %v7296_v7 = vpack.c.bf16 %v3746_v5, %v3742_v4  ;;  %v3753_v8 = vld [vmem:[#allocation14 + $0x3a8] sm:$0xff]  ;;  %v3752_v17 = vld [vmem:[#allocation14 + $0x3a0] sm:$0xff]  ;;  %v3751_v18 = vld [vmem:[#allocation14 + $0x398] sm:$0xff] }
 0x6e6   :  { %7203 = vmatprep.subr.bf16.mxu0 %v7202_v27  ;;  %v3718_v27 = vld [vmem:[#allocation14 + $0x290] sm:$0xff]  ;;  %v3755_v22 = vld [vmem:[#allocation14 + $0x3b8] sm:$0xff] }
 0x6e7   :  { %7265 = vmatpush1.bf16.msra.mxu1 %v7264_v1  ;;  %v3723_v1 = vld [vmem:[#allocation14 + $0x2b8] sm:$0xff]  ;;  %v3750_v23 = vld [vmem:[#allocation14 + $0x390] sm:$0xff] }
 0x6e8   :  { %7267 = vmatprep.subr.bf16.mxu1 %v7266_v30  ;;  %v7282_v29 = vpack.c.bf16 %v3723_v1, %v3719_v24  ;;  %v7284_v30 = vpack.c.bf16 %v3722_v28, %v3718_v27  ;;  %v3754_v24 = vld [vmem:[#allocation14 + $0x3b0] sm:$0xff]  ;;  %v3757_v27 = vld [vmem:[#allocation14 + $0x3c8] sm:$0xff] }
 0x6e9   :  { %7205 = vmatpush1.bf16.msra.mxu0 %v7204_v34  ;;  %v7222_v34 = vpack.c.bf16 %v3729_v33, %v3725_v31  ;;  %v7300_v1 = vpack.c.bf16 %v3754_v24, %v3750_v23  ;;  %v3761_v28 = vld [vmem:[#allocation14 + $0x3e8] sm:$0xff]  ;;  %v3760_v31 = vld [vmem:[#allocation14 + $0x3e0] sm:$0xff]  ;;  %v3759_v33 = vld [vmem:[#allocation14 + $0x3d8] sm:$0xff] }
 0x6ea   :  { %7207 = vmatprep.subr.bf16.mxu0 %v7206_v37  ;;  %v3448_v24 = vld [vmem:[%s8950_s4] sm:$0xf] }
 0x6eb   :  { %7269 = vmatpush1.bf16.msra.mxu1 %v7268_v52  ;;  %v3724_v52 = vld [vmem:[#allocation14 + $0x2c0] sm:$0xff] }
 0x6ec   :  { %7271 = vmatprep.subr.bf16.mxu1 %v7270_v48  ;;  %v7224_v37 = vpack.c.bf16 %v3728_v35, %v3724_v52  ;;  %v7226_v48 = vpack.c.bf16 %v3737_v47, %v3733_v46  ;;  %v3763_v52 = vld [vmem:[#allocation14 + $0x3f8] sm:$0xff]  ;;  %v3758_v35 = vld [vmem:[#allocation14 + $0x3d0] sm:$0xff] }
 0x6ed   :  { %7209 = vmatpush1.bf16.msra.mxu0 %v7208_v43  ;;  %v7286_v43 = vpack.c.bf16 %v3731_v39, %v3727_v36  ;;  %v3762_v36 = vld [vmem:[#allocation14 + $0x3f0] sm:$0xff]  ;;  %v3963_v46 = vld [vmem:[#allocation12 + $0x38] sm:$0xff] }
 0x6ee   :  { %7211 = vmatprep.subr.bf16.mxu0 %v7210_v51  ;;  %v7304_v39 = vpack.c.bf16 %v3762_v36, %v3758_v35  ;;  %v3465_v36 = vrot.slane %v3448_v24, %v8515_v21 }
 0x6ef   :  { %7273 = vmatpush1.bf16.msra.mxu1 %v7272_v49  ;;  %v3732_v49 = vld [vmem:[#allocation14 + $0x300] sm:$0xff] }
 0x6f0   :  { %7275 = vmatprep.subr.bf16.mxu1 %v7274_v60  ;;  %v7228_v51 = vpack.c.bf16 %v3736_v19, %v3732_v49  ;;  %v7230_v60 = vpack.c.bf16 %v3745_v58, %v3741_v57 }
 0x6f1   :  { %7213 = vmatpush1.bf16.msra.mxu0 %v7212_v55  ;;  %v7290_v55 = vpack.c.bf16 %v3739_v53, %v3735_v50 }
 0x6f2   :  { %7215 = vmatprep.subr.bf16.mxu0 %v7214_v2 }
 0x6f3   :  { %7277 = vmatpush1.bf16.msra.mxu1 %v7276_v61  ;;  %v3740_v61 = vld [vmem:[#allocation14 + $0x340] sm:$0xff] }
 0x6f4   :  { %7279 = vmatprep.subr.bf16.mxu1 %v7278_v12  ;;  %v7232_v2 = vpack.c.bf16 %v3744_v62, %v3740_v61  ;;  %v7234_v12 = vpack.c.bf16 %v3753_v8, %v3749_v59 }
 0x6f5   :  { %7217 = vmatpush1.bf16.msra.mxu0 %v7216_v38  ;;  %v7294_v38 = vpack.c.bf16 %v3747_v3, %v3743_v63 }
 0x6f6   :  { %7219 = vmatprep.subr.bf16.mxu0 %v7218_v20 }
 0x6f7   :  { %7281 = vmatpush1.bf16.msra.mxu1 %v7280_v15  ;;  %v3748_v15 = vld [vmem:[#allocation14 + $0x380] sm:$0xff] }
 0x6f8   :  { %7283 = vmatprep.subr.bf16.mxu1 %v7282_v29  ;;  %v7236_v20 = vpack.c.bf16 %v3752_v17, %v3748_v15  ;;  %v7238_v29 = vpack.c.bf16 %v3761_v28, %v3757_v27 }
 0x6f9   :  { %7221 = vmatpush1.bf16.msra.mxu0 %v7220_v26  ;;  %v7298_v26 = vpack.c.bf16 %v3755_v22, %v3751_v18 }
 0x6fa   :  { %7223 = vmatprep.subr.bf16.mxu0 %v7222_v34 }
 0x6fb   :  { %7285 = vmatpush1.bf16.msra.mxu1 %v7284_v30  ;;  %v3756_v30 = vld [vmem:[#allocation14 + $0x3c0] sm:$0xff] }
 0x6fc   :  { %7287 = vmatprep.subr.bf16.mxu1 %v7286_v43  ;;  %v7240_v34 = vpack.c.bf16 %v3760_v31, %v3756_v30  ;;  %v7306_v43 = vpack.c.bf16 %v3961_v42, %v3957_v40 }
 0x6fd   :  { %7225 = vmatpush1.bf16.msra.mxu0 %v7224_v37  ;;  %v7302_v37 = vpack.c.bf16 %v3763_v52, %v3759_v33 }
 0x6fe   :  { %7227 = vmatprep.subr.bf16.mxu0 %v7226_v48  ;;  %v3128_v48 = vld [vmem:[%s8952_s6] sm:$0xf] }
 0x6ff   :  { %7289 = vmatpush1.bf16.msra.mxu1 %v7288_v45  ;;  %v3959_v45 = vld [vmem:[#allocation12 + $0x18] sm:$0xff]  ;;  %v3133_v49 = vrot.slane %v3128_v48, %v8500_v11  ;;  %v3137_v19 = vrot.slane %v3128_v48, %v8506_v13  ;;  %v3141_v32 = vrot.slane %v3128_v48, %v8509_v14  ;;  %v3145_v61 = vrot.slane %v3128_v48, %v8515_v21 }
 0x700   :  { %7291 = vmatprep.subr.bf16.mxu1 %v7290_v55  ;;  %v7370_v47 = vpack.c.bf16 %v3963_v46, %v3959_v45 }
 0x701   :  { %7229 = vmatpush1.bf16.msra.mxu0 %v7228_v51 }
 0x702   :  { %7231 = vmatprep.subr.bf16.mxu0 %v7230_v60 }
 0x703   :  { %7293 = vmatpush1.bf16.msra.mxu1 %v7292_v56 }
 0x704   :  { %7295 = vmatprep.subr.bf16.mxu1 %v7294_v38 }
 0x705   :  { %7233 = vmatpush1.bf16.msra.mxu0 %v7232_v2 }
 0x706   :  { %7235 = vmatprep.subr.bf16.mxu0 %v7234_v12 }
 0x707   :  { %7297 = vmatpush1.bf16.msra.mxu1 %v7296_v7 }
 0x708   :  { %7299 = vmatprep.subr.bf16.mxu1 %v7298_v26  ;;  %v3457_v26 = vrot.slane %v3448_v24, %v8506_v13 }
 0x709   :  { %7237 = vmatpush1.bf16.msra.mxu0 %v7236_v20 }
 0x70a   :  { %7239 = vmatprep.subr.bf16.mxu0 %v7238_v29 }
 0x70b   :  { %7301 = vmatpush1.bf16.msra.mxu1 %v7300_v1  ;;  %v3461_v1 = vrot.slane %v3448_v24, %v8509_v14 }
 0x70c   :  { %7303 = vmatprep.subr.bf16.mxu1 %v7302_v37 }
 0x70d   :  { %7241 = vmatpush1.bf16.msra.mxu0 %v7240_v34 }
 0x70e   :  { %7307 = vmatprep.subr.bf16.mxu0 %v7306_v43 }
 0x70f   :  { %7305 = vmatpush1.bf16.msra.mxu1 %v7304_v39 }
 0x710   :  { %7371 = vmatprep.subr.bf16.mxu1 %v7370_v47 }
 0x763   :  { %v3216_v50 = vpop.f32.mrb[18].mxu0  ;;  %v3287_v51 = vpop.f32.mrb[18].mxu1 }
 0x764   :  { %v3217_v53 = vadd.f32 %v3216_v50, %v3133_v49  ;;  %v3218_v54 = vpop.f32.mrb[19].mxu0  ;;  %v3289_v55 = vpop.f32.mrb[19].mxu1  ;;  %v3288_v60 = vadd.f32 %v3287_v51, %v3141_v32  ;;  %v3956_v32 = vld [vmem:[#allocation12] sm:$0xff] }
 0x765   :  { %v3219_v56 = vadd.f32 %v3218_v54, %v3137_v19  ;;  %v3290_v62 = vadd.f32 %v3289_v55, %v3145_v61  ;;  %v3960_v54 = vld [vmem:[#allocation12 + $0x20] sm:$0xff]  ;;  %v3965_v55 = vld [vmem:[#allocation12 + $0x48] sm:$0xff] }
 0x766   :  { %v3292_v57 = vmul.f32 0.5, %v3217_v53 }
 0x767   :  { %v3296_v58 = vmul.f32 0.5, %v3219_v56  ;;  %v3301_v63 = vmul.f32 0.5, %v3290_v62  ;;  %v3969_v56 = vld [vmem:[#allocation12 + $0x68] sm:$0xff]  ;;  %v7308_v62 = vpack.c.bf16 %v3960_v54, %v3956_v32 }
 0x768   :  { %7970 = vtanh.f32 %v3292_v57  ;;  %v3997_v54 = vld [vmem:[#allocation12 + $0x148] sm:$0xff] }
 0x769   :  { %7972 = vtanh.f32 %v3296_v58  ;;  %v3958_v58 = vld [vmem:[#allocation12 + $0x10] sm:$0xff] }
 0x76a   :  { %7974 = vtanh.f32 %v3288_v60  ;;  %v3962_v60 = vld [vmem:[#allocation12 + $0x30] sm:$0xff] }
 0x76b   :  { %7976 = vtanh.f32 %v3301_v63  ;;  %v3967_v63 = vld [vmem:[#allocation12 + $0x58] sm:$0xff] }
 0x772   :  { %v7971_v2 = vpop.eup %7970 }
 0x773   :  { %v7973_v3 = vpop.eup %7972  ;;  %v3294_v4 = vadd.f32 1.0, %v7971_v2  ;;  %v3971_v2 = vld [vmem:[#allocation12 + $0x78] sm:$0xff] }
 0x774   :  { %v3298_v5 = vadd.f32 1.0, %v7973_v3  ;;  %v7975_v7 = vpop.eup %7974 }
 0x775   :  { %v3295_v38 = vmul.f32 0.5, %v3294_v4  ;;  %v7977_v17 = vpop.eup %7976  ;;  %v7310_v4 = vpack.c.bf16 %v3969_v56, %v3965_v55  ;;  %v4001_v55 = vld [vmem:[#allocation12 + $0x168] sm:$0xff] }
 0x776   :  { %v3299_v59 = vmul.f32 0.5, %v3298_v5  ;;  %v3303_v18 = vadd.f32 1.0, %v7977_v17  ;;  %v3968_v5 = vld [vmem:[#allocation12 + $0x60] sm:$0xff]  ;;  %v3970_v17 = vld [vmem:[#allocation12 + $0x70] sm:$0xff] }
 0x777   :  { %v3307_v8 = vmul.f32 %v7975_v7, %v3295_v38  ;;  %v7372_v38 = vpack.c.bf16 %v3962_v60, %v3958_v58  ;;  %v3973_v7 = vld [vmem:[#allocation12 + $0x88] sm:$0xff]  ;;  %v3994_v58 = vld [vmem:[#allocation12 + $0x130] sm:$0xff] }
 0x778   :  { %v3306_v12 = vmul.f32 %v3299_v59, %v8606_v44  ;;  %v3304_v20 = vmul.f32 0.5, %v3303_v18  ;;  %v3453_v44 = vrot.slane %v3448_v24, %v8500_v11  ;;  %v3977_v59 = vld [vmem:[#allocation12 + $0xa8] sm:$0xff] }
 0x779   :  { %v7314_v24 = vpack.c.bf16 %v3977_v59, %v3973_v7  ;;  %v3998_v7 = vld [vmem:[#allocation12 + $0x150] sm:$0xff] }
 0x77a   :  { %v8632_v15 = vadd.f32 %v3307_v8, %v3306_v12  ;;  %v7374_v8 = vpack.c.bf16 %v3971_v2, %v3967_v63  ;;  %v3966_v12 = vld [vmem:[#allocation12 + $0x50] sm:$0xff]  ;;  %v7326_v63 = vpack.c.bf16 %v4001_v55, %v3997_v54  ;;  %v3996_v2 = vld [vmem:[#allocation12 + $0x140] sm:$0xff] }
 0x77b   :  { %v4002_v59 = vld [vmem:[#allocation12 + $0x170] sm:$0xff] }
 0x77c   :  { %7978 = vtanh.f32 %v8632_v15  ;;  %v4022_v54 = vld [vmem:[#allocation12 + $0x210] sm:$0xff] }
 0x77d   :  { %v4026_v55 = vld [vmem:[#allocation12 + $0x230] sm:$0xff] }
 0x786   :  { %v7979_v22 = vpop.eup %7978 }
 0x787   :  { %v8635_v23 = vmul.f32 %v7979_v22, %v3304_v20  ;;  %v3975_v20 = vld [vmem:[#allocation12 + $0x98] sm:$0xff] }
 0x788   :  { %v3979_v22 = vld [vmem:[#allocation12 + $0xb8] sm:$0xff] }
 0x789   :  { %3850 = vmatprep.mubr.f32.mxu0 %v8635_v23  ;;  %3921 = vmatprep.mubr.f32.mxu1 %v8635_v23 }
 0x7a3   :  { %v3536_v27 = vpop.f32.mrb[20].mxu0 }
 0x7a4   :  { %v3537_v28 = vadd.f32 %v3536_v27, %v3453_v44  ;;  %v3538_v29 = vpop.f32.mrb[21].mxu0  ;;  %v3972_v44 = vld [vmem:[#allocation12 + $0x80] sm:$0xff]  ;;  %v3981_v27 = vld [vmem:[#allocation12 + $0xc8] sm:$0xff] }
 0x7a5   :  { %v3539_v30 = vadd.f32 %v3538_v29, %v3457_v26  ;;  %v3607_v31 = vpop.f32.mrb[20].mxu1  ;;  %v3976_v26 = vld [vmem:[#allocation12 + $0xa0] sm:$0xff]  ;;  %v7378_v29 = vpack.c.bf16 %v3979_v22, %v3975_v20 }
 0x7a6   :  { %v3612_v33 = vmul.f32 0.5, %v3537_v28  ;;  %v3608_v34 = vadd.f32 %v3607_v31, %v3461_v1  ;;  %v3609_v52 = vpop.f32.mrb[21].mxu1  ;;  %v7376_v1 = vpack.c.bf16 %v3970_v17, %v3966_v12  ;;  %v3985_v28 = vld [vmem:[#allocation12 + $0xe8] sm:$0xff]  ;;  %v3978_v31 = vld [vmem:[#allocation12 + $0xb0] sm:$0xff]  ;;  %v4007_v12 = vld [vmem:[#allocation12 + $0x198] sm:$0xff] }
 0x7a7   :  { %v3616_v35 = vmul.f32 0.5, %v3539_v30  ;;  %v3610_v37 = vadd.f32 %v3609_v52, %v3465_v36  ;;  %v3974_v30 = vld [vmem:[#allocation12 + $0x90] sm:$0xff]  ;;  %v3987_v52 = vld [vmem:[#allocation12 + $0xf8] sm:$0xff]  ;;  %v3980_v36 = vld [vmem:[#allocation12 + $0xc0] sm:$0xff] }
 0x7a8   :  { %7980 = vtanh.f32 %v3612_v33  ;;  %v7316_v33 = vpack.c.bf16 %v3976_v26, %v3972_v44  ;;  %v4011_v17 = vld [vmem:[#allocation12 + $0x1b8] sm:$0xff]  ;;  %v4004_v20 = vld [vmem:[#allocation12 + $0x180] sm:$0xff]  ;;  %v4013_v44 = vld [vmem:[#allocation12 + $0x1c8] sm:$0xff] }
 0x7a9   :  { %7982 = vtanh.f32 %v3616_v35  ;;  %v3621_v39 = vmul.f32 0.5, %v3610_v37  ;;  %v7318_v35 = vpack.c.bf16 %v3985_v28, %v3981_v27  ;;  %v3984_v37 = vld [vmem:[#allocation12 + $0xe0] sm:$0xff]  ;;  %v4017_v26 = vld [vmem:[#allocation12 + $0x1e8] sm:$0xff]  ;;  %v4006_v27 = vld [vmem:[#allocation12 + $0x190] sm:$0xff] }
 0x7aa   :  { %7984 = vtanh.f32 %v3608_v34  ;;  %v3983_v34 = vld [vmem:[#allocation12 + $0xd8] sm:$0xff]  ;;  %v4008_v22 = vld [vmem:[#allocation12 + $0x1a0] sm:$0xff]  ;;  %v4010_v28 = vld [vmem:[#allocation12 + $0x1b0] sm:$0xff] }
 0x7ab   :  { %7986 = vtanh.f32 %v3621_v39  ;;  %v7380_v39 = vpack.c.bf16 %v3978_v31, %v3974_v30  ;;  %v4015_v30 = vld [vmem:[#allocation12 + $0x1d8] sm:$0xff] }
 0x7ac   :  { %v4019_v31 = vld [vmem:[#allocation12 + $0x1f8] sm:$0xff] }
 0x7b2   :  { %v7981_v40 = vpop.eup %7980 }
 0x7b3   :  { %v7983_v42 = vpop.eup %7982  ;;  %v3614_v43 = vadd.f32 1.0, %v7981_v40  ;;  %v3989_v40 = vld [vmem:[#allocation12 + $0x108] sm:$0xff] }
 0x7b4   :  { %v7985_v45 = vpop.eup %7984  ;;  %v3618_v46 = vadd.f32 1.0, %v7983_v42  ;;  %v3993_v42 = vld [vmem:[#allocation12 + $0x128] sm:$0xff] }
 0x7b5   :  { %v3615_v47 = vmul.f32 0.5, %v3614_v43  ;;  %v7987_v51 = vpop.eup %7986  ;;  %v7382_v43 = vpack.c.bf16 %v3987_v52, %v3983_v34  ;;  %v4012_v34 = vld [vmem:[#allocation12 + $0x1c0] sm:$0xff] }
 0x7b6   :  { %v3619_v48 = vmul.f32 0.5, %v3618_v46  ;;  %v3623_v53 = vadd.f32 1.0, %v7987_v51  ;;  %v3986_v46 = vld [vmem:[#allocation12 + $0xf0] sm:$0xff]  ;;  %v3988_v51 = vld [vmem:[#allocation12 + $0x100] sm:$0xff] }
 0x7b7   :  { %v3627_v49 = vmul.f32 %v7985_v45, %v3615_v47  ;;  %v3982_v45 = vld [vmem:[#allocation12 + $0xd0] sm:$0xff]  ;;  %v7320_v47 = vpack.c.bf16 %v3984_v37, %v3980_v36  ;;  %v4016_v52 = vld [vmem:[#allocation12 + $0x1e0] sm:$0xff]  ;;  %v4021_v36 = vld [vmem:[#allocation12 + $0x208] sm:$0xff] }
 0x7b8   :  { %v3626_v19 = vmul.f32 %v3619_v48, %v8621_v16  ;;  %v3624_v57 = vmul.f32 0.5, %v3623_v53  ;;  %v3964_v16 = vld [vmem:[#allocation12 + $0x40] sm:$0xff]  ;;  %v3991_v48 = vld [vmem:[#allocation12 + $0x118] sm:$0xff]  ;;  %v7384_v32 = vpack.c.bf16 %v3986_v46, %v3982_v45  ;;  %v4025_v37 = vld [vmem:[#allocation12 + $0x228] sm:$0xff] }
 0x7b9   :  { %v7312_v18 = vpack.c.bf16 %v3968_v5, %v3964_v16  ;;  %v3992_v53 = vld [vmem:[#allocation12 + $0x120] sm:$0xff]  ;;  %v4005_v16 = vld [vmem:[#allocation12 + $0x188] sm:$0xff]  ;;  %v4023_v45 = vld [vmem:[#allocation12 + $0x218] sm:$0xff] }
 0x7ba   :  { %v8647_v50 = vadd.f32 %v3627_v49, %v3626_v19  ;;  %v3995_v49 = vld [vmem:[#allocation12 + $0x138] sm:$0xff]  ;;  %v7322_v19 = vpack.c.bf16 %v3993_v42, %v3989_v40  ;;  %v7324_v60 = vpack.c.bf16 %v3992_v53, %v3988_v51  ;;  %v4009_v5 = vld [vmem:[#allocation12 + $0x1a8] sm:$0xff]  ;;  %v4014_v40 = vld [vmem:[#allocation12 + $0x1d0] sm:$0xff] }
 0x7bb   :  { %v7386_v56 = vpack.c.bf16 %v3995_v49, %v3991_v48  ;;  %v4018_v42 = vld [vmem:[#allocation12 + $0x1f0] sm:$0xff]  ;;  %v4027_v46 = vld [vmem:[#allocation12 + $0x238] sm:$0xff]  ;;  %v4020_v48 = vld [vmem:[#allocation12 + $0x200] sm:$0xff] }
 0x7bc   :  { %7988 = vtanh.f32 %v8647_v50  ;;  %v4024_v49 = vld [vmem:[#allocation12 + $0x220] sm:$0xff]  ;;  %v4029_v51 = vld [vmem:[#allocation12 + $0x248] sm:$0xff] }
 0x7bd   :  { %v4033_v53 = vld [vmem:[#allocation12 + $0x268] sm:$0xff] }
 0x7c6   :  { %v7989_v61 = vpop.eup %7988 }
 0x7c7   :  { %v3630_v3 = vmul.f32 %v7989_v61, %v3624_v57  ;;  %v3990_v57 = vld [vmem:[#allocation12 + $0x110] sm:$0xff]  ;;  %v3999_v61 = vld [vmem:[#allocation12 + $0x158] sm:$0xff] }
 0x7c9   :  { %3851 = vmatmul.mubr.f32.vlgmr.msra.gmra.mrb[22].mxu0 %v3630_v3  ;;  %3922 = vmatmul.mubr.f32.vlgmr.msra.gmra.mrb[22].mxu1 %v3630_v3 }
 0x7ca   :  { %7309 = vmatpush1.bf16.msra.mxu0 %v7308_v62  ;;  %4170 = vmatprep.mubr.f32.mxu0 %v3630_v3  ;;  %v4003_v62 = vld [vmem:[#allocation12 + $0x178] sm:$0xff] }
 0x7cb   :  { %4241 = vmatprep.mubr.f32.mxu1 %v3630_v3  ;;  %7311 = vmatprep.subr.bf16.mxu0 %v7310_v4  ;;  %v4000_v3 = vld [vmem:[#allocation12 + $0x160] sm:$0xff]  ;;  %v7388_v4 = vpack.c.bf16 %v3994_v58, %v3990_v57  ;;  %v4031_v57 = vld [vmem:[#allocation12 + $0x258] sm:$0xff] }
 0x7cc   :  { %7373 = vmatpush1.bf16.msra.mxu1 %v7372_v38  ;;  %v7390_v38 = vpack.c.bf16 %v4003_v62, %v3999_v61  ;;  %v4035_v58 = vld [vmem:[#allocation12 + $0x278] sm:$0xff]  ;;  %v4028_v61 = vld [vmem:[#allocation12 + $0x240] sm:$0xff] }
 0x7cd   :  { %7375 = vmatprep.subr.bf16.mxu1 %v7374_v8  ;;  %v7328_v8 = vpack.c.bf16 %v4000_v3, %v3996_v2  ;;  %v4032_v62 = vld [vmem:[#allocation12 + $0x260] sm:$0xff]  ;;  %v4037_v2 = vld [vmem:[#allocation12 + $0x288] sm:$0xff] }
 0x7ce   :  { %7313 = vmatpush1.bf16.msra.mxu0 %v7312_v18  ;;  %v7330_v18 = vpack.c.bf16 %v4009_v5, %v4005_v16  ;;  %v4041_v3 = vld [vmem:[#allocation12 + $0x2a8] sm:$0xff]  ;;  %v4030_v16 = vld [vmem:[#allocation12 + $0x250] sm:$0xff] }
 0x7cf   :  { %7315 = vmatprep.subr.bf16.mxu0 %v7314_v24  ;;  %v7392_v24 = vpack.c.bf16 %v4002_v59, %v3998_v7  ;;  %v4034_v5 = vld [vmem:[#allocation12 + $0x270] sm:$0xff]  ;;  %v4039_v7 = vld [vmem:[#allocation12 + $0x298] sm:$0xff] }
 0x7d0   :  { %7377 = vmatpush1.bf16.msra.mxu1 %v7376_v1  ;;  %v7394_v1 = vpack.c.bf16 %v4011_v17, %v4007_v12  ;;  %v4043_v59 = vld [vmem:[#allocation12 + $0x2b8] sm:$0xff]  ;;  %v4036_v12 = vld [vmem:[#allocation12 + $0x280] sm:$0xff] }
 0x7d1   :  { %7379 = vmatprep.subr.bf16.mxu1 %v7378_v29  ;;  %v7332_v29 = vpack.c.bf16 %v4008_v22, %v4004_v20  ;;  %v4040_v17 = vld [vmem:[#allocation12 + $0x2a0] sm:$0xff]  ;;  %v4045_v20 = vld [vmem:[#allocation12 + $0x2c8] sm:$0xff] }
 0x7d2   :  { %7317 = vmatpush1.bf16.msra.mxu0 %v7316_v33  ;;  %v7334_v33 = vpack.c.bf16 %v4017_v26, %v4013_v44  ;;  %v4049_v22 = vld [vmem:[#allocation12 + $0x2e8] sm:$0xff]  ;;  %v4038_v44 = vld [vmem:[#allocation12 + $0x290] sm:$0xff] }
 0x7d3   :  { %7319 = vmatprep.subr.bf16.mxu0 %v7318_v35  ;;  %v7396_v35 = vpack.c.bf16 %v4010_v28, %v4006_v27  ;;  %v4042_v26 = vld [vmem:[#allocation12 + $0x2b0] sm:$0xff]  ;;  %v4047_v27 = vld [vmem:[#allocation12 + $0x2d8] sm:$0xff] }
 0x7d4   :  { %7381 = vmatpush1.bf16.msra.mxu1 %v7380_v39  ;;  %v7398_v39 = vpack.c.bf16 %v4019_v31, %v4015_v30  ;;  %v4051_v28 = vld [vmem:[#allocation12 + $0x2f8] sm:$0xff]  ;;  %v4044_v30 = vld [vmem:[#allocation12 + $0x2c0] sm:$0xff] }
 0x7d5   :  { %7383 = vmatprep.subr.bf16.mxu1 %v7382_v43  ;;  %v7336_v43 = vpack.c.bf16 %v4016_v52, %v4012_v34  ;;  %v4048_v31 = vld [vmem:[#allocation12 + $0x2e0] sm:$0xff]  ;;  %v4053_v34 = vld [vmem:[#allocation12 + $0x308] sm:$0xff] }
 0x7d6   :  { %7321 = vmatpush1.bf16.msra.mxu0 %v7320_v47  ;;  %v7338_v47 = vpack.c.bf16 %v4025_v37, %v4021_v36  ;;  %v4057_v52 = vld [vmem:[#allocation12 + $0x328] sm:$0xff]  ;;  %v4046_v36 = vld [vmem:[#allocation12 + $0x2d0] sm:$0xff] }
 0x7d7   :  { %7323 = vmatprep.subr.bf16.mxu0 %v7322_v19  ;;  %v7400_v19 = vpack.c.bf16 %v4018_v42, %v4014_v40  ;;  %v4050_v37 = vld [vmem:[#allocation12 + $0x2f0] sm:$0xff]  ;;  %v4055_v40 = vld [vmem:[#allocation12 + $0x318] sm:$0xff] }
 0x7d8   :  { %7385 = vmatpush1.bf16.msra.mxu1 %v7384_v32  ;;  %v7402_v32 = vpack.c.bf16 %v4027_v46, %v4023_v45  ;;  %v4059_v42 = vld [vmem:[#allocation12 + $0x338] sm:$0xff]  ;;  %v4052_v45 = vld [vmem:[#allocation12 + $0x300] sm:$0xff] }
 0x7d9   :  { %7387 = vmatprep.subr.bf16.mxu1 %v7386_v56  ;;  %v7340_v56 = vpack.c.bf16 %v4024_v49, %v4020_v48  ;;  %v4056_v46 = vld [vmem:[#allocation12 + $0x320] sm:$0xff]  ;;  %v4061_v48 = vld [vmem:[#allocation12 + $0x348] sm:$0xff] }
 0x7da   :  { %7325 = vmatpush1.bf16.msra.mxu0 %v7324_v60  ;;  %v7342_v60 = vpack.c.bf16 %v4033_v53, %v4029_v51  ;;  %v4065_v49 = vld [vmem:[#allocation12 + $0x368] sm:$0xff]  ;;  %v4054_v51 = vld [vmem:[#allocation12 + $0x310] sm:$0xff] }
 0x7db   :  { %7327 = vmatprep.subr.bf16.mxu0 %v7326_v63  ;;  %v7404_v63 = vpack.c.bf16 %v4026_v55, %v4022_v54  ;;  %v4058_v53 = vld [vmem:[#allocation12 + $0x330] sm:$0xff]  ;;  %v4063_v54 = vld [vmem:[#allocation12 + $0x358] sm:$0xff] }
 0x7dc   :  { %7389 = vmatpush1.bf16.msra.mxu1 %v7388_v4  ;;  %v7406_v4 = vpack.c.bf16 %v4035_v58, %v4031_v57  ;;  %v4067_v55 = vld [vmem:[#allocation12 + $0x378] sm:$0xff]  ;;  %v4060_v57 = vld [vmem:[#allocation12 + $0x340] sm:$0xff] }
 0x7dd   :  { %7391 = vmatprep.subr.bf16.mxu1 %v7390_v38  ;;  %v7344_v38 = vpack.c.bf16 %v4032_v62, %v4028_v61  ;;  %v4064_v58 = vld [vmem:[#allocation12 + $0x360] sm:$0xff]  ;;  %v4069_v61 = vld [vmem:[#allocation12 + $0x388] sm:$0xff] }
 0x7de   :  { %7329 = vmatpush1.bf16.msra.mxu0 %v7328_v8  ;;  %v7346_v8 = vpack.c.bf16 %v4041_v3, %v4037_v2  ;;  %v4073_v62 = vld [vmem:[#allocation12 + $0x3a8] sm:$0xff]  ;;  %v4062_v2 = vld [vmem:[#allocation12 + $0x350] sm:$0xff] }
 0x7df   :  { %7331 = vmatprep.subr.bf16.mxu0 %v7330_v18  ;;  %v7408_v18 = vpack.c.bf16 %v4034_v5, %v4030_v16  ;;  %v4066_v3 = vld [vmem:[#allocation12 + $0x370] sm:$0xff]  ;;  %v4071_v16 = vld [vmem:[#allocation12 + $0x398] sm:$0xff] }
 0x7e0   :  { %7393 = vmatpush1.bf16.msra.mxu1 %v7392_v24  ;;  %v7410_v24 = vpack.c.bf16 %v4043_v59, %v4039_v7  ;;  %v4075_v5 = vld [vmem:[#allocation12 + $0x3b8] sm:$0xff]  ;;  %v4068_v7 = vld [vmem:[#allocation12 + $0x380] sm:$0xff] }
 0x7e1   :  { %7395 = vmatprep.subr.bf16.mxu1 %v7394_v1  ;;  %v7348_v1 = vpack.c.bf16 %v4040_v17, %v4036_v12  ;;  %v4072_v59 = vld [vmem:[#allocation12 + $0x3a0] sm:$0xff]  ;;  %v4077_v12 = vld [vmem:[#allocation12 + $0x3c8] sm:$0xff] }
 0x7e2   :  { %7333 = vmatpush1.bf16.msra.mxu0 %v7332_v29  ;;  %v7350_v29 = vpack.c.bf16 %v4049_v22, %v4045_v20  ;;  %v4081_v17 = vld [vmem:[#allocation12 + $0x3e8] sm:$0xff]  ;;  %v4070_v20 = vld [vmem:[#allocation12 + $0x390] sm:$0xff] }
 0x7e3   :  { %7335 = vmatprep.subr.bf16.mxu0 %v7334_v33  ;;  %v7412_v33 = vpack.c.bf16 %v4042_v26, %v4038_v44  ;;  %v4074_v22 = vld [vmem:[#allocation12 + $0x3b0] sm:$0xff]  ;;  %v4079_v44 = vld [vmem:[#allocation12 + $0x3d8] sm:$0xff] }
 0x7e4   :  { %7397 = vmatpush1.bf16.msra.mxu1 %v7396_v35  ;;  %v7414_v35 = vpack.c.bf16 %v4051_v28, %v4047_v27  ;;  %v4083_v26 = vld [vmem:[#allocation12 + $0x3f8] sm:$0xff]  ;;  %v4076_v27 = vld [vmem:[#allocation12 + $0x3c0] sm:$0xff] }
 0x7e5   :  { %7399 = vmatprep.subr.bf16.mxu1 %v7398_v39  ;;  %v7352_v39 = vpack.c.bf16 %v4048_v31, %v4044_v30  ;;  %v4080_v28 = vld [vmem:[#allocation12 + $0x3e0] sm:$0xff]  ;;  %v7430_v30 = vpack.c.bf16 %v4083_v26, %v4079_v44  ;;  %v4078_v31 = vld [vmem:[#allocation12 + $0x3d0] sm:$0xff] }
 0x7e6   :  { %7337 = vmatpush1.bf16.msra.mxu0 %v7336_v43  ;;  %v7354_v43 = vpack.c.bf16 %v4057_v52, %v4053_v34  ;;  %v7368_v34 = vpack.c.bf16 %v4080_v28, %v4076_v27  ;;  %v4296_v44 = vld [vmem:[#allocation14 + $0xc0] sm:$0xff]  ;;  %v4303_v27 = vld [vmem:[#allocation14 + $0xf8] sm:$0xff]  ;;  %v4298_v28 = vld [vmem:[#allocation14 + $0xd0] sm:$0xff] }
 0x7e7   :  { %7339 = vmatprep.subr.bf16.mxu0 %v7338_v47  ;;  %v7416_v47 = vpack.c.bf16 %v4050_v37, %v4046_v36  ;;  %v4273_v36 = vld [vmem:[#allocation14 + $0x8] sm:$0xff]  ;;  %v4300_v26 = vld [vmem:[#allocation14 + $0xe0] sm:$0xff] }
 0x7e8   :  { %7401 = vmatpush1.bf16.msra.mxu1 %v7400_v19  ;;  %v7418_v19 = vpack.c.bf16 %v4059_v42, %v4055_v40  ;;  %v4277_v37 = vld [vmem:[#allocation14 + $0x28] sm:$0xff]  ;;  %v4276_v42 = vld [vmem:[#allocation14 + $0x20] sm:$0xff] }
 0x7e9   :  { %7403 = vmatprep.subr.bf16.mxu1 %v7402_v32  ;;  %v7356_v32 = vpack.c.bf16 %v4056_v46, %v4052_v45  ;;  %v7434_v40 = vpack.c.bf16 %v4277_v37, %v4273_v36  ;;  %v4279_v45 = vld [vmem:[#allocation14 + $0x38] sm:$0xff]  ;;  %v4308_v37 = vld [vmem:[#allocation14 + $0x120] sm:$0xff] }
 0x7ea   :  { %7341 = vmatpush1.bf16.msra.mxu0 %v7340_v56  ;;  %v7358_v56 = vpack.c.bf16 %v4065_v49, %v4061_v48  ;;  %v4274_v48 = vld [vmem:[#allocation14 + $0x10] sm:$0xff] }
 0x7eb   :  { %7343 = vmatprep.subr.bf16.mxu0 %v7342_v60  ;;  %v7420_v60 = vpack.c.bf16 %v4058_v53, %v4054_v51  ;;  %v4278_v49 = vld [vmem:[#allocation14 + $0x30] sm:$0xff]  ;;  %v4281_v51 = vld [vmem:[#allocation14 + $0x48] sm:$0xff] }
 0x7ec   :  { %7405 = vmatpush1.bf16.msra.mxu1 %v7404_v63  ;;  %v7422_v63 = vpack.c.bf16 %v4067_v55, %v4063_v54  ;;  %v4285_v53 = vld [vmem:[#allocation14 + $0x68] sm:$0xff]  ;;  %v4284_v55 = vld [vmem:[#allocation14 + $0x60] sm:$0xff] }
 0x7ed   :  { %7407 = vmatprep.subr.bf16.mxu1 %v7406_v4  ;;  %v7360_v4 = vpack.c.bf16 %v4064_v58, %v4060_v57  ;;  %v7438_v54 = vpack.c.bf16 %v4285_v53, %v4281_v51  ;;  %v4287_v57 = vld [vmem:[#allocation14 + $0x78] sm:$0xff] }
 0x7ee   :  { %7345 = vmatpush1.bf16.msra.mxu0 %v7344_v38  ;;  %v7362_v38 = vpack.c.bf16 %v4073_v62, %v4069_v61  ;;  %v4282_v61 = vld [vmem:[#allocation14 + $0x50] sm:$0xff] }
 0x7ef   :  { %7347 = vmatprep.subr.bf16.mxu0 %v7346_v8  ;;  %v7424_v8 = vpack.c.bf16 %v4066_v3, %v4062_v2  ;;  %v4286_v62 = vld [vmem:[#allocation14 + $0x70] sm:$0xff]  ;;  %v4293_v3 = vld [vmem:[#allocation14 + $0xa8] sm:$0xff] }
 0x7f0   :  { %7409 = vmatpush1.bf16.msra.mxu1 %v7408_v18  ;;  %v7426_v18 = vpack.c.bf16 %v4075_v5, %v4071_v16  ;;  %v7504_v2 = vpack.c.bf16 %v4286_v62, %v4282_v61  ;;  %v4292_v16 = vld [vmem:[#allocation14 + $0xa0] sm:$0xff]  ;;  %v4323_v61 = vld [vmem:[#allocation14 + $0x198] sm:$0xff] }
 0x7f1   :  { %7411 = vmatprep.subr.bf16.mxu1 %v7410_v24  ;;  %v7364_v24 = vpack.c.bf16 %v4072_v59, %v4068_v7  ;;  %v4291_v7 = vld [vmem:[#allocation14 + $0x98] sm:$0xff] }
 0x7f2   :  { %7349 = vmatpush1.bf16.msra.mxu0 %v7348_v1  ;;  %v7366_v1 = vpack.c.bf16 %v4081_v17, %v4077_v12  ;;  %v4295_v59 = vld [vmem:[#allocation14 + $0xb8] sm:$0xff]  ;;  %v4294_v17 = vld [vmem:[#allocation14 + $0xb0] sm:$0xff] }
 0x7f3   :  { %7351 = vmatprep.subr.bf16.mxu0 %v7350_v29  ;;  %v7428_v29 = vpack.c.bf16 %v4074_v22, %v4070_v20  ;;  %v7506_v12 = vpack.c.bf16 %v4295_v59, %v4291_v7  ;;  %v4301_v20 = vld [vmem:[#allocation14 + $0xe8] sm:$0xff]  ;;  %v4327_v62 = vld [vmem:[#allocation14 + $0x1b8] sm:$0xff]  ;;  %v4326_v7 = vld [vmem:[#allocation14 + $0x1b0] sm:$0xff] }
 0x7f4   :  { %7413 = vmatpush1.bf16.msra.mxu1 %v7412_v33  ;;  %v4082_v33 = vld [vmem:[#allocation12 + $0x3f0] sm:$0xff] }
 0x7f5   :  { %7415 = vmatprep.subr.bf16.mxu1 %v7414_v35  ;;  %v7432_v52 = vpack.c.bf16 %v4082_v33, %v4078_v31  ;;  %v3952_v35 = vld [vmem:[#allocation6 + $0x30] sm:$0xff]  ;;  %v4305_v33 = vld [vmem:[#allocation14 + $0x108] sm:$0xff] }
 0x7f6   :  { %7353 = vmatpush1.bf16.msra.mxu0 %v7352_v39  ;;  %v4272_v39 = vld [vmem:[#allocation14] sm:$0xff] }
 0x7f7   :  { %7355 = vmatprep.subr.bf16.mxu0 %v7354_v43  ;;  %v4275_v43 = vld [vmem:[#allocation14 + $0x18] sm:$0xff]  ;;  %v7436_v46 = vpack.c.bf16 %v4276_v42, %v4272_v39 }
 0x7f8   :  { %7417 = vmatpush1.bf16.msra.mxu1 %v7416_v47  ;;  %v7498_v47 = vpack.c.bf16 %v4279_v45, %v4275_v43  ;;  %v4307_v39 = vld [vmem:[#allocation14 + $0x118] sm:$0xff]  ;;  %v4306_v43 = vld [vmem:[#allocation14 + $0x110] sm:$0xff] }
 0x7f9   :  { %7419 = vmatprep.subr.bf16.mxu1 %v7418_v19  ;;  %v7500_v19 = vpack.c.bf16 %v4278_v49, %v4274_v48  ;;  %v4310_v45 = vld [vmem:[#allocation14 + $0x130] sm:$0xff]  ;;  %v4315_v49 = vld [vmem:[#allocation14 + $0x158] sm:$0xff] }
 0x7fa   :  { %7357 = vmatpush1.bf16.msra.mxu0 %v7356_v32  ;;  %v4280_v32 = vld [vmem:[#allocation14 + $0x40] sm:$0xff]  ;;  %v7516_v51 = vpack.c.bf16 %v4310_v45, %v4306_v43  ;;  %v4345_v45 = vld [vmem:[#allocation14 + $0x248] sm:$0xff] }
 0x7fb   :  { %7359 = vmatprep.subr.bf16.mxu0 %v7358_v56  ;;  %v4283_v56 = vld [vmem:[#allocation14 + $0x58] sm:$0xff]  ;;  %v7440_v58 = vpack.c.bf16 %v4284_v55, %v4280_v32  ;;  %v4312_v32 = vld [vmem:[#allocation14 + $0x140] sm:$0xff]  ;;  %v4314_v55 = vld [vmem:[#allocation14 + $0x150] sm:$0xff] }
 0x7fc   :  { %7421 = vmatpush1.bf16.msra.mxu1 %v7420_v60  ;;  %v7502_v60 = vpack.c.bf16 %v4287_v57, %v4283_v56  ;;  %v4318_v57 = vld [vmem:[#allocation14 + $0x170] sm:$0xff] }
 0x7fd   :  { %7423 = vmatprep.subr.bf16.mxu1 %v7422_v63  ;;  %v4289_v63 = vld [vmem:[#allocation14 + $0x88] sm:$0xff] }
 0x7fe   :  { %7361 = vmatpush1.bf16.msra.mxu0 %v7360_v4  ;;  %v4288_v4 = vld [vmem:[#allocation14 + $0x80] sm:$0xff]  ;;  %v7442_v5 = vpack.c.bf16 %v4293_v3, %v4289_v63 }
 0x7ff   :  { %7363 = vmatprep.subr.bf16.mxu0 %v7362_v38  ;;  %v7444_v38 = vpack.c.bf16 %v4292_v16, %v4288_v4  ;;  %v4320_v4 = vld [vmem:[#allocation14 + $0x180] sm:$0xff] }
 0x800   :  { %7425 = vmatpush1.bf16.msra.mxu1 %v7424_v8  ;;  %v4290_v8 = vld [vmem:[#allocation14 + $0x90] sm:$0xff]  ;;  %v4324_v16 = vld [vmem:[#allocation14 + $0x1a0] sm:$0xff] }
 0x801   :  { %7427 = vmatprep.subr.bf16.mxu1 %v7426_v18  ;;  %v4297_v18 = vld [vmem:[#allocation14 + $0xc8] sm:$0xff]  ;;  %v7508_v22 = vpack.c.bf16 %v4294_v17, %v4290_v8  ;;  %v7460_v59 = vpack.c.bf16 %v4324_v16, %v4320_v4  ;;  %v4354_v4 = vld [vmem:[#allocation14 + $0x290] sm:$0xff] }
 0x802   :  { %7365 = vmatpush1.bf16.msra.mxu0 %v7364_v24  ;;  %v7446_v24 = vpack.c.bf16 %v4301_v20, %v4297_v18  ;;  %v4333_v17 = vld [vmem:[#allocation14 + $0x1e8] sm:$0xff]  ;;  %v4328_v20 = vld [vmem:[#allocation14 + $0x1c0] sm:$0xff]  ;;  %v4358_v16 = vld [vmem:[#allocation14 + $0x2b0] sm:$0xff] }
 0x803   :  { %7367 = vmatprep.subr.bf16.mxu0 %v7366_v1  ;;  %v4299_v1 = vld [vmem:[#allocation14 + $0xd8] sm:$0xff] }
 0x804   :  { %7429 = vmatpush1.bf16.msra.mxu1 %v7428_v29  ;;  %v4302_v29 = vld [vmem:[#allocation14 + $0xf0] sm:$0xff]  ;;  %v7510_v31 = vpack.c.bf16 %v4303_v27, %v4299_v1 }
 0x805   :  { %7431 = vmatprep.subr.bf16.mxu1 %v7430_v30  ;;  %v7448_v30 = vpack.c.bf16 %v4300_v26, %v4296_v44  ;;  %v4335_v26 = vld [vmem:[#allocation14 + $0x1f8] sm:$0xff]  ;;  %v4330_v1 = vld [vmem:[#allocation14 + $0x1d0] sm:$0xff] }
 0x806   :  { %7369 = vmatpush1.bf16.msra.mxu0 %v7368_v34  ;;  %v4309_v34 = vld [vmem:[#allocation14 + $0x128] sm:$0xff]  ;;  %v4334_v27 = vld [vmem:[#allocation14 + $0x1f0] sm:$0xff] }
 0x807   :  { %7435 = vmatprep.subr.bf16.mxu0 %v7434_v40  ;;  %v7450_v36 = vpack.c.bf16 %v4309_v34, %v4305_v33  ;;  %v4311_v40 = vld [vmem:[#allocation14 + $0x138] sm:$0xff]  ;;  %v4336_v34 = vld [vmem:[#allocation14 + $0x200] sm:$0xff] }
 0x808   :  { %7433 = vmatpush1.bf16.msra.mxu1 %v7432_v52  ;;  %v4304_v52 = vld [vmem:[#allocation14 + $0x100] sm:$0xff]  ;;  %v7514_v42 = vpack.c.bf16 %v4311_v40, %v4307_v39  ;;  %v4338_v39 = vld [vmem:[#allocation14 + $0x210] sm:$0xff] }
 0x809   :  { %4171 = vmatmul.mubr.f32.vlgmr.msra.gmra.mrb[24].mxu0 %v3952_v35  ;;  %7499 = vmatprep.subr.bf16.mxu1 %v7498_v47  ;;  %v4317_v47 = vld [vmem:[#allocation14 + $0x168] sm:$0xff]  ;;  %v7452_v48 = vpack.c.bf16 %v4308_v37, %v4304_v52  ;;  %v4340_v52 = vld [vmem:[#allocation14 + $0x220] sm:$0xff]  ;;  %v4343_v37 = vld [vmem:[#allocation14 + $0x238] sm:$0xff] }
 0x80a   :  { %7437 = vmatpush1.bf16.msra.mxu0 %v7436_v46  ;;  %v4313_v46 = vld [vmem:[#allocation14 + $0x148] sm:$0xff]  ;;  %v4342_v40 = vld [vmem:[#allocation14 + $0x230] sm:$0xff] }
 0x80b   :  { %4242 = vmatmul.mubr.f32.vlgmr.msra.gmra.mrb[24].mxu1 %v3952_v35  ;;  %7439 = vmatprep.subr.bf16.mxu0 %v7438_v54  ;;  %v7512_v35 = vpack.c.bf16 %v4302_v29, %v4298_v28  ;;  %v7454_v53 = vpack.c.bf16 %v4317_v47, %v4313_v46  ;;  %v4316_v54 = vld [vmem:[#allocation14 + $0x160] sm:$0xff]  ;;  %v7528_v29 = vpack.c.bf16 %v4334_v27, %v4330_v1  ;;  %v4349_v46 = vld [vmem:[#allocation14 + $0x268] sm:$0xff] }
 0x80c   :  { %7501 = vmatpush1.bf16.msra.mxu1 %v7500_v19  ;;  %v4319_v19 = vld [vmem:[#allocation14 + $0x178] sm:$0xff]  ;;  %v7456_v63 = vpack.c.bf16 %v4316_v54, %v4312_v32  ;;  %v7532_v43 = vpack.c.bf16 %v4342_v40, %v4338_v39  ;;  %v7470_v47 = vpack.c.bf16 %v4349_v46, %v4345_v45  ;;  %v4346_v32 = vld [vmem:[#allocation14 + $0x250] sm:$0xff]  ;;  %v4369_v27 = vld [vmem:[#allocation14 + $0x308] sm:$0xff] }
 0x80d   :  { %7503 = vmatprep.subr.bf16.mxu1 %v7502_v60  ;;  %v7518_v56 = vpack.c.bf16 %v4319_v19, %v4315_v49  ;;  %v4325_v60 = vld [vmem:[#allocation14 + $0x1a8] sm:$0xff]  ;;  %v4348_v49 = vld [vmem:[#allocation14 + $0x260] sm:$0xff]  ;;  %v4347_v19 = vld [vmem:[#allocation14 + $0x258] sm:$0xff] }
 0x80e   :  { %7441 = vmatpush1.bf16.msra.mxu0 %v7440_v58  ;;  %v4321_v58 = vld [vmem:[#allocation14 + $0x188] sm:$0xff]  ;;  %v4350_v54 = vld [vmem:[#allocation14 + $0x270] sm:$0xff]  ;;  %v4376_v45 = vld [vmem:[#allocation14 + $0x340] sm:$0xff] }
 0x80f   :  { %7443 = vmatprep.subr.bf16.mxu0 %v7442_v5  ;;  %v7458_v3 = vpack.c.bf16 %v4325_v60, %v4321_v58  ;;  %v7522_v5 = vpack.c.bf16 %v4327_v62, %v4323_v61  ;;  %v4357_v58 = vld [vmem:[#allocation14 + $0x2a8] sm:$0xff]  ;;  %v4352_v61 = vld [vmem:[#allocation14 + $0x280] sm:$0xff] }
 0x810   :  { %7505 = vmatpush1.bf16.msra.mxu1 %v7504_v2  ;;  %v7520_v2 = vpack.c.bf16 %v4318_v57, %v4314_v55  ;;  %v4353_v57 = vld [vmem:[#allocation14 + $0x288] sm:$0xff]  ;;  %v4356_v62 = vld [vmem:[#allocation14 + $0x2a0] sm:$0xff] }
 0x811   :  { %7507 = vmatprep.subr.bf16.mxu1 %v7506_v12  ;;  %v4329_v12 = vld [vmem:[#allocation14 + $0x1c8] sm:$0xff]  ;;  %v7474_v60 = vpack.c.bf16 %v4357_v58, %v4353_v57  ;;  %v4380_v46 = vld [vmem:[#allocation14 + $0x360] sm:$0xff] }
 0x812   :  { %7445 = vmatpush1.bf16.msra.mxu0 %v7444_v38  ;;  %v4322_v38 = vld [vmem:[#allocation14 + $0x190] sm:$0xff]  ;;  %v7462_v18 = vpack.c.bf16 %v4333_v17, %v4329_v12  ;;  %v4360_v12 = vld [vmem:[#allocation14 + $0x2c0] sm:$0xff]  ;;  %v4377_v40 = vld [vmem:[#allocation14 + $0x348] sm:$0xff] }
 0x813   :  { %7447 = vmatprep.subr.bf16.mxu0 %v7446_v24  ;;  %v7524_v8 = vpack.c.bf16 %v4326_v7, %v4322_v38  ;;  %v4331_v24 = vld [vmem:[#allocation14 + $0x1d8] sm:$0xff]  ;;  %v7540_v38 = vpack.c.bf16 %v4358_v16, %v4354_v4  ;;  %v4361_v7 = vld [vmem:[#allocation14 + $0x2c8] sm:$0xff]  ;;  %v4364_v17 = vld [vmem:[#allocation14 + $0x2e0] sm:$0xff] }
 0x814   :  { %7509 = vmatpush1.bf16.msra.mxu1 %v7508_v22  ;;  %v4332_v22 = vld [vmem:[#allocation14 + $0x1e0] sm:$0xff]  ;;  %v7526_v28 = vpack.c.bf16 %v4335_v26, %v4331_v24  ;;  %v4362_v24 = vld [vmem:[#allocation14 + $0x2d0] sm:$0xff]  ;;  %v4393_v16 = vld [vmem:[#allocation14 + $0x3c8] sm:$0xff] }
 0x815   :  { %7511 = vmatprep.subr.bf16.mxu1 %v7510_v31  ;;  %v7464_v44 = vpack.c.bf16 %v4332_v22, %v4328_v20  ;;  %v4341_v31 = vld [vmem:[#allocation14 + $0x228] sm:$0xff]  ;;  %v7480_v20 = vpack.c.bf16 %v4364_v17, %v4360_v12  ;;  %v4367_v22 = vld [vmem:[#allocation14 + $0x2f8] sm:$0xff]  ;;  %v4384_v57 = vld [vmem:[#allocation14 + $0x380] sm:$0xff] }
 0x816   :  { %7449 = vmatpush1.bf16.msra.mxu0 %v7448_v30  ;;  %v4337_v30 = vld [vmem:[#allocation14 + $0x208] sm:$0xff]  ;;  %v4388_v58 = vld [vmem:[#allocation14 + $0x3a0] sm:$0xff]  ;;  %v4399_v17 = vld [vmem:[#allocation14 + $0x3f8] sm:$0xff] }
 0x817   :  { %7451 = vmatprep.subr.bf16.mxu0 %v7450_v36  ;;  %v7466_v33 = vpack.c.bf16 %v4341_v31, %v4337_v30  ;;  %v7468_v36 = vpack.c.bf16 %v4340_v52, %v4336_v34  ;;  %v4368_v30 = vld [vmem:[#allocation14 + $0x300] sm:$0xff]  ;;  %v4375_v52 = vld [vmem:[#allocation14 + $0x338] sm:$0xff] }
 0x818   :  { %7513 = vmatpush1.bf16.msra.mxu1 %v7512_v35  ;;  %v4339_v35 = vld [vmem:[#allocation14 + $0x218] sm:$0xff]  ;;  %v4372_v31 = vld [vmem:[#allocation14 + $0x320] sm:$0xff] }
 0x819   :  { %7515 = vmatprep.subr.bf16.mxu1 %v7514_v42  ;;  %v7530_v42 = vpack.c.bf16 %v4343_v37, %v4339_v35  ;;  %v7484_v34 = vpack.c.bf16 %v4372_v31, %v4368_v30  ;;  %v4370_v35 = vld [vmem:[#allocation14 + $0x310] sm:$0xff]  ;;  %v3764_v30 = vld [vmem:[%s8952_s6] sm:$0xf] }
 0x81a   :  { %7453 = vmatpush1.bf16.msra.mxu0 %v7452_v48  ;;  %v4344_v48 = vld [vmem:[#allocation14 + $0x240] sm:$0xff]  ;;  %v3769_v31 = vrot.slane %v3764_v30, %v8500_v11 }
 0x81b   :  { %7455 = vmatprep.subr.bf16.mxu0 %v7454_v53  ;;  %v4351_v53 = vld [vmem:[#allocation14 + $0x278] sm:$0xff] }
 0x81c   :  { %7517 = vmatpush1.bf16.msra.mxu1 %v7516_v51  ;;  %v7472_v51 = vpack.c.bf16 %v4348_v49, %v4344_v48  ;;  %v7534_v55 = vpack.c.bf16 %v4351_v53, %v4347_v19  ;;  %v7488_v48 = vpack.c.bf16 %v4380_v46, %v4376_v45  ;;  %v4383_v49 = vld [vmem:[#allocation14 + $0x378] sm:$0xff]  ;;  %v4378_v19 = vld [vmem:[#allocation14 + $0x350] sm:$0xff]  ;;  %v3781_v46 = vrot.slane %v3764_v30, %v8515_v21 }
 0x81d   :  { %7519 = vmatprep.subr.bf16.mxu1 %v7518_v56  ;;  %v7536_v56 = vpack.c.bf16 %v4350_v54, %v4346_v32  ;;  %v4385_v54 = vld [vmem:[#allocation14 + $0x388] sm:$0xff] }
 0x81e   :  { %7457 = vmatpush1.bf16.msra.mxu0 %v7456_v63  ;;  %v4355_v63 = vld [vmem:[#allocation14 + $0x298] sm:$0xff] }
 0x81f   :  { %7459 = vmatprep.subr.bf16.mxu0 %v7458_v3  ;;  %v4359_v3 = vld [vmem:[#allocation14 + $0x2b8] sm:$0xff] }
 0x820   :  { %7521 = vmatpush1.bf16.msra.mxu1 %v7520_v2  ;;  %v7476_v2 = vpack.c.bf16 %v4356_v62, %v4352_v61  ;;  %v7492_v61 = vpack.c.bf16 %v4388_v58, %v4384_v57  ;;  %v4391_v62 = vld [vmem:[#allocation14 + $0x3b8] sm:$0xff] }
 0x821   :  { %7523 = vmatprep.subr.bf16.mxu1 %v7522_v5  ;;  %v7538_v5 = vpack.c.bf16 %v4359_v3, %v4355_v63  ;;  %v4386_v63 = vld [vmem:[#allocation14 + $0x390] sm:$0xff] }
 0x822   :  { %7461 = vmatpush1.bf16.msra.mxu0 %v7460_v59  ;;  %v4365_v59 = vld [vmem:[#allocation14 + $0x2e8] sm:$0xff] }
 0x823   :  { %7463 = vmatprep.subr.bf16.mxu0 %v7462_v18  ;;  %v4363_v18 = vld [vmem:[#allocation14 + $0x2d8] sm:$0xff] }
 0x824   :  { %7525 = vmatpush1.bf16.msra.mxu1 %v7524_v8  ;;  %v7478_v8 = vpack.c.bf16 %v4365_v59, %v4361_v7  ;;  %v7542_v26 = vpack.c.bf16 %v4367_v22, %v4363_v18  ;;  %v4392_v7 = vld [vmem:[#allocation14 + $0x3c0] sm:$0xff]  ;;  %v4394_v18 = vld [vmem:[#allocation14 + $0x3d0] sm:$0xff] }
 0x825   :  { %7527 = vmatprep.subr.bf16.mxu1 %v7526_v28  ;;  %v4373_v28 = vld [vmem:[#allocation14 + $0x328] sm:$0xff]  ;;  %v4396_v59 = vld [vmem:[#allocation14 + $0x3e0] sm:$0xff] }
 0x826   :  { %7465 = vmatpush1.bf16.msra.mxu0 %v7464_v44  ;;  %v4366_v44 = vld [vmem:[#allocation14 + $0x2f0] sm:$0xff]  ;;  %v7496_v12 = vpack.c.bf16 %v4396_v59, %v4392_v7 }
 0x827   :  { %7467 = vmatprep.subr.bf16.mxu0 %v7466_v33  ;;  %v7544_v1 = vpack.c.bf16 %v4366_v44, %v4362_v24  ;;  %v4371_v33 = vld [vmem:[#allocation14 + $0x318] sm:$0xff]  ;;  %v4593_v44 = vld [vmem:[#allocation12 + $0x8] sm:$0xff] }
 0x828   :  { %7529 = vmatpush1.bf16.msra.mxu1 %v7528_v29  ;;  %v7482_v29 = vpack.c.bf16 %v4373_v28, %v4369_v27  ;;  %v7546_v37 = vpack.c.bf16 %v4375_v52, %v4371_v33  ;;  %v4595_v27 = vld [vmem:[#allocation12 + $0x18] sm:$0xff]  ;;  %v3773_v33 = vrot.slane %v3764_v30, %v8506_v13 }
 0x829   :  { %7531 = vmatprep.subr.bf16.mxu1 %v7530_v42  ;;  %v4381_v42 = vld [vmem:[#allocation14 + $0x368] sm:$0xff]  ;;  %v4599_v28 = vld [vmem:[#allocation12 + $0x38] sm:$0xff] }
 0x82a   :  { %7469 = vmatpush1.bf16.msra.mxu0 %v7468_v36  ;;  %v4374_v36 = vld [vmem:[#allocation14 + $0x330] sm:$0xff] }
 0x82b   :  { %7471 = vmatprep.subr.bf16.mxu0 %v7470_v47  ;;  %v7548_v39 = vpack.c.bf16 %v4374_v36, %v4370_v35  ;;  %v4379_v47 = vld [vmem:[#allocation14 + $0x358] sm:$0xff]  ;;  %v3777_v36 = vrot.slane %v3764_v30, %v8509_v14 }
 0x82c   :  { %7533 = vmatpush1.bf16.msra.mxu1 %v7532_v43  ;;  %v7486_v43 = vpack.c.bf16 %v4381_v42, %v4377_v40  ;;  %v7550_v53 = vpack.c.bf16 %v4383_v49, %v4379_v47 }
 0x82d   :  { %7535 = vmatprep.subr.bf16.mxu1 %v7534_v55  ;;  %v4389_v55 = vld [vmem:[#allocation14 + $0x3a8] sm:$0xff] }
 0x82e   :  { %7473 = vmatpush1.bf16.msra.mxu0 %v7472_v51  ;;  %v4382_v51 = vld [vmem:[#allocation14 + $0x370] sm:$0xff] }
 0x82f   :  { %7475 = vmatprep.subr.bf16.mxu0 %v7474_v60  ;;  %v7552_v32 = vpack.c.bf16 %v4382_v51, %v4378_v19  ;;  %v4387_v60 = vld [vmem:[#allocation14 + $0x398] sm:$0xff] }
 0x830   :  { %7537 = vmatpush1.bf16.msra.mxu1 %v7536_v56  ;;  %v7490_v56 = vpack.c.bf16 %v4389_v55, %v4385_v54  ;;  %v7554_v3 = vpack.c.bf16 %v4391_v62, %v4387_v60 }
 0x831   :  { %7539 = vmatprep.subr.bf16.mxu1 %v7538_v5  ;;  %v4397_v5 = vld [vmem:[#allocation14 + $0x3e8] sm:$0xff] }
 0x832   :  { %7477 = vmatpush1.bf16.msra.mxu0 %v7476_v2  ;;  %v4390_v2 = vld [vmem:[#allocation14 + $0x3b0] sm:$0xff] }
 0x833   :  { %7479 = vmatprep.subr.bf16.mxu0 %v7478_v8  ;;  %v7556_v4 = vpack.c.bf16 %v4390_v2, %v4386_v63  ;;  %v4395_v8 = vld [vmem:[#allocation14 + $0x3d8] sm:$0xff] }
 0x834   :  { %7541 = vmatpush1.bf16.msra.mxu1 %v7540_v38  ;;  %v7494_v38 = vpack.c.bf16 %v4397_v5, %v4393_v16  ;;  %v7558_v22 = vpack.c.bf16 %v4399_v17, %v4395_v8 }
 0x835   :  { %7543 = vmatprep.subr.bf16.mxu1 %v7542_v26  ;;  %v4597_v26 = vld [vmem:[#allocation12 + $0x28] sm:$0xff] }
 0x836   :  { %7481 = vmatpush1.bf16.msra.mxu0 %v7480_v20  ;;  %v4398_v20 = vld [vmem:[#allocation14 + $0x3f0] sm:$0xff] }
 0x837   :  { %7483 = vmatprep.subr.bf16.mxu0 %v7482_v29  ;;  %v7560_v24 = vpack.c.bf16 %v4398_v20, %v4394_v18  ;;  %v7626_v29 = vpack.c.bf16 %v4599_v28, %v4595_v27 }
 0x838   :  { %7545 = vmatpush1.bf16.msra.mxu1 %v7544_v1  ;;  %v7562_v1 = vpack.c.bf16 %v4597_v26, %v4593_v44 }
 0x839   :  { %7547 = vmatprep.subr.bf16.mxu1 %v7546_v37 }
 0x83a   :  { %7485 = vmatpush1.bf16.msra.mxu0 %v7484_v34 }
 0x83b   :  { %7487 = vmatprep.subr.bf16.mxu0 %v7486_v43 }
 0x83c   :  { %7549 = vmatpush1.bf16.msra.mxu1 %v7548_v39 }
 0x83d   :  { %7551 = vmatprep.subr.bf16.mxu1 %v7550_v53 }
 0x83e   :  { %7489 = vmatpush1.bf16.msra.mxu0 %v7488_v48 }
 0x83f   :  { %7491 = vmatprep.subr.bf16.mxu0 %v7490_v56 }
 0x840   :  { %7553 = vmatpush1.bf16.msra.mxu1 %v7552_v32 }
 0x841   :  { %7555 = vmatprep.subr.bf16.mxu1 %v7554_v3  ;;  %v4084_v3 = vld [vmem:[%s8950_s4] sm:$0xf] }
 0x842   :  { %7493 = vmatpush1.bf16.msra.mxu0 %v7492_v61  ;;  %v4097_v16 = vrot.slane %v4084_v3, %v8509_v14 }
 0x843   :  { %7495 = vmatprep.subr.bf16.mxu0 %v7494_v38 }
 0x844   :  { %7557 = vmatpush1.bf16.msra.mxu1 %v7556_v4  ;;  %v4093_v4 = vrot.slane %v4084_v3, %v8506_v13 }
 0x845   :  { %7559 = vmatprep.subr.bf16.mxu1 %v7558_v22  ;;  %v4101_v22 = vrot.slane %v4084_v3, %v8515_v21 }
 0x846   :  { %7497 = vmatpush1.bf16.msra.mxu0 %v7496_v12 }
 0x847   :  { %7563 = vmatprep.subr.bf16.mxu0 %v7562_v1 }
 0x848   :  { %7561 = vmatpush1.bf16.msra.mxu1 %v7560_v24 }
 0x849   :  { %7627 = vmatprep.subr.bf16.mxu1 %v7626_v29 }
 0x89c   :  { %v3852_v34 = vpop.f32.mrb[22].mxu0  ;;  %v3923_v52 = vpop.f32.mrb[22].mxu1 }
 0x89d   :  { %v3853_v35 = vadd.f32 %v3852_v34, %v3769_v31  ;;  %v3854_v37 = vpop.f32.mrb[23].mxu0  ;;  %v3925_v39 = vpop.f32.mrb[23].mxu1  ;;  %v3924_v45 = vadd.f32 %v3923_v52, %v3777_v36 }
 0x89e   :  { %v3855_v40 = vadd.f32 %v3854_v37, %v3773_v33  ;;  %v3926_v47 = vadd.f32 %v3925_v39, %v3781_v46  ;;  %v4592_v37 = vld [vmem:[#allocation12] sm:$0xff]  ;;  %v4598_v46 = vld [vmem:[#allocation12 + $0x30] sm:$0xff] }
 0x89f   :  { %v3928_v42 = vmul.f32 0.5, %v3853_v35  ;;  %v4596_v39 = vld [vmem:[#allocation12 + $0x20] sm:$0xff] }
 0x8a0   :  { %v3932_v43 = vmul.f32 0.5, %v3855_v40  ;;  %v3937_v48 = vmul.f32 0.5, %v3926_v47  ;;  %v4601_v40 = vld [vmem:[#allocation12 + $0x48] sm:$0xff] }
 0x8a1   :  { %7990 = vtanh.f32 %v3928_v42  ;;  %v4605_v42 = vld [vmem:[#allocation12 + $0x68] sm:$0xff] }
 0x8a2   :  { %7992 = vtanh.f32 %v3932_v43 }
 0x8a3   :  { %7994 = vtanh.f32 %v3924_v45  ;;  %v4594_v45 = vld [vmem:[#allocation12 + $0x10] sm:$0xff] }
 0x8a4   :  { %7996 = vtanh.f32 %v3937_v48  ;;  %v7564_v48 = vpack.c.bf16 %v4596_v39, %v4592_v37  ;;  %v4628_v37 = vld [vmem:[#allocation12 + $0x120] sm:$0xff] }
 0x8ab   :  { %v7991_v49 = vpop.eup %7990 }
 0x8ac   :  { %v7993_v19 = vpop.eup %7992  ;;  %v3930_v51 = vadd.f32 1.0, %v7991_v49  ;;  %v4603_v49 = vld [vmem:[#allocation12 + $0x58] sm:$0xff] }
 0x8ad   :  { %v3934_v53 = vadd.f32 1.0, %v7993_v19  ;;  %v7995_v54 = vpop.eup %7994  ;;  %v4607_v19 = vld [vmem:[#allocation12 + $0x78] sm:$0xff] }
 0x8ae   :  { %v3931_v32 = vmul.f32 0.5, %v3930_v51  ;;  %v7997_v60 = vpop.eup %7996 }
 0x8af   :  { %v3935_v55 = vmul.f32 0.5, %v3934_v53  ;;  %v3939_v61 = vadd.f32 1.0, %v7997_v60  ;;  %v7566_v53 = vpack.c.bf16 %v4605_v42, %v4601_v40  ;;  %v4602_v60 = vld [vmem:[#allocation12 + $0x50] sm:$0xff]  ;;  %v4633_v40 = vld [vmem:[#allocation12 + $0x148] sm:$0xff] }
 0x8b0   :  { %v3943_v56 = vmul.f32 %v7995_v54, %v3931_v32  ;;  %v4604_v32 = vld [vmem:[#allocation12 + $0x60] sm:$0xff]  ;;  %v7628_v54 = vpack.c.bf16 %v4598_v46, %v4594_v45  ;;  %v4637_v42 = vld [vmem:[#allocation12 + $0x168] sm:$0xff]  ;;  %v4626_v45 = vld [vmem:[#allocation12 + $0x110] sm:$0xff] }
 0x8b1   :  { %v3942_v57 = vmul.f32 %v3935_v55, %v8632_v15  ;;  %v3940_v62 = vmul.f32 0.5, %v3939_v61  ;;  %v4089_v15 = vrot.slane %v4084_v3, %v8500_v11  ;;  %v4609_v55 = vld [vmem:[#allocation12 + $0x88] sm:$0xff]  ;;  %v4606_v61 = vld [vmem:[#allocation12 + $0x70] sm:$0xff]  ;;  %v4615_v3 = vld [vmem:[#allocation12 + $0xb8] sm:$0xff] }
 0x8b2   :  { %v4630_v46 = vld [vmem:[#allocation12 + $0x130] sm:$0xff] }
 0x8b3   :  { %v8658_v58 = vadd.f32 %v3943_v56, %v3942_v57  ;;  %v4613_v56 = vld [vmem:[#allocation12 + $0xa8] sm:$0xff]  ;;  %v7630_v57 = vpack.c.bf16 %v4607_v19, %v4603_v49  ;;  %v4639_v49 = vld [vmem:[#allocation12 + $0x178] sm:$0xff]  ;;  %v7582_v19 = vpack.c.bf16 %v4637_v42, %v4633_v40  ;;  %v4658_v42 = vld [vmem:[#allocation12 + $0x210] sm:$0xff] }
 0x8b5   :  { %7998 = vtanh.f32 %v8658_v58 }
 0x8bf   :  { %v7999_v63 = vpop.eup %7998 }
 0x8c0   :  { %v8661_v2 = vmul.f32 %v7999_v63, %v3940_v62  ;;  %v4611_v63 = vld [vmem:[#allocation12 + $0x98] sm:$0xff] }
 0x8c2   :  { %4486 = vmatprep.mubr.f32.mxu0 %v8661_v2  ;;  %4557 = vmatprep.mubr.f32.mxu1 %v8661_v2 }
 0x8dc   :  { %v4172_v5 = vpop.f32.mrb[24].mxu0 }
 0x8dd   :  { %v4173_v38 = vadd.f32 %v4172_v5, %v4089_v15  ;;  %v4174_v7 = vpop.f32.mrb[25].mxu0  ;;  %v7570_v15 = vpack.c.bf16 %v4613_v56, %v4609_v55  ;;  %v7632_v5 = vpack.c.bf16 %v4606_v61, %v4602_v60  ;;  %v4634_v56 = vld [vmem:[#allocation12 + $0x150] sm:$0xff]  ;;  %v4643_v61 = vld [vmem:[#allocation12 + $0x198] sm:$0xff] }
 0x8de   :  { %v4175_v59 = vadd.f32 %v4174_v7, %v4093_v4  ;;  %v4243_v8 = vpop.f32.mrb[24].mxu1  ;;  %v4608_v4 = vld [vmem:[#allocation12 + $0x80] sm:$0xff]  ;;  %v4621_v7 = vld [vmem:[#allocation12 + $0xe8] sm:$0xff] }
 0x8df   :  { %v4248_v12 = vmul.f32 0.5, %v4173_v38  ;;  %v4244_v17 = vadd.f32 %v4243_v8, %v4097_v16  ;;  %v4245_v18 = vpop.f32.mrb[25].mxu1  ;;  %v4612_v16 = vld [vmem:[#allocation12 + $0xa0] sm:$0xff]  ;;  %v4617_v38 = vld [vmem:[#allocation12 + $0xc8] sm:$0xff]  ;;  %v4610_v8 = vld [vmem:[#allocation12 + $0x90] sm:$0xff] }
 0x8e0   :  { %v4252_v20 = vmul.f32 0.5, %v4175_v59  ;;  %v4246_v24 = vadd.f32 %v4245_v18, %v4101_v22  ;;  %v7634_v59 = vpack.c.bf16 %v4615_v3, %v4611_v63  ;;  %v4619_v18 = vld [vmem:[#allocation12 + $0xd8] sm:$0xff]  ;;  %v7574_v22 = vpack.c.bf16 %v4621_v7, %v4617_v38  ;;  %v4640_v3 = vld [vmem:[#allocation12 + $0x180] sm:$0xff]  ;;  %v4642_v7 = vld [vmem:[#allocation12 + $0x190] sm:$0xff] }
 0x8e1   :  { %8000 = vtanh.f32 %v4248_v12  ;;  %v4614_v12 = vld [vmem:[#allocation12 + $0xb0] sm:$0xff] }
 0x8e2   :  { %8002 = vtanh.f32 %v4252_v20  ;;  %v4257_v44 = vmul.f32 0.5, %v4246_v24  ;;  %v4623_v20 = vld [vmem:[#allocation12 + $0xf8] sm:$0xff]  ;;  %v4616_v24 = vld [vmem:[#allocation12 + $0xc0] sm:$0xff] }
 0x8e3   :  { %8004 = vtanh.f32 %v4244_v17  ;;  %v7572_v17 = vpack.c.bf16 %v4612_v16, %v4608_v4  ;;  %v4649_v16 = vld [vmem:[#allocation12 + $0x1c8] sm:$0xff] }
 0x8e4   :  { %8006 = vtanh.f32 %v4257_v44  ;;  %v4620_v44 = vld [vmem:[#allocation12 + $0xe0] sm:$0xff] }
 0x8eb   :  { %v8001_v26 = vpop.eup %8000 }
 0x8ec   :  { %v8003_v1 = vpop.eup %8002  ;;  %v4250_v27 = vadd.f32 1.0, %v8001_v26  ;;  %v7636_v26 = vpack.c.bf16 %v4614_v12, %v4610_v8  ;;  %v4651_v12 = vld [vmem:[#allocation12 + $0x1d8] sm:$0xff] }
 0x8ed   :  { %v8005_v28 = vpop.eup %8004  ;;  %v4254_v29 = vadd.f32 1.0, %v8003_v1  ;;  %v4625_v1 = vld [vmem:[#allocation12 + $0x108] sm:$0xff] }
 0x8ee   :  { %v4251_v30 = vmul.f32 0.5, %v4250_v27  ;;  %v8007_v35 = vpop.eup %8006  ;;  %v4629_v27 = vld [vmem:[#allocation12 + $0x128] sm:$0xff] }
 0x8ef   :  { %v4255_v31 = vmul.f32 0.5, %v4254_v29  ;;  %v4259_v36 = vadd.f32 1.0, %v8007_v35  ;;  %v4618_v29 = vld [vmem:[#allocation12 + $0xd0] sm:$0xff]  ;;  %v7578_v35 = vpack.c.bf16 %v4629_v27, %v4625_v1 }
 0x8f0   :  { %v4263_v33 = vmul.f32 %v8005_v28, %v4251_v30  ;;  %v7638_v28 = vpack.c.bf16 %v4623_v20, %v4619_v18  ;;  %v4622_v30 = vld [vmem:[#allocation12 + $0xf0] sm:$0xff]  ;;  %v4648_v20 = vld [vmem:[#allocation12 + $0x1c0] sm:$0xff] }
 0x8f1   :  { %v4262_v34 = vmul.f32 %v4255_v31, %v8647_v50  ;;  %v4260_v43 = vmul.f32 0.5, %v4259_v36  ;;  %v4600_v50 = vld [vmem:[#allocation12 + $0x40] sm:$0xff]  ;;  %v7576_v31 = vpack.c.bf16 %v4620_v44, %v4616_v24  ;;  %v7640_v39 = vpack.c.bf16 %v4622_v30, %v4618_v29  ;;  %v4657_v44 = vld [vmem:[#allocation12 + $0x208] sm:$0xff]  ;;  %v4650_v27 = vld [vmem:[#allocation12 + $0x1d0] sm:$0xff] }
 0x8f2   :  { %v7568_v62 = vpack.c.bf16 %v4604_v32, %v4600_v50  ;;  %v4624_v36 = vld [vmem:[#allocation12 + $0x100] sm:$0xff]  ;;  %v7644_v50 = vpack.c.bf16 %v4630_v46, %v4626_v45  ;;  %v4641_v32 = vld [vmem:[#allocation12 + $0x188] sm:$0xff]  ;;  %v4659_v30 = vld [vmem:[#allocation12 + $0x218] sm:$0xff] }
 0x8f3   :  { %v8673_v52 = vadd.f32 %v4263_v33, %v4262_v34  ;;  %v4627_v33 = vld [vmem:[#allocation12 + $0x118] sm:$0xff] }
 0x8f4   :  { %v4631_v34 = vld [vmem:[#allocation12 + $0x138] sm:$0xff] }
 0x8f5   :  { %8008 = vtanh.f32 %v8673_v52  ;;  %v4667_v46 = vld [vmem:[#allocation12 + $0x258] sm:$0xff] }
 0x8ff   :  { %v8009_v47 = vpop.eup %8008 }
 0x900   :  { %v4266_v51 = vmul.f32 %v8009_v47, %v4260_v43  ;;  %v7642_v43 = vpack.c.bf16 %v4631_v34, %v4627_v33  ;;  %v7580_v47 = vpack.c.bf16 %v4628_v37, %v4624_v36  ;;  %v4656_v34 = vld [vmem:[#allocation12 + $0x200] sm:$0xff]  ;;  %v4665_v37 = vld [vmem:[#allocation12 + $0x248] sm:$0xff] }
 0x902   :  { %4487 = vmatmul.mubr.f32.vlgmr.msra.gmra.mrb[26].mxu0 %v4266_v51  ;;  %4558 = vmatmul.mubr.f32.vlgmr.msra.gmra.mrb[26].mxu1 %v4266_v51 }
 0x903   :  { %7565 = vmatpush1.bf16.msra.mxu0 %v7564_v48  ;;  %4806 = vmatprep.mubr.f32.mxu0 %v4266_v51  ;;  %v4635_v48 = vld [vmem:[#allocation12 + $0x158] sm:$0xff] }
 0x904   :  { %4877 = vmatprep.mubr.f32.mxu1 %v4266_v51  ;;  %7567 = vmatprep.subr.bf16.mxu0 %v7566_v53  ;;  %v4632_v51 = vld [vmem:[#allocation12 + $0x140] sm:$0xff]  ;;  %v7646_v55 = vpack.c.bf16 %v4639_v49, %v4635_v48 }
 0x905   :  { %7629 = vmatpush1.bf16.msra.mxu1 %v7628_v54  ;;  %v4636_v53 = vld [vmem:[#allocation12 + $0x160] sm:$0xff]  ;;  %v4645_v54 = vld [vmem:[#allocation12 + $0x1a8] sm:$0xff] }
 0x906   :  { %7631 = vmatprep.subr.bf16.mxu1 %v7630_v57  ;;  %v4638_v57 = vld [vmem:[#allocation12 + $0x170] sm:$0xff]  ;;  %v7584_v60 = vpack.c.bf16 %v4636_v53, %v4632_v51  ;;  %v7586_v63 = vpack.c.bf16 %v4645_v54, %v4641_v32  ;;  %v4664_v49 = vld [vmem:[#allocation12 + $0x240] sm:$0xff]  ;;  %v4673_v53 = vld [vmem:[#allocation12 + $0x288] sm:$0xff] }
 0x907   :  { %7569 = vmatpush1.bf16.msra.mxu0 %v7568_v62  ;;  %v4647_v62 = vld [vmem:[#allocation12 + $0x1b8] sm:$0xff]  ;;  %v7648_v4 = vpack.c.bf16 %v4638_v57, %v4634_v56  ;;  %v4666_v54 = vld [vmem:[#allocation12 + $0x250] sm:$0xff] }
 0x908   :  { %7571 = vmatprep.subr.bf16.mxu0 %v7570_v15  ;;  %v4644_v15 = vld [vmem:[#allocation12 + $0x1a0] sm:$0xff]  ;;  %v7650_v38 = vpack.c.bf16 %v4647_v62, %v4643_v61  ;;  %v4675_v57 = vld [vmem:[#allocation12 + $0x298] sm:$0xff] }
 0x909   :  { %7633 = vmatpush1.bf16.msra.mxu1 %v7632_v5  ;;  %v4653_v5 = vld [vmem:[#allocation12 + $0x1e8] sm:$0xff]  ;;  %v7588_v8 = vpack.c.bf16 %v4644_v15, %v4640_v3  ;;  %v4672_v62 = vld [vmem:[#allocation12 + $0x280] sm:$0xff] }
 0x90a   :  { %7635 = vmatprep.subr.bf16.mxu1 %v7634_v59  ;;  %v4646_v59 = vld [vmem:[#allocation12 + $0x1b0] sm:$0xff]  ;;  %v7590_v18 = vpack.c.bf16 %v4653_v5, %v4649_v16  ;;  %v4681_v15 = vld [vmem:[#allocation12 + $0x2c8] sm:$0xff] }
 0x90b   :  { %7573 = vmatpush1.bf16.msra.mxu0 %v7572_v17  ;;  %v4655_v17 = vld [vmem:[#allocation12 + $0x1f8] sm:$0xff]  ;;  %v7652_v24 = vpack.c.bf16 %v4646_v59, %v4642_v7  ;;  %v4674_v5 = vld [vmem:[#allocation12 + $0x290] sm:$0xff] }
 0x90c   :  { %7575 = vmatprep.subr.bf16.mxu0 %v7574_v22  ;;  %v4652_v22 = vld [vmem:[#allocation12 + $0x1e0] sm:$0xff]  ;;  %v7654_v1 = vpack.c.bf16 %v4655_v17, %v4651_v12  ;;  %v4683_v59 = vld [vmem:[#allocation12 + $0x2d8] sm:$0xff] }
 0x90d   :  { %7637 = vmatpush1.bf16.msra.mxu1 %v7636_v26  ;;  %v4661_v26 = vld [vmem:[#allocation12 + $0x228] sm:$0xff]  ;;  %v7592_v29 = vpack.c.bf16 %v4652_v22, %v4648_v20  ;;  %v4680_v17 = vld [vmem:[#allocation12 + $0x2c0] sm:$0xff] }
 0x90e   :  { %7639 = vmatprep.subr.bf16.mxu1 %v7638_v28  ;;  %v4654_v28 = vld [vmem:[#allocation12 + $0x1f0] sm:$0xff]  ;;  %v7594_v33 = vpack.c.bf16 %v4661_v26, %v4657_v44  ;;  %v4689_v22 = vld [vmem:[#allocation12 + $0x308] sm:$0xff] }
 0x90f   :  { %7577 = vmatpush1.bf16.msra.mxu0 %v7576_v31  ;;  %v4663_v31 = vld [vmem:[#allocation12 + $0x238] sm:$0xff]  ;;  %v7656_v36 = vpack.c.bf16 %v4654_v28, %v4650_v27  ;;  %v4682_v26 = vld [vmem:[#allocation12 + $0x2d0] sm:$0xff] }
 0x910   :  { %7579 = vmatprep.subr.bf16.mxu0 %v7578_v35  ;;  %v4660_v35 = vld [vmem:[#allocation12 + $0x220] sm:$0xff]  ;;  %v7658_v40 = vpack.c.bf16 %v4663_v31, %v4659_v30  ;;  %v4691_v28 = vld [vmem:[#allocation12 + $0x318] sm:$0xff] }
 0x911   :  { %7641 = vmatpush1.bf16.msra.mxu1 %v7640_v39  ;;  %v4669_v39 = vld [vmem:[#allocation12 + $0x268] sm:$0xff]  ;;  %v7596_v45 = vpack.c.bf16 %v4660_v35, %v4656_v34  ;;  %v4688_v31 = vld [vmem:[#allocation12 + $0x300] sm:$0xff] }
 0x912   :  { %7643 = vmatprep.subr.bf16.mxu1 %v7642_v43  ;;  %v4662_v43 = vld [vmem:[#allocation12 + $0x230] sm:$0xff]  ;;  %v7598_v48 = vpack.c.bf16 %v4669_v39, %v4665_v37  ;;  %v4697_v35 = vld [vmem:[#allocation12 + $0x348] sm:$0xff] }
 0x913   :  { %7581 = vmatpush1.bf16.msra.mxu0 %v7580_v47  ;;  %v4671_v47 = vld [vmem:[#allocation12 + $0x278] sm:$0xff]  ;;  %v7660_v51 = vpack.c.bf16 %v4662_v43, %v4658_v42  ;;  %v4690_v39 = vld [vmem:[#allocation12 + $0x310] sm:$0xff] }
 0x914   :  { %7583 = vmatprep.subr.bf16.mxu0 %v7582_v19  ;;  %v4668_v19 = vld [vmem:[#allocation12 + $0x260] sm:$0xff]  ;;  %v7662_v32 = vpack.c.bf16 %v4671_v47, %v4667_v46  ;;  %v4699_v43 = vld [vmem:[#allocation12 + $0x358] sm:$0xff] }
 0x915   :  { %7645 = vmatpush1.bf16.msra.mxu1 %v7644_v50  ;;  %v4677_v50 = vld [vmem:[#allocation12 + $0x2a8] sm:$0xff]  ;;  %v7600_v56 = vpack.c.bf16 %v4668_v19, %v4664_v49  ;;  %v4696_v47 = vld [vmem:[#allocation12 + $0x340] sm:$0xff] }
 0x916   :  { %7647 = vmatprep.subr.bf16.mxu1 %v7646_v55  ;;  %v4670_v55 = vld [vmem:[#allocation12 + $0x270] sm:$0xff]  ;;  %v7602_v61 = vpack.c.bf16 %v4677_v50, %v4673_v53  ;;  %v4705_v19 = vld [vmem:[#allocation12 + $0x388] sm:$0xff] }
 0x917   :  { %7585 = vmatpush1.bf16.msra.mxu0 %v7584_v60  ;;  %v4679_v60 = vld [vmem:[#allocation12 + $0x2b8] sm:$0xff]  ;;  %v7664_v3 = vpack.c.bf16 %v4670_v55, %v4666_v54  ;;  %v4698_v50 = vld [vmem:[#allocation12 + $0x350] sm:$0xff] }
 0x918   :  { %7587 = vmatprep.subr.bf16.mxu0 %v7586_v63  ;;  %v4676_v63 = vld [vmem:[#allocation12 + $0x2a0] sm:$0xff]  ;;  %v7666_v16 = vpack.c.bf16 %v4679_v60, %v4675_v57  ;;  %v4707_v55 = vld [vmem:[#allocation12 + $0x398] sm:$0xff] }
 0x919   :  { %7649 = vmatpush1.bf16.msra.mxu1 %v7648_v4  ;;  %v4685_v4 = vld [vmem:[#allocation12 + $0x2e8] sm:$0xff]  ;;  %v7604_v7 = vpack.c.bf16 %v4676_v63, %v4672_v62  ;;  %v4704_v60 = vld [vmem:[#allocation12 + $0x380] sm:$0xff] }
 0x91a   :  { %7651 = vmatprep.subr.bf16.mxu1 %v7650_v38  ;;  %v4678_v38 = vld [vmem:[#allocation12 + $0x2b0] sm:$0xff]  ;;  %v7606_v12 = vpack.c.bf16 %v4685_v4, %v4681_v15  ;;  %v4713_v63 = vld [vmem:[#allocation12 + $0x3c8] sm:$0xff] }
 0x91b   :  { %7589 = vmatpush1.bf16.msra.mxu0 %v7588_v8  ;;  %v4687_v8 = vld [vmem:[#allocation12 + $0x2f8] sm:$0xff]  ;;  %v7668_v20 = vpack.c.bf16 %v4678_v38, %v4674_v5  ;;  %v4706_v4 = vld [vmem:[#allocation12 + $0x390] sm:$0xff] }
 0x91c   :  { %7591 = vmatprep.subr.bf16.mxu0 %v7590_v18  ;;  %v4684_v18 = vld [vmem:[#allocation12 + $0x2e0] sm:$0xff]  ;;  %v7670_v44 = vpack.c.bf16 %v4687_v8, %v4683_v59  ;;  %v4715_v38 = vld [vmem:[#allocation12 + $0x3d8] sm:$0xff] }
 0x91d   :  { %7653 = vmatpush1.bf16.msra.mxu1 %v7652_v24  ;;  %v4693_v24 = vld [vmem:[#allocation12 + $0x328] sm:$0xff]  ;;  %v7608_v27 = vpack.c.bf16 %v4684_v18, %v4680_v17  ;;  %v4712_v8 = vld [vmem:[#allocation12 + $0x3c0] sm:$0xff] }
 0x91e   :  { %7655 = vmatprep.subr.bf16.mxu1 %v7654_v1  ;;  %v4686_v1 = vld [vmem:[#allocation12 + $0x2f0] sm:$0xff]  ;;  %v7610_v30 = vpack.c.bf16 %v4693_v24, %v4689_v22 }
 0x91f   :  { %7593 = vmatpush1.bf16.msra.mxu0 %v7592_v29  ;;  %v4695_v29 = vld [vmem:[#allocation12 + $0x338] sm:$0xff]  ;;  %v7672_v34 = vpack.c.bf16 %v4686_v1, %v4682_v26  ;;  %v4718_v22 = vld [vmem:[#allocation12 + $0x3f0] sm:$0xff]  ;;  %v4909_v1 = vld [vmem:[#allocation14 + $0x8] sm:$0xff] }
 0x920   :  { %7595 = vmatprep.subr.bf16.mxu0 %v7594_v33  ;;  %v4692_v33 = vld [vmem:[#allocation12 + $0x320] sm:$0xff]  ;;  %v7674_v37 = vpack.c.bf16 %v4695_v29, %v4691_v28  ;;  %v4588_v26 = vld [vmem:[#allocation6 + $0x38] sm:$0xff] }
 0x921   :  { %7657 = vmatpush1.bf16.msra.mxu1 %v7656_v36  ;;  %v4701_v36 = vld [vmem:[#allocation12 + $0x368] sm:$0xff]  ;;  %v7612_v42 = vpack.c.bf16 %v4692_v33, %v4688_v31  ;;  %v4911_v28 = vld [vmem:[#allocation14 + $0x18] sm:$0xff]  ;;  %v4908_v31 = vld [vmem:[#allocation14] sm:$0xff] }
 0x922   :  { %7659 = vmatprep.subr.bf16.mxu1 %v7658_v40  ;;  %v4694_v40 = vld [vmem:[#allocation12 + $0x330] sm:$0xff]  ;;  %v7614_v46 = vpack.c.bf16 %v4701_v36, %v4697_v35  ;;  %v4912_v33 = vld [vmem:[#allocation14 + $0x20] sm:$0xff] }
 0x923   :  { %7597 = vmatpush1.bf16.msra.mxu0 %v7596_v45  ;;  %v4703_v45 = vld [vmem:[#allocation12 + $0x378] sm:$0xff]  ;;  %v7676_v49 = vpack.c.bf16 %v4694_v40, %v4690_v39  ;;  %v7692_v35 = vpack.c.bf16 %v4912_v33, %v4908_v31  ;;  %v4910_v36 = vld [vmem:[#allocation14 + $0x10] sm:$0xff]  ;;  %v4917_v40 = vld [vmem:[#allocation14 + $0x48] sm:$0xff] }
 0x924   :  { %7599 = vmatprep.subr.bf16.mxu0 %v7598_v48  ;;  %v4700_v48 = vld [vmem:[#allocation12 + $0x360] sm:$0xff]  ;;  %v7678_v53 = vpack.c.bf16 %v4703_v45, %v4699_v43  ;;  %v4919_v43 = vld [vmem:[#allocation14 + $0x58] sm:$0xff]  ;;  %v4942_v33 = vld [vmem:[#allocation14 + $0x110] sm:$0xff] }
 0x925   :  { %7661 = vmatpush1.bf16.msra.mxu1 %v7660_v51  ;;  %v4709_v51 = vld [vmem:[#allocation12 + $0x3a8] sm:$0xff]  ;;  %v7616_v54 = vpack.c.bf16 %v4700_v48, %v4696_v47  ;;  %v4916_v47 = vld [vmem:[#allocation14 + $0x40] sm:$0xff] }
 0x926   :  { %7663 = vmatprep.subr.bf16.mxu1 %v7662_v32  ;;  %v4702_v32 = vld [vmem:[#allocation12 + $0x370] sm:$0xff]  ;;  %v7618_v57 = vpack.c.bf16 %v4709_v51, %v4705_v19  ;;  %v4920_v48 = vld [vmem:[#allocation14 + $0x60] sm:$0xff] }
 0x927   :  { %7601 = vmatpush1.bf16.msra.mxu0 %v7600_v56  ;;  %v4711_v56 = vld [vmem:[#allocation12 + $0x3b8] sm:$0xff]  ;;  %v7680_v62 = vpack.c.bf16 %v4702_v32, %v4698_v50  ;;  %v7696_v19 = vpack.c.bf16 %v4920_v48, %v4916_v47  ;;  %v4918_v51 = vld [vmem:[#allocation14 + $0x50] sm:$0xff]  ;;  %v4925_v50 = vld [vmem:[#allocation14 + $0x88] sm:$0xff] }
 0x928   :  { %7603 = vmatprep.subr.bf16.mxu0 %v7602_v61  ;;  %v4708_v61 = vld [vmem:[#allocation12 + $0x3a0] sm:$0xff]  ;;  %v7682_v15 = vpack.c.bf16 %v4711_v56, %v4707_v55  ;;  %v4927_v55 = vld [vmem:[#allocation14 + $0x98] sm:$0xff]  ;;  %v4950_v47 = vld [vmem:[#allocation14 + $0x150] sm:$0xff] }
 0x929   :  { %7665 = vmatpush1.bf16.msra.mxu1 %v7664_v3  ;;  %v4717_v3 = vld [vmem:[#allocation12 + $0x3e8] sm:$0xff]  ;;  %v7620_v5 = vpack.c.bf16 %v4708_v61, %v4704_v60  ;;  %v4931_v56 = vld [vmem:[#allocation14 + $0xb8] sm:$0xff]  ;;  %v4924_v61 = vld [vmem:[#allocation14 + $0x80] sm:$0xff] }
 0x92a   :  { %7667 = vmatprep.subr.bf16.mxu1 %v7666_v16  ;;  %v4710_v16 = vld [vmem:[#allocation12 + $0x3b0] sm:$0xff]  ;;  %v7622_v59 = vpack.c.bf16 %v4717_v3, %v4713_v63  ;;  %v7762_v60 = vpack.c.bf16 %v4931_v56, %v4927_v55  ;;  %v4956_v56 = vld [vmem:[#allocation14 + $0x180] sm:$0xff] }
 0x92b   :  { %7605 = vmatpush1.bf16.msra.mxu0 %v7604_v7  ;;  %v4719_v7 = vld [vmem:[#allocation12 + $0x3f8] sm:$0xff]  ;;  %v7684_v17 = vpack.c.bf16 %v4710_v16, %v4706_v4  ;;  %v4926_v63 = vld [vmem:[#allocation14 + $0x90] sm:$0xff]  ;;  %v4933_v4 = vld [vmem:[#allocation14 + $0xc8] sm:$0xff] }
 0x92c   :  { %7607 = vmatprep.subr.bf16.mxu0 %v7606_v12  ;;  %v4716_v12 = vld [vmem:[#allocation12 + $0x3e0] sm:$0xff]  ;;  %v7686_v18 = vpack.c.bf16 %v4719_v7, %v4715_v38  ;;  %v4937_v16 = vld [vmem:[#allocation14 + $0xe8] sm:$0xff]  ;;  %v4935_v7 = vld [vmem:[#allocation14 + $0xd8] sm:$0xff] }
 0x92d   :  { %7669 = vmatpush1.bf16.msra.mxu1 %v7668_v20  ;;  %v4714_v20 = vld [vmem:[#allocation12 + $0x3d0] sm:$0xff]  ;;  %v7624_v24 = vpack.c.bf16 %v4716_v12, %v4712_v8  ;;  %v7702_v38 = vpack.c.bf16 %v4937_v16, %v4933_v4  ;;  %v4932_v8 = vld [vmem:[#allocation14 + $0xc0] sm:$0xff]  ;;  %v4969_v4 = vld [vmem:[#allocation14 + $0x1e8] sm:$0xff] }
 0x92e   :  { %7671 = vmatprep.subr.bf16.mxu1 %v7670_v44  ;;  %v7688_v44 = vpack.c.bf16 %v4718_v22, %v4714_v20  ;;  %v4938_v20 = vld [vmem:[#allocation14 + $0xf0] sm:$0xff]  ;;  %v4967_v16 = vld [vmem:[#allocation14 + $0x1d8] sm:$0xff] }
 0x92f   :  { %7609 = vmatpush1.bf16.msra.mxu0 %v7608_v27  ;;  %v4913_v27 = vld [vmem:[#allocation14 + $0x28] sm:$0xff] }
 0x930   :  { %7611 = vmatprep.subr.bf16.mxu0 %v7610_v30  ;;  %v7690_v29 = vpack.c.bf16 %v4913_v27, %v4909_v1  ;;  %v4915_v30 = vld [vmem:[#allocation14 + $0x38] sm:$0xff] }
 0x931   :  { %7673 = vmatpush1.bf16.msra.mxu1 %v7672_v34  ;;  %v7754_v34 = vpack.c.bf16 %v4915_v30, %v4911_v28  ;;  %v4947_v28 = vld [vmem:[#allocation14 + $0x138] sm:$0xff]  ;;  %v4944_v30 = vld [vmem:[#allocation14 + $0x120] sm:$0xff] }
 0x932   :  { %7675 = vmatprep.subr.bf16.mxu1 %v7674_v37  ;;  %v4914_v37 = vld [vmem:[#allocation14 + $0x30] sm:$0xff] }
 0x933   :  { %7613 = vmatpush1.bf16.msra.mxu0 %v7612_v42  ;;  %v7756_v39 = vpack.c.bf16 %v4914_v37, %v4910_v36  ;;  %v4921_v42 = vld [vmem:[#allocation14 + $0x68] sm:$0xff]  ;;  %v4951_v37 = vld [vmem:[#allocation14 + $0x158] sm:$0xff] }
 0x934   :  { %7615 = vmatprep.subr.bf16.mxu0 %v7614_v46  ;;  %v7694_v45 = vpack.c.bf16 %v4921_v42, %v4917_v40  ;;  %v4923_v46 = vld [vmem:[#allocation14 + $0x78] sm:$0xff]  ;;  %v4953_v36 = vld [vmem:[#allocation14 + $0x168] sm:$0xff] }
 0x935   :  { %7677 = vmatpush1.bf16.msra.mxu1 %v7676_v49  ;;  %v7758_v49 = vpack.c.bf16 %v4923_v46, %v4919_v43  ;;  %v4952_v46 = vld [vmem:[#allocation14 + $0x160] sm:$0xff] }
 0x936   :  { %7679 = vmatprep.subr.bf16.mxu1 %v7678_v53  ;;  %v4922_v53 = vld [vmem:[#allocation14 + $0x70] sm:$0xff] }
 0x937   :  { %7617 = vmatpush1.bf16.msra.mxu0 %v7616_v54  ;;  %v7760_v32 = vpack.c.bf16 %v4922_v53, %v4918_v51  ;;  %v4929_v54 = vld [vmem:[#allocation14 + $0xa8] sm:$0xff]  ;;  %v4959_v53 = vld [vmem:[#allocation14 + $0x198] sm:$0xff] }
 0x938   :  { %7619 = vmatprep.subr.bf16.mxu0 %v7618_v57  ;;  %v7698_v57 = vpack.c.bf16 %v4929_v54, %v4925_v50  ;;  %v4961_v51 = vld [vmem:[#allocation14 + $0x1a8] sm:$0xff]  ;;  %v4963_v50 = vld [vmem:[#allocation14 + $0x1b8] sm:$0xff] }
 0x939   :  { %7681 = vmatpush1.bf16.msra.mxu1 %v7680_v62  ;;  %v4928_v62 = vld [vmem:[#allocation14 + $0xa0] sm:$0xff] }
 0x93a   :  { %7683 = vmatprep.subr.bf16.mxu1 %v7682_v15  ;;  %v7700_v3 = vpack.c.bf16 %v4928_v62, %v4924_v61  ;;  %v4930_v15 = vld [vmem:[#allocation14 + $0xb0] sm:$0xff] }
 0x93b   :  { %7621 = vmatpush1.bf16.msra.mxu0 %v7620_v5  ;;  %v7764_v5 = vpack.c.bf16 %v4930_v15, %v4926_v63  ;;  %v4958_v61 = vld [vmem:[#allocation14 + $0x190] sm:$0xff]  ;;  %v4965_v15 = vld [vmem:[#allocation14 + $0x1c8] sm:$0xff] }
 0x93c   :  { %7623 = vmatprep.subr.bf16.mxu0 %v7622_v59  ;;  %v4939_v59 = vld [vmem:[#allocation14 + $0xf8] sm:$0xff]  ;;  %v4962_v62 = vld [vmem:[#allocation14 + $0x1b0] sm:$0xff] }
 0x93d   :  { %7685 = vmatpush1.bf16.msra.mxu1 %v7684_v17  ;;  %v7766_v12 = vpack.c.bf16 %v4939_v59, %v4935_v7  ;;  %v4936_v17 = vld [vmem:[#allocation14 + $0xe0] sm:$0xff] }
 0x93e   :  { %7687 = vmatprep.subr.bf16.mxu1 %v7686_v18  ;;  %v4934_v18 = vld [vmem:[#allocation14 + $0xd0] sm:$0xff]  ;;  %v7704_v22 = vpack.c.bf16 %v4936_v17, %v4932_v8  ;;  %v4964_v7 = vld [vmem:[#allocation14 + $0x1c0] sm:$0xff] }
 0x93f   :  { %7625 = vmatpush1.bf16.msra.mxu0 %v7624_v24  ;;  %v4941_v24 = vld [vmem:[#allocation14 + $0x108] sm:$0xff]  ;;  %v7768_v1 = vpack.c.bf16 %v4938_v20, %v4934_v18  ;;  %v4968_v59 = vld [vmem:[#allocation14 + $0x1e0] sm:$0xff]  ;;  %v4966_v17 = vld [vmem:[#allocation14 + $0x1d0] sm:$0xff] }
 0x940   :  { %7691 = vmatprep.subr.bf16.mxu0 %v7690_v29  ;;  %v4940_v29 = vld [vmem:[#allocation14 + $0x100] sm:$0xff]  ;;  %v4970_v18 = vld [vmem:[#allocation14 + $0x1f0] sm:$0xff] }
 0x941   :  { %7689 = vmatpush1.bf16.msra.mxu1 %v7688_v44  ;;  %v4945_v44 = vld [vmem:[#allocation14 + $0x128] sm:$0xff]  ;;  %v7708_v40 = vpack.c.bf16 %v4944_v30, %v4940_v29  ;;  %v7784_v20 = vpack.c.bf16 %v4970_v18, %v4966_v17 }
 0x942   :  { %4807 = vmatmul.mubr.f32.vlgmr.msra.gmra.mrb[28].mxu0 %v4588_v26  ;;  %7755 = vmatprep.subr.bf16.mxu1 %v7754_v34  ;;  %v7706_v27 = vpack.c.bf16 %v4945_v44, %v4941_v24  ;;  %v4946_v34 = vld [vmem:[#allocation14 + $0x130] sm:$0xff]  ;;  %v4977_v24 = vld [vmem:[#allocation14 + $0x228] sm:$0xff]  ;;  %v4975_v44 = vld [vmem:[#allocation14 + $0x218] sm:$0xff] }
 0x943   :  { %7693 = vmatpush1.bf16.msra.mxu0 %v7692_v35  ;;  %v4949_v35 = vld [vmem:[#allocation14 + $0x148] sm:$0xff]  ;;  %v7772_v42 = vpack.c.bf16 %v4946_v34, %v4942_v33  ;;  %v4978_v33 = vld [vmem:[#allocation14 + $0x230] sm:$0xff] }
 0x944   :  { %4878 = vmatmul.mubr.f32.vlgmr.msra.gmra.mrb[28].mxu1 %v4588_v26  ;;  %7695 = vmatprep.subr.bf16.mxu0 %v7694_v45  ;;  %v4943_v26 = vld [vmem:[#allocation14 + $0x118] sm:$0xff]  ;;  %v7710_v43 = vpack.c.bf16 %v4953_v36, %v4949_v35  ;;  %v4948_v45 = vld [vmem:[#allocation14 + $0x140] sm:$0xff]  ;;  %v4981_v35 = vld [vmem:[#allocation14 + $0x248] sm:$0xff] }
 0x945   :  { %7757 = vmatpush1.bf16.msra.mxu1 %v7756_v39  ;;  %v7770_v31 = vpack.c.bf16 %v4947_v28, %v4943_v26  ;;  %v4955_v39 = vld [vmem:[#allocation14 + $0x178] sm:$0xff]  ;;  %v4976_v28 = vld [vmem:[#allocation14 + $0x220] sm:$0xff]  ;;  %v4985_v36 = vld [vmem:[#allocation14 + $0x268] sm:$0xff] }
 0x946   :  { %7759 = vmatprep.subr.bf16.mxu1 %v7758_v49  ;;  %v7774_v48 = vpack.c.bf16 %v4955_v39, %v4951_v37  ;;  %v4954_v49 = vld [vmem:[#allocation14 + $0x170] sm:$0xff]  ;;  %v4983_v37 = vld [vmem:[#allocation14 + $0x258] sm:$0xff]  ;;  %v7726_v39 = vpack.c.bf16 %v4985_v36, %v4981_v35  ;;  %v5005_v18 = vld [vmem:[#allocation14 + $0x308] sm:$0xff] }
 0x947   :  { %7697 = vmatpush1.bf16.msra.mxu0 %v7696_v19  ;;  %v4957_v19 = vld [vmem:[#allocation14 + $0x188] sm:$0xff]  ;;  %v7776_v54 = vpack.c.bf16 %v4954_v49, %v4950_v47  ;;  %v4982_v47 = vld [vmem:[#allocation14 + $0x250] sm:$0xff]  ;;  %v5015_v35 = vld [vmem:[#allocation14 + $0x358] sm:$0xff] }
 0x948   :  { %7699 = vmatprep.subr.bf16.mxu0 %v7698_v57  ;;  %v7714_v55 = vpack.c.bf16 %v4961_v51, %v4957_v19  ;;  %v4960_v57 = vld [vmem:[#allocation14 + $0x1a0] sm:$0xff]  ;;  %v4989_v19 = vld [vmem:[#allocation14 + $0x288] sm:$0xff] }
 0x949   :  { %7761 = vmatpush1.bf16.msra.mxu1 %v7760_v32  ;;  %v7712_v32 = vpack.c.bf16 %v4952_v46, %v4948_v45  ;;  %v7716_v63 = vpack.c.bf16 %v4960_v57, %v4956_v56  ;;  %v4993_v51 = vld [vmem:[#allocation14 + $0x2a8] sm:$0xff] }
 0x94a   :  { %7763 = vmatprep.subr.bf16.mxu1 %v7762_v60  ;;  %v7778_v60 = vpack.c.bf16 %v4963_v50, %v4959_v53  ;;  %v4991_v53 = vld [vmem:[#allocation14 + $0x298] sm:$0xff]  ;;  %v7730_v50 = vpack.c.bf16 %v4993_v51, %v4989_v19 }
 0x94b   :  { %7701 = vmatpush1.bf16.msra.mxu0 %v7700_v3  ;;  %v7780_v3 = vpack.c.bf16 %v4962_v62, %v4958_v61  ;;  %v4994_v61 = vld [vmem:[#allocation14 + $0x2b0] sm:$0xff]  ;;  %v5023_v19 = vld [vmem:[#allocation14 + $0x398] sm:$0xff] }
 0x94c   :  { %7703 = vmatprep.subr.bf16.mxu0 %v7702_v38  ;;  %v4971_v38 = vld [vmem:[#allocation14 + $0x1f8] sm:$0xff] }
 0x94d   :  { %7765 = vmatpush1.bf16.msra.mxu1 %v7764_v5  ;;  %v7718_v5 = vpack.c.bf16 %v4969_v4, %v4965_v15  ;;  %v7782_v8 = vpack.c.bf16 %v4971_v38, %v4967_v16  ;;  %v4999_v15 = vld [vmem:[#allocation14 + $0x2d8] sm:$0xff]  ;;  %v5000_v38 = vld [vmem:[#allocation14 + $0x2e0] sm:$0xff] }
 0x94e   :  { %7767 = vmatprep.subr.bf16.mxu1 %v7766_v12  ;;  %v7720_v12 = vpack.c.bf16 %v4968_v59, %v4964_v7  ;;  %v5003_v16 = vld [vmem:[#allocation14 + $0x2f8] sm:$0xff] }
 0x94f   :  { %7705 = vmatpush1.bf16.msra.mxu0 %v7704_v22  ;;  %v4973_v22 = vld [vmem:[#allocation14 + $0x208] sm:$0xff]  ;;  %v7798_v7 = vpack.c.bf16 %v5003_v16, %v4999_v15  ;;  %v5035_v15 = vld [vmem:[#allocation14 + $0x3f8] sm:$0xff]  ;;  %v5032_v16 = vld [vmem:[#allocation14 + $0x3e0] sm:$0xff] }
 0x950   :  { %7707 = vmatprep.subr.bf16.mxu0 %v7706_v27  ;;  %v7722_v26 = vpack.c.bf16 %v4977_v24, %v4973_v22  ;;  %v4972_v27 = vld [vmem:[#allocation14 + $0x200] sm:$0xff]  ;;  %v5007_v22 = vld [vmem:[#allocation14 + $0x318] sm:$0xff] }
 0x951   :  { %7769 = vmatpush1.bf16.msra.mxu1 %v7768_v1  ;;  %v4979_v1 = vld [vmem:[#allocation14 + $0x238] sm:$0xff]  ;;  %v7724_v30 = vpack.c.bf16 %v4976_v28, %v4972_v27 }
 0x952   :  { %7771 = vmatprep.subr.bf16.mxu1 %v7770_v31  ;;  %v7786_v29 = vpack.c.bf16 %v4979_v1, %v4975_v44  ;;  %v4974_v31 = vld [vmem:[#allocation14 + $0x210] sm:$0xff]  ;;  %v5011_v44 = vld [vmem:[#allocation14 + $0x338] sm:$0xff]  ;;  %v5008_v1 = vld [vmem:[#allocation14 + $0x320] sm:$0xff] }
 0x953   :  { %7709 = vmatpush1.bf16.msra.mxu0 %v7708_v40  ;;  %v7788_v34 = vpack.c.bf16 %v4978_v33, %v4974_v31  ;;  %v4987_v40 = vld [vmem:[#allocation14 + $0x278] sm:$0xff]  ;;  %v7802_v27 = vpack.c.bf16 %v5011_v44, %v5007_v22  ;;  %v5013_v33 = vld [vmem:[#allocation14 + $0x348] sm:$0xff] }
 0x954   :  { %7711 = vmatprep.subr.bf16.mxu0 %v7710_v43  ;;  %v4984_v43 = vld [vmem:[#allocation14 + $0x260] sm:$0xff]  ;;  %v7790_v45 = vpack.c.bf16 %v4987_v40, %v4983_v37  ;;  %v5019_v37 = vld [vmem:[#allocation14 + $0x378] sm:$0xff] }
 0x955   :  { %7773 = vmatpush1.bf16.msra.mxu1 %v7772_v42  ;;  %v4980_v42 = vld [vmem:[#allocation14 + $0x240] sm:$0xff] }
 0x956   :  { %7775 = vmatprep.subr.bf16.mxu1 %v7774_v48  ;;  %v7728_v46 = vpack.c.bf16 %v4984_v43, %v4980_v42  ;;  %v4986_v48 = vld [vmem:[#allocation14 + $0x270] sm:$0xff]  ;;  %v5016_v40 = vld [vmem:[#allocation14 + $0x360] sm:$0xff]  ;;  %v7806_v42 = vpack.c.bf16 %v5019_v37, %v5015_v35 }
 0x957   :  { %7713 = vmatpush1.bf16.msra.mxu0 %v7712_v32  ;;  %v7792_v49 = vpack.c.bf16 %v4986_v48, %v4982_v47  ;;  %v4995_v32 = vld [vmem:[#allocation14 + $0x2b8] sm:$0xff]  ;;  %v5021_v48 = vld [vmem:[#allocation14 + $0x388] sm:$0xff] }
 0x958   :  { %7715 = vmatprep.subr.bf16.mxu0 %v7714_v55  ;;  %v4992_v55 = vld [vmem:[#allocation14 + $0x2a0] sm:$0xff]  ;;  %v7794_v56 = vpack.c.bf16 %v4995_v32, %v4991_v53  ;;  %v5027_v53 = vld [vmem:[#allocation14 + $0x3b8] sm:$0xff] }
 0x959   :  { %7777 = vmatpush1.bf16.msra.mxu1 %v7776_v54  ;;  %v4988_v54 = vld [vmem:[#allocation14 + $0x280] sm:$0xff] }
 0x95a   :  { %7779 = vmatprep.subr.bf16.mxu1 %v7778_v60  ;;  %v7732_v57 = vpack.c.bf16 %v4992_v55, %v4988_v54  ;;  %v4990_v60 = vld [vmem:[#allocation14 + $0x290] sm:$0xff]  ;;  %v5024_v32 = vld [vmem:[#allocation14 + $0x3a0] sm:$0xff]  ;;  %v7810_v54 = vpack.c.bf16 %v5027_v53, %v5023_v19 }
 0x95b   :  { %7717 = vmatpush1.bf16.msra.mxu0 %v7716_v63  ;;  %v7796_v62 = vpack.c.bf16 %v4994_v61, %v4990_v60  ;;  %v4997_v63 = vld [vmem:[#allocation14 + $0x2c8] sm:$0xff] }
 0x95c   :  { %7719 = vmatprep.subr.bf16.mxu0 %v7718_v5  ;;  %v4996_v5 = vld [vmem:[#allocation14 + $0x2c0] sm:$0xff]  ;;  %v5029_v61 = vld [vmem:[#allocation14 + $0x3c8] sm:$0xff] }
 0x95d   :  { %7781 = vmatpush1.bf16.msra.mxu1 %v7780_v3  ;;  %v5001_v3 = vld [vmem:[#allocation14 + $0x2e8] sm:$0xff]  ;;  %v7736_v59 = vpack.c.bf16 %v5000_v38, %v4996_v5 }
 0x95e   :  { %7783 = vmatprep.subr.bf16.mxu1 %v7782_v8  ;;  %v7734_v4 = vpack.c.bf16 %v5001_v3, %v4997_v63  ;;  %v4998_v8 = vld [vmem:[#allocation14 + $0x2d0] sm:$0xff]  ;;  %v5031_v63 = vld [vmem:[#allocation14 + $0x3d8] sm:$0xff] }
 0x95f   :  { %7721 = vmatpush1.bf16.msra.mxu0 %v7720_v12  ;;  %v5002_v12 = vld [vmem:[#allocation14 + $0x2f0] sm:$0xff]  ;;  %v7814_v5 = vpack.c.bf16 %v5035_v15, %v5031_v63 }
 0x960   :  { %7723 = vmatprep.subr.bf16.mxu0 %v7722_v26  ;;  %v7800_v17 = vpack.c.bf16 %v5002_v12, %v4998_v8  ;;  %v5004_v26 = vld [vmem:[#allocation14 + $0x300] sm:$0xff] }
 0x961   :  { %7785 = vmatpush1.bf16.msra.mxu1 %v7784_v20  ;;  %v5009_v20 = vld [vmem:[#allocation14 + $0x328] sm:$0xff]  ;;  %v7740_v28 = vpack.c.bf16 %v5008_v1, %v5004_v26  ;;  %v5231_v12 = vld [vmem:[#allocation15] sm:$0xff] }
 0x962   :  { %7787 = vmatprep.subr.bf16.mxu1 %v7786_v29  ;;  %v7738_v24 = vpack.c.bf16 %v5009_v20, %v5005_v18  ;;  %v5006_v29 = vld [vmem:[#allocation14 + $0x310] sm:$0xff]  ;;  %v4400_v20 = vld [vmem:[%s8952_s6] sm:$0xf] }
 0x963   :  { %7725 = vmatpush1.bf16.msra.mxu0 %v7724_v30  ;;  %v5010_v30 = vld [vmem:[#allocation14 + $0x330] sm:$0xff]  ;;  %v4405_v22 = vrot.slane %v4400_v20, %v8500_v11  ;;  %v4417_v35 = vrot.slane %v4400_v20, %v8515_v21 }
 0x964   :  { %7727 = vmatprep.subr.bf16.mxu0 %v7726_v39  ;;  %v7804_v31 = vpack.c.bf16 %v5010_v30, %v5006_v29  ;;  %v5012_v39 = vld [vmem:[#allocation14 + $0x340] sm:$0xff] }
 0x965   :  { %7789 = vmatpush1.bf16.msra.mxu1 %v7788_v34  ;;  %v5017_v34 = vld [vmem:[#allocation14 + $0x368] sm:$0xff]  ;;  %v7744_v43 = vpack.c.bf16 %v5016_v40, %v5012_v39 }
 0x966   :  { %7791 = vmatprep.subr.bf16.mxu1 %v7790_v45  ;;  %v7742_v36 = vpack.c.bf16 %v5017_v34, %v5013_v33  ;;  %v5014_v45 = vld [vmem:[#allocation14 + $0x350] sm:$0xff] }
 0x967   :  { %7729 = vmatpush1.bf16.msra.mxu0 %v7728_v46  ;;  %v5018_v46 = vld [vmem:[#allocation14 + $0x370] sm:$0xff] }
 0x968   :  { %7731 = vmatprep.subr.bf16.mxu0 %v7730_v50  ;;  %v7808_v47 = vpack.c.bf16 %v5018_v46, %v5014_v45  ;;  %v5020_v50 = vld [vmem:[#allocation14 + $0x380] sm:$0xff] }
 0x969   :  { %7793 = vmatpush1.bf16.msra.mxu1 %v7792_v49  ;;  %v5025_v49 = vld [vmem:[#allocation14 + $0x3a8] sm:$0xff]  ;;  %v7748_v55 = vpack.c.bf16 %v5024_v32, %v5020_v50 }
 0x96a   :  { %7795 = vmatprep.subr.bf16.mxu1 %v7794_v56  ;;  %v7746_v51 = vpack.c.bf16 %v5025_v49, %v5021_v48  ;;  %v5022_v56 = vld [vmem:[#allocation14 + $0x390] sm:$0xff] }
 0x96b   :  { %7733 = vmatpush1.bf16.msra.mxu0 %v7732_v57  ;;  %v5026_v57 = vld [vmem:[#allocation14 + $0x3b0] sm:$0xff] }
 0x96c   :  { %7735 = vmatprep.subr.bf16.mxu0 %v7734_v4  ;;  %v7812_v60 = vpack.c.bf16 %v5026_v57, %v5022_v56  ;;  %v5028_v4 = vld [vmem:[#allocation14 + $0x3c0] sm:$0xff] }
 0x96d   :  { %7797 = vmatpush1.bf16.msra.mxu1 %v7796_v62  ;;  %v5033_v62 = vld [vmem:[#allocation14 + $0x3e8] sm:$0xff]  ;;  %v7752_v38 = vpack.c.bf16 %v5032_v16, %v5028_v4 }
 0x96e   :  { %7799 = vmatprep.subr.bf16.mxu1 %v7798_v7  ;;  %v7750_v3 = vpack.c.bf16 %v5033_v62, %v5029_v61  ;;  %v5030_v7 = vld [vmem:[#allocation14 + $0x3d0] sm:$0xff] }
 0x96f   :  { %7737 = vmatpush1.bf16.msra.mxu0 %v7736_v59  ;;  %v5034_v59 = vld [vmem:[#allocation14 + $0x3f0] sm:$0xff] }
 0x970   :  { %7739 = vmatprep.subr.bf16.mxu0 %v7738_v24  ;;  %v7816_v8 = vpack.c.bf16 %v5034_v59, %v5030_v7  ;;  %v4409_v24 = vrot.slane %v4400_v20, %v8506_v13 }
 0x971   :  { %7801 = vmatpush1.bf16.msra.mxu1 %v7800_v17  ;;  %v5232_v17 = vld [vmem:[#allocation15 + $0x8] sm:$0xff] }
 0x972   :  { %7803 = vmatprep.subr.bf16.mxu1 %v7802_v27  ;;  %v8676_v18 = vpack.c.bf16 %v5232_v17, %v5231_v12  ;;  %v4413_v27 = vrot.slane %v4400_v20, %v8509_v14 }
 0x973   :  { %7741 = vmatpush1.bf16.msra.mxu0 %v7740_v28 }
 0x974   :  { %7743 = vmatprep.subr.bf16.mxu0 %v7742_v36 }
 0x975   :  { %7805 = vmatpush1.bf16.msra.mxu1 %v7804_v31 }
 0x976   :  { %7807 = vmatprep.subr.bf16.mxu1 %v7806_v42 }
 0x977   :  { %7745 = vmatpush1.bf16.msra.mxu0 %v7744_v43 }
 0x978   :  { %7747 = vmatprep.subr.bf16.mxu0 %v7746_v51 }
 0x979   :  { %7809 = vmatpush1.bf16.msra.mxu1 %v7808_v47 }
 0x97a   :  { %7811 = vmatprep.subr.bf16.mxu1 %v7810_v54 }
 0x97b   :  { %7749 = vmatpush1.bf16.msra.mxu0 %v7748_v55  ;;  %v4720_v55 = vld [vmem:[%s8950_s4] sm:$0xf] }
 0x97c   :  { %7751 = vmatprep.subr.bf16.mxu0 %v7750_v3  ;;  %v4729_v56 = vrot.slane %v4720_v55, %v8506_v13  ;;  %v4733_v57 = vrot.slane %v4720_v55, %v8509_v14 }
 0x97d   :  { %7813 = vmatpush1.bf16.msra.mxu1 %v7812_v60 }
 0x97e   :  { %7815 = vmatprep.subr.bf16.mxu1 %v7814_v5 }
 0x97f   :  { %7753 = vmatpush1.bf16.msra.mxu0 %v7752_v38  ;;  %v4737_v38 = vrot.slane %v4720_v55, %v8515_v21 }
 0x980   :  { %7819 = vmatprep.subr.bf16.mxu0 %v8676_v18 }
 0x981   :  { %7817 = vmatpush1.bf16.msra.mxu1 %v7816_v8 }
 0x982   :  { %7850 = vmatprep.subr.bf16.mxu1 %v8676_v18 }
 0x9d5   :  { %v4488_v44 = vpop.f32.mrb[26].mxu0  ;;  %v4559_v26 = vpop.f32.mrb[26].mxu1 }
 0x9d6   :  { %v4489_v1 = vadd.f32 %v4488_v44, %v4405_v22  ;;  %v4490_v28 = vpop.f32.mrb[27].mxu0  ;;  %v4561_v29 = vpop.f32.mrb[27].mxu1  ;;  %v4560_v34 = vadd.f32 %v4559_v26, %v4413_v27 }
 0x9d7   :  { %v4491_v30 = vadd.f32 %v4490_v28, %v4409_v24  ;;  %v4562_v36 = vadd.f32 %v4561_v29, %v4417_v35 }
 0x9d8   :  { %v4564_v31 = vmul.f32 0.5, %v4489_v1 }
 0x9d9   :  { %v4568_v33 = vmul.f32 0.5, %v4491_v30  ;;  %v4573_v37 = vmul.f32 0.5, %v4562_v36 }
 0x9da   :  { %8010 = vtanh.f32 %v4564_v31  ;;  %v5233_v31 = vld [vmem:[#allocation15 + $0x10] sm:$0xff] }
 0x9db   :  { %8012 = vtanh.f32 %v4568_v33  ;;  %v5234_v33 = vld [vmem:[#allocation15 + $0x18] sm:$0xff] }
 0x9dc   :  { %8014 = vtanh.f32 %v4560_v34  ;;  %v7822_v36 = vpack.c.bf16 %v5234_v33, %v5233_v31 }
 0x9dd   :  { %8016 = vtanh.f32 %v4573_v37  ;;  %v5235_v37 = vld [vmem:[#allocation15 + $0x20] sm:$0xff] }
 0x9e4   :  { %v8011_v39 = vpop.eup %8010 }
 0x9e5   :  { %v8013_v40 = vpop.eup %8012  ;;  %v4566_v42 = vadd.f32 1.0, %v8011_v39  ;;  %v5236_v39 = vld [vmem:[#allocation15 + $0x28] sm:$0xff] }
 0x9e6   :  { %v4570_v43 = vadd.f32 1.0, %v8013_v40  ;;  %v8015_v46 = vpop.eup %8014  ;;  %v5237_v40 = vld [vmem:[#allocation15 + $0x30] sm:$0xff] }
 0x9e7   :  { %v4567_v45 = vmul.f32 0.5, %v4566_v42  ;;  %v8017_v51 = vpop.eup %8016  ;;  %v5238_v42 = vld [vmem:[#allocation15 + $0x38] sm:$0xff] }
 0x9e8   :  { %v4571_v47 = vmul.f32 0.5, %v4570_v43  ;;  %v4575_v53 = vadd.f32 1.0, %v8017_v51  ;;  %v7830_v43 = vpack.c.bf16 %v5238_v42, %v5237_v40  ;;  %v8727_v40 = vand.u32 127, %v270_v9 }
 0x9e9   :  { %v4579_v48 = vmul.f32 %v8015_v46, %v4567_v45  ;;  %v5239_v45 = vld [vmem:[#allocation15 + $0x40] sm:$0xff]  ;;  %v5240_v46 = vld [vmem:[#allocation15 + $0x48] sm:$0xff] }
 0x9ea   :  { %v4578_v49 = vmul.f32 %v4571_v47, %v8658_v58  ;;  %v4576_v50 = vmul.f32 0.5, %v4575_v53  ;;  %v4725_v58 = vrot.slane %v4720_v55, %v8500_v11  ;;  %v5242_v47 = vld [vmem:[#allocation15 + $0x58] sm:$0xff]  ;;  %v5245_v53 = vld [vmem:[#allocation15 + $0x70] sm:$0xff]  ;;  %v5036_v55 = vld [vmem:[%s8952_s6] sm:$0xf] }
 0x9ec   :  { %v8688_v19 = vadd.f32 %v4579_v48, %v4578_v49  ;;  %v5243_v48 = vld [vmem:[#allocation15 + $0x60] sm:$0xff]  ;;  %v5244_v49 = vld [vmem:[#allocation15 + $0x68] sm:$0xff] }
 0x9ed   :  { %v7842_v51 = vpack.c.bf16 %v5244_v49, %v5243_v48 }
 0x9ee   :  { %8018 = vtanh.f32 %v8688_v19 }
 0x9f8   :  { %v8019_v32 = vpop.eup %8018 }
 0x9f9   :  { %v8691_v54 = vmul.f32 %v8019_v32, %v4576_v50  ;;  %v5246_v50 = vld [vmem:[#allocation15 + $0x78] sm:$0xff] }
 0x9fa   :  { %v7846_v32 = vpack.c.bf16 %v5246_v50, %v5245_v53 }
 0x9fb   :  { %5122 = vmatprep.mubr.f32.mxu0 %v8691_v54  ;;  %5193 = vmatprep.mubr.f32.mxu1 %v8691_v54 }
 0xa15   :  { %v4808_v60 = vpop.f32.mrb[28].mxu0 }
 0xa16   :  { %v4809_v61 = vadd.f32 %v4808_v60, %v4725_v58  ;;  %v4810_v62 = vpop.f32.mrb[29].mxu0  ;;  %v5041_v58 = vrot.slane %v5036_v55, %v8500_v11 }
 0xa17   :  { %v4811_v63 = vadd.f32 %v4810_v62, %v4729_v56  ;;  %v4879_v3 = vpop.f32.mrb[28].mxu1  ;;  %v5045_v56 = vrot.slane %v5036_v55, %v8506_v13 }
 0xa18   :  { %v4884_v15 = vmul.f32 0.5, %v4809_v61  ;;  %v4880_v4 = vadd.f32 %v4879_v3, %v4733_v57  ;;  %v4881_v16 = vpop.f32.mrb[29].mxu1  ;;  %v5053_v3 = vrot.slane %v5036_v55, %v8515_v21 }
 0xa19   :  { %v4888_v5 = vmul.f32 0.5, %v4811_v63  ;;  %v4882_v7 = vadd.f32 %v4881_v16, %v4737_v38 }
 0xa1a   :  { %8020 = vtanh.f32 %v4884_v15 }
 0xa1b   :  { %8022 = vtanh.f32 %v4888_v5  ;;  %v4893_v59 = vmul.f32 0.5, %v4882_v7 }
 0xa1c   :  { %8024 = vtanh.f32 %v4880_v4 }
 0xa1d   :  { %8026 = vtanh.f32 %v4893_v59 }
 0xa24   :  { %v8021_v8 = vpop.eup %8020 }
 0xa25   :  { %v8023_v12 = vpop.eup %8022  ;;  %v4886_v17 = vadd.f32 1.0, %v8021_v8 }
 0xa26   :  { %v8025_v20 = vpop.eup %8024  ;;  %v4890_v22 = vadd.f32 1.0, %v8023_v12 }
 0xa27   :  { %v4887_v24 = vmul.f32 0.5, %v4886_v17  ;;  %v8027_v28 = vpop.eup %8026 }
 0xa28   :  { %v4891_v44 = vmul.f32 0.5, %v4890_v22  ;;  %v4895_v29 = vadd.f32 1.0, %v8027_v28 }
 0xa29   :  { %v4899_v26 = vmul.f32 %v8025_v20, %v4887_v24  ;;  %v5701_v20 = vld [vmem:[%s8954_s8] ss:$0 sm:$0xff]  ;;  %s8316_s8 = smov [#allocation21]  }
 0xa2a   :  { %v4898_v1 = vmul.f32 %v4891_v44, %v8673_v52  ;;  %v4896_v30 = vmul.f32 0.5, %v4895_v29  ;;  %v7826_v52 = vpack.c.bf16 %v5236_v39, %v5235_v37  ;;  %s5675_s18 = sshll.u32 %s8316_s8, 4  ;;  %s5676_s18 = int_to_ptr.vmem [resolvable:$true] %s5675_s18 }
 0xa2b   :  { %s8204_s20 = scalar_lea.vmem %s5676_s18, 256  ;;  %p8209_p7 = scmp.lt.s32.totalorder %s5676_s18, %s5676_s18 }
 0xa2c   :  { %v4900_v27 = vadd.f32 %v4899_v26, %v4898_v1  ;;  %p8205_p6 = scmp.ne.s32.totalorder %s5676_s18, %s8204_s20  ;;  %p8210_p8 = scmp.lt.s32.totalorder %s8204_s20, %s8204_s20 }
 0xa2e   :  { %8028 = vtanh.f32 %v4900_v27  ;;  %5634 = vst [vmem:[#allocation21] sm:$0xff] %v4900_v27  ;;  %p8211_p9 = por %p8210_p8, %p8209_p7 }
 0xa30   :  { %p8212_p10 = pnand %p8211_p9, %p8205_p6 }
 0xa38   :  { %v8029_v34 = vpop.eup %8028 }
 0xa39   :  { %v4902_v35 = vmul.f32 %v8029_v34, %v4896_v30 }
 0xa3b   :  { %5628 = vst [vmem:[#allocation20] sm:$0xff] %v4902_v35  ;;  %5123 = vmatmul.mubr.f32.vlgmr.msra.gmra.mrb[30].mxu0 %v4902_v35  ;;  %5194 = vmatmul.mubr.f32.vlgmr.msra.gmra.mrb[30].mxu1 %v4902_v35 }
 0xa3c   :  { %7821 = vmatpush3.bf16.msra.mxu0 %v8676_v18  ;;  %7858 = vmatpush3.bf16.msra.mxu1 %v8676_v18  ;;  %v7834_v18 = vpack.c.bf16 %v5240_v46, %v5239_v45 }
 0xa3d   :  { %5758 = vmatprep.mubr.f32.mxu0 %v8531_v0  ;;  %5764 = vmatprep.mubr.f32.mxu1 %v8635_v23  ;;  %v5241_v0 = vld [vmem:[#allocation15 + $0x50] sm:$0xff] }
 0xa3e   :  { %7823 = vmatprep.subr.bf16.mxu0 %v7822_v36  ;;  %7851 = vmatprep.subr.bf16.mxu1 %v7822_v36  ;;  %v7838_v23 = vpack.c.bf16 %v5242_v47, %v5241_v0 }
 0xa40   :  { %7825 = vmatpush3.bf16.msra.mxu0 %v7822_v36  ;;  %7859 = vmatpush3.bf16.msra.mxu1 %v7822_v36 }
 0xa41   :  { %7827 = vmatprep.subr.bf16.mxu0 %v7826_v52  ;;  %7852 = vmatprep.subr.bf16.mxu1 %v7826_v52 }
 0xa44   :  { %7829 = vmatpush3.bf16.msra.mxu0 %v7826_v52  ;;  %7860 = vmatpush3.bf16.msra.mxu1 %v7826_v52 }
 0xa45   :  { %7831 = vmatprep.subr.bf16.mxu0 %v7830_v43  ;;  %7853 = vmatprep.subr.bf16.mxu1 %v7830_v43 }
 0xa48   :  { %7833 = vmatpush3.bf16.msra.mxu0 %v7830_v43  ;;  %7861 = vmatpush3.bf16.msra.mxu1 %v7830_v43 }
 0xa49   :  { %7835 = vmatprep.subr.bf16.mxu0 %v7834_v18  ;;  %7854 = vmatprep.subr.bf16.mxu1 %v7834_v18 }
 0xa4c   :  { %7837 = vmatpush3.bf16.msra.mxu0 %v7834_v18  ;;  %7862 = vmatpush3.bf16.msra.mxu1 %v7834_v18 }
 0xa4d   :  { %7839 = vmatprep.subr.bf16.mxu0 %v7838_v23  ;;  %7855 = vmatprep.subr.bf16.mxu1 %v7838_v23 }
 0xa50   :  { %7841 = vmatpush3.bf16.msra.mxu0 %v7838_v23  ;;  %7863 = vmatpush3.bf16.msra.mxu1 %v7838_v23 }
 0xa51   :  { %7843 = vmatprep.subr.bf16.mxu0 %v7842_v51  ;;  %7856 = vmatprep.subr.bf16.mxu1 %v7842_v51 }
 0xa54   :  { %7845 = vmatpush3.bf16.msra.mxu0 %v7842_v51  ;;  %7864 = vmatpush3.bf16.msra.mxu1 %v7842_v51 }
 0xa55   :  { %7847 = vmatprep.subr.bf16.mxu0 %v7846_v32  ;;  %7857 = vmatprep.subr.bf16.mxu1 %v7846_v32 }
 0xa58   :  { %7849 = vmatpush3.bf16.msra.mxu0 %v7846_v32  ;;  %7865 = vmatpush3.bf16.msra.mxu1 %v7846_v32 }
 0xa5b   :  { %5759 = vmatmul.mubr.f32.vlgmr.msra.gmra.mrb[32].mxu0 %v8557_v6  ;;  %5765 = vmatmul.mubr.f32.vlgmr.msra.gmra.mrb[32].mxu1 %v8661_v2  ;;  %v5049_v6 = vrot.slane %v5036_v55, %v8509_v14 }
 0xa5c   :  { %5761 = vmatprep.mubr.f32.mxu0 %v8583_v25  ;;  %5767 = vmatprep.mubr.f32.mxu1 %v8691_v54 }
 0xa5f   :  { %5762 = vmatmul.mubr.f32.gmra.mrb[34].mxu0 %v8609_v41 }
 0xb0e   :  { %v5124_v57 = vpop.f32.mrb[30].mxu0  ;;  %v5195_v60 = vpop.f32.mrb[30].mxu1 }
 0xb0f   :  { %v5125_v61 = vadd.f32 %v5124_v57, %v5041_v58  ;;  %v5126_v2 = vpop.f32.mrb[31].mxu0  ;;  %v5197_v62 = vpop.f32.mrb[31].mxu1  ;;  %v5196_v41 = vadd.f32 %v5195_v60, %v5049_v6 }
 0xb10   :  { %v5127_v25 = vadd.f32 %v5126_v2, %v5045_v56  ;;  %v5198_v15 = vadd.f32 %v5197_v62, %v5053_v3 }
 0xb11   :  { %v5200_v63 = vmul.f32 0.5, %v5125_v61 }
 0xb12   :  { %v5204_v54 = vmul.f32 0.5, %v5127_v25  ;;  %v5209_v11 = vmul.f32 0.5, %v5198_v15 }
 0xb13   :  { %8030 = vtanh.f32 %v5200_v63 }
 0xb14   :  { %8032 = vtanh.f32 %v5204_v54 }
 0xb15   :  { %8034 = vtanh.f32 %v5196_v41 }
 0xb16   :  { %8036 = vtanh.f32 %v5209_v11 }
 0xb1d   :  { %v8031_v4 = vpop.eup %8030 }
 0xb1e   :  { %v8033_v13 = vpop.eup %8032  ;;  %v5202_v16 = vadd.f32 1.0, %v8031_v4 }
 0xb1f   :  { %v5206_v5 = vadd.f32 1.0, %v8033_v13  ;;  %v8035_v14 = vpop.eup %8034 }
 0xb20   :  { %v5203_v38 = vmul.f32 0.5, %v5202_v16  ;;  %v8037_v17 = vpop.eup %8036 }
 0xb21   :  { %v5207_v7 = vmul.f32 0.5, %v5206_v5  ;;  %v5211_v21 = vadd.f32 1.0, %v8037_v17 }
 0xb22   :  { %v5215_v59 = vmul.f32 %v8035_v14, %v5203_v38 }
 0xb23   :  { %v5214_v8 = vmul.f32 %v5207_v7, %v8688_v19  ;;  %v5212_v27 = vmul.f32 0.5, %v5211_v21 }
 0xb25   :  { %v5216_v12 = vadd.f32 %v5215_v59, %v5214_v8 }
 0xb27   :  { %8038 = vtanh.f32 %v5216_v12  ;;  %5635 = vst [vmem:[#allocation21 + $0x8] sm:$0xff] %v5216_v12 }
 0xb2e   :  { %v5760_v22 = vpop.f32.mrb[32].mxu0  ;;  %v5766_v24 = vpop.f32.mrb[32].mxu1 }
 0xb2f   :  { %v8723_v44 = vadd.f32 %v5760_v22, %v5701_v20  ;;  %v5320_v26 = vpop.f32.mrb[33].mxu0  ;;  %v5340_v1 = vpop.f32.mrb[33].mxu1  ;;  %v5346_v36 = vadd.f32 %v5766_v24, %v5701_v20 }
 0xb30   :  { %v5321_v30 = vadd.f32 %v5701_v20, %v5320_v26  ;;  %v5341_v34 = vadd.f32 %v5701_v20, %v5340_v1 }
 0xb31   :  { %v8039_v28 = vpop.eup %8038  ;;  %5361 = vmax.xlane.f32.xlu0 %v8723_v44 }
 0xb32   :  { %v5763_v19 = vpop.f32.mrb[34].mxu0  ;;  %v5218_v29 = vmul.f32 %v8039_v28, %v5212_v27 }
 0xb33   :  { %v5336_v31 = vadd.f32 %v5763_v19, %v5701_v20  ;;  %v5330_v33 = vpop.f32.mrb[35].mxu0 }
 0xb34   :  { %5768 = vmatmul.mubr.f32.gmra.mrb[34].mxu1 %v5218_v29  ;;  %5631 = vst [vmem:[#allocation20 + $0x8] sm:$0xff] %v5218_v29  ;;  %v5331_v35 = vadd.f32 %v5701_v20, %v5330_v33 }
 0xb35   :  { %5365 = vmax.xlane.f32.xlu1 %v5336_v31  ;;  %5359 = vmax.xlane.f32.xlu0 %v5321_v30 }
 0xb39   :  { %5363 = vmax.xlane.f32.xlu1 %v5331_v35  ;;  %5367 = vmax.xlane.f32.xlu0 %v5341_v34 }
 0xb3d   :  { %5369 = vmax.xlane.f32.xlu1 %v5346_v36 }
 0xbbe   :  { %v5362_v37 = vpop.xlane.xlu0 %5361 }
 0xbbf   :  { %vm5450_vm0 = vcmp.eq.f32.partialorder %v8723_v44, %v5362_v37  ;;  %v8773_v63 = vsub.f32 %v8723_v44, %v5362_v37 }
 0xbc0   :  { %v8731_v43 = vsel %vm5450_vm0, %v8727_v40, 128  ;;  %vm5610_vm0 = vcmask 1041409  }
 0xbc1   :  { %v5480_v9 = vshra.s32 %v8731_v43, 16  ;;  %v5385_v41 = vmul.f32 1.442695, %v8773_v63 }
 0xbc2   :  { %v5366_v39 = vpop.xlane.xlu1 %5365  ;;  %v5360_v52 = vpop.xlane.xlu0 %5359 }
 0xbc3   :  { %vm5449_vm1 = vcmp.eq.f32.partialorder %v5321_v30, %v5360_v52  ;;  %vm5452_vm2 = vcmp.eq.f32.partialorder %v5336_v31, %v5366_v39  ;;  %v8744_v50 = vcvt.s32.f32 %v5480_v9  ;;  %v8775_v54 = vsub.f32 %v5321_v30, %v5360_v52 }
 0xbc4   :  { %v8734_v45 = vsel %vm5449_vm1, %v8727_v40, 128  ;;  %v8738_v48 = vsel %vm5452_vm2, %v8727_v40, 128  ;;  %v8778_v3 = vsub.f32 %v5336_v31, %v5366_v39  ;;  %8040 = vpow2.f32 %v5385_v41 }
 0xbc5   :  { %v5466_v51 = vshra.s32 %v8734_v45, 16  ;;  %v5508_v32 = vshra.s32 %v8738_v48, 16  ;;  %v5383_v15 = vmul.f32 1.442695, %v8775_v54  ;;  %v5479_v31 = vand.u32 65535, %v8731_v43 }
 0xbc6   :  { %v5364_v42 = vpop.xlane.xlu1 %5363  ;;  %v5368_v0 = vpop.xlane.xlu0 %5367  ;;  %v5389_v4 = vmul.f32 1.442695, %v8778_v3  ;;  %v5507_v52 = vand.u32 65535, %v8738_v48  ;;  %vm5612_vm1 = vcmask 1042434   ;;  %vm5614_vm2 = vcmask 1043459  }
 0xbc7   :  { %vm5451_vm3 = vcmp.eq.f32.partialorder %v5331_v35, %v5364_v42  ;;  %vm5453_vm5 = vcmp.eq.f32.partialorder %v5341_v34, %v5368_v0  ;;  %v8750_v58 = vcvt.s32.f32 %v5466_v51  ;;  %v8758_v60 = vcvt.s32.f32 %v5508_v32 }
 0xbc8   :  { %v8742_v53 = vsel %vm5451_vm3, %v8727_v40, 128  ;;  %v8754_v57 = vsel %vm5453_vm5, %v8727_v40, 128  ;;  %v8781_v11 = vsub.f32 %v5331_v35, %v5364_v42  ;;  %8042 = vpow2.f32 %v5383_v15 }
 0xbc9   :  { %v5494_v56 = vshra.s32 %v8742_v53, 16  ;;  %v5522_v2 = vshra.s32 %v8754_v57, 16  ;;  %v8787_v38 = vsub.f32 %v5341_v34, %v5368_v0  ;;  %8044 = vpow2.f32 %v5389_v4 }
 0xbca   :  { %v5370_v46 = vpop.xlane.xlu1 %5369  ;;  %v5387_v5 = vmul.f32 1.442695, %v8781_v11  ;;  %v5465_v34 = vand.u32 65535, %v8734_v45  ;;  %v5481_v39 = vcvt.s32.f32 %v5479_v31  ;;  %v5493_v45 = vand.u32 65535, %v8742_v53 }
 0xbcb   :  { %vm5454_vm4 = vcmp.eq.f32.partialorder %v5346_v36, %v5370_v46  ;;  %v8761_v6 = vcvt.s32.f32 %v5494_v56  ;;  %v8768_v25 = vcvt.s32.f32 %v5522_v2  ;;  %v8784_v13 = vsub.f32 %v5346_v36, %v5370_v46 }
 0xbcc   :  { %v8748_v55 = vsel %vm5454_vm4, %v8727_v40, 128  ;;  %8046 = vpow2.f32 %v5387_v5  ;;  %v5391_v21 = vmul.f32 1.442695, %v8787_v38  ;;  %v5467_v43 = vcvt.s32.f32 %v5465_v34 }
 0xbcd   :  { %v5536_v61 = vshra.s32 %v8748_v55, 16  ;;  %v5393_v12 = vmul.f32 1.442695, %v8784_v13  ;;  %v5509_v0 = vcvt.s32.f32 %v5507_v52  ;;  %v5521_v53 = vand.u32 65535, %v8754_v57 }
 0xbce   :  { %v8041_v24 = vpop.eup %8040 }
 0xbcf   :  { %v8766_v62 = vcvt.s32.f32 %v5536_v61  ;;  %8048 = vpow2.f32 %v5393_v12  ;;  %v5523_v56 = vcvt.s32.f32 %v5521_v53 }
 0xbd0   :  { %8050 = vpow2.f32 %v5391_v21 }
 0xbd2   :  { %v8043_v44 = vpop.eup %8042 }
 0xbd3   :  { %v8045_v27 = vpop.eup %8044 }
 0xbd6   :  { %v8047_v19 = vpop.eup %8046 }
 0xbd9   :  { %v8049_v35 = vpop.eup %8048 }
 0xbda   :  { %v8051_v36 = vpop.eup %8050 }
 0xc07   :  { %v5769_v18 = vpop.f32.mrb[34].mxu1 }
 0xc08   :  { %v5356_v47 = vadd.f32 %v5769_v18, %v5701_v20  ;;  %v5350_v23 = vpop.f32.mrb[35].mxu1 }
 0xc09   :  { %v5351_v49 = vadd.f32 %v5701_v20, %v5350_v23 }
 0xc0a   :  { %5373 = vmax.xlane.f32.xlu1 %v5356_v47 }
 0xc0b   :  { %5371 = vmax.xlane.f32.xlu0 %v5351_v49 }
 0xc0e   :  { %5483 = vmin.xlane.f32.xlu1 %v8744_v50 }
 0xc0f   :  { %5469 = vmin.xlane.f32.xlu0 %v8750_v58 }
 0xc12   :  { %5511 = vmin.xlane.f32.xlu1 %v8758_v60 }
 0xc13   :  { %5497 = vmin.xlane.f32.xlu0 %v8761_v6 }
 0xc16   :  { %5539 = vmin.xlane.f32.xlu1 %v8766_v62 }
 0xc17   :  { %5525 = vmin.xlane.f32.xlu0 %v8768_v25 }
 0xc97   :  { %v5374_v16 = vpop.xlane.xlu1 %5373 }
 0xc98   :  { %vm5456_vm6 = vcmp.eq.f32.partialorder %v5356_v47, %v5374_v16  ;;  %v5372_v14 = vpop.xlane.xlu0 %5371  ;;  %v8805_v26 = vsub.f32 %v5356_v47, %v5374_v16  ;;  %v5495_v47 = vcvt.s32.f32 %v5493_v45 }
 0xc99   :  { %v8790_v7 = vsel %vm5456_vm6, %v8727_v40, 128  ;;  %vm5455_vm7 = vcmp.eq.f32.partialorder %v5351_v49, %v5372_v14  ;;  %v8807_v1 = vsub.f32 %v5351_v49, %v5372_v14  ;;  %v5535_v49 = vand.u32 65535, %v8748_v55 }
 0xc9a   :  { %v8793_v59 = vsel %vm5455_vm7, %v8727_v40, 128  ;;  %v5564_v8 = vshra.s32 %v8790_v7, 16  ;;  %v5397_v30 = vmul.f32 1.442695, %v8805_v26  ;;  %v5563_v55 = vand.u32 65535, %v8790_v7 }
 0xc9b   :  { %v5550_v17 = vshra.s32 %v8793_v59, 16  ;;  %v8809_v28 = vpop.xlane.xlu1 %5483  ;;  %v5395_v33 = vmul.f32 1.442695, %v8807_v1  ;;  %v5549_v57 = vand.u32 65535, %v8793_v59 }
 0xc9c   :  { %v8799_v20 = vcvt.s32.f32 %v5564_v8  ;;  %v8811_v29 = vpop.xlane.xlu0 %5469  ;;  %vm5485_vm8 = vcmp.eq.f32.partialorder %v8744_v50, %v8809_v28  ;;  %8052 = vpow2.f32 %v5397_v30  ;;  %v5565_v2 = vcvt.s32.f32 %v5563_v55 }
 0xc9d   :  { %v8801_v22 = vcvt.s32.f32 %v5550_v17  ;;  %vm5471_vm9 = vcmp.eq.f32.partialorder %v8750_v58, %v8811_v29  ;;  %8054 = vpow2.f32 %v5395_v33  ;;  %v5486_v46 = vsel %vm5485_vm8, %v5481_v39, inf }
 0xc9e   :  { %5567 = vmin.xlane.f32.xlu1 %v8799_v20  ;;  %v5472_v18 = vsel %vm5471_vm9, %v5467_v43, inf  ;;  %v5537_v58 = vcvt.s32.f32 %v5535_v49  ;;  %v5490_v59 = vcvt.f32.s32 %v8809_v28  ;;  %v5476_v12 = vcvt.f32.s32 %v8811_v29 }
 0xc9f   :  { %5553 = vmin.xlane.f32.xlu0 %v8801_v22  ;;  %v8819_v37 = vpop.xlane.xlu1 %5511 }
 0xca0   :  { %v8824_v42 = vpop.xlane.xlu0 %5497  ;;  %vm5513_vm10 = vcmp.eq.f32.partialorder %v8758_v60, %v8819_v37  ;;  %v5477_v28 = vshll.u32 %v5476_v12, 16 }
 0xca1   :  { %vm5499_vm11 = vcmp.eq.f32.partialorder %v8761_v6, %v8824_v42  ;;  %v5514_v23 = vsel %vm5513_vm10, %v5509_v0, inf  ;;  %v5504_v33 = vcvt.f32.s32 %v8824_v42 }
 0xca2   :  { %5401 = vadd.xlane.f32.xlu1 %v8041_v24  ;;  %v5500_v9 = vsel %vm5499_vm11, %v5495_v47, inf }
 0xca3   :  { %5399 = vadd.xlane.f32.xlu0 %v8043_v44  ;;  %v8831_v48 = vpop.xlane.xlu1 %5539  ;;  %v5491_v44 = vshll.u32 %v5490_v59, 16  ;;  %v5505_v0 = vshll.u32 %v5504_v33, 16 }
 0xca4   :  { %v8834_v51 = vpop.xlane.xlu0 %5525  ;;  %vm5541_vm12 = vcmp.eq.f32.partialorder %v8766_v62, %v8831_v48  ;;  %v5551_v62 = vcvt.s32.f32 %v5549_v57 }
 0xca5   :  { %vm5527_vm13 = vcmp.eq.f32.partialorder %v8768_v25, %v8834_v51  ;;  %v5542_v60 = vsel %vm5541_vm12, %v5537_v58, inf }
 0xca6   :  { %5405 = vadd.xlane.f32.xlu1 %v8045_v27  ;;  %v8053_v50 = vpop.eup %8052  ;;  %v5528_v61 = vsel %vm5527_vm13, %v5523_v56, inf }
 0xca7   :  { %5403 = vadd.xlane.f32.xlu0 %v8047_v19  ;;  %v8055_v32 = vpop.eup %8054  ;;  %v8856_v19 = vsub.s32 %v8727_v40, %v8497_v10 }
 0xcaa   :  { %5409 = vadd.xlane.f32.xlu1 %v8049_v35 }
 0xcab   :  { %5407 = vadd.xlane.f32.xlu0 %v8051_v36 }
 0xcae   :  { %5487 = vmin.xlane.f32.xlu1 %v5486_v46 }
 0xcaf   :  { %5473 = vmin.xlane.f32.xlu0 %v5472_v18 }
 0xcb2   :  { %5515 = vmin.xlane.f32.xlu1 %v5514_v23 }
 0xcb3   :  { %5501 = vmin.xlane.f32.xlu0 %v5500_v9 }
 0xcb6   :  { %5413 = vadd.xlane.f32.xlu1 %v8053_v50 }
 0xcb7   :  { %5411 = vadd.xlane.f32.xlu0 %v8055_v32 }
 0xcba   :  { %5543 = vmin.xlane.f32.xlu1 %v5542_v60 }
 0xcbb   :  { %5529 = vmin.xlane.f32.xlu0 %v5528_v61 }
 0xd2b   :  { %v8843_v6 = vpop.xlane.xlu1 %5567 }
 0xd2c   :  { %v8845_v41 = vpop.xlane.xlu0 %5553  ;;  %vm5569_vm14 = vcmp.eq.f32.partialorder %v8799_v20, %v8843_v6  ;;  %v5518_v20 = vcvt.f32.s32 %v8819_v37 }
 0xd2d   :  { %v5570_v15 = vsel %vm5569_vm14, %v5565_v2, inf  ;;  %vm5555_vm15 = vcmp.eq.f32.partialorder %v8801_v22, %v8845_v41 }
 0xd2e   :  { %5571 = vmin.xlane.f32.xlu1 %v5570_v15  ;;  %v5556_v25 = vsel %vm5555_vm15, %v5551_v62, inf  ;;  %v5519_v52 = vshll.u32 %v5518_v20, 16 }
 0xd2f   :  { %v5402_v4 = vpop.xlane.xlu1 %5401  ;;  %5557 = vmin.xlane.f32.xlu0 %v5556_v25 }
 0xd30   :  { %8056 = vlog2.f32 %v5402_v4  ;;  %v5400_v16 = vpop.xlane.xlu0 %5399 }
 0xd31   :  { %8058 = vlog2.f32 %v5400_v16 }
 0xd33   :  { %v5406_v5 = vpop.xlane.xlu1 %5405 }
 0xd34   :  { %8060 = vlog2.f32 %v5406_v5  ;;  %v5404_v14 = vpop.xlane.xlu0 %5403 }
 0xd35   :  { %8062 = vlog2.f32 %v5404_v14 }
 0xd37   :  { %v5410_v7 = vpop.xlane.xlu1 %5409 }
 0xd38   :  { %8064 = vlog2.f32 %v5410_v7  ;;  %v5408_v8 = vpop.xlane.xlu0 %5407 }
 0xd39   :  { %8066 = vlog2.f32 %v5408_v8 }
 0xd3a   :  { %v8057_v17 = vpop.eup %8056 }
 0xd3b   :  { %v8059_v21 = vpop.eup %8058  ;;  %v5418_v22 = vmul.f32 0.6931472, %v8057_v17  ;;  %v5488_v24 = vpop.xlane.xlu1 %5487 }
 0xd3c   :  { %v5416_v27 = vmul.f32 0.6931472, %v8059_v21  ;;  %v5489_v30 = vcvt.f32.s32 %v5488_v24  ;;  %v5474_v31 = vpop.xlane.xlu0 %5473 }
 0xd3d   :  { %v5432_v29 = vsub.f32 %v8773_v63, %v5418_v22  ;;  %v5475_v34 = vcvt.f32.s32 %v5474_v31 }
 0xd3e   :  { %v8061_v35 = vpop.eup %8060  ;;  %v5431_v36 = vsub.f32 %v8775_v54, %v5416_v27  ;;  %v5492_v37 = vadd.s32 %v5491_v44, %v5489_v30 }
 0xd3f   :  { %v8063_v39 = vpop.eup %8062  ;;  %5440 = vst [vmem:[#allocation17 + $0x8] sm:$0xff] %v5432_v29  ;;  %v5422_v43 = vmul.f32 0.6931472, %v8061_v35  ;;  %v5478_v45 = vadd.s32 %v5477_v28, %v5475_v34  ;;  %v5516_v46 = vpop.xlane.xlu1 %5515 }
 0xd40   :  { %5439 = vst [vmem:[#allocation17] sm:$0xff] %v5431_v36  ;;  %v5420_v10 = vmul.f32 0.6931472, %v8063_v39  ;;  %v5585_v40 = vrot.slane %v5492_v37, %v8856_v19  ;;  %v5517_v18 = vcvt.f32.s32 %v5516_v46  ;;  %v5502_v42 = vpop.xlane.xlu0 %5501 }
 0xd41   :  { %v5434_v63 = vsub.f32 %v8778_v3, %v5422_v43  ;;  %v5581_v47 = vrot.slane %v5478_v45, %v8856_v19  ;;  %v5503_v54 = vcvt.f32.s32 %v5502_v42 }
 0xd42   :  { %v8065_v23 = vpop.eup %8064  ;;  %v5433_v9 = vsub.f32 %v8781_v11, %v5420_v10  ;;  %v5520_v49 = vadd.s32 %v5519_v52, %v5517_v18 }
 0xd43   :  { %v8067_v53 = vpop.eup %8066  ;;  %5442 = vst [vmem:[#allocation17 + $0x18] sm:$0xff] %v5434_v63  ;;  %v5426_v50 = vmul.f32 0.6931472, %v8065_v23  ;;  %v5611_v32 = vsel %vm5610_vm0, %v5585_v40, %v5581_v47  ;;  %v5506_v58 = vadd.s32 %v5505_v0, %v5503_v54  ;;  %v5414_v56 = vpop.xlane.xlu1 %5413 }
 0xd44   :  { %5441 = vst [vmem:[#allocation17 + $0x10] sm:$0xff] %v5433_v9  ;;  %v5424_v60 = vmul.f32 0.6931472, %v8067_v53  ;;  %8068 = vlog2.f32 %v5414_v56  ;;  %v5412_v61 = vpop.xlane.xlu0 %5411  ;;  %v5593_v57 = vrot.slane %v5520_v49, %v8856_v19 }
 0xd45   :  { %v5436_v3 = vsub.f32 %v8784_v13, %v5426_v50  ;;  %v5589_v55 = vrot.slane %v5506_v58, %v8856_v19  ;;  %8070 = vlog2.f32 %v5412_v61 }
 0xd46   :  { %v5435_v11 = vsub.f32 %v8787_v38, %v5424_v60 }
 0xd47   :  { %5444 = vst [vmem:[#allocation17 + $0x28] sm:$0xff] %v5436_v3  ;;  %v5613_v2 = vsel %vm5612_vm1, %v5589_v55, %v5611_v32 }
 0xd48   :  { %5443 = vst [vmem:[#allocation17 + $0x20] sm:$0xff] %v5435_v11  ;;  %v8869_v62 = vsel %vm5614_vm2, %v5593_v57, %v5613_v2 }
 0xd49   :  { %8215 = shalt.err (!%p8212_p10)
}
 0xd4a   :  { %s8216_s0 = scalar_lea.hbm %s8958_s12, 256 }
 0xd4b   :  { %p8217_p11 = scmp.ne.s32.totalorder %s8958_s12, %s8216_s0  ;;  %p8220_p12 = scmp.lt.u32.totalorder %s8216_s0, %s8958_s12 }
 0xd4d   :  { %p8222_p13 = pnand %p8220_p12, %p8217_p11 }
 0xd4f   :  { %8225 = shalt.err (!%p8222_p13)
}
 0xd50   :  { %5681 = dma.vmem_to_hbm [thread:$0]  %s5676_s18, 256, %s8958_s12, [#allocation22], %s8308_s15, %s8308_s15, %s8309_s16   ;;  %v8069_v13 = vpop.eup %8068 }
 0xd51   :  { %v8071_v38 = vpop.eup %8070  ;;  %v5430_v15 = vmul.f32 0.6931472, %v8069_v13  ;;  %s8317_s1 = smov [#allocation17]  }
 0xd52   :  { %s5641_s7 = sshll.u32 %s8317_s1, 4  ;;  %v5428_v25 = vmul.f32 0.6931472, %v8071_v38  ;;  %s5642_s7 = int_to_ptr.vmem [resolvable:$true] %s5641_s7 }
 0xd53   :  { %v5438_v4 = vsub.f32 %v8805_v26, %v5430_v15  ;;  %s8226_s22 = scalar_lea.vmem %s5642_s7, 1024  ;;  %p8231_p1 = scmp.lt.s32.totalorder %s5642_s7, %s5642_s7 }
 0xd54   :  { %v5437_v16 = vsub.f32 %v8807_v1, %v5428_v25  ;;  %p8227_p0 = scmp.ne.s32.totalorder %s5642_s7, %s8226_s22  ;;  %p8232_p2 = scmp.lt.s32.totalorder %s8226_s22, %s8226_s22 }
 0xd55   :  { %5446 = vst [vmem:[#allocation17 + $0x38] sm:$0xff] %v5438_v4 }
 0xd56   :  { %5445 = vst [vmem:[#allocation17 + $0x30] sm:$0xff] %v5437_v16  ;;  %p8233_p3 = por %p8232_p2, %p8231_p1 }
 0xd58   :  { %p8234_p4 = pnand %p8233_p3, %p8227_p0 }
 0xd5a   :  { %8237 = shalt.err (!%p8234_p4)
}
 0xd5b   :  { %s8238_s3 = scalar_lea.hbm %s8955_s9, 1024 }
 0xd5c   :  { %p8239_p5 = scmp.ne.s32.totalorder %s8955_s9, %s8238_s3  ;;  %p8242_p6 = scmp.lt.u32.totalorder %s8238_s3, %s8955_s9 }
 0xd5e   :  { %p8244_p7 = pnand %p8242_p6, %p8239_p5 }
 0xd60   :  { %8247 = shalt.err (!%p8244_p7)
}
 0xd61   :  { %5647 = dma.vmem_to_hbm [thread:$0]  %s5642_s7, 1024, %s8955_s9, [#allocation8], %s8308_s15, %s8308_s15, %s8309_s16   ;;  %v5530_v26 = vpop.xlane.xlu0 %5529  ;;  %v5532_v1 = vcvt.f32.s32 %v8834_v51  ;;  %v5544_v7 = vpop.xlane.xlu1 %5543  ;;  %v5546_v59 = vcvt.f32.s32 %v8831_v48  ;;  %v5574_v12 = vcvt.f32.s32 %v8843_v6  ;;  %v5560_v21 = vcvt.f32.s32 %v8845_v41 }
 0xd62   :  { %v5531_v5 = vcvt.f32.s32 %v5530_v26  ;;  %v5545_v17 = vcvt.f32.s32 %v5544_v7  ;;  %vm5616_vm3 = vcmask 1044484   ;;  %vm5618_vm4 = vcmask 1045509   ;;  %s8318_s9 = smov [#allocation18]   ;;  %s8319_s2 = smov [#allocation20]  }
 0xd63   :  { %v5533_v14 = vshll.u32 %v5532_v1, 16  ;;  %v5547_v20 = vshll.u32 %v5546_v59, 16  ;;  %v5575_v44 = vshll.u32 %v5574_v12, 16  ;;  %v5561_v31 = vshll.u32 %v5560_v21, 16  ;;  %s5654_s6 = sshll.u32 %s8318_s9, 4  ;;  %s5663_s8 = sshll.u32 %s8319_s2, 4  ;;  %s5655_s6 = int_to_ptr.vmem [resolvable:$true] %s5654_s6  ;;  %s8912_s8 = int_to_ptr.vmem [resolvable:$true] %s5663_s8 }
 0xd64   :  { %vm5620_vm5 = vcmask 1046534   ;;  %vm5622_vm6 = vcmask 1047559   ;;  %vm5625_vm7 = vcmask 64512   ;;  %s8248_s18 = scalar_lea.vmem %s5655_s6, 128  ;;  %p8253_p9 = scmp.lt.s32.totalorder %s5655_s6, %s5655_s6 }
 0xd65   :  { %v5534_v8 = vadd.s32 %v5533_v14, %v5531_v5  ;;  %v5548_v27 = vadd.s32 %v5547_v20, %v5545_v17  ;;  %p8249_p8 = scmp.ne.s32.totalorder %s5655_s6, %s8248_s18  ;;  %p8254_p10 = scmp.lt.s32.totalorder %s8248_s18, %s8248_s18 }
 0xd67   :  { %v5597_v22 = vrot.slane %v5534_v8, %v8856_v19  ;;  %v5601_v6 = vrot.slane %v5548_v27, %v8856_v19  ;;  %p8255_p11 = por %p8254_p10, %p8253_p9 }
 0xd69   :  { %v5617_v48 = vsel %vm5616_vm3, %v5597_v22, %v8869_v62  ;;  %p8256_p12 = pnand %p8255_p11, %p8249_p8 }
 0xd6a   :  { %v5619_v35 = vsel %vm5618_vm4, %v5601_v6, %v5617_v48 }
 0xdbb   :  { %v5572_v24 = vpop.xlane.xlu1 %5571 }
 0xdbc   :  { %v5573_v30 = vcvt.f32.s32 %v5572_v24  ;;  %v5558_v51 = vpop.xlane.xlu0 %5557 }
 0xdbd   :  { %v5559_v28 = vcvt.f32.s32 %v5558_v51 }
 0xdbe   :  { %v5576_v33 = vadd.s32 %v5575_v44, %v5573_v30 }
 0xdbf   :  { %v5562_v29 = vadd.s32 %v5561_v31, %v5559_v28 }
 0xdc0   :  { %v5609_v34 = vrot.slane %v5576_v33, %v8856_v19 }
 0xdc1   :  { %v5605_v41 = vrot.slane %v5562_v29, %v8856_v19 }
 0xdc3   :  { %v5621_v36 = vsel %vm5620_vm5, %v5605_v41, %v5619_v35 }
 0xdc4   :  { %v5623_v37 = vsel %vm5622_vm6, %v5609_v34, %v5621_v36 }
 0xdc5   :  { %5626 = vst.msk [vmem:[#allocation18] sm:$0xff] %vm5625_vm7, %v5623_v37 }
 0xdc6   :  { %8259 = shalt.err (!%p8256_p12)
}
 0xdc7   :  { %s8260_s23 = scalar_lea.hbm %s8956_s10, 128 }
 0xdc8   :  { %p8261_p13 = scmp.ne.s32.totalorder %s8956_s10, %s8260_s23  ;;  %p8264_p0 = scmp.lt.u32.totalorder %s8260_s23, %s8956_s10 }
 0xdca   :  { %p8266_p1 = pnand %p8264_p0, %p8261_p13 }
 0xdcc   :  { %8269 = shalt.err (!%p8266_p1)
}
 0xdcd   :  { %5657 = dma.vmem_to_hbm [thread:$0]  %s5655_s6, 128, %s8956_s10, [#allocation19]  }
 0xdce   :  { %s8270_s5 = scalar_lea.vmem %s8912_s8, 256  ;;  %p8275_p3 = scmp.lt.s32.totalorder %s8912_s8, %s8912_s8 }
 0xdcf   :  { %p8271_p2 = scmp.ne.s32.totalorder %s8912_s8, %s8270_s5  ;;  %p8276_p4 = scmp.lt.s32.totalorder %s8270_s5, %s8270_s5 }
 0xdd1   :  { %p8277_p5 = por %p8276_p4, %p8275_p3 }
 0xdd3   :  { %p8278_p6 = pnand %p8277_p5, %p8271_p2 }
 0xdd5   :  { %8281 = shalt.err (!%p8278_p6)
}
 0xdd6   :  { %s8282_s22 = scalar_lea.hbm %s8957_s11, 256 }
 0xdd7   :  { %p8283_p7 = scmp.ne.s32.totalorder %s8957_s11, %s8282_s22  ;;  %p8286_p8 = scmp.lt.u32.totalorder %s8282_s22, %s8957_s11 }
 0xdd9   :  { %p8288_p9 = pnand %p8286_p8, %p8283_p7 }
 0xddb   :  { %8291 = shalt.err (!%p8288_p9)
}
 0xddc   :  { %5669 = dma.vmem_to_hbm [thread:$0]  %s8912_s8, 256, %s8957_s11, [#allocation19], %s8308_s15, %s8308_s15, %s8309_s16  }
 0xddd   :  { %8300 = dma.done.wait [#allocation8], 1024  }
 0xdde   :  { %8301 = vsyncadd [#allocation8], 4294966272 }
 0xddf   :  { %8302 = dma.done.wait [#allocation19], 384  }
 0xde0   :  { %8303 = vsyncadd [#allocation19], 4294966912 }
 0xde1   :  { %8304 = dma.done.wait [#allocation22], 256  }
 0xde2   :  { %8305 = vsyncadd [#allocation22], 4294967040 }
 0xde3   :  { %5694 = vsyncpa [#allocation7], 1 }
 0xde4   :  { %5695 = vsyncpa [#allocation10], 1 }
 0xde5   :  { %5696 = vsyncpa [#allocation13], 1 }
 0xde6   :  { %5697 = vsyncpa [#allocation16], 1 }
 0xde7   :  { %5698 = vsyncpa [#allocation8], 1 }
 0xde8   :  { %5699 = vsyncpa [#allocation19], 1 }
 0xde9   :  { %5700 = vsyncpa [#allocation22], 1 }

</bundles_post_ra>
